<compile_context>
chip_gen: v5e
topology: v5e:2x2
jax: 0.10.0
libtpu: 0.0.40
codegen_flags: <defaults>
</compile_context>

<pallas_src>
import functools

import jax
import jax.numpy as jnp
from jax import lax
from jax.experimental import pallas as pl
from jax.experimental.pallas import tpu as pltpu  # noqa: F401  (TPU backend)


def _lstm_kernel(x_ref, w0_ref, b0_ref, w1_ref, b1_ref, wfc_ref, bfc_ref,
                 out_ref, *, hidden, seq_len):
    H = hidden
    B = out_ref.shape[0]
    mm_dtype = w0_ref.dtype  # matmul operand dtype (f32 or bf16)

    # Hoisted out of the recurrence: weights loaded once, bias broadcast once
    # (JAX does not CSE broadcast_in_dim; inside the loop it would be re-emitted
    # T times per layer on the serial critical path).
    w0 = w0_ref[...]                                   # (I+H, 4H)
    w1 = w1_ref[...]                                   # (2H, 4H)
    b0 = jnp.broadcast_to(b0_ref[...], (B, 4 * H))     # (B, 4H) f32
    b1 = jnp.broadcast_to(b1_ref[...], (B, 4 * H))

    def cell(inp, c_prev, w, b):
        # Single fused gate matmul, f32 accumulation on the MXU.
        gates = jnp.dot(inp, w, preferred_element_type=jnp.float32) + b
        i = jax.nn.sigmoid(gates[:, 0 * H:1 * H])
        f = jax.nn.sigmoid(gates[:, 1 * H:2 * H])
        g = jnp.tanh(gates[:, 2 * H:3 * H])
        o = jax.nn.sigmoid(gates[:, 3 * H:4 * H])
        c_new = f * c_prev + i * g
        h_new = o * jnp.tanh(c_new)
        return h_new, c_new  # f32

    def step(t, carry):
        h0, c0, h1, c1 = carry
        x_t = x_ref[t]                                            # (B, I)
        in0 = jnp.concatenate([x_t, h0.astype(mm_dtype)], axis=-1)
        h0, c0 = cell(in0, c0, w0, b0)
        in1 = jnp.concatenate([h0.astype(mm_dtype), h1.astype(mm_dtype)],
                              axis=-1)
        h1, c1 = cell(in1, c1, w1, b1)
        return (h0, c0, h1, c1)

    z = jnp.zeros((B, H), jnp.float32)
    _, _, h1, _ = lax.fori_loop(0, seq_len, step, (z, z, z, z), unroll=True)

    # Classifier on the last timestep's top hidden state (lane-dense padded N).
    out_ref[...] = (jnp.dot(h1.astype(mm_dtype), wfc_ref[...],
                            preferred_element_type=jnp.float32)
                    + bfc_ref[...]).astype(out_ref.dtype)


def player_lstm_forward(x, params, *, matmul_dtype=jnp.float32):
    """x: (B, T, I) float32, batch_first like the PyTorch module.

    matmul_dtype=jnp.bfloat16 is recommended on v6e/v7x (cuts MXU passes and
    weight DMA); keep jnp.float32 on v5e / when exact f32 parity is required.
    """
    B, T, I = x.shape
    H = params["whh0"].shape[0]
    C = params["wfc"].shape[1]

    # Pad batch to the f32 sublane tile (8) and classifier output to a
    # lane-dense multiple of 128; both are sliced off after the kernel.
    BP = ((B + 7) // 8) * 8
    CP = ((C + 127) // 128) * 128

    x_tm = jnp.transpose(x, (1, 0, 2))                 # (T, B, I) time-major
    if BP != B:
        x_tm = jnp.pad(x_tm, ((0, 0), (0, BP - B), (0, 0)))
    x_tm = x_tm.astype(matmul_dtype)

    # Fused per-layer weights: [W_ih; W_hh] -> right-multiply form.
    w0 = jnp.concatenate([params["wih0"], params["whh0"]],
                         axis=0).astype(matmul_dtype)      # (I+H, 4H)
    w1 = jnp.concatenate([params["wih1"], params["whh1"]],
                         axis=0).astype(matmul_dtype)      # (2H, 4H)
    wfc = jnp.pad(params["wfc"], ((0, 0), (0, CP - C))).astype(matmul_dtype)
    bfc = jnp.pad(params["bfc"], ((0, 0), (0, CP - C)))

    out = pl.pallas_call(
        functools.partial(_lstm_kernel, hidden=H, seq_len=T),
        out_shape=jax.ShapeDtypeStruct((BP, CP), jnp.float32),
    )(x_tm, w0, params["b0"], w1, params["b1"], wfc, bfc)

    return out[:B, :C]


def player_lstm_reference(x, params):
    """Pure-JAX reference matching torch.nn.LSTM(batch_first=True) + Linear."""
    H = params["whh0"].shape[0]
    B = x.shape[0]

    def cell(x_in, h, c, wih, whh, b):
        gates = x_in @ wih + h @ whh + b
        i = jax.nn.sigmoid(gates[:, 0 * H:1 * H])
        f = jax.nn.sigmoid(gates[:, 1 * H:2 * H])
        g = jnp.tanh(gates[:, 2 * H:3 * H])
        o = jax.nn.sigmoid(gates[:, 3 * H:4 * H])
        c_new = f * c + i * g
        return o * jnp.tanh(c_new), c_new

    def step(carry, x_t):
        h0, c0, h1, c1 = carry
        h0, c0 = cell(x_t, h0, c0, params["wih0"], params["whh0"], params["b0"])
        h1, c1 = cell(h0, h1, c1, params["wih1"], params["whh1"], params["b1"])
        return (h0, c0, h1, c1), None

    zeros = jnp.zeros((B, H), jnp.float32)
    (h0, c0, h1, c1), _ = lax.scan(step, (zeros,) * 4,
                                   jnp.transpose(x, (1, 0, 2)))
    return h1 @ params["wfc"] + params["bfc"]


def init_params(key, input_size, hidden_size, num_classes):
    """Deterministic synthetic init (PyTorch-style uniform +/- 1/sqrt(H))."""
    ks = jax.random.split(key, 9)
    s = 1.0 / jnp.sqrt(hidden_size)
    u = lambda k, shape: jax.random.uniform(k, shape, jnp.float32, -s, s)
    return {
        # layer 0: weight_ih (4H, I) -> transposed (I, 4H); biases combined
        "wih0": u(ks[0], (input_size, 4 * hidden_size)),
        "whh0": u(ks[1], (hidden_size, 4 * hidden_size)),
        "b0":   u(ks[2], (1, 4 * hidden_size)) + u(ks[3], (1, 4 * hidden_size)),
        # layer 1: input is hidden of layer 0
        "wih1": u(ks[4], (hidden_size, 4 * hidden_size)),
        "whh1": u(ks[5], (hidden_size, 4 * hidden_size)),
        "b1":   u(ks[6], (1, 4 * hidden_size)) + u(ks[7], (1, 4 * hidden_size)),
        # fc: torch Linear(hidden, num_classes) weight (C, H) -> (H, C)
        "wfc":  u(ks[8], (hidden_size, num_classes)),
        "bfc":  jnp.zeros((1, num_classes), jnp.float32),
    }


if __name__ == "__main__":
    # Small shapes consistent with the module (input/hidden scaled down).
    B, T, I, H, C = 8, 8, 128, 128, 8

    key = jax.random.PRNGKey(0)
    kx, kp = jax.random.split(key)
    x = jax.random.normal(kx, (B, T, I), jnp.float32)
    params = init_params(kp, I, H, C)

    out = jax.block_until_ready(player_lstm_forward(x, params))
    ref = jax.block_until_ready(player_lstm_reference(x, params))

    assert out.shape == (B, C), out.shape
    assert jnp.allclose(out, ref, atol=1e-4, rtol=1e-4), (
        float(jnp.max(jnp.abs(out - ref))))
    print("KERNEL_OK")
</pallas_src>

<mosaic_0001>
module attributes {stable_mosaic.version = 11 : i64} {
  func.func @_lstm_kernel(%arg0: memref<8x8x128xf32, #tpu.memory_space<vmem>>, %arg1: memref<256x512xf32, #tpu.memory_space<vmem>>, %arg2: memref<1x512xf32, #tpu.memory_space<vmem>>, %arg3: memref<256x512xf32, #tpu.memory_space<vmem>>, %arg4: memref<1x512xf32, #tpu.memory_space<vmem>>, %arg5: memref<128x128xf32, #tpu.memory_space<vmem>>, %arg6: memref<1x128xf32, #tpu.memory_space<vmem>>, %arg7: memref<8x128xf32, #tpu.memory_space<vmem>>) attributes {dimension_semantics = [], scalar_prefetch = 0 : i64, scratch_operands = 0 : i64, tpu.core_type = #tpu.core_type<tc>} {
    %c0 = arith.constant 0 : index
    %c0_0 = arith.constant 0 : index
    %0 = vector.load %arg1[%c0, %c0_0] : memref<256x512xf32, #tpu.memory_space<vmem>>, vector<256x512xf32>
    %c0_1 = arith.constant 0 : index
    %c0_2 = arith.constant 0 : index
    %1 = vector.load %arg3[%c0_1, %c0_2] : memref<256x512xf32, #tpu.memory_space<vmem>>, vector<256x512xf32>
    %c0_3 = arith.constant 0 : index
    %c0_4 = arith.constant 0 : index
    %2 = vector.load %arg2[%c0_3, %c0_4] : memref<1x512xf32, #tpu.memory_space<vmem>>, vector<1x512xf32>
    %3 = vector.shape_cast %2 : vector<1x512xf32> to vector<1x512xf32>
    %4 = vector.broadcast %3 : vector<1x512xf32> to vector<8x512xf32>
    %c0_5 = arith.constant 0 : index
    %c0_6 = arith.constant 0 : index
    %5 = vector.load %arg4[%c0_5, %c0_6] : memref<1x512xf32, #tpu.memory_space<vmem>>, vector<1x512xf32>
    %6 = vector.shape_cast %5 : vector<1x512xf32> to vector<1x512xf32>
    %7 = vector.broadcast %6 : vector<1x512xf32> to vector<8x512xf32>
    %cst = arith.constant 0.000000e+00 : f32
    %8 = vector.broadcast %cst : f32 to vector<8x128xf32>
    %c0_i32 = arith.constant 0 : i32
    %9 = arith.index_cast %c0_i32 : i32 to index
    %c0_7 = arith.constant 0 : index
    %c0_8 = arith.constant 0 : index
    %10 = vector.load %arg0[%9, %c0_7, %c0_8] : memref<8x8x128xf32, #tpu.memory_space<vmem>>, vector<1x8x128xf32>
    %11 = vector.shape_cast %10 : vector<1x8x128xf32> to vector<8x128xf32>
    %12 = tpu.concatenate %11, %8 in 1 : vector<8x128xf32>, vector<8x128xf32> -> vector<8x256xf32>
    %cst_9 = arith.constant dense<0.000000e+00> : vector<8x512xf32>
    %13 = tpu.matmul %12, %0, %cst_9 {dimension_numbers = #tpu.dot_dimension_numbers<[1], [0], [0], [1], [0, 0, 1, 1], [], []>} : vector<8x256xf32>, vector<256x512xf32>, vector<8x512xf32> -> vector<8x512xf32>
    %14 = arith.addf %13, %4 : vector<8x512xf32>
    %15 = vector.extract_strided_slice %14 {offsets = [0, 0], sizes = [8, 128], strides = [1, 1]} : vector<8x512xf32> to vector<8x128xf32>
    %16 = arith.negf %15 : vector<8x128xf32>
    %17 = math.exp %16 : vector<8x128xf32>
    %cst_10 = arith.constant 1.000000e+00 : f32
    %18 = vector.broadcast %cst_10 : f32 to vector<8x128xf32>
    %19 = arith.addf %18, %17 : vector<8x128xf32>
    %20 = arith.divf %18, %19 : vector<8x128xf32>
    %21 = vector.extract_strided_slice %14 {offsets = [0, 128], sizes = [8, 128], strides = [1, 1]} : vector<8x512xf32> to vector<8x128xf32>
    %22 = arith.negf %21 : vector<8x128xf32>
    %23 = math.exp %22 : vector<8x128xf32>
    %cst_11 = arith.constant 1.000000e+00 : f32
    %24 = vector.broadcast %cst_11 : f32 to vector<8x128xf32>
    %25 = arith.addf %24, %23 : vector<8x128xf32>
    %26 = arith.divf %24, %25 : vector<8x128xf32>
    %27 = vector.extract_strided_slice %14 {offsets = [0, 256], sizes = [8, 128], strides = [1, 1]} : vector<8x512xf32> to vector<8x128xf32>
    %28 = math.tanh %27 : vector<8x128xf32>
    %29 = vector.extract_strided_slice %14 {offsets = [0, 384], sizes = [8, 128], strides = [1, 1]} : vector<8x512xf32> to vector<8x128xf32>
    %30 = arith.negf %29 : vector<8x128xf32>
    %31 = math.exp %30 : vector<8x128xf32>
    %cst_12 = arith.constant 1.000000e+00 : f32
    %32 = vector.broadcast %cst_12 : f32 to vector<8x128xf32>
    %33 = arith.addf %32, %31 : vector<8x128xf32>
    %34 = arith.divf %32, %33 : vector<8x128xf32>
    %35 = arith.mulf %26, %8 : vector<8x128xf32>
    %36 = arith.mulf %20, %28 : vector<8x128xf32>
    %37 = arith.addf %35, %36 : vector<8x128xf32>
    %38 = math.tanh %37 : vector<8x128xf32>
    %39 = arith.mulf %34, %38 : vector<8x128xf32>
    %40 = tpu.concatenate %39, %8 in 1 : vector<8x128xf32>, vector<8x128xf32> -> vector<8x256xf32>
    %cst_13 = arith.constant dense<0.000000e+00> : vector<8x512xf32>
    %41 = tpu.matmul %40, %1, %cst_13 {dimension_numbers = #tpu.dot_dimension_numbers<[1], [0], [0], [1], [0, 0, 1, 1], [], []>} : vector<8x256xf32>, vector<256x512xf32>, vector<8x512xf32> -> vector<8x512xf32>
    %42 = arith.addf %41, %7 : vector<8x512xf32>
    %43 = vector.extract_strided_slice %42 {offsets = [0, 0], sizes = [8, 128], strides = [1, 1]} : vector<8x512xf32> to vector<8x128xf32>
    %44 = arith.negf %43 : vector<8x128xf32>
    %45 = math.exp %44 : vector<8x128xf32>
    %cst_14 = arith.constant 1.000000e+00 : f32
    %46 = vector.broadcast %cst_14 : f32 to vector<8x128xf32>
    %47 = arith.addf %46, %45 : vector<8x128xf32>
    %48 = arith.divf %46, %47 : vector<8x128xf32>
    %49 = vector.extract_strided_slice %42 {offsets = [0, 128], sizes = [8, 128], strides = [1, 1]} : vector<8x512xf32> to vector<8x128xf32>
    %50 = arith.negf %49 : vector<8x128xf32>
    %51 = math.exp %50 : vector<8x128xf32>
    %cst_15 = arith.constant 1.000000e+00 : f32
    %52 = vector.broadcast %cst_15 : f32 to vector<8x128xf32>
    %53 = arith.addf %52, %51 : vector<8x128xf32>
    %54 = arith.divf %52, %53 : vector<8x128xf32>
    %55 = vector.extract_strided_slice %42 {offsets = [0, 256], sizes = [8, 128], strides = [1, 1]} : vector<8x512xf32> to vector<8x128xf32>
    %56 = math.tanh %55 : vector<8x128xf32>
    %57 = vector.extract_strided_slice %42 {offsets = [0, 384], sizes = [8, 128], strides = [1, 1]} : vector<8x512xf32> to vector<8x128xf32>
    %58 = arith.negf %57 : vector<8x128xf32>
    %59 = math.exp %58 : vector<8x128xf32>
    %cst_16 = arith.constant 1.000000e+00 : f32
    %60 = vector.broadcast %cst_16 : f32 to vector<8x128xf32>
    %61 = arith.addf %60, %59 : vector<8x128xf32>
    %62 = arith.divf %60, %61 : vector<8x128xf32>
    %63 = arith.mulf %54, %8 : vector<8x128xf32>
    %64 = arith.mulf %48, %56 : vector<8x128xf32>
    %65 = arith.addf %63, %64 : vector<8x128xf32>
    %66 = math.tanh %65 : vector<8x128xf32>
    %67 = arith.mulf %62, %66 : vector<8x128xf32>
    %c1_i32 = arith.constant 1 : i32
    %68 = arith.index_cast %c1_i32 : i32 to index
    %c0_17 = arith.constant 0 : index
    %c0_18 = arith.constant 0 : index
    %69 = vector.load %arg0[%68, %c0_17, %c0_18] : memref<8x8x128xf32, #tpu.memory_space<vmem>>, vector<1x8x128xf32>
    %70 = vector.shape_cast %69 : vector<1x8x128xf32> to vector<8x128xf32>
    %71 = tpu.concatenate %70, %39 in 1 : vector<8x128xf32>, vector<8x128xf32> -> vector<8x256xf32>
    %cst_19 = arith.constant dense<0.000000e+00> : vector<8x512xf32>
    %72 = tpu.matmul %71, %0, %cst_19 {dimension_numbers = #tpu.dot_dimension_numbers<[1], [0], [0], [1], [0, 0, 1, 1], [], []>} : vector<8x256xf32>, vector<256x512xf32>, vector<8x512xf32> -> vector<8x512xf32>
    %73 = arith.addf %72, %4 : vector<8x512xf32>
    %74 = vector.extract_strided_slice %73 {offsets = [0, 0], sizes = [8, 128], strides = [1, 1]} : vector<8x512xf32> to vector<8x128xf32>
    %75 = arith.negf %74 : vector<8x128xf32>
    %76 = math.exp %75 : vector<8x128xf32>
    %cst_20 = arith.constant 1.000000e+00 : f32
    %77 = vector.broadcast %cst_20 : f32 to vector<8x128xf32>
    %78 = arith.addf %77, %76 : vector<8x128xf32>
    %79 = arith.divf %77, %78 : vector<8x128xf32>
    %80 = vector.extract_strided_slice %73 {offsets = [0, 128], sizes = [8, 128], strides = [1, 1]} : vector<8x512xf32> to vector<8x128xf32>
    %81 = arith.negf %80 : vector<8x128xf32>
    %82 = math.exp %81 : vector<8x128xf32>
    %cst_21 = arith.constant 1.000000e+00 : f32
    %83 = vector.broadcast %cst_21 : f32 to vector<8x128xf32>
    %84 = arith.addf %83, %82 : vector<8x128xf32>
    %85 = arith.divf %83, %84 : vector<8x128xf32>
    %86 = vector.extract_strided_slice %73 {offsets = [0, 256], sizes = [8, 128], strides = [1, 1]} : vector<8x512xf32> to vector<8x128xf32>
    %87 = math.tanh %86 : vector<8x128xf32>
    %88 = vector.extract_strided_slice %73 {offsets = [0, 384], sizes = [8, 128], strides = [1, 1]} : vector<8x512xf32> to vector<8x128xf32>
    %89 = arith.negf %88 : vector<8x128xf32>
    %90 = math.exp %89 : vector<8x128xf32>
    %cst_22 = arith.constant 1.000000e+00 : f32
    %91 = vector.broadcast %cst_22 : f32 to vector<8x128xf32>
    %92 = arith.addf %91, %90 : vector<8x128xf32>
    %93 = arith.divf %91, %92 : vector<8x128xf32>
    %94 = arith.mulf %85, %37 : vector<8x128xf32>
    %95 = arith.mulf %79, %87 : vector<8x128xf32>
    %96 = arith.addf %94, %95 : vector<8x128xf32>
    %97 = math.tanh %96 : vector<8x128xf32>
    %98 = arith.mulf %93, %97 : vector<8x128xf32>
    %99 = tpu.concatenate %98, %67 in 1 : vector<8x128xf32>, vector<8x128xf32> -> vector<8x256xf32>
    %cst_23 = arith.constant dense<0.000000e+00> : vector<8x512xf32>
    %100 = tpu.matmul %99, %1, %cst_23 {dimension_numbers = #tpu.dot_dimension_numbers<[1], [0], [0], [1], [0, 0, 1, 1], [], []>} : vector<8x256xf32>, vector<256x512xf32>, vector<8x512xf32> -> vector<8x512xf32>
    %101 = arith.addf %100, %7 : vector<8x512xf32>
    %102 = vector.extract_strided_slice %101 {offsets = [0, 0], sizes = [8, 128], strides = [1, 1]} : vector<8x512xf32> to vector<8x128xf32>
    %103 = arith.negf %102 : vector<8x128xf32>
    %104 = math.exp %103 : vector<8x128xf32>
    %cst_24 = arith.constant 1.000000e+00 : f32
    %105 = vector.broadcast %cst_24 : f32 to vector<8x128xf32>
    %106 = arith.addf %105, %104 : vector<8x128xf32>
    %107 = arith.divf %105, %106 : vector<8x128xf32>
    %108 = vector.extract_strided_slice %101 {offsets = [0, 128], sizes = [8, 128], strides = [1, 1]} : vector<8x512xf32> to vector<8x128xf32>
    %109 = arith.negf %108 : vector<8x128xf32>
    %110 = math.exp %109 : vector<8x128xf32>
    %cst_25 = arith.constant 1.000000e+00 : f32
    %111 = vector.broadcast %cst_25 : f32 to vector<8x128xf32>
    %112 = arith.addf %111, %110 : vector<8x128xf32>
    %113 = arith.divf %111, %112 : vector<8x128xf32>
    %114 = vector.extract_strided_slice %101 {offsets = [0, 256], sizes = [8, 128], strides = [1, 1]} : vector<8x512xf32> to vector<8x128xf32>
    %115 = math.tanh %114 : vector<8x128xf32>
    %116 = vector.extract_strided_slice %101 {offsets = [0, 384], sizes = [8, 128], strides = [1, 1]} : vector<8x512xf32> to vector<8x128xf32>
    %117 = arith.negf %116 : vector<8x128xf32>
    %118 = math.exp %117 : vector<8x128xf32>
    %cst_26 = arith.constant 1.000000e+00 : f32
    %119 = vector.broadcast %cst_26 : f32 to vector<8x128xf32>
    %120 = arith.addf %119, %118 : vector<8x128xf32>
    %121 = arith.divf %119, %120 : vector<8x128xf32>
    %122 = arith.mulf %113, %65 : vector<8x128xf32>
    %123 = arith.mulf %107, %115 : vector<8x128xf32>
    %124 = arith.addf %122, %123 : vector<8x128xf32>
    %125 = math.tanh %124 : vector<8x128xf32>
    %126 = arith.mulf %121, %125 : vector<8x128xf32>
    %c2_i32 = arith.constant 2 : i32
    %127 = arith.index_cast %c2_i32 : i32 to index
    %c0_27 = arith.constant 0 : index
    %c0_28 = arith.constant 0 : index
    %128 = vector.load %arg0[%127, %c0_27, %c0_28] : memref<8x8x128xf32, #tpu.memory_space<vmem>>, vector<1x8x128xf32>
    %129 = vector.shape_cast %128 : vector<1x8x128xf32> to vector<8x128xf32>
    %130 = tpu.concatenate %129, %98 in 1 : vector<8x128xf32>, vector<8x128xf32> -> vector<8x256xf32>
    %cst_29 = arith.constant dense<0.000000e+00> : vector<8x512xf32>
    %131 = tpu.matmul %130, %0, %cst_29 {dimension_numbers = #tpu.dot_dimension_numbers<[1], [0], [0], [1], [0, 0, 1, 1], [], []>} : vector<8x256xf32>, vector<256x512xf32>, vector<8x512xf32> -> vector<8x512xf32>
    %132 = arith.addf %131, %4 : vector<8x512xf32>
    %133 = vector.extract_strided_slice %132 {offsets = [0, 0], sizes = [8, 128], strides = [1, 1]} : vector<8x512xf32> to vector<8x128xf32>
    %134 = arith.negf %133 : vector<8x128xf32>
    %135 = math.exp %134 : vector<8x128xf32>
    %cst_30 = arith.constant 1.000000e+00 : f32
    %136 = vector.broadcast %cst_30 : f32 to vector<8x128xf32>
    %137 = arith.addf %136, %135 : vector<8x128xf32>
    %138 = arith.divf %136, %137 : vector<8x128xf32>
    %139 = vector.extract_strided_slice %132 {offsets = [0, 128], sizes = [8, 128], strides = [1, 1]} : vector<8x512xf32> to vector<8x128xf32>
    %140 = arith.negf %139 : vector<8x128xf32>
    %141 = math.exp %140 : vector<8x128xf32>
    %cst_31 = arith.constant 1.000000e+00 : f32
    %142 = vector.broadcast %cst_31 : f32 to vector<8x128xf32>
    %143 = arith.addf %142, %141 : vector<8x128xf32>
    %144 = arith.divf %142, %143 : vector<8x128xf32>
    %145 = vector.extract_strided_slice %132 {offsets = [0, 256], sizes = [8, 128], strides = [1, 1]} : vector<8x512xf32> to vector<8x128xf32>
    %146 = math.tanh %145 : vector<8x128xf32>
    %147 = vector.extract_strided_slice %132 {offsets = [0, 384], sizes = [8, 128], strides = [1, 1]} : vector<8x512xf32> to vector<8x128xf32>
    %148 = arith.negf %147 : vector<8x128xf32>
    %149 = math.exp %148 : vector<8x128xf32>
    %cst_32 = arith.constant 1.000000e+00 : f32
    %150 = vector.broadcast %cst_32 : f32 to vector<8x128xf32>
    %151 = arith.addf %150, %149 : vector<8x128xf32>
    %152 = arith.divf %150, %151 : vector<8x128xf32>
    %153 = arith.mulf %144, %96 : vector<8x128xf32>
    %154 = arith.mulf %138, %146 : vector<8x128xf32>
    %155 = arith.addf %153, %154 : vector<8x128xf32>
    %156 = math.tanh %155 : vector<8x128xf32>
    %157 = arith.mulf %152, %156 : vector<8x128xf32>
    %158 = tpu.concatenate %157, %126 in 1 : vector<8x128xf32>, vector<8x128xf32> -> vector<8x256xf32>
    %cst_33 = arith.constant dense<0.000000e+00> : vector<8x512xf32>
    %159 = tpu.matmul %158, %1, %cst_33 {dimension_numbers = #tpu.dot_dimension_numbers<[1], [0], [0], [1], [0, 0, 1, 1], [], []>} : vector<8x256xf32>, vector<256x512xf32>, vector<8x512xf32> -> vector<8x512xf32>
    %160 = arith.addf %159, %7 : vector<8x512xf32>
    %161 = vector.extract_strided_slice %160 {offsets = [0, 0], sizes = [8, 128], strides = [1, 1]} : vector<8x512xf32> to vector<8x128xf32>
    %162 = arith.negf %161 : vector<8x128xf32>
    %163 = math.exp %162 : vector<8x128xf32>
    %cst_34 = arith.constant 1.000000e+00 : f32
    %164 = vector.broadcast %cst_34 : f32 to vector<8x128xf32>
    %165 = arith.addf %164, %163 : vector<8x128xf32>
    %166 = arith.divf %164, %165 : vector<8x128xf32>
    %167 = vector.extract_strided_slice %160 {offsets = [0, 128], sizes = [8, 128], strides = [1, 1]} : vector<8x512xf32> to vector<8x128xf32>
    %168 = arith.negf %167 : vector<8x128xf32>
    %169 = math.exp %168 : vector<8x128xf32>
    %cst_35 = arith.constant 1.000000e+00 : f32
    %170 = vector.broadcast %cst_35 : f32 to vector<8x128xf32>
    %171 = arith.addf %170, %169 : vector<8x128xf32>
    %172 = arith.divf %170, %171 : vector<8x128xf32>
    %173 = vector.extract_strided_slice %160 {offsets = [0, 256], sizes = [8, 128], strides = [1, 1]} : vector<8x512xf32> to vector<8x128xf32>
    %174 = math.tanh %173 : vector<8x128xf32>
    %175 = vector.extract_strided_slice %160 {offsets = [0, 384], sizes = [8, 128], strides = [1, 1]} : vector<8x512xf32> to vector<8x128xf32>
    %176 = arith.negf %175 : vector<8x128xf32>
    %177 = math.exp %176 : vector<8x128xf32>
    %cst_36 = arith.constant 1.000000e+00 : f32
    %178 = vector.broadcast %cst_36 : f32 to vector<8x128xf32>
    %179 = arith.addf %178, %177 : vector<8x128xf32>
    %180 = arith.divf %178, %179 : vector<8x128xf32>
    %181 = arith.mulf %172, %124 : vector<8x128xf32>
    %182 = arith.mulf %166, %174 : vector<8x128xf32>
    %183 = arith.addf %181, %182 : vector<8x128xf32>
    %184 = math.tanh %183 : vector<8x128xf32>
    %185 = arith.mulf %180, %184 : vector<8x128xf32>
    %c3_i32 = arith.constant 3 : i32
    %186 = arith.index_cast %c3_i32 : i32 to index
    %c0_37 = arith.constant 0 : index
    %c0_38 = arith.constant 0 : index
    %187 = vector.load %arg0[%186, %c0_37, %c0_38] : memref<8x8x128xf32, #tpu.memory_space<vmem>>, vector<1x8x128xf32>
    %188 = vector.shape_cast %187 : vector<1x8x128xf32> to vector<8x128xf32>
    %189 = tpu.concatenate %188, %157 in 1 : vector<8x128xf32>, vector<8x128xf32> -> vector<8x256xf32>
    %cst_39 = arith.constant dense<0.000000e+00> : vector<8x512xf32>
    %190 = tpu.matmul %189, %0, %cst_39 {dimension_numbers = #tpu.dot_dimension_numbers<[1], [0], [0], [1], [0, 0, 1, 1], [], []>} : vector<8x256xf32>, vector<256x512xf32>, vector<8x512xf32> -> vector<8x512xf32>
    %191 = arith.addf %190, %4 : vector<8x512xf32>
    %192 = vector.extract_strided_slice %191 {offsets = [0, 0], sizes = [8, 128], strides = [1, 1]} : vector<8x512xf32> to vector<8x128xf32>
    %193 = arith.negf %192 : vector<8x128xf32>
    %194 = math.exp %193 : vector<8x128xf32>
    %cst_40 = arith.constant 1.000000e+00 : f32
    %195 = vector.broadcast %cst_40 : f32 to vector<8x128xf32>
    %196 = arith.addf %195, %194 : vector<8x128xf32>
    %197 = arith.divf %195, %196 : vector<8x128xf32>
    %198 = vector.extract_strided_slice %191 {offsets = [0, 128], sizes = [8, 128], strides = [1, 1]} : vector<8x512xf32> to vector<8x128xf32>
    %199 = arith.negf %198 : vector<8x128xf32>
    %200 = math.exp %199 : vector<8x128xf32>
    %cst_41 = arith.constant 1.000000e+00 : f32
    %201 = vector.broadcast %cst_41 : f32 to vector<8x128xf32>
    %202 = arith.addf %201, %200 : vector<8x128xf32>
    %203 = arith.divf %201, %202 : vector<8x128xf32>
    %204 = vector.extract_strided_slice %191 {offsets = [0, 256], sizes = [8, 128], strides = [1, 1]} : vector<8x512xf32> to vector<8x128xf32>
    %205 = math.tanh %204 : vector<8x128xf32>
    %206 = vector.extract_strided_slice %191 {offsets = [0, 384], sizes = [8, 128], strides = [1, 1]} : vector<8x512xf32> to vector<8x128xf32>
    %207 = arith.negf %206 : vector<8x128xf32>
    %208 = math.exp %207 : vector<8x128xf32>
    %cst_42 = arith.constant 1.000000e+00 : f32
    %209 = vector.broadcast %cst_42 : f32 to vector<8x128xf32>
    %210 = arith.addf %209, %208 : vector<8x128xf32>
    %211 = arith.divf %209, %210 : vector<8x128xf32>
    %212 = arith.mulf %203, %155 : vector<8x128xf32>
    %213 = arith.mulf %197, %205 : vector<8x128xf32>
    %214 = arith.addf %212, %213 : vector<8x128xf32>
    %215 = math.tanh %214 : vector<8x128xf32>
    %216 = arith.mulf %211, %215 : vector<8x128xf32>
    %217 = tpu.concatenate %216, %185 in 1 : vector<8x128xf32>, vector<8x128xf32> -> vector<8x256xf32>
    %cst_43 = arith.constant dense<0.000000e+00> : vector<8x512xf32>
    %218 = tpu.matmul %217, %1, %cst_43 {dimension_numbers = #tpu.dot_dimension_numbers<[1], [0], [0], [1], [0, 0, 1, 1], [], []>} : vector<8x256xf32>, vector<256x512xf32>, vector<8x512xf32> -> vector<8x512xf32>
    %219 = arith.addf %218, %7 : vector<8x512xf32>
    %220 = vector.extract_strided_slice %219 {offsets = [0, 0], sizes = [8, 128], strides = [1, 1]} : vector<8x512xf32> to vector<8x128xf32>
    %221 = arith.negf %220 : vector<8x128xf32>
    %222 = math.exp %221 : vector<8x128xf32>
    %cst_44 = arith.constant 1.000000e+00 : f32
    %223 = vector.broadcast %cst_44 : f32 to vector<8x128xf32>
    %224 = arith.addf %223, %222 : vector<8x128xf32>
    %225 = arith.divf %223, %224 : vector<8x128xf32>
    %226 = vector.extract_strided_slice %219 {offsets = [0, 128], sizes = [8, 128], strides = [1, 1]} : vector<8x512xf32> to vector<8x128xf32>
    %227 = arith.negf %226 : vector<8x128xf32>
    %228 = math.exp %227 : vector<8x128xf32>
    %cst_45 = arith.constant 1.000000e+00 : f32
    %229 = vector.broadcast %cst_45 : f32 to vector<8x128xf32>
    %230 = arith.addf %229, %228 : vector<8x128xf32>
    %231 = arith.divf %229, %230 : vector<8x128xf32>
    %232 = vector.extract_strided_slice %219 {offsets = [0, 256], sizes = [8, 128], strides = [1, 1]} : vector<8x512xf32> to vector<8x128xf32>
    %233 = math.tanh %232 : vector<8x128xf32>
    %234 = vector.extract_strided_slice %219 {offsets = [0, 384], sizes = [8, 128], strides = [1, 1]} : vector<8x512xf32> to vector<8x128xf32>
    %235 = arith.negf %234 : vector<8x128xf32>
    %236 = math.exp %235 : vector<8x128xf32>
    %cst_46 = arith.constant 1.000000e+00 : f32
    %237 = vector.broadcast %cst_46 : f32 to vector<8x128xf32>
    %238 = arith.addf %237, %236 : vector<8x128xf32>
    %239 = arith.divf %237, %238 : vector<8x128xf32>
    %240 = arith.mulf %231, %183 : vector<8x128xf32>
    %241 = arith.mulf %225, %233 : vector<8x128xf32>
    %242 = arith.addf %240, %241 : vector<8x128xf32>
    %243 = math.tanh %242 : vector<8x128xf32>
    %244 = arith.mulf %239, %243 : vector<8x128xf32>
    %c4_i32 = arith.constant 4 : i32
    %245 = arith.index_cast %c4_i32 : i32 to index
    %c0_47 = arith.constant 0 : index
    %c0_48 = arith.constant 0 : index
    %246 = vector.load %arg0[%245, %c0_47, %c0_48] : memref<8x8x128xf32, #tpu.memory_space<vmem>>, vector<1x8x128xf32>
    %247 = vector.shape_cast %246 : vector<1x8x128xf32> to vector<8x128xf32>
    %248 = tpu.concatenate %247, %216 in 1 : vector<8x128xf32>, vector<8x128xf32> -> vector<8x256xf32>
    %cst_49 = arith.constant dense<0.000000e+00> : vector<8x512xf32>
    %249 = tpu.matmul %248, %0, %cst_49 {dimension_numbers = #tpu.dot_dimension_numbers<[1], [0], [0], [1], [0, 0, 1, 1], [], []>} : vector<8x256xf32>, vector<256x512xf32>, vector<8x512xf32> -> vector<8x512xf32>
    %250 = arith.addf %249, %4 : vector<8x512xf32>
    %251 = vector.extract_strided_slice %250 {offsets = [0, 0], sizes = [8, 128], strides = [1, 1]} : vector<8x512xf32> to vector<8x128xf32>
    %252 = arith.negf %251 : vector<8x128xf32>
    %253 = math.exp %252 : vector<8x128xf32>
    %cst_50 = arith.constant 1.000000e+00 : f32
    %254 = vector.broadcast %cst_50 : f32 to vector<8x128xf32>
    %255 = arith.addf %254, %253 : vector<8x128xf32>
    %256 = arith.divf %254, %255 : vector<8x128xf32>
    %257 = vector.extract_strided_slice %250 {offsets = [0, 128], sizes = [8, 128], strides = [1, 1]} : vector<8x512xf32> to vector<8x128xf32>
    %258 = arith.negf %257 : vector<8x128xf32>
    %259 = math.exp %258 : vector<8x128xf32>
    %cst_51 = arith.constant 1.000000e+00 : f32
    %260 = vector.broadcast %cst_51 : f32 to vector<8x128xf32>
    %261 = arith.addf %260, %259 : vector<8x128xf32>
    %262 = arith.divf %260, %261 : vector<8x128xf32>
    %263 = vector.extract_strided_slice %250 {offsets = [0, 256], sizes = [8, 128], strides = [1, 1]} : vector<8x512xf32> to vector<8x128xf32>
    %264 = math.tanh %263 : vector<8x128xf32>
    %265 = vector.extract_strided_slice %250 {offsets = [0, 384], sizes = [8, 128], strides = [1, 1]} : vector<8x512xf32> to vector<8x128xf32>
    %266 = arith.negf %265 : vector<8x128xf32>
    %267 = math.exp %266 : vector<8x128xf32>
    %cst_52 = arith.constant 1.000000e+00 : f32
    %268 = vector.broadcast %cst_52 : f32 to vector<8x128xf32>
    %269 = arith.addf %268, %267 : vector<8x128xf32>
    %270 = arith.divf %268, %269 : vector<8x128xf32>
    %271 = arith.mulf %262, %214 : vector<8x128xf32>
    %272 = arith.mulf %256, %264 : vector<8x128xf32>
    %273 = arith.addf %271, %272 : vector<8x128xf32>
    %274 = math.tanh %273 : vector<8x128xf32>
    %275 = arith.mulf %270, %274 : vector<8x128xf32>
    %276 = tpu.concatenate %275, %244 in 1 : vector<8x128xf32>, vector<8x128xf32> -> vector<8x256xf32>
    %cst_53 = arith.constant dense<0.000000e+00> : vector<8x512xf32>
    %277 = tpu.matmul %276, %1, %cst_53 {dimension_numbers = #tpu.dot_dimension_numbers<[1], [0], [0], [1], [0, 0, 1, 1], [], []>} : vector<8x256xf32>, vector<256x512xf32>, vector<8x512xf32> -> vector<8x512xf32>
    %278 = arith.addf %277, %7 : vector<8x512xf32>
    %279 = vector.extract_strided_slice %278 {offsets = [0, 0], sizes = [8, 128], strides = [1, 1]} : vector<8x512xf32> to vector<8x128xf32>
    %280 = arith.negf %279 : vector<8x128xf32>
    %281 = math.exp %280 : vector<8x128xf32>
    %cst_54 = arith.constant 1.000000e+00 : f32
    %282 = vector.broadcast %cst_54 : f32 to vector<8x128xf32>
    %283 = arith.addf %282, %281 : vector<8x128xf32>
    %284 = arith.divf %282, %283 : vector<8x128xf32>
    %285 = vector.extract_strided_slice %278 {offsets = [0, 128], sizes = [8, 128], strides = [1, 1]} : vector<8x512xf32> to vector<8x128xf32>
    %286 = arith.negf %285 : vector<8x128xf32>
    %287 = math.exp %286 : vector<8x128xf32>
    %cst_55 = arith.constant 1.000000e+00 : f32
    %288 = vector.broadcast %cst_55 : f32 to vector<8x128xf32>
    %289 = arith.addf %288, %287 : vector<8x128xf32>
    %290 = arith.divf %288, %289 : vector<8x128xf32>
    %291 = vector.extract_strided_slice %278 {offsets = [0, 256], sizes = [8, 128], strides = [1, 1]} : vector<8x512xf32> to vector<8x128xf32>
    %292 = math.tanh %291 : vector<8x128xf32>
    %293 = vector.extract_strided_slice %278 {offsets = [0, 384], sizes = [8, 128], strides = [1, 1]} : vector<8x512xf32> to vector<8x128xf32>
    %294 = arith.negf %293 : vector<8x128xf32>
    %295 = math.exp %294 : vector<8x128xf32>
    %cst_56 = arith.constant 1.000000e+00 : f32
    %296 = vector.broadcast %cst_56 : f32 to vector<8x128xf32>
    %297 = arith.addf %296, %295 : vector<8x128xf32>
    %298 = arith.divf %296, %297 : vector<8x128xf32>
    %299 = arith.mulf %290, %242 : vector<8x128xf32>
    %300 = arith.mulf %284, %292 : vector<8x128xf32>
    %301 = arith.addf %299, %300 : vector<8x128xf32>
    %302 = math.tanh %301 : vector<8x128xf32>
    %303 = arith.mulf %298, %302 : vector<8x128xf32>
    %c5_i32 = arith.constant 5 : i32
    %304 = arith.index_cast %c5_i32 : i32 to index
    %c0_57 = arith.constant 0 : index
    %c0_58 = arith.constant 0 : index
    %305 = vector.load %arg0[%304, %c0_57, %c0_58] : memref<8x8x128xf32, #tpu.memory_space<vmem>>, vector<1x8x128xf32>
    %306 = vector.shape_cast %305 : vector<1x8x128xf32> to vector<8x128xf32>
    %307 = tpu.concatenate %306, %275 in 1 : vector<8x128xf32>, vector<8x128xf32> -> vector<8x256xf32>
    %cst_59 = arith.constant dense<0.000000e+00> : vector<8x512xf32>
    %308 = tpu.matmul %307, %0, %cst_59 {dimension_numbers = #tpu.dot_dimension_numbers<[1], [0], [0], [1], [0, 0, 1, 1], [], []>} : vector<8x256xf32>, vector<256x512xf32>, vector<8x512xf32> -> vector<8x512xf32>
    %309 = arith.addf %308, %4 : vector<8x512xf32>
    %310 = vector.extract_strided_slice %309 {offsets = [0, 0], sizes = [8, 128], strides = [1, 1]} : vector<8x512xf32> to vector<8x128xf32>
    %311 = arith.negf %310 : vector<8x128xf32>
    %312 = math.exp %311 : vector<8x128xf32>
    %cst_60 = arith.constant 1.000000e+00 : f32
    %313 = vector.broadcast %cst_60 : f32 to vector<8x128xf32>
    %314 = arith.addf %313, %312 : vector<8x128xf32>
    %315 = arith.divf %313, %314 : vector<8x128xf32>
    %316 = vector.extract_strided_slice %309 {offsets = [0, 128], sizes = [8, 128], strides = [1, 1]} : vector<8x512xf32> to vector<8x128xf32>
    %317 = arith.negf %316 : vector<8x128xf32>
    %318 = math.exp %317 : vector<8x128xf32>
    %cst_61 = arith.constant 1.000000e+00 : f32
    %319 = vector.broadcast %cst_61 : f32 to vector<8x128xf32>
    %320 = arith.addf %319, %318 : vector<8x128xf32>
    %321 = arith.divf %319, %320 : vector<8x128xf32>
    %322 = vector.extract_strided_slice %309 {offsets = [0, 256], sizes = [8, 128], strides = [1, 1]} : vector<8x512xf32> to vector<8x128xf32>
    %323 = math.tanh %322 : vector<8x128xf32>
    %324 = vector.extract_strided_slice %309 {offsets = [0, 384], sizes = [8, 128], strides = [1, 1]} : vector<8x512xf32> to vector<8x128xf32>
    %325 = arith.negf %324 : vector<8x128xf32>
    %326 = math.exp %325 : vector<8x128xf32>
    %cst_62 = arith.constant 1.000000e+00 : f32
    %327 = vector.broadcast %cst_62 : f32 to vector<8x128xf32>
    %328 = arith.addf %327, %326 : vector<8x128xf32>
    %329 = arith.divf %327, %328 : vector<8x128xf32>
    %330 = arith.mulf %321, %273 : vector<8x128xf32>
    %331 = arith.mulf %315, %323 : vector<8x128xf32>
    %332 = arith.addf %330, %331 : vector<8x128xf32>
    %333 = math.tanh %332 : vector<8x128xf32>
    %334 = arith.mulf %329, %333 : vector<8x128xf32>
    %335 = tpu.concatenate %334, %303 in 1 : vector<8x128xf32>, vector<8x128xf32> -> vector<8x256xf32>
    %cst_63 = arith.constant dense<0.000000e+00> : vector<8x512xf32>
    %336 = tpu.matmul %335, %1, %cst_63 {dimension_numbers = #tpu.dot_dimension_numbers<[1], [0], [0], [1], [0, 0, 1, 1], [], []>} : vector<8x256xf32>, vector<256x512xf32>, vector<8x512xf32> -> vector<8x512xf32>
    %337 = arith.addf %336, %7 : vector<8x512xf32>
    %338 = vector.extract_strided_slice %337 {offsets = [0, 0], sizes = [8, 128], strides = [1, 1]} : vector<8x512xf32> to vector<8x128xf32>
    %339 = arith.negf %338 : vector<8x128xf32>
    %340 = math.exp %339 : vector<8x128xf32>
    %cst_64 = arith.constant 1.000000e+00 : f32
    %341 = vector.broadcast %cst_64 : f32 to vector<8x128xf32>
    %342 = arith.addf %341, %340 : vector<8x128xf32>
    %343 = arith.divf %341, %342 : vector<8x128xf32>
    %344 = vector.extract_strided_slice %337 {offsets = [0, 128], sizes = [8, 128], strides = [1, 1]} : vector<8x512xf32> to vector<8x128xf32>
    %345 = arith.negf %344 : vector<8x128xf32>
    %346 = math.exp %345 : vector<8x128xf32>
    %cst_65 = arith.constant 1.000000e+00 : f32
    %347 = vector.broadcast %cst_65 : f32 to vector<8x128xf32>
    %348 = arith.addf %347, %346 : vector<8x128xf32>
    %349 = arith.divf %347, %348 : vector<8x128xf32>
    %350 = vector.extract_strided_slice %337 {offsets = [0, 256], sizes = [8, 128], strides = [1, 1]} : vector<8x512xf32> to vector<8x128xf32>
    %351 = math.tanh %350 : vector<8x128xf32>
    %352 = vector.extract_strided_slice %337 {offsets = [0, 384], sizes = [8, 128], strides = [1, 1]} : vector<8x512xf32> to vector<8x128xf32>
    %353 = arith.negf %352 : vector<8x128xf32>
    %354 = math.exp %353 : vector<8x128xf32>
    %cst_66 = arith.constant 1.000000e+00 : f32
    %355 = vector.broadcast %cst_66 : f32 to vector<8x128xf32>
    %356 = arith.addf %355, %354 : vector<8x128xf32>
    %357 = arith.divf %355, %356 : vector<8x128xf32>
    %358 = arith.mulf %349, %301 : vector<8x128xf32>
    %359 = arith.mulf %343, %351 : vector<8x128xf32>
    %360 = arith.addf %358, %359 : vector<8x128xf32>
    %361 = math.tanh %360 : vector<8x128xf32>
    %362 = arith.mulf %357, %361 : vector<8x128xf32>
    %c6_i32 = arith.constant 6 : i32
    %363 = arith.index_cast %c6_i32 : i32 to index
    %c0_67 = arith.constant 0 : index
    %c0_68 = arith.constant 0 : index
    %364 = vector.load %arg0[%363, %c0_67, %c0_68] : memref<8x8x128xf32, #tpu.memory_space<vmem>>, vector<1x8x128xf32>
    %365 = vector.shape_cast %364 : vector<1x8x128xf32> to vector<8x128xf32>
    %366 = tpu.concatenate %365, %334 in 1 : vector<8x128xf32>, vector<8x128xf32> -> vector<8x256xf32>
    %cst_69 = arith.constant dense<0.000000e+00> : vector<8x512xf32>
    %367 = tpu.matmul %366, %0, %cst_69 {dimension_numbers = #tpu.dot_dimension_numbers<[1], [0], [0], [1], [0, 0, 1, 1], [], []>} : vector<8x256xf32>, vector<256x512xf32>, vector<8x512xf32> -> vector<8x512xf32>
    %368 = arith.addf %367, %4 : vector<8x512xf32>
    %369 = vector.extract_strided_slice %368 {offsets = [0, 0], sizes = [8, 128], strides = [1, 1]} : vector<8x512xf32> to vector<8x128xf32>
    %370 = arith.negf %369 : vector<8x128xf32>
    %371 = math.exp %370 : vector<8x128xf32>
    %cst_70 = arith.constant 1.000000e+00 : f32
    %372 = vector.broadcast %cst_70 : f32 to vector<8x128xf32>
    %373 = arith.addf %372, %371 : vector<8x128xf32>
    %374 = arith.divf %372, %373 : vector<8x128xf32>
    %375 = vector.extract_strided_slice %368 {offsets = [0, 128], sizes = [8, 128], strides = [1, 1]} : vector<8x512xf32> to vector<8x128xf32>
    %376 = arith.negf %375 : vector<8x128xf32>
    %377 = math.exp %376 : vector<8x128xf32>
    %cst_71 = arith.constant 1.000000e+00 : f32
    %378 = vector.broadcast %cst_71 : f32 to vector<8x128xf32>
    %379 = arith.addf %378, %377 : vector<8x128xf32>
    %380 = arith.divf %378, %379 : vector<8x128xf32>
    %381 = vector.extract_strided_slice %368 {offsets = [0, 256], sizes = [8, 128], strides = [1, 1]} : vector<8x512xf32> to vector<8x128xf32>
    %382 = math.tanh %381 : vector<8x128xf32>
    %383 = vector.extract_strided_slice %368 {offsets = [0, 384], sizes = [8, 128], strides = [1, 1]} : vector<8x512xf32> to vector<8x128xf32>
    %384 = arith.negf %383 : vector<8x128xf32>
    %385 = math.exp %384 : vector<8x128xf32>
    %cst_72 = arith.constant 1.000000e+00 : f32
    %386 = vector.broadcast %cst_72 : f32 to vector<8x128xf32>
    %387 = arith.addf %386, %385 : vector<8x128xf32>
    %388 = arith.divf %386, %387 : vector<8x128xf32>
    %389 = arith.mulf %380, %332 : vector<8x128xf32>
    %390 = arith.mulf %374, %382 : vector<8x128xf32>
    %391 = arith.addf %389, %390 : vector<8x128xf32>
    %392 = math.tanh %391 : vector<8x128xf32>
    %393 = arith.mulf %388, %392 : vector<8x128xf32>
    %394 = tpu.concatenate %393, %362 in 1 : vector<8x128xf32>, vector<8x128xf32> -> vector<8x256xf32>
    %cst_73 = arith.constant dense<0.000000e+00> : vector<8x512xf32>
    %395 = tpu.matmul %394, %1, %cst_73 {dimension_numbers = #tpu.dot_dimension_numbers<[1], [0], [0], [1], [0, 0, 1, 1], [], []>} : vector<8x256xf32>, vector<256x512xf32>, vector<8x512xf32> -> vector<8x512xf32>
    %396 = arith.addf %395, %7 : vector<8x512xf32>
    %397 = vector.extract_strided_slice %396 {offsets = [0, 0], sizes = [8, 128], strides = [1, 1]} : vector<8x512xf32> to vector<8x128xf32>
    %398 = arith.negf %397 : vector<8x128xf32>
    %399 = math.exp %398 : vector<8x128xf32>
    %cst_74 = arith.constant 1.000000e+00 : f32
    %400 = vector.broadcast %cst_74 : f32 to vector<8x128xf32>
    %401 = arith.addf %400, %399 : vector<8x128xf32>
    %402 = arith.divf %400, %401 : vector<8x128xf32>
    %403 = vector.extract_strided_slice %396 {offsets = [0, 128], sizes = [8, 128], strides = [1, 1]} : vector<8x512xf32> to vector<8x128xf32>
    %404 = arith.negf %403 : vector<8x128xf32>
    %405 = math.exp %404 : vector<8x128xf32>
    %cst_75 = arith.constant 1.000000e+00 : f32
    %406 = vector.broadcast %cst_75 : f32 to vector<8x128xf32>
    %407 = arith.addf %406, %405 : vector<8x128xf32>
    %408 = arith.divf %406, %407 : vector<8x128xf32>
    %409 = vector.extract_strided_slice %396 {offsets = [0, 256], sizes = [8, 128], strides = [1, 1]} : vector<8x512xf32> to vector<8x128xf32>
    %410 = math.tanh %409 : vector<8x128xf32>
    %411 = vector.extract_strided_slice %396 {offsets = [0, 384], sizes = [8, 128], strides = [1, 1]} : vector<8x512xf32> to vector<8x128xf32>
    %412 = arith.negf %411 : vector<8x128xf32>
    %413 = math.exp %412 : vector<8x128xf32>
    %cst_76 = arith.constant 1.000000e+00 : f32
    %414 = vector.broadcast %cst_76 : f32 to vector<8x128xf32>
    %415 = arith.addf %414, %413 : vector<8x128xf32>
    %416 = arith.divf %414, %415 : vector<8x128xf32>
    %417 = arith.mulf %408, %360 : vector<8x128xf32>
    %418 = arith.mulf %402, %410 : vector<8x128xf32>
    %419 = arith.addf %417, %418 : vector<8x128xf32>
    %420 = math.tanh %419 : vector<8x128xf32>
    %421 = arith.mulf %416, %420 : vector<8x128xf32>
    %c7_i32 = arith.constant 7 : i32
    %422 = arith.index_cast %c7_i32 : i32 to index
    %c0_77 = arith.constant 0 : index
    %c0_78 = arith.constant 0 : index
    %423 = vector.load %arg0[%422, %c0_77, %c0_78] : memref<8x8x128xf32, #tpu.memory_space<vmem>>, vector<1x8x128xf32>
    %424 = vector.shape_cast %423 : vector<1x8x128xf32> to vector<8x128xf32>
    %425 = tpu.concatenate %424, %393 in 1 : vector<8x128xf32>, vector<8x128xf32> -> vector<8x256xf32>
    %cst_79 = arith.constant dense<0.000000e+00> : vector<8x512xf32>
    %426 = tpu.matmul %425, %0, %cst_79 {dimension_numbers = #tpu.dot_dimension_numbers<[1], [0], [0], [1], [0, 0, 1, 1], [], []>} : vector<8x256xf32>, vector<256x512xf32>, vector<8x512xf32> -> vector<8x512xf32>
    %427 = arith.addf %426, %4 : vector<8x512xf32>
    %428 = vector.extract_strided_slice %427 {offsets = [0, 0], sizes = [8, 128], strides = [1, 1]} : vector<8x512xf32> to vector<8x128xf32>
    %429 = arith.negf %428 : vector<8x128xf32>
    %430 = math.exp %429 : vector<8x128xf32>
    %cst_80 = arith.constant 1.000000e+00 : f32
    %431 = vector.broadcast %cst_80 : f32 to vector<8x128xf32>
    %432 = arith.addf %431, %430 : vector<8x128xf32>
    %433 = arith.divf %431, %432 : vector<8x128xf32>
    %434 = vector.extract_strided_slice %427 {offsets = [0, 128], sizes = [8, 128], strides = [1, 1]} : vector<8x512xf32> to vector<8x128xf32>
    %435 = arith.negf %434 : vector<8x128xf32>
    %436 = math.exp %435 : vector<8x128xf32>
    %cst_81 = arith.constant 1.000000e+00 : f32
    %437 = vector.broadcast %cst_81 : f32 to vector<8x128xf32>
    %438 = arith.addf %437, %436 : vector<8x128xf32>
    %439 = arith.divf %437, %438 : vector<8x128xf32>
    %440 = vector.extract_strided_slice %427 {offsets = [0, 256], sizes = [8, 128], strides = [1, 1]} : vector<8x512xf32> to vector<8x128xf32>
    %441 = math.tanh %440 : vector<8x128xf32>
    %442 = vector.extract_strided_slice %427 {offsets = [0, 384], sizes = [8, 128], strides = [1, 1]} : vector<8x512xf32> to vector<8x128xf32>
    %443 = arith.negf %442 : vector<8x128xf32>
    %444 = math.exp %443 : vector<8x128xf32>
    %cst_82 = arith.constant 1.000000e+00 : f32
    %445 = vector.broadcast %cst_82 : f32 to vector<8x128xf32>
    %446 = arith.addf %445, %444 : vector<8x128xf32>
    %447 = arith.divf %445, %446 : vector<8x128xf32>
    %448 = arith.mulf %439, %391 : vector<8x128xf32>
    %449 = arith.mulf %433, %441 : vector<8x128xf32>
    %450 = arith.addf %448, %449 : vector<8x128xf32>
    %451 = math.tanh %450 : vector<8x128xf32>
    %452 = arith.mulf %447, %451 : vector<8x128xf32>
    %453 = tpu.concatenate %452, %421 in 1 : vector<8x128xf32>, vector<8x128xf32> -> vector<8x256xf32>
    %cst_83 = arith.constant dense<0.000000e+00> : vector<8x512xf32>
    %454 = tpu.matmul %453, %1, %cst_83 {dimension_numbers = #tpu.dot_dimension_numbers<[1], [0], [0], [1], [0, 0, 1, 1], [], []>} : vector<8x256xf32>, vector<256x512xf32>, vector<8x512xf32> -> vector<8x512xf32>
    %455 = arith.addf %454, %7 : vector<8x512xf32>
    %456 = vector.extract_strided_slice %455 {offsets = [0, 0], sizes = [8, 128], strides = [1, 1]} : vector<8x512xf32> to vector<8x128xf32>
    %457 = arith.negf %456 : vector<8x128xf32>
    %458 = math.exp %457 : vector<8x128xf32>
    %cst_84 = arith.constant 1.000000e+00 : f32
    %459 = vector.broadcast %cst_84 : f32 to vector<8x128xf32>
    %460 = arith.addf %459, %458 : vector<8x128xf32>
    %461 = arith.divf %459, %460 : vector<8x128xf32>
    %462 = vector.extract_strided_slice %455 {offsets = [0, 128], sizes = [8, 128], strides = [1, 1]} : vector<8x512xf32> to vector<8x128xf32>
    %463 = arith.negf %462 : vector<8x128xf32>
    %464 = math.exp %463 : vector<8x128xf32>
    %cst_85 = arith.constant 1.000000e+00 : f32
    %465 = vector.broadcast %cst_85 : f32 to vector<8x128xf32>
    %466 = arith.addf %465, %464 : vector<8x128xf32>
    %467 = arith.divf %465, %466 : vector<8x128xf32>
    %468 = vector.extract_strided_slice %455 {offsets = [0, 256], sizes = [8, 128], strides = [1, 1]} : vector<8x512xf32> to vector<8x128xf32>
    %469 = math.tanh %468 : vector<8x128xf32>
    %470 = vector.extract_strided_slice %455 {offsets = [0, 384], sizes = [8, 128], strides = [1, 1]} : vector<8x512xf32> to vector<8x128xf32>
    %471 = arith.negf %470 : vector<8x128xf32>
    %472 = math.exp %471 : vector<8x128xf32>
    %cst_86 = arith.constant 1.000000e+00 : f32
    %473 = vector.broadcast %cst_86 : f32 to vector<8x128xf32>
    %474 = arith.addf %473, %472 : vector<8x128xf32>
    %475 = arith.divf %473, %474 : vector<8x128xf32>
    %476 = arith.mulf %467, %419 : vector<8x128xf32>
    %477 = arith.mulf %461, %469 : vector<8x128xf32>
    %478 = arith.addf %476, %477 : vector<8x128xf32>
    %479 = math.tanh %478 : vector<8x128xf32>
    %480 = arith.mulf %475, %479 : vector<8x128xf32>
    %c8_i32 = arith.constant 8 : i32
    %c0_87 = arith.constant 0 : index
    %c0_88 = arith.constant 0 : index
    %481 = vector.load %arg5[%c0_87, %c0_88] : memref<128x128xf32, #tpu.memory_space<vmem>>, vector<128x128xf32>
    %cst_89 = arith.constant dense<0.000000e+00> : vector<8x128xf32>
    %482 = tpu.matmul %480, %481, %cst_89 {dimension_numbers = #tpu.dot_dimension_numbers<[1], [0], [0], [1], [0, 0, 1, 1], [], []>} : vector<8x128xf32>, vector<128x128xf32>, vector<8x128xf32> -> vector<8x128xf32>
    %c0_90 = arith.constant 0 : index
    %c0_91 = arith.constant 0 : index
    %483 = vector.load %arg6[%c0_90, %c0_91] : memref<1x128xf32, #tpu.memory_space<vmem>>, vector<1x128xf32>
    %484 = vector.broadcast %483 : vector<1x128xf32> to vector<8x128xf32>
    %485 = arith.addf %482, %484 : vector<8x128xf32>
    %c0_92 = arith.constant 0 : index
    %c0_93 = arith.constant 0 : index
    %486 = vector.load %arg7[%c0_92, %c0_93] : memref<8x128xf32, #tpu.memory_space<vmem>>, vector<8x128xf32>
    tpu.vector_store %arg7[%c0_92, %c0_93], %485 {strides = array<i32>} : memref<8x128xf32, #tpu.memory_space<vmem>>, vector<8x128xf32>,
    return
  }
}

</mosaic_0001>

<bundles_post_ra>
// kernel: tpu_custom_call.1
= control target key start
LH: loop header
LB: loop body
LE: loop exit
PB: predicated region body
PF: predicated region fallthrough
CT: control target
= control target key end

     0   :  { %12 = vsyncpa [#allocation3], 0  ;;  %s9772_s0 = inlined_call_operand.hbm [shape: f32[8,8,128], index: 0, kind: input, shape index: {}]   ;;  %s9773_s1 = inlined_call_operand.hbm [shape: f32[256,512], index: 1, kind: input, shape index: {}]   ;;  %s9774_s2 = inlined_call_operand.hbm [shape: f32[1,512], index: 2, kind: input, shape index: {}]   ;;  %s9775_s3 = inlined_call_operand.hbm [shape: f32[256,512], index: 3, kind: input, shape index: {}]   ;;  %s9776_s4 = inlined_call_operand.hbm [shape: f32[1,512], index: 4, kind: input, shape index: {}]   ;;  %s9777_s5 = inlined_call_operand.hbm [shape: f32[128,128], index: 5, kind: input, shape index: {}]   ;;  %s9778_s6 = inlined_call_operand.vmem [shape: f32[1,128], index: 6, kind: input, shape index: {}]   ;;  %s9779_s7 = inlined_call_operand.hbm [shape: f32[8,128], index: 7, kind: output, shape index: {}]  }
   0x1   :  { %13 = vsyncpa [#allocation6], 0 }
   0x2   :  { %14 = vsyncpa [#allocation9], 0 }
   0x3   :  { %15 = vsyncpa [#allocation12], 0  ;;  %s34_s26 = sshll.u32 %s9773_s1, 4  ;;  %s35_s26 = int_to_ptr.hbm [resolvable:$true] %s34_s26 }
   0x4   :  { %16 = vsyncpa [#allocation4], 0  ;;  %s5364_s27 = smov [#allocation5]   ;;  %s58_s8 = sshll.u32 %s9775_s3, 4  ;;  %s59_s8 = int_to_ptr.hbm [resolvable:$true] %s58_s8 }
   0x5   :  { %s36_s28 = sshll.u32 %s5364_s27, 4  ;;  %s5365_s9 = smov 512   ;;  %s37_s28 = int_to_ptr.vmem [resolvable:$true] %s36_s28 }
   0x6   :  { %s5366_s10 = smov 32   ;;  %s5367_s11 = smov [#allocation8]  }
   0x7   :  { %42 = dma.hbm_to_vmem [thread:$0]  %s35_s26, 16384, %s37_s28, [#allocation6], %s5365_s9, %s5365_s9, %s5366_s10  }
   0x8   :  { %s60_s12 = sshll.u32 %s5367_s11, 4  ;;  %s21_s15 = sshll.u32 %s9772_s0, 4  ;;  %s61_s12 = int_to_ptr.vmem [resolvable:$true] %s60_s12  ;;  %s22_s15 = int_to_ptr.hbm [resolvable:$true] %s21_s15 }
   0x9   :  { %66 = dma.hbm_to_vmem [thread:$0]  %s59_s8, 16384, %s61_s12, [#allocation9], %s5365_s9, %s5365_s9, %s5366_s10  }
   0xa   :  { %s5368_s1 = smov [#allocation2]   ;;  %s48_s3 = sshll.u32 %s9774_s2, 4  ;;  %s49_s3 = int_to_ptr.hbm [resolvable:$true] %s48_s3 }
   0xb   :  { %s23_s16 = sshll.u32 %s5368_s1, 4  ;;  %s5369_s19 = smov 128   ;;  %s24_s16 = int_to_ptr.vmem [resolvable:$true] %s23_s16 }
   0xc   :  { %s5370_s20 = smov 8   ;;  %s5371_s21 = smov [#allocation7]  }
   0xd   :  { %29 = dma.hbm_to_vmem [thread:$0]  %s22_s15, 1024, %s24_s16, [#allocation3], %s5369_s19, %s5369_s19, %s5370_s20  }
   0xe   :  { %s50_s22 = sshll.u32 %s5371_s21, 4  ;;  %s72_s0 = sshll.u32 %s9776_s4, 4  ;;  %s51_s22 = int_to_ptr.vmem [resolvable:$true] %s50_s22  ;;  %s73_s0 = int_to_ptr.hbm [resolvable:$true] %s72_s0 }
   0xf   :  { %53 = dma.hbm_to_vmem [thread:$0]  %s49_s3, 64, %s51_s22, [#allocation6]  }
  0x10   :  { %s82_s27 = sshll.u32 %s9777_s5, 4  ;;  %s5372_s28 = smov [#allocation10]   ;;  %s83_s27 = int_to_ptr.hbm [resolvable:$true] %s82_s27 }
  0x11   :  { %s74_s29 = sshll.u32 %s5372_s28, 4  ;;  %s5373_s2 = smov [#allocation11]   ;;  %s75_s29 = int_to_ptr.vmem [resolvable:$true] %s74_s29 }
  0x12   :  { %77 = dma.hbm_to_vmem [thread:$0]  %s73_s0, 64, %s75_s29, [#allocation9]  }
  0x13   :  { %s84_s30 = sshll.u32 %s5373_s2, 4  ;;  %s85_s30 = int_to_ptr.vmem [resolvable:$true] %s84_s30 }
  0x14   :  { %90 = dma.hbm_to_vmem [thread:$0]  %s83_s27, 2048, %s85_s30, [#allocation12], %s5369_s19, %s5369_s19, %s5370_s20  }
  0x15   :  { %5354 = dma.done.wait [#allocation3], 1024  }
  0x16   :  { %5355 = vsyncadd [#allocation3], 4294966272 }
  0x17   :  { %5356 = dma.done.wait [#allocation6], 16448  }
  0x18   :  { %5357 = vsyncadd [#allocation6], 4294950848 }
  0x19   :  { %5358 = dma.done.wait [#allocation9], 16448  }
  0x1a   :  { %5359 = vsyncadd [#allocation9], 4294950848 }
  0x1b   :  { %5360 = dma.done.wait [#allocation12], 2048  }
  0x1c   :  { %5361 = vsyncadd [#allocation12], 4294965248  ;;  %v178_v0 = vld [vmem:[#allocation5 + $0x1e8] sm:$0xff]  ;;  %v177_v3 = vld [vmem:[#allocation5 + $0x1e0] sm:$0xff]  ;;  %s5375_s8 = smov [#allocation13]   ;;  %s4024_s12 = sshll.u32 %s9779_s7, 4  ;;  %s4025_s12 = int_to_ptr.hbm [resolvable:$true] %s4024_s12 }
  0x1d   :  { %v174_v1 = vld [vmem:[#allocation5 + $0x1c8] sm:$0xff]  ;;  %434 = vmatpush.msra.mxu2 %v178_v0  ;;  %394 = vmatpush.msra.mxu0 %v177_v3  ;;  %v173_v6 = vld [vmem:[#allocation5 + $0x1c0] sm:$0xff]  ;;  %v180_v61 = vld [vmem:[#allocation5 + $0x1f8] sm:$0xff]  ;;  %s4022_s9 = sshll.u32 %s5375_s8, 4  ;;  %s4023_s9 = int_to_ptr.vmem [resolvable:$true] %s4022_s9 }
  0x1e   :  { %v5434_v2 = vld [vmem:[#allocation5 + $0x3e8] sm:$0xff]  ;;  %v5439_v7 = vld [vmem:[#allocation5 + $0x3e0] sm:$0xff]  ;;  %v5525_v0 = vld [vmem:[#allocation5 + $0x3f8] sm:$0xff] }
  0x1f   :  { %454 = vmatpush.msra.mxu3 %v5434_v2  ;;  %v5437_v4 = vld [vmem:[#allocation5 + $0x3c8] sm:$0xff]  ;;  %435 = vmatpush.msra.mxu2 %v174_v1  ;;  %v169_v9 = vld [vmem:[#allocation5 + $0x1a0] sm:$0xff]  ;;  %v176_v1 = vld [vmem:[#allocation5 + $0x1d8] sm:$0xff] }
  0x20   :  { %v170_v5 = vld [vmem:[#allocation5 + $0x1a8] sm:$0xff]  ;;  %v5444_v10 = vld [vmem:[#allocation5 + $0x3c0] sm:$0xff]  ;;  %395 = vmatpush.msra.mxu0 %v173_v6  ;;  %414 = vmatpush.msra.mxu1 %v5439_v7  ;;  %v179_v3 = vld [vmem:[#allocation5 + $0x1f0] sm:$0xff] }
  0x21   :  { %455 = vmatpush.msra.mxu3 %v5437_v4  ;;  %v5442_v8 = vld [vmem:[#allocation5 + $0x3a8] sm:$0xff]  ;;  %436 = vmatpush.msra.mxu2 %v170_v5  ;;  %v165_v13 = vld [vmem:[#allocation5 + $0x180] sm:$0xff]  ;;  %v5530_v6 = vld [vmem:[#allocation5 + $0x3d8] sm:$0xff] }
  0x22   :  { %v166_v11 = vld [vmem:[#allocation5 + $0x188] sm:$0xff]  ;;  %v5450_v14 = vld [vmem:[#allocation5 + $0x3a0] sm:$0xff]  ;;  %396 = vmatpush.msra.mxu0 %v169_v9  ;;  %415 = vmatpush.msra.mxu1 %v5444_v10  ;;  %v172_v9 = vld [vmem:[#allocation5 + $0x1b8] sm:$0xff] }
  0x23   :  { %v5447_v12 = vld [vmem:[#allocation5 + $0x388] sm:$0xff]  ;;  %456 = vmatpush.msra.mxu3 %v5442_v8  ;;  %437 = vmatpush.msra.mxu2 %v166_v11  ;;  %v161_v17 = vld [vmem:[#allocation5 + $0x160] sm:$0xff]  ;;  %v175_v11 = vld [vmem:[#allocation5 + $0x1d0] sm:$0xff] }
  0x24   :  { %v162_v15 = vld [vmem:[#allocation5 + $0x168] sm:$0xff]  ;;  %v5456_v18 = vld [vmem:[#allocation5 + $0x380] sm:$0xff]  ;;  %397 = vmatpush.msra.mxu0 %v165_v13  ;;  %416 = vmatpush.msra.mxu1 %v5450_v14  ;;  %v5534_v13 = vld [vmem:[#allocation5 + $0x3f0] sm:$0xff] }
  0x25   :  { %v5453_v16 = vld [vmem:[#allocation5 + $0x368] sm:$0xff]  ;;  %457 = vmatpush.msra.mxu3 %v5447_v12  ;;  %438 = vmatpush.msra.mxu2 %v162_v15  ;;  %v157_v21 = vld [vmem:[#allocation5 + $0x140] sm:$0xff]  ;;  %v5536_v15 = vld [vmem:[#allocation5 + $0x3b8] sm:$0xff] }
  0x26   :  { %v158_v19 = vld [vmem:[#allocation5 + $0x148] sm:$0xff]  ;;  %v5462_v22 = vld [vmem:[#allocation5 + $0x360] sm:$0xff]  ;;  %398 = vmatpush.msra.mxu0 %v161_v17  ;;  %417 = vmatpush.msra.mxu1 %v5456_v18  ;;  %v168_v17 = vld [vmem:[#allocation5 + $0x198] sm:$0xff] }
  0x27   :  { %v5459_v20 = vld [vmem:[#allocation5 + $0x348] sm:$0xff]  ;;  %458 = vmatpush.msra.mxu3 %v5453_v16  ;;  %439 = vmatpush.msra.mxu2 %v158_v19  ;;  %v153_v25 = vld [vmem:[#allocation5 + $0x120] sm:$0xff]  ;;  %v171_v19 = vld [vmem:[#allocation5 + $0x1b0] sm:$0xff] }
  0x28   :  { %v154_v23 = vld [vmem:[#allocation5 + $0x128] sm:$0xff]  ;;  %v5468_v26 = vld [vmem:[#allocation5 + $0x340] sm:$0xff]  ;;  %399 = vmatpush.msra.mxu0 %v157_v21  ;;  %418 = vmatpush.msra.mxu1 %v5462_v22 }
  0x29   :  { %v5465_v24 = vld [vmem:[#allocation5 + $0x328] sm:$0xff]  ;;  %459 = vmatpush.msra.mxu3 %v5459_v20  ;;  %440 = vmatpush.msra.mxu2 %v154_v23  ;;  %v149_v29 = vld [vmem:[#allocation5 + $0x100] sm:$0xff]  ;;  %v5542_v23 = vld [vmem:[#allocation5 + $0x3d0] sm:$0xff] }
  0x2a   :  { %v150_v27 = vld [vmem:[#allocation5 + $0x108] sm:$0xff]  ;;  %v5474_v30 = vld [vmem:[#allocation5 + $0x320] sm:$0xff]  ;;  %400 = vmatpush.msra.mxu0 %v153_v25  ;;  %419 = vmatpush.msra.mxu1 %v5468_v26  ;;  %v164_v25 = vld [vmem:[#allocation5 + $0x178] sm:$0xff] }
  0x2b   :  { %v5471_v28 = vld [vmem:[#allocation5 + $0x308] sm:$0xff]  ;;  %460 = vmatpush.msra.mxu3 %v5465_v24  ;;  %441 = vmatpush.msra.mxu2 %v150_v27  ;;  %v145_v33 = vld [vmem:[#allocation5 + $0xe0] sm:$0xff]  ;;  %v5546_v27 = vld [vmem:[#allocation5 + $0x398] sm:$0xff] }
  0x2c   :  { %v146_v31 = vld [vmem:[#allocation5 + $0xe8] sm:$0xff]  ;;  %v5480_v34 = vld [vmem:[#allocation5 + $0x300] sm:$0xff]  ;;  %401 = vmatpush.msra.mxu0 %v149_v29  ;;  %420 = vmatpush.msra.mxu1 %v5474_v30  ;;  %v167_v29 = vld [vmem:[#allocation5 + $0x190] sm:$0xff] }
  0x2d   :  { %v5477_v32 = vld [vmem:[#allocation5 + $0x2e8] sm:$0xff]  ;;  %461 = vmatpush.msra.mxu3 %v5471_v28  ;;  %442 = vmatpush.msra.mxu2 %v146_v31  ;;  %v141_v37 = vld [vmem:[#allocation5 + $0xc0] sm:$0xff]  ;;  %v5550_v31 = vld [vmem:[#allocation5 + $0x3b0] sm:$0xff] }
  0x2e   :  { %v142_v35 = vld [vmem:[#allocation5 + $0xc8] sm:$0xff]  ;;  %v5486_v38 = vld [vmem:[#allocation5 + $0x2e0] sm:$0xff]  ;;  %402 = vmatpush.msra.mxu0 %v145_v33  ;;  %421 = vmatpush.msra.mxu1 %v5480_v34  ;;  %v160_v33 = vld [vmem:[#allocation5 + $0x158] sm:$0xff] }
  0x2f   :  { %v5483_v36 = vld [vmem:[#allocation5 + $0x2c8] sm:$0xff]  ;;  %462 = vmatpush.msra.mxu3 %v5477_v32  ;;  %443 = vmatpush.msra.mxu2 %v142_v35  ;;  %v137_v41 = vld [vmem:[#allocation5 + $0xa0] sm:$0xff]  ;;  %v5553_v35 = vld [vmem:[#allocation5 + $0x378] sm:$0xff] }
  0x30   :  { %v138_v39 = vld [vmem:[#allocation5 + $0xa8] sm:$0xff]  ;;  %v5492_v42 = vld [vmem:[#allocation5 + $0x2c0] sm:$0xff]  ;;  %403 = vmatpush.msra.mxu0 %v141_v37  ;;  %422 = vmatpush.msra.mxu1 %v5486_v38  ;;  %v163_v37 = vld [vmem:[#allocation5 + $0x170] sm:$0xff] }
  0x31   :  { %v5489_v40 = vld [vmem:[#allocation5 + $0x2a8] sm:$0xff]  ;;  %463 = vmatpush.msra.mxu3 %v5483_v36  ;;  %444 = vmatpush.msra.mxu2 %v138_v39  ;;  %v133_v45 = vld [vmem:[#allocation5 + $0x80] sm:$0xff]  ;;  %v9780_v39 = vmov 0.0  }
  0x32   :  { %v134_v43 = vld [vmem:[#allocation5 + $0x88] sm:$0xff]  ;;  %v5498_v46 = vld [vmem:[#allocation5 + $0x2a0] sm:$0xff]  ;;  %404 = vmatpush.msra.mxu0 %v137_v41  ;;  %423 = vmatpush.msra.mxu1 %v5492_v42  ;;  %v5556_v41 = vld [vmem:[#allocation5 + $0x390] sm:$0xff] }
  0x33   :  { %v5495_v44 = vld [vmem:[#allocation5 + $0x288] sm:$0xff]  ;;  %464 = vmatpush.msra.mxu3 %v5489_v40  ;;  %445 = vmatpush.msra.mxu2 %v134_v43  ;;  %v129_v49 = vld [vmem:[#allocation5 + $0x60] sm:$0xff]  ;;  %v156_v43 = vld [vmem:[#allocation5 + $0x138] sm:$0xff] }
  0x34   :  { %v130_v47 = vld [vmem:[#allocation5 + $0x68] sm:$0xff]  ;;  %v5504_v50 = vld [vmem:[#allocation5 + $0x280] sm:$0xff]  ;;  %405 = vmatpush.msra.mxu0 %v133_v45  ;;  %424 = vmatpush.msra.mxu1 %v5498_v46  ;;  %v5559_v45 = vld [vmem:[#allocation5 + $0x358] sm:$0xff] }
  0x35   :  { %v5501_v48 = vld [vmem:[#allocation5 + $0x268] sm:$0xff]  ;;  %465 = vmatpush.msra.mxu3 %v5495_v44  ;;  %446 = vmatpush.msra.mxu2 %v130_v47  ;;  %v125_v53 = vld [vmem:[#allocation5 + $0x40] sm:$0xff]  ;;  %v159_v47 = vld [vmem:[#allocation5 + $0x150] sm:$0xff] }
  0x36   :  { %v126_v51 = vld [vmem:[#allocation5 + $0x48] sm:$0xff]  ;;  %v5510_v54 = vld [vmem:[#allocation5 + $0x260] sm:$0xff]  ;;  %406 = vmatpush.msra.mxu0 %v129_v49  ;;  %425 = vmatpush.msra.mxu1 %v5504_v50  ;;  %v5562_v49 = vld [vmem:[#allocation5 + $0x370] sm:$0xff] }
  0x37   :  { %v5507_v52 = vld [vmem:[#allocation5 + $0x248] sm:$0xff]  ;;  %466 = vmatpush.msra.mxu3 %v5501_v48  ;;  %447 = vmatpush.msra.mxu2 %v126_v51  ;;  %v121_v57 = vld [vmem:[#allocation5 + $0x20] sm:$0xff]  ;;  %v152_v51 = vld [vmem:[#allocation5 + $0x118] sm:$0xff] }
  0x38   :  { %v122_v55 = vld [vmem:[#allocation5 + $0x28] sm:$0xff]  ;;  %v5516_v58 = vld [vmem:[#allocation5 + $0x240] sm:$0xff]  ;;  %407 = vmatpush.msra.mxu0 %v125_v53  ;;  %426 = vmatpush.msra.mxu1 %v5510_v54  ;;  %v5565_v53 = vld [vmem:[#allocation5 + $0x338] sm:$0xff] }
  0x39   :  { %v5513_v56 = vld [vmem:[#allocation5 + $0x228] sm:$0xff]  ;;  %467 = vmatpush.msra.mxu3 %v5507_v52  ;;  %448 = vmatpush.msra.mxu2 %v122_v55  ;;  %v117_v62 = vld [vmem:[#allocation5] sm:$0xff]  ;;  %v155_v55 = vld [vmem:[#allocation5 + $0x130] sm:$0xff] }
  0x3a   :  { %v118_v59 = vld [vmem:[#allocation5 + $0x8] sm:$0xff]  ;;  %408 = vmatpush.msra.mxu0 %v121_v57  ;;  %427 = vmatpush.msra.mxu1 %v5516_v58  ;;  %v5523_v63 = vld [vmem:[#allocation5 + $0x220] sm:$0xff]  ;;  %v5570_v57 = vld [vmem:[#allocation5 + $0x350] sm:$0xff] }
  0x3b   :  { %v5519_v60 = vld [vmem:[#allocation5 + $0x208] sm:$0xff]  ;;  %468 = vmatpush.msra.mxu3 %v5513_v56  ;;  %449 = vmatpush.msra.mxu2 %v118_v59  ;;  %v5528_v5 = vld [vmem:[#allocation5 + $0x200] sm:$0xff]  ;;  %v148_v59 = vld [vmem:[#allocation5 + $0xf8] sm:$0xff] }
  0x3c   :  { %409 = vmatpush.msra.mxu0 %v117_v62  ;;  %428 = vmatpush.msra.mxu1 %v5523_v63  ;;  %v5540_v21 = vld [vmem:[#allocation2] sm:$0xff]  ;;  %v151_v62 = vld [vmem:[#allocation5 + $0x110] sm:$0xff] }
  0x3d   :  { %469 = vmatpush.msra.mxu3 %v5519_v60  ;;  %514 = vmatpush.msrb.mxu2 %v180_v61  ;;  %v5573_v61 = vld [vmem:[#allocation5 + $0x318] sm:$0xff] }
  0x3e   :  { %474 = vmatpush.msrb.mxu0 %v179_v3  ;;  %429 = vmatpush.msra.mxu1 %v5528_v5  ;;  %v144_v3 = vld [vmem:[#allocation5 + $0xd8] sm:$0xff] }
  0x3f   :  { %534 = vmatpush.msrb.mxu3 %v5525_v0  ;;  %515 = vmatpush.msrb.mxu2 %v176_v1  ;;  %v5576_v1 = vld [vmem:[#allocation5 + $0x330] sm:$0xff] }
  0x40   :  { %475 = vmatpush.msrb.mxu0 %v175_v11  ;;  %494 = vmatpush.msrb.mxu1 %v5534_v13  ;;  %v147_v11 = vld [vmem:[#allocation5 + $0xf0] sm:$0xff] }
  0x41   :  { %535 = vmatpush.msrb.mxu3 %v5530_v6  ;;  %516 = vmatpush.msrb.mxu2 %v172_v9  ;;  %v5579_v9 = vld [vmem:[#allocation5 + $0x2f8] sm:$0xff] }
  0x42   :  { %476 = vmatpush.msrb.mxu0 %v171_v19  ;;  %450 = vmatmul.f32.vlgmr.msra.gmra.mxu2 %v5540_v21  ;;  %v140_v19 = vld [vmem:[#allocation5 + $0xb8] sm:$0xff] }
  0x43   :  { %536 = vmatpush.msrb.mxu3 %v5536_v15  ;;  %517 = vmatpush.msrb.mxu2 %v168_v17  ;;  %v5582_v17 = vld [vmem:[#allocation5 + $0x310] sm:$0xff] }
  0x44   :  { %495 = vmatpush.msrb.mxu1 %v5542_v23  ;;  %470 = vmatmul.f32.vlgmr.msra.gmra.mxu3 %v9780_v39 }
  0x45   :  { %518 = vmatpush.msrb.mxu2 %v164_v25  ;;  %537 = vmatpush.msrb.mxu3 %v5546_v27  ;;  %v5585_v25 = vld [vmem:[#allocation5 + $0x2d8] sm:$0xff] }
  0x46   :  { %477 = vmatpush.msrb.mxu0 %v167_v29  ;;  %496 = vmatpush.msrb.mxu1 %v5550_v31  ;;  %10481 = vst [vmem:[#allocation19_spill] sm:$0xff] %v5585_v25  ;;  %v143_v29 = vld [vmem:[#allocation5 + $0xd0] sm:$0xff] }
  0x47   :  { %519 = vmatpush.msrb.mxu2 %v160_v33  ;;  %538 = vmatpush.msrb.mxu3 %v5553_v35  ;;  %v5588_v33 = vld [vmem:[#allocation5 + $0x2f0] sm:$0xff] }
  0x48   :  { %478 = vmatpush.msrb.mxu0 %v163_v37  ;;  %497 = vmatpush.msrb.mxu1 %v5556_v41  ;;  %v136_v37 = vld [vmem:[#allocation5 + $0x98] sm:$0xff] }
  0x49   :  { %520 = vmatpush.msrb.mxu2 %v156_v43  ;;  %539 = vmatpush.msrb.mxu3 %v5559_v45  ;;  %v5591_v43 = vld [vmem:[#allocation5 + $0x2b8] sm:$0xff] }
  0x4a   :  { %410 = vmatmul.f32.vlgmr.msra.gmra.mxu0 %v5540_v21  ;;  %498 = vmatpush.msrb.mxu1 %v5562_v49  ;;  %10482 = vst [vmem:[#allocation20_spill] sm:$0xff] %v5591_v43 }
  0x4b   :  { %479 = vmatpush.msrb.mxu0 %v159_v47  ;;  %521 = vmatpush.msrb.mxu2 %v152_v51  ;;  %v139_v47 = vld [vmem:[#allocation5 + $0xb0] sm:$0xff] }
  0x4c   :  { %540 = vmatpush.msrb.mxu3 %v5565_v53  ;;  %430 = vmatmul.f32.vlgmr.msra.gmra.mxu1 %v9780_v39  ;;  %v5594_v51 = vld [vmem:[#allocation5 + $0x2d0] sm:$0xff] }
  0x4d   :  { %480 = vmatpush.msrb.mxu0 %v155_v55  ;;  %499 = vmatpush.msrb.mxu1 %v5570_v57  ;;  %v132_v55 = vld [vmem:[#allocation5 + $0x78] sm:$0xff]  ;;  %v5606_v39 = vld [vmem:[#allocation5 + $0x290] sm:$0xff] }
  0x4e   :  { %522 = vmatpush.msrb.mxu2 %v148_v59  ;;  %541 = vmatpush.msrb.mxu3 %v5573_v61  ;;  %v5597_v59 = vld [vmem:[#allocation5 + $0x298] sm:$0xff] }
  0x4f   :  { %481 = vmatpush.msrb.mxu0 %v151_v62  ;;  %500 = vmatpush.msrb.mxu1 %v5576_v1  ;;  %10483 = vst [vmem:[#allocation21_spill] sm:$0xff] %v5597_v59  ;;  %v135_v62 = vld [vmem:[#allocation5 + $0x90] sm:$0xff] }
  0x50   :  { %523 = vmatpush.msrb.mxu2 %v144_v3  ;;  %542 = vmatpush.msrb.mxu3 %v5579_v9  ;;  %v5600_v3 = vld [vmem:[#allocation5 + $0x2b0] sm:$0xff] }
  0x51   :  { %482 = vmatpush.msrb.mxu0 %v147_v11  ;;  %501 = vmatpush.msrb.mxu1 %v5582_v17  ;;  %10484 = vst [vmem:[#allocation22_spill] sm:$0xff] %v5600_v3  ;;  %v128_v11 = vld [vmem:[#allocation5 + $0x58] sm:$0xff] }
  0x52   :  { %524 = vmatpush.msrb.mxu2 %v140_v19  ;;  %543 = vmatpush.msrb.mxu3 %v5585_v25  ;;  %v5603_v19 = vld [vmem:[#allocation5 + $0x278] sm:$0xff]  ;;  %v5612_v25 = vld [vmem:[#allocation5 + $0x270] sm:$0xff] }
  0x53   :  { %483 = vmatpush.msrb.mxu0 %v143_v29  ;;  %502 = vmatpush.msrb.mxu1 %v5588_v33  ;;  %10485 = vst [vmem:[#allocation23_spill] sm:$0xff] %v5603_v19  ;;  %v131_v29 = vld [vmem:[#allocation5 + $0x70] sm:$0xff] }
  0x54   :  { %525 = vmatpush.msrb.mxu2 %v136_v37  ;;  %544 = vmatpush.msrb.mxu3 %v5591_v43  ;;  %v124_v37 = vld [vmem:[#allocation5 + $0x38] sm:$0xff] }
  0x55   :  { %484 = vmatpush.msrb.mxu0 %v139_v47  ;;  %503 = vmatpush.msrb.mxu1 %v5594_v51  ;;  %v5609_v43 = vld [vmem:[#allocation5 + $0x258] sm:$0xff]  ;;  %v127_v47 = vld [vmem:[#allocation5 + $0x50] sm:$0xff] }
  0x56   :  { %526 = vmatpush.msrb.mxu2 %v132_v55  ;;  %545 = vmatpush.msrb.mxu3 %v5597_v59  ;;  %10486 = vst [vmem:[#allocation24_spill] sm:$0xff] %v5609_v43  ;;  %v120_v55 = vld [vmem:[#allocation5 + $0x18] sm:$0xff] }
  0x57   :  { %485 = vmatpush.msrb.mxu0 %v135_v62  ;;  %504 = vmatpush.msrb.mxu1 %v5600_v3  ;;  %v5615_v59 = vld [vmem:[#allocation5 + $0x238] sm:$0xff]  ;;  %v123_v62 = vld [vmem:[#allocation5 + $0x30] sm:$0xff] }
  0x58   :  { %527 = vmatpush.msrb.mxu2 %v128_v11  ;;  %546 = vmatpush.msrb.mxu3 %v5603_v19  ;;  %10487 = vst [vmem:[#allocation25_spill] sm:$0xff] %v5615_v59  ;;  %v5618_v3 = vld [vmem:[#allocation5 + $0x250] sm:$0xff]  ;;  %v5621_v11 = vld [vmem:[#allocation5 + $0x218] sm:$0xff] }
  0x59   :  { %486 = vmatpush.msrb.mxu0 %v131_v29  ;;  %505 = vmatpush.msrb.mxu1 %v5606_v39  ;;  %10488 = vst [vmem:[#allocation26_spill] sm:$0xff] %v5618_v3  ;;  %v119_v29 = vld [vmem:[#allocation5 + $0x10] sm:$0xff] }
  0x5a   :  { %528 = vmatpush.msrb.mxu2 %v124_v37  ;;  %547 = vmatpush.msrb.mxu3 %v5609_v43  ;;  %10489 = vst [vmem:[#allocation27_spill] sm:$0xff] %v5621_v11  ;;  %v5624_v19 = vld [vmem:[#allocation5 + $0x230] sm:$0xff] }
  0x5b   :  { %487 = vmatpush.msrb.mxu0 %v127_v47  ;;  %506 = vmatpush.msrb.mxu1 %v5612_v25  ;;  %10490 = vst [vmem:[#allocation28_spill] sm:$0xff] %v5624_v19  ;;  %v5628_v37 = vld [vmem:[#allocation8 + $0x3e8] sm:$0xff] }
  0x5c   :  { %529 = vmatpush.msrb.mxu2 %v120_v55  ;;  %548 = vmatpush.msrb.mxu3 %v5615_v59  ;;  %10491 = vst [vmem:[#allocation29_spill] sm:$0xff] %v5628_v37  ;;  %v5631_v47 = vld [vmem:[#allocation5 + $0x210] sm:$0xff]  ;;  %v10493_v55 = vmov 0.0  }
  0x5d   :  { %488 = vmatpush.msrb.mxu0 %v123_v62  ;;  %507 = vmatpush.msrb.mxu1 %v5618_v3  ;;  %10492 = vst [vmem:[#allocation30_spill] sm:$0xff] %v5631_v47  ;;  %v5635_v43 = vld [vmem:[#allocation8 + $0x3c8] sm:$0xff]  ;;  %v5638_v62 = vld [vmem:[#allocation8 + $0x3e0] sm:$0xff] }
  0x5e   :  { %530 = vmatmul.f32.vlgmr.msrb.gmra.mxu2 %v5540_v21  ;;  %549 = vmatpush.msrb.mxu3 %v5621_v11  ;;  %10494 = vst [vmem:[#allocation31_spill] sm:$0xff] %v5635_v43  ;;  %v5642_v59 = vld [vmem:[#allocation8 + $0x3a8] sm:$0xff] }
  0x5f   :  { %489 = vmatpush.msrb.mxu0 %v119_v29  ;;  %508 = vmatpush.msrb.mxu1 %v5624_v19  ;;  %10495 = vst [vmem:[#allocation32_spill] sm:$0xff] %v5638_v62  ;;  %v5645_v29 = vld [vmem:[#allocation8 + $0x3c0] sm:$0xff]  ;;  %v5649_v11 = vld [vmem:[#allocation8 + $0x388] sm:$0xff] }
  0x60   :  { %550 = vmatmul.f32.vlgmr.msrb.gmra.mxu3 %v10493_v55  ;;  %490 = vmatmul.f32.vlgmr.msrb.gmra.mxu0 %v5540_v21  ;;  %10496 = vst [vmem:[#allocation33_spill] sm:$0xff] %v5642_v59  ;;  %v5651_v19 = vld [vmem:[#allocation8 + $0x3a0] sm:$0xff]  ;;  %v5655_v21 = vld [vmem:[#allocation8 + $0x368] sm:$0xff] }
  0x61   :  { %677 = vmatpush.msra.mxu3 %v5628_v37  ;;  %509 = vmatpush.msrb.mxu1 %v5631_v47  ;;  %10497 = vst [vmem:[#allocation34_spill] sm:$0xff] %v5645_v29  ;;  %v5657_v37 = vld [vmem:[#allocation8 + $0x380] sm:$0xff]  ;;  %v5661_v47 = vld [vmem:[#allocation8 + $0x348] sm:$0xff] }
  0x62   :  { %510 = vmatmul.f32.vlgmr.msrb.gmra.mxu1 %v10493_v55  ;;  %10498 = vst [vmem:[#allocation35_spill] sm:$0xff] %v5649_v11  ;;  %v5716_v3 = vld [vmem:[#allocation8 + $0x1e8] sm:$0xff] }
  0x63   :  { %678 = vmatpush.msra.mxu3 %v5635_v43  ;;  %637 = vmatpush.msra.mxu1 %v5638_v62  ;;  %10499 = vst [vmem:[#allocation36_spill] sm:$0xff] %v5651_v19  ;;  %v5663_v43 = vld [vmem:[#allocation8 + $0x360] sm:$0xff]  ;;  %v5667_v62 = vld [vmem:[#allocation8 + $0x328] sm:$0xff] }
  0x64   :  { %10500 = vst [vmem:[#allocation37_spill] sm:$0xff] %v5655_v21  ;;  %657 = vmatpush.msra.mxu2 %v5716_v3 }
  0x65   :  { %679 = vmatpush.msra.mxu3 %v5642_v59  ;;  %638 = vmatpush.msra.mxu1 %v5645_v29  ;;  %10501 = vst [vmem:[#allocation38_spill] sm:$0xff] %v5657_v37  ;;  %v5669_v59 = vld [vmem:[#allocation8 + $0x340] sm:$0xff]  ;;  %v5673_v29 = vld [vmem:[#allocation8 + $0x308] sm:$0xff] }
  0x66   :  { %10502 = vst [vmem:[#allocation39_spill] sm:$0xff] %v5661_v47 }
  0x67   :  { %680 = vmatpush.msra.mxu3 %v5649_v11  ;;  %639 = vmatpush.msra.mxu1 %v5651_v19  ;;  %10503 = vst [vmem:[#allocation40_spill] sm:$0xff] %v5663_v43  ;;  %v5675_v11 = vld [vmem:[#allocation8 + $0x320] sm:$0xff]  ;;  %v5679_v19 = vld [vmem:[#allocation8 + $0x2e8] sm:$0xff] }
  0x68   :  { %10504 = vst [vmem:[#allocation41_spill] sm:$0xff] %v5667_v62 }
  0x69   :  { %681 = vmatpush.msra.mxu3 %v5655_v21  ;;  %640 = vmatpush.msra.mxu1 %v5657_v37  ;;  %10505 = vst [vmem:[#allocation42_spill] sm:$0xff] %v5669_v59  ;;  %v5681_v21 = vld [vmem:[#allocation8 + $0x300] sm:$0xff]  ;;  %v5685_v37 = vld [vmem:[#allocation8 + $0x2c8] sm:$0xff] }
  0x6a   :  { %10506 = vst [vmem:[#allocation43_spill] sm:$0xff] %v5673_v29 }
  0x6b   :  { %682 = vmatpush.msra.mxu3 %v5661_v47  ;;  %641 = vmatpush.msra.mxu1 %v5663_v43  ;;  %10507 = vst [vmem:[#allocation44_spill] sm:$0xff] %v5675_v11  ;;  %v5687_v47 = vld [vmem:[#allocation8 + $0x2e0] sm:$0xff]  ;;  %v5691_v43 = vld [vmem:[#allocation8 + $0x2a8] sm:$0xff] }
  0x6c   :  { %10508 = vst [vmem:[#allocation45_spill] sm:$0xff] %v5679_v19 }
  0x6d   :  { %683 = vmatpush.msra.mxu3 %v5667_v62  ;;  %642 = vmatpush.msra.mxu1 %v5669_v59  ;;  %10509 = vst [vmem:[#allocation46_spill] sm:$0xff] %v5681_v21  ;;  %v5693_v62 = vld [vmem:[#allocation8 + $0x2c0] sm:$0xff]  ;;  %v5697_v59 = vld [vmem:[#allocation8 + $0x288] sm:$0xff] }
  0x6e   :  { %10510 = vst [vmem:[#allocation47_spill] sm:$0xff] %v5685_v37 }
  0x6f   :  { %684 = vmatpush.msra.mxu3 %v5673_v29  ;;  %643 = vmatpush.msra.mxu1 %v5675_v11  ;;  %10511 = vst [vmem:[#allocation48_spill] sm:$0xff] %v5687_v47  ;;  %v5699_v29 = vld [vmem:[#allocation8 + $0x2a0] sm:$0xff]  ;;  %v5703_v11 = vld [vmem:[#allocation8 + $0x268] sm:$0xff] }
  0x70   :  { %10512 = vst [vmem:[#allocation49_spill] sm:$0xff] %v5691_v43 }
  0x71   :  { %685 = vmatpush.msra.mxu3 %v5679_v19  ;;  %644 = vmatpush.msra.mxu1 %v5681_v21  ;;  %10513 = vst [vmem:[#allocation50_spill] sm:$0xff] %v5693_v62  ;;  %v5705_v19 = vld [vmem:[#allocation8 + $0x280] sm:$0xff]  ;;  %v5709_v21 = vld [vmem:[#allocation8 + $0x248] sm:$0xff] }
  0x72   :  { %10514 = vst [vmem:[#allocation51_spill] sm:$0xff] %v5697_v59 }
  0x73   :  { %686 = vmatpush.msra.mxu3 %v5685_v37  ;;  %645 = vmatpush.msra.mxu1 %v5687_v47  ;;  %10515 = vst [vmem:[#allocation52_spill] sm:$0xff] %v5699_v29  ;;  %v5711_v37 = vld [vmem:[#allocation8 + $0x260] sm:$0xff] }
  0x74   :  { %10516 = vst [vmem:[#allocation53_spill] sm:$0xff] %v5703_v11  ;;  %v5714_v47 = vld [vmem:[#allocation8 + $0x1e0] sm:$0xff] }
  0x75   :  { %687 = vmatpush.msra.mxu3 %v5691_v43  ;;  %646 = vmatpush.msra.mxu1 %v5693_v62  ;;  %10517 = vst [vmem:[#allocation54_spill] sm:$0xff] %v5705_v19  ;;  %v5719_v43 = vld [vmem:[#allocation8 + $0x228] sm:$0xff]  ;;  %v5722_v62 = vld [vmem:[#allocation8 + $0x240] sm:$0xff] }
  0x76   :  { %10518 = vst [vmem:[#allocation55_spill] sm:$0xff] %v5709_v21  ;;  %617 = vmatpush.msra.mxu0 %v5714_v47 }
  0x77   :  { %688 = vmatpush.msra.mxu3 %v5697_v59  ;;  %647 = vmatpush.msra.mxu1 %v5699_v29  ;;  %10519 = vst [vmem:[#allocation56_spill] sm:$0xff] %v5711_v37  ;;  %v5726_v59 = vld [vmem:[#allocation8 + $0x1c0] sm:$0xff]  ;;  %v5728_v29 = vld [vmem:[#allocation8 + $0x1c8] sm:$0xff] }
  0x78   :  { %10520 = vst [vmem:[#allocation57_spill] sm:$0xff] %v5714_v47  ;;  %618 = vmatpush.msra.mxu0 %v5726_v59  ;;  %v5737_v47 = vld [vmem:[#allocation8 + $0x3f8] sm:$0xff]  ;;  %658 = vmatpush.msra.mxu2 %v5728_v29 }
  0x79   :  { %689 = vmatpush.msra.mxu3 %v5703_v11  ;;  %10521 = vst [vmem:[#allocation58_spill] sm:$0xff] %v5716_v3  ;;  %648 = vmatpush.msra.mxu1 %v5705_v19  ;;  %v5731_v11 = vld [vmem:[#allocation8 + $0x208] sm:$0xff]  ;;  %v5734_v19 = vld [vmem:[#allocation8 + $0x220] sm:$0xff] }
  0x7a   :  { %10522 = vst [vmem:[#allocation59_spill] sm:$0xff] %v5719_v43  ;;  %v5741_v3 = vld [vmem:[#allocation8 + $0x200] sm:$0xff] }
  0x7b   :  { %690 = vmatpush.msra.mxu3 %v5709_v21  ;;  %10523 = vst [vmem:[#allocation60_spill] sm:$0xff] %v5726_v59  ;;  %649 = vmatpush.msra.mxu1 %v5711_v37  ;;  %v5744_v21 = vld [vmem:[#allocation8 + $0x3d8] sm:$0xff]  ;;  %v5747_v37 = vld [vmem:[#allocation8 + $0x3f0] sm:$0xff] }
  0x7c   :  { %10524 = vst [vmem:[#allocation61_spill] sm:$0xff] %v5728_v29  ;;  %v5750_v59 = vld [vmem:[#allocation8 + $0x3b8] sm:$0xff]  ;;  %v5754_v29 = vld [vmem:[#allocation8 + $0x3d0] sm:$0xff] }
  0x7d   :  { %10525 = vst [vmem:[#allocation62_spill] sm:$0xff] %v5731_v11  ;;  %691 = vmatpush.msra.mxu3 %v5719_v43  ;;  %650 = vmatpush.msra.mxu1 %v5722_v62  ;;  %v5760_v43 = vld [vmem:[#allocation8 + $0x3b0] sm:$0xff] }
  0x7e   :  { %10526 = vst [vmem:[#allocation63_spill] sm:$0xff] %v5734_v19 }
  0x7f   :  { %10527 = vst [vmem:[#allocation64_spill] sm:$0xff] %v5737_v47  ;;  %692 = vmatpush.msra.mxu3 %v5731_v11  ;;  %651 = vmatpush.msra.mxu1 %v5734_v19  ;;  %v5758_v11 = vld [vmem:[#allocation8 + $0x398] sm:$0xff]  ;;  %v5767_v19 = vld [vmem:[#allocation8 + $0x390] sm:$0xff] }
  0x80   :  { %10528 = vst [vmem:[#allocation65_spill] sm:$0xff] %v5741_v3  ;;  %693 = vmatmul.f32.vlgmr.msra.gmra.mxu3 %v10493_v55 }
  0x81   :  { %10529 = vst [vmem:[#allocation66_spill] sm:$0xff] %v5744_v21  ;;  %757 = vmatpush.msrb.mxu3 %v5737_v47  ;;  %652 = vmatpush.msra.mxu1 %v5741_v3  ;;  %v5765_v47 = vld [vmem:[#allocation8 + $0x378] sm:$0xff]  ;;  %v5779_v3 = vld [vmem:[#allocation8 + $0x350] sm:$0xff] }
  0x82   :  { %10530 = vst [vmem:[#allocation67_spill] sm:$0xff] %v5747_v37  ;;  %653 = vmatmul.f32.vlgmr.msra.gmra.mxu1 %v10493_v55 }
  0x83   :  { %10531 = vst [vmem:[#allocation68_spill] sm:$0xff] %v5750_v59  ;;  %758 = vmatpush.msrb.mxu3 %v5744_v21  ;;  %717 = vmatpush.msrb.mxu1 %v5747_v37  ;;  %v5771_v21 = vld [vmem:[#allocation8 + $0x358] sm:$0xff]  ;;  %v5773_v37 = vld [vmem:[#allocation8 + $0x370] sm:$0xff] }
  0x84   :  { %10532 = vst [vmem:[#allocation69_spill] sm:$0xff] %v5754_v29 }
  0x85   :  { %10533 = vst [vmem:[#allocation70_spill] sm:$0xff] %v5758_v11  ;;  %759 = vmatpush.msrb.mxu3 %v5750_v59  ;;  %718 = vmatpush.msrb.mxu1 %v5754_v29  ;;  %v5777_v59 = vld [vmem:[#allocation8 + $0x338] sm:$0xff] }
  0x86   :  { %10534 = vst [vmem:[#allocation71_spill] sm:$0xff] %v5760_v43  ;;  %v5783_v29 = vld [vmem:[#allocation8 + $0x318] sm:$0xff] }
  0x87   :  { %10535 = vst [vmem:[#allocation72_spill] sm:$0xff] %v5765_v47  ;;  %760 = vmatpush.msrb.mxu3 %v5758_v11  ;;  %719 = vmatpush.msrb.mxu1 %v5760_v43  ;;  %v5785_v11 = vld [vmem:[#allocation8 + $0x330] sm:$0xff]  ;;  %v5789_v43 = vld [vmem:[#allocation8 + $0x2f8] sm:$0xff] }
  0x88   :  { %10536 = vst [vmem:[#allocation73_spill] sm:$0xff] %v5767_v19 }
  0x89   :  { %10537 = vst [vmem:[#allocation74_spill] sm:$0xff] %v5771_v21  ;;  %761 = vmatpush.msrb.mxu3 %v5765_v47  ;;  %720 = vmatpush.msrb.mxu1 %v5767_v19  ;;  %v5791_v47 = vld [vmem:[#allocation8 + $0x310] sm:$0xff]  ;;  %v5795_v19 = vld [vmem:[#allocation8 + $0x2d8] sm:$0xff] }
  0x8a   :  { %10538 = vst [vmem:[#allocation75_spill] sm:$0xff] %v5773_v37 }
  0x8b   :  { %10539 = vst [vmem:[#allocation76_spill] sm:$0xff] %v5777_v59  ;;  %762 = vmatpush.msrb.mxu3 %v5771_v21  ;;  %721 = vmatpush.msrb.mxu1 %v5773_v37  ;;  %v5797_v21 = vld [vmem:[#allocation8 + $0x2f0] sm:$0xff]  ;;  %v5801_v37 = vld [vmem:[#allocation8 + $0x2b8] sm:$0xff] }
  0x8c   :  { %10540 = vst [vmem:[#allocation77_spill] sm:$0xff] %v5779_v3 }
  0x8d   :  { %10541 = vst [vmem:[#allocation78_spill] sm:$0xff] %v5783_v29  ;;  %763 = vmatpush.msrb.mxu3 %v5777_v59  ;;  %722 = vmatpush.msrb.mxu1 %v5779_v3  ;;  %v5803_v59 = vld [vmem:[#allocation8 + $0x2d0] sm:$0xff]  ;;  %v5807_v3 = vld [vmem:[#allocation8 + $0x298] sm:$0xff] }
  0x8e   :  { %10542 = vst [vmem:[#allocation79_spill] sm:$0xff] %v5785_v11 }
  0x8f   :  { %10543 = vst [vmem:[#allocation80_spill] sm:$0xff] %v5789_v43  ;;  %764 = vmatpush.msrb.mxu3 %v5783_v29  ;;  %723 = vmatpush.msrb.mxu1 %v5785_v11  ;;  %v5809_v29 = vld [vmem:[#allocation8 + $0x2b0] sm:$0xff]  ;;  %v5813_v11 = vld [vmem:[#allocation8 + $0x278] sm:$0xff] }
  0x90   :  { %10544 = vst [vmem:[#allocation81_spill] sm:$0xff] %v5791_v47 }
  0x91   :  { %10545 = vst [vmem:[#allocation82_spill] sm:$0xff] %v5795_v19  ;;  %765 = vmatpush.msrb.mxu3 %v5789_v43  ;;  %724 = vmatpush.msrb.mxu1 %v5791_v47  ;;  %v5815_v43 = vld [vmem:[#allocation8 + $0x290] sm:$0xff] }
  0x92   :  { %10546 = vst [vmem:[#allocation83_spill] sm:$0xff] %v5801_v37  ;;  %v5819_v47 = vld [vmem:[#allocation8 + $0x270] sm:$0xff] }
  0x93   :  { %10547 = vst [vmem:[#allocation84_spill] sm:$0xff] %v5803_v59  ;;  %766 = vmatpush.msrb.mxu3 %v5795_v19  ;;  %725 = vmatpush.msrb.mxu1 %v5797_v21  ;;  %v5824_v19 = vld [vmem:[#allocation8 + $0x250] sm:$0xff] }
  0x94   :  { %10548 = vst [vmem:[#allocation85_spill] sm:$0xff] %v5807_v3 }
  0x95   :  { %10549 = vst [vmem:[#allocation86_spill] sm:$0xff] %v5809_v29  ;;  %767 = vmatpush.msrb.mxu3 %v5801_v37  ;;  %726 = vmatpush.msrb.mxu1 %v5803_v59  ;;  %v5826_v37 = vld [vmem:[#allocation8 + $0x258] sm:$0xff]  ;;  %v5828_v59 = vld [vmem:[#allocation8 + $0x1a0] sm:$0xff] }
  0x96   :  { %10550 = vst [vmem:[#allocation87_spill] sm:$0xff] %v5813_v11  ;;  %619 = vmatpush.msra.mxu0 %v5828_v59 }
  0x97   :  { %10551 = vst [vmem:[#allocation88_spill] sm:$0xff] %v5815_v43  ;;  %768 = vmatpush.msrb.mxu3 %v5807_v3  ;;  %727 = vmatpush.msrb.mxu1 %v5809_v29  ;;  %v5832_v3 = vld [vmem:[#allocation8 + $0x1a8] sm:$0xff] }
  0x98   :  { %10552 = vst [vmem:[#allocation89_spill] sm:$0xff] %v5819_v47  ;;  %659 = vmatpush.msra.mxu2 %v5832_v3  ;;  %v5844_v29 = vld [vmem:[#allocation8 + $0x188] sm:$0xff] }
  0x99   :  { %769 = vmatpush.msrb.mxu3 %v5813_v11  ;;  %728 = vmatpush.msrb.mxu1 %v5815_v43  ;;  %10553 = vst [vmem:[#allocation90_spill] sm:$0xff] %v5824_v19  ;;  %v5836_v11 = vld [vmem:[#allocation8 + $0x230] sm:$0xff]  ;;  %v5838_v43 = vld [vmem:[#allocation8 + $0x238] sm:$0xff] }
  0x9a   :  { %10554 = vst [vmem:[#allocation91_spill] sm:$0xff] %v5826_v37  ;;  %660 = vmatpush.msra.mxu2 %v5844_v29 }
  0x9b   :  { %729 = vmatpush.msrb.mxu1 %v5819_v47  ;;  %770 = vmatpush.msrb.mxu3 %v5826_v37  ;;  %10555 = vst [vmem:[#allocation92_spill] sm:$0xff] %v5832_v3  ;;  %v5842_v47 = vld [vmem:[#allocation8 + $0x180] sm:$0xff]  ;;  %v5848_v37 = vld [vmem:[#allocation8 + $0x210] sm:$0xff] }
  0x9c   :  { %10556 = vst [vmem:[#allocation93_spill] sm:$0xff] %v5836_v11  ;;  %620 = vmatpush.msra.mxu0 %v5842_v47  ;;  %v5854_v3 = vld [vmem:[#allocation8 + $0x160] sm:$0xff] }
  0x9d   :  { %730 = vmatpush.msrb.mxu1 %v5824_v19  ;;  %10557 = vst [vmem:[#allocation94_spill] sm:$0xff] %v5838_v43  ;;  %771 = vmatpush.msrb.mxu3 %v5838_v43  ;;  %v5850_v19 = vld [vmem:[#allocation8 + $0x218] sm:$0xff]  ;;  %v5862_v43 = vld [vmem:[#allocation8 + $0x140] sm:$0xff] }
  0x9e   :  { %10558 = vst [vmem:[#allocation95_spill] sm:$0xff] %v5844_v29  ;;  %621 = vmatpush.msra.mxu0 %v5854_v3  ;;  %v5864_v29 = vld [vmem:[#allocation8 + $0x148] sm:$0xff] }
  0x9f   :  { %731 = vmatpush.msrb.mxu1 %v5836_v11  ;;  %10559 = vst [vmem:[#allocation96_spill] sm:$0xff] %v5848_v37  ;;  %772 = vmatpush.msrb.mxu3 %v5850_v19  ;;  %v5856_v11 = vld [vmem:[#allocation8 + $0x168] sm:$0xff] }
  0xa0   :  { %10560 = vst [vmem:[#allocation97_spill] sm:$0xff] %v5850_v19  ;;  %661 = vmatpush.msra.mxu2 %v5856_v11  ;;  %622 = vmatpush.msra.mxu0 %v5862_v43  ;;  %v5870_v19 = vld [vmem:[#allocation8 + $0x120] sm:$0xff] }
  0xa1   :  { %732 = vmatpush.msrb.mxu1 %v5848_v37  ;;  %902 = vmatpush.msra.mxu3 %v5434_v2  ;;  %v5872_v37 = vld [vmem:[#allocation8 + $0x128] sm:$0xff]  ;;  %v5878_v2 = vld [vmem:[#allocation8 + $0x100] sm:$0xff] }
  0xa2   :  { %662 = vmatpush.msra.mxu2 %v5864_v29  ;;  %623 = vmatpush.msra.mxu0 %v5870_v19 }
  0xa3   :  { %862 = vmatpush.msra.mxu1 %v5439_v7  ;;  %903 = vmatpush.msra.mxu3 %v5437_v4  ;;  %v5880_v7 = vld [vmem:[#allocation8 + $0x108] sm:$0xff]  ;;  %v5886_v4 = vld [vmem:[#allocation8 + $0xe0] sm:$0xff] }
  0xa4   :  { %663 = vmatpush.msra.mxu2 %v5872_v37  ;;  %624 = vmatpush.msra.mxu0 %v5878_v2 }
  0xa5   :  { %863 = vmatpush.msra.mxu1 %v5444_v10  ;;  %904 = vmatpush.msra.mxu3 %v5442_v8  ;;  %v5888_v10 = vld [vmem:[#allocation8 + $0xe8] sm:$0xff]  ;;  %v5894_v8 = vld [vmem:[#allocation8 + $0xc0] sm:$0xff] }
  0xa6   :  { %664 = vmatpush.msra.mxu2 %v5880_v7  ;;  %625 = vmatpush.msra.mxu0 %v5886_v4 }
  0xa7   :  { %864 = vmatpush.msra.mxu1 %v5450_v14  ;;  %905 = vmatpush.msra.mxu3 %v5447_v12  ;;  %v5896_v14 = vld [vmem:[#allocation8 + $0xc8] sm:$0xff]  ;;  %v5902_v12 = vld [vmem:[#allocation8 + $0xa0] sm:$0xff] }
  0xa8   :  { %665 = vmatpush.msra.mxu2 %v5888_v10  ;;  %626 = vmatpush.msra.mxu0 %v5894_v8 }
  0xa9   :  { %865 = vmatpush.msra.mxu1 %v5456_v18  ;;  %906 = vmatpush.msra.mxu3 %v5453_v16  ;;  %v5904_v18 = vld [vmem:[#allocation8 + $0xa8] sm:$0xff]  ;;  %v5910_v16 = vld [vmem:[#allocation8 + $0x80] sm:$0xff] }
  0xaa   :  { %666 = vmatpush.msra.mxu2 %v5896_v14  ;;  %627 = vmatpush.msra.mxu0 %v5902_v12 }
  0xab   :  { %866 = vmatpush.msra.mxu1 %v5462_v22  ;;  %907 = vmatpush.msra.mxu3 %v5459_v20  ;;  %v5912_v22 = vld [vmem:[#allocation8 + $0x88] sm:$0xff]  ;;  %v5918_v20 = vld [vmem:[#allocation8 + $0x60] sm:$0xff] }
  0xac   :  { %667 = vmatpush.msra.mxu2 %v5904_v18  ;;  %628 = vmatpush.msra.mxu0 %v5910_v16 }
  0xad   :  { %867 = vmatpush.msra.mxu1 %v5468_v26  ;;  %908 = vmatpush.msra.mxu3 %v5465_v24  ;;  %v5920_v26 = vld [vmem:[#allocation8 + $0x68] sm:$0xff]  ;;  %v5926_v24 = vld [vmem:[#allocation8 + $0x40] sm:$0xff] }
  0xae   :  { %668 = vmatpush.msra.mxu2 %v5912_v22  ;;  %10561 = vst [vmem:[#allocation98_spill] sm:$0xff] %v5920_v26  ;;  %629 = vmatpush.msra.mxu0 %v5918_v20 }
  0xaf   :  { %868 = vmatpush.msra.mxu1 %v5474_v30  ;;  %909 = vmatpush.msra.mxu3 %v5471_v28  ;;  %10562 = vst [vmem:[#allocation99_spill] sm:$0xff] %v5926_v24  ;;  %v5928_v30 = vld [vmem:[#allocation8 + $0x48] sm:$0xff]  ;;  %v5932_v28 = vld [vmem:[#allocation7] sm:$0xf] }
  0xb0   :  { %669 = vmatpush.msra.mxu2 %v5920_v26  ;;  %10563 = vst [vmem:[#allocation100_spill] sm:$0xff] %v5928_v30  ;;  %630 = vmatpush.msra.mxu0 %v5926_v24  ;;  %v5938_v26 = vld [vmem:[#allocation8 + $0x28] sm:$0xff] }
  0xb1   :  { %869 = vmatpush.msra.mxu1 %v5480_v34  ;;  %910 = vmatpush.msra.mxu3 %v5477_v32  ;;  %v5936_v34 = vld [vmem:[#allocation8 + $0x20] sm:$0xff]  ;;  %10565 = vst [vmem:[#allocation102_spill] sm:$0xff] %v5938_v26 }
  0xb2   :  { %670 = vmatpush.msra.mxu2 %v5928_v30  ;;  %10564 = vst [vmem:[#allocation101_spill] sm:$0xff] %v5936_v34  ;;  %631 = vmatpush.msra.mxu0 %v5936_v34  ;;  %v5944_v32 = vld [vmem:[#allocation8] sm:$0xff]  ;;  %v5956_v34 = vld [vmem:[#allocation8 + $0x1f0] sm:$0xff] }
  0xb3   :  { %870 = vmatpush.msra.mxu1 %v5486_v38  ;;  %911 = vmatpush.msra.mxu3 %v5483_v36  ;;  %10566 = vst [vmem:[#allocation103_spill] sm:$0xff] %v5944_v32  ;;  %v5946_v38 = vld [vmem:[#allocation8 + $0x8] sm:$0xff]  ;;  %v5952_v36 = vperm.slane %v5932_v28, 1 }
  0xb4   :  { %671 = vmatpush.msra.mxu2 %v5938_v26  ;;  %10567 = vst [vmem:[#allocation104_spill] sm:$0xff] %v5946_v38  ;;  %632 = vmatpush.msra.mxu0 %v5944_v32  ;;  %v5958_v26 = vld [vmem:[#allocation8 + $0x1f8] sm:$0xff] }
  0xb5   :  { %871 = vmatpush.msra.mxu1 %v5492_v42  ;;  %912 = vmatpush.msra.mxu3 %v5489_v40  ;;  %v5949_v42 = vperm.slane %v5932_v28, 0  ;;  %10569 = vst [vmem:[#allocation106_spill] sm:$0xff] %v5952_v36  ;;  %v5964_v40 = vld [vmem:[#allocation8 + $0x1d0] sm:$0xff] }
  0xb6   :  { %672 = vmatpush.msra.mxu2 %v5946_v38  ;;  %10570 = vst [vmem:[#allocation107_spill] sm:$0xff] %v5956_v34  ;;  %697 = vmatpush.msrb.mxu0 %v5956_v34 }
  0xb7   :  { %872 = vmatpush.msra.mxu1 %v5498_v46  ;;  %10568 = vst [vmem:[#allocation105_spill] sm:$0xff] %v5949_v42  ;;  %913 = vmatpush.msra.mxu3 %v5495_v44  ;;  %v5966_v46 = vld [vmem:[#allocation8 + $0x1d8] sm:$0xff]  ;;  %v5974_v44 = vld [vmem:[#allocation8 + $0x1b0] sm:$0xff] }
  0xb8   :  { %10571 = vst [vmem:[#allocation108_spill] sm:$0xff] %v5958_v26  ;;  %737 = vmatpush.msrb.mxu2 %v5958_v26  ;;  %698 = vmatpush.msrb.mxu0 %v5964_v40  ;;  %v5976_v26 = vld [vmem:[#allocation8 + $0x1b8] sm:$0xff] }
  0xb9   :  { %873 = vmatpush.msra.mxu1 %v5504_v50  ;;  %914 = vmatpush.msra.mxu3 %v5501_v48  ;;  %v5982_v48 = vld [vmem:[#allocation8 + $0x190] sm:$0xff] }
  0xba   :  { %738 = vmatpush.msrb.mxu2 %v5966_v46  ;;  %699 = vmatpush.msrb.mxu0 %v5974_v44 }
  0xbb   :  { %874 = vmatpush.msra.mxu1 %v5510_v54  ;;  %915 = vmatpush.msra.mxu3 %v5507_v52  ;;  %v5990_v52 = vld [vmem:[#allocation8 + $0x170] sm:$0xff] }
  0xbc   :  { %739 = vmatpush.msrb.mxu2 %v5976_v26  ;;  %700 = vmatpush.msrb.mxu0 %v5982_v48 }
  0xbd   :  { %875 = vmatpush.msra.mxu1 %v5516_v58  ;;  %916 = vmatpush.msra.mxu3 %v5513_v56  ;;  %v5992_v58 = vld [vmem:[#allocation8 + $0x178] sm:$0xff]  ;;  %v5998_v56 = vld [vmem:[#allocation8 + $0x150] sm:$0xff] }
  0xbe   :  { %701 = vmatpush.msrb.mxu0 %v5990_v52  ;;  %733 = vmatmul.f32.vlgmr.msrb.gmra.mxu1 %v10493_v55 }
  0xbf   :  { %876 = vmatpush.msra.mxu1 %v5523_v63  ;;  %917 = vmatpush.msra.mxu3 %v5519_v60  ;;  %v6000_v63 = vld [vmem:[#allocation8 + $0x158] sm:$0xff] }
  0xc0   :  { %773 = vmatmul.f32.vlgmr.msrb.gmra.mxu3 %v10493_v55  ;;  %v6008_v60 = vld [vmem:[#allocation8 + $0x138] sm:$0xff]  ;;  %702 = vmatpush.msrb.mxu0 %v5998_v56 }
  0xc1   :  { %877 = vmatpush.msra.mxu1 %v5528_v5  ;;  %982 = vmatpush.msrb.mxu3 %v5525_v0  ;;  %v6006_v5 = vld [vmem:[#allocation8 + $0x130] sm:$0xff]  ;;  %v6024_v55 = vld [vmem:[#allocation8 + $0xf8] sm:$0xff] }
  0xc2   :  { %703 = vmatpush.msrb.mxu0 %v6006_v5 }
  0xc3   :  { %942 = vmatpush.msrb.mxu1 %v5534_v13  ;;  %983 = vmatpush.msrb.mxu3 %v5530_v6  ;;  %v6022_v13 = vld [vmem:[#allocation8 + $0xf0] sm:$0xff] }
  0xc5   :  { %v451_v32 = vpop.f32.mrf.mxu2  ;;  %943 = vmatpush.msrb.mxu1 %v5542_v23  ;;  %984 = vmatpush.msrb.mxu3 %v5536_v15  ;;  %v6036_v15 = vld [vmem:[#allocation8 + $0xd8] sm:$0xff] }
  0xc6   :  { %v452_v50 = vadd.f32 %v451_v32, %v5952_v36 }
  0xc7   :  { %v411_v30 = vpop.f32.mrf.mxu0  ;;  %v471_v34 = vpop.f32.mrf.mxu3  ;;  %944 = vmatpush.msrb.mxu1 %v5550_v31  ;;  %985 = vmatpush.msrb.mxu3 %v5546_v27  ;;  %v6034_v31 = vld [vmem:[#allocation8 + $0xd0] sm:$0xff] }
  0xc8   :  { %v412_v38 = vadd.f32 %v411_v30, %v5949_v42  ;;  %v472_v24 = vadd.f32 %v471_v34, %v452_v50  ;;  %v5984_v30 = vld [vmem:[#allocation8 + $0x198] sm:$0xff]  ;;  %v6044_v50 = vld [vmem:[#allocation8 + $0xb0] sm:$0xff] }
  0xc9   :  { %v431_v54 = vpop.f32.mrf.mxu1  ;;  %740 = vmatpush.msrb.mxu2 %v5984_v30  ;;  %945 = vmatpush.msrb.mxu1 %v5556_v41  ;;  %10572 = vst [vmem:[#allocation109_spill] sm:$0xff] %v6044_v50  ;;  %v6046_v41 = vld [vmem:[#allocation8 + $0xb8] sm:$0xff]  ;;  %v6052_v27 = vld [vmem:[#allocation8 + $0x90] sm:$0xff] }
  0xca   :  { %v432_v32 = vadd.f32 %v431_v54, %v412_v38  ;;  %v4038_v36 = vmul.f32 -1.442695, %v472_v24  ;;  %v6014_v24 = vld [vmem:[#allocation8 + $0x110] sm:$0xff]  ;;  %v6016_v38 = vld [vmem:[#allocation8 + $0x118] sm:$0xff]  ;;  %986 = vmatpush.msrb.mxu3 %v5553_v35  ;;  %10573 = vst [vmem:[#allocation110_spill] sm:$0xff] %v6046_v41 }
  0xcb   :  { %741 = vmatpush.msrb.mxu2 %v5992_v58  ;;  %704 = vmatpush.msrb.mxu0 %v6014_v24  ;;  %10574 = vst [vmem:[#allocation111_spill] sm:$0xff] %v6052_v27  ;;  %v6054_v54 = vld [vmem:[#allocation8 + $0x98] sm:$0xff]  ;;  %v6060_v35 = vld [vmem:[#allocation8 + $0x70] sm:$0xff] }
  0xcc   :  { %v4037_v34 = vmul.f32 -1.442695, %v432_v32  ;;  %4098 = vpow2.f32 %v4038_v36  ;;  %946 = vmatpush.msrb.mxu1 %v5562_v49  ;;  %987 = vmatpush.msrb.mxu3 %v5559_v45  ;;  %10575 = vst [vmem:[#allocation112_spill] sm:$0xff] %v6054_v54  ;;  %v6062_v49 = vld [vmem:[#allocation8 + $0x78] sm:$0xff] }
  0xcd   :  { %742 = vmatpush.msrb.mxu2 %v6000_v63  ;;  %705 = vmatpush.msrb.mxu0 %v6022_v13  ;;  %10576 = vst [vmem:[#allocation113_spill] sm:$0xff] %v6060_v35 }
  0xce   :  { %4100 = vpow2.f32 %v4037_v34  ;;  %947 = vmatpush.msrb.mxu1 %v5570_v57  ;;  %988 = vmatpush.msrb.mxu3 %v5565_v53  ;;  %10577 = vst [vmem:[#allocation114_spill] sm:$0xff] %v6062_v49  ;;  %v6073_v34 = vperm.slane %v5932_v28, 2  ;;  %v6076_v53 = vperm.slane %v5932_v28, 3  ;;  %v6090_v28 = vld [vmem:[#allocation8 + $0x30] sm:$0xff] }
  0xcf   :  { %743 = vmatpush.msrb.mxu2 %v6008_v60  ;;  %706 = vmatpush.msrb.mxu0 %v6034_v31 }
  0xd0   :  { %948 = vmatpush.msrb.mxu1 %v5576_v1  ;;  %10578 = vst [vmem:[#allocation115_spill] sm:$0xff] %v6073_v34  ;;  %989 = vmatpush.msrb.mxu3 %v5573_v61  ;;  %v6080_v1 = vld [vmem:[#allocation8 + $0x50] sm:$0xff] }
  0xd1   :  { %744 = vmatpush.msrb.mxu2 %v6016_v38  ;;  %707 = vmatpush.msrb.mxu0 %v6044_v50  ;;  %10579 = vst [vmem:[#allocation116_spill] sm:$0xff] %v6076_v53 }
  0xd2   :  { %v4099_v0 = vpop.eup %4098  ;;  %949 = vmatpush.msrb.mxu1 %v5582_v17  ;;  %990 = vmatpush.msrb.mxu3 %v5579_v9  ;;  %v6092_v17 = vld [vmem:[#allocation8 + $0x38] sm:$0xff]  ;;  %v6100_v9 = vld [vmem:[#allocation8 + $0x10] sm:$0xff] }
  0xd3   :  { %v6026_v36 = vadd.f32 1.0, %v4099_v0  ;;  %745 = vmatpush.msrb.mxu2 %v6024_v55  ;;  %708 = vmatpush.msrb.mxu0 %v6052_v27  ;;  %v6082_v0 = vld [vmem:[#allocation8 + $0x58] sm:$0xff] }
  0xd4   :  { %v4101_v23 = vpop.eup %4100  ;;  %10580 = vst [vmem:[#allocation117_spill] sm:$0xff] %v6082_v0  ;;  %950 = vmatpush.msrb.mxu1 %v5588_v33  ;;  %v10581_v33 = vld [vmem:[#allocation19_spill] sm:$0xff] }
  0xd5   :  { %v6030_v6 = vadd.f32 1.0, %v4101_v23  ;;  %4102 = vrcp.f32 %v6026_v36  ;;  %746 = vmatpush.msrb.mxu2 %v6036_v15  ;;  %709 = vmatpush.msrb.mxu0 %v6060_v35  ;;  %vm582_vm0 = vweird.f32 %v6026_v36 }
  0xd6   :  { %951 = vmatpush.msrb.mxu1 %v5594_v51  ;;  %991 = vmatpush.msrb.mxu3 %v10581_v33 }
  0xd7   :  { %4104 = vrcp.f32 %v6030_v6  ;;  %747 = vmatpush.msrb.mxu2 %v6046_v41  ;;  %710 = vmatpush.msrb.mxu0 %v6080_v1  ;;  %vm563_vm2 = vweird.f32 %v6030_v6 }
  0xd9   :  { %748 = vmatpush.msrb.mxu2 %v6054_v54  ;;  %711 = vmatpush.msrb.mxu0 %v6090_v28 }
  0xdb   :  { %v6064_v32 = vpop.eup %4102  ;;  %749 = vmatpush.msrb.mxu2 %v6062_v49  ;;  %v6102_v49 = vld [vmem:[#allocation8 + $0x18] sm:$0xff]  ;;  %712 = vmatpush.msrb.mxu0 %v6100_v9 }
  0xdc   :  { %v578_v57 = vmul.f32 %v6064_v32, %v6026_v36  ;;  %10582 = vst [vmem:[#allocation19_spill] sm:$0xff] %v6102_v49  ;;  %vm583_vm1 = vweird.f32 %v6064_v32 }
  0xdd   :  { %v6068_v45 = vpop.eup %4104  ;;  %v491_v42 = vpop.f32.mrf.mxu0  ;;  %750 = vmatpush.msrb.mxu2 %v6082_v0  ;;  %v10583_v0 = vld [vmem:[#allocation22_spill] sm:$0xff]  ;;  %vm6127_vm4 = vmor %vm582_vm0, %vm583_vm1 }
  0xde   :  { %v559_v23 = vmul.f32 %v6068_v45, %v6030_v6  ;;  %v579_v54 = vsub.f32 1.0, %v578_v57  ;;  %v492_v41 = vadd.f32 %v491_v42, %v6073_v34  ;;  %952 = vmatpush.msrb.mxu1 %v10583_v0  ;;  %v10584_v42 = vld [vmem:[#allocation20_spill] sm:$0xff]  ;;  %vm564_vm3 = vweird.f32 %v6068_v45 }
  0xdf   :  { %v511_v50 = vpop.f32.mrf.mxu1  ;;  %751 = vmatpush.msrb.mxu2 %v6092_v17  ;;  %992 = vmatpush.msrb.mxu3 %v10584_v42  ;;  %v569_v0 = vand.u32 2147483648, %v6030_v6  ;;  %vm6132_vm5 = vmor %vm563_vm2, %vm564_vm3  ;;  %v10592_v42 = vld [vmem:[#allocation24_spill] sm:$0xff] }
  0xe0   :  { %v560_v61 = vsub.f32 1.0, %v559_v23  ;;  %v512_v33 = vadd.f32 %v511_v50, %v492_v41  ;;  %953 = vmatpush.msrb.mxu1 %v5606_v39  ;;  %v567_v41 = vand.u32 2147483647, %v6030_v6 }
  0xe1   :  { %v531_v27 = vpop.f32.mrf.mxu2  ;;  %752 = vmatpush.msrb.mxu2 %v6102_v49 }
  0xe2   :  { %v532_v35 = vadd.f32 %v531_v27, %v6076_v53  ;;  %v580_v27 = vmul.f32 %v6064_v32, %v579_v54  ;;  %v561_v51 = vmul.f32 %v6068_v45, %v560_v61  ;;  %v588_v54 = vand.u32 2147483648, %v6026_v36  ;;  %954 = vmatpush.msrb.mxu1 %v5612_v25  ;;  %v10586_v61 = vld [vmem:[#allocation23_spill] sm:$0xff]  ;;  %v10591_v25 = vld [vmem:[#allocation26_spill] sm:$0xff] }
  0xe3   :  { %v551_v23 = vpop.f32.mrf.mxu3  ;;  %vm568_vm6 = vcmp.eq.f32.partialorder %v567_v41, 8.507059e+37 }
  0xe4   :  { %v552_v57 = vadd.f32 %v551_v23, %v532_v35  ;;  %v10585_v35 = vld [vmem:[#allocation21_spill] sm:$0xff]  ;;  %v562_v50 = vadd.f32 %v6068_v45, %v561_v51  ;;  %v581_v39 = vadd.f32 %v6064_v32, %v580_v27  ;;  %955 = vmatpush.msrb.mxu1 %v10591_v25  ;;  %v589_v6 = vor.u32 1.1754944e-38, %v588_v54  ;;  %v10593_v27 = vld [vmem:[#allocation28_spill] sm:$0xff]  ;;  %v10595_v25 = vld [vmem:[#allocation30_spill] sm:$0xff] }
  0xe5   :  { %993 = vmatpush.msrb.mxu3 %v10585_v35  ;;  %v570_v51 = vor.u32 1.1754944e-38, %v569_v0  ;;  %v10594_v35 = vld [vmem:[#allocation25_spill] sm:$0xff] }
  0xe6   :  { %v4039_v53 = vmul.f32 -1.442695, %v552_v57  ;;  %v586_v57 = vand.u32 2147483647, %v6026_v36  ;;  %956 = vmatpush.msrb.mxu1 %v10593_v27  ;;  %v585_v36 = vsel %vm6127_vm4, %v6064_v32, %v581_v39 }
  0xe7   :  { %994 = vmatpush.msrb.mxu3 %v10586_v61  ;;  %v566_v61 = vsel %vm6132_vm5, %v6068_v45, %v562_v50 }
  0xe8   :  { %4106 = vpow2.f32 %v4039_v53  ;;  %vm587_vm7 = vcmp.eq.f32.partialorder %v586_v57, 8.507059e+37  ;;  %957 = vmatpush.msrb.mxu1 %v10595_v25  ;;  %v571_v27 = vsel %vm568_vm6, %v570_v51, %v566_v61  ;;  %v6157_v25 = vld [vmem:[#allocation5 + $0x1c0] sm:$0xff] }
  0xe9   :  { %4108 = vtanh.f32 %v512_v33  ;;  %995 = vmatpush.msrb.mxu3 %v10592_v42  ;;  %v10596_v42 = vld [vmem:[#allocation27_spill] sm:$0xff]  ;;  %v590_v34 = vsel %vm587_vm7, %v589_v6, %v585_v36  ;;  %v6154_v36 = vld [vmem:[#allocation5 + $0x1e8] sm:$0xff] }
  0xeb   :  { %996 = vmatpush.msrb.mxu3 %v10594_v35  ;;  %v612_v35 = vmul.f32 0.0, %v590_v34 }
  0xed   :  { %997 = vmatpush.msrb.mxu3 %v10596_v42  ;;  %v10597_v42 = vld [vmem:[#allocation32_spill] sm:$0xff] }
  0xee   :  { %v4107_v33 = vpop.eup %4106 }
  0xef   :  { %v596_v54 = vadd.f32 1.0, %v4107_v33  ;;  %v4109_v0 = vpop.eup %4108 }
  0xf0   :  { %v613_v49 = vmul.f32 %v4109_v0, %v571_v27  ;;  %v10598_v0 = vld [vmem:[#allocation29_spill] sm:$0xff] }
  0xf1   :  { %4110 = vrcp.f32 %v596_v54  ;;  %v608_v32 = vand.u32 2147483648, %v596_v54  ;;  %v606_v23 = vand.u32 2147483647, %v596_v54  ;;  %vm602_vm9 = vweird.f32 %v596_v54  ;;  %v6165_v27 = vld [vmem:[#allocation5 + $0x1a0] sm:$0xff] }
  0xf2   :  { %v6148_v45 = vadd.f32 %v613_v49, %v612_v35  ;;  %v6151_v49 = vld [vmem:[#allocation5 + $0x1e0] sm:$0xff]  ;;  %v10599_v35 = vld [vmem:[#allocation34_spill] sm:$0xff] }
  0xf3   :  { %v609_v33 = vor.u32 1.1754944e-38, %v608_v32  ;;  %vm607_vm11 = vcmp.eq.f32.partialorder %v606_v23, 8.507059e+37  ;;  %v10601_v32 = vld [vmem:[#allocation36_spill] sm:$0xff]  ;;  %v6180_v23 = vld [vmem:[#allocation5 + $0x160] sm:$0xff] }
  0xf4   :  { %4112 = vtanh.f32 %v6148_v45 }
  0xf7   :  { %v4111_v53 = vpop.eup %4110 }
  0xf8   :  { %v598_v50 = vmul.f32 %v4111_v53, %v596_v54  ;;  %vm603_vm8 = vweird.f32 %v4111_v53  ;;  %v6161_v54 = vld [vmem:[#allocation5 + $0x1c8] sm:$0xff] }
  0xf9   :  { %vm604_vm10 = vmor %vm602_vm9, %vm603_vm8 }
  0xfa   :  { %v599_v41 = vsub.f32 1.0, %v598_v50  ;;  %v4113_v6 = vpop.eup %4112  ;;  %v10600_v50 = vld [vmem:[#allocation31_spill] sm:$0xff] }
  0xfc   :  { %v600_v39 = vmul.f32 %v4111_v53, %v599_v41  ;;  %v6173_v41 = vld [vmem:[#allocation5 + $0x180] sm:$0xff] }
  0xfe   :  { %v601_v57 = vadd.f32 %v4111_v53, %v600_v39  ;;  %v6177_v39 = vld [vmem:[#allocation5 + $0x188] sm:$0xff] }
 0x100   :  { %v605_v51 = vsel %vm604_vm10, %v4111_v53, %v601_v57  ;;  %v6169_v53 = vld [vmem:[#allocation5 + $0x1a8] sm:$0xff] }
 0x101   :  { %v610_v34 = vsel %vm607_vm11, %v609_v33, %v605_v51  ;;  %v6183_v57 = vld [vmem:[#allocation5 + $0x168] sm:$0xff]  ;;  %v6186_v33 = vld [vmem:[#allocation5 + $0x140] sm:$0xff] }
 0x102   :  { %v616_v61 = vmul.f32 %v4113_v6, %v610_v34  ;;  %v6189_v51 = vld [vmem:[#allocation5 + $0x148] sm:$0xff]  ;;  %v10602_v6 = vld [vmem:[#allocation33_spill] sm:$0xff] }
 0x103   :  { %v6193_v34 = vld [vmem:[#allocation5 + $0x120] sm:$0xff] }
 0x104   :  { %633 = vmatmul.f32.vlgmr.msra.gmra.mxu0 %v616_v61  ;;  %673 = vmatmul.f32.vlgmr.msra.gmra.mxu2 %v616_v61  ;;  %10603 = vst [vmem:[#allocation22_spill] sm:$0xff] %v6193_v34 }
 0x105   :  { %842 = vmatpush.msra.mxu0 %v6151_v49  ;;  %878 = vmatmul.f32.vlgmr.msra.gmra.mxu1 %v616_v61 }
 0x106   :  { %882 = vmatpush.msra.mxu2 %v6154_v36  ;;  %918 = vmatmul.f32.vlgmr.msra.gmra.mxu3 %v616_v61 }
 0x107   :  { %843 = vmatpush.msra.mxu0 %v6157_v25  ;;  %1085 = vmatpush.msra.mxu1 %v10597_v42  ;;  %v10604_v42 = vld [vmem:[#allocation38_spill] sm:$0xff] }
 0x108   :  { %883 = vmatpush.msra.mxu2 %v6161_v54  ;;  %1125 = vmatpush.msra.mxu3 %v10598_v0  ;;  %v6197_v0 = vld [vmem:[#allocation5 + $0x128] sm:$0xff] }
 0x109   :  { %844 = vmatpush.msra.mxu0 %v6165_v27  ;;  %1086 = vmatpush.msra.mxu1 %v10599_v35  ;;  %10605 = vst [vmem:[#allocation20_spill] sm:$0xff] %v6197_v0  ;;  %v6201_v35 = vld [vmem:[#allocation5 + $0x100] sm:$0xff] }
 0x10a   :  { %884 = vmatpush.msra.mxu2 %v6169_v53  ;;  %1126 = vmatpush.msra.mxu3 %v10600_v50  ;;  %10607 = vst [vmem:[#allocation21_spill] sm:$0xff] %v6201_v35  ;;  %v10608_v50 = vld [vmem:[#allocation40_spill] sm:$0xff] }
 0x10b   :  { %845 = vmatpush.msra.mxu0 %v6173_v41  ;;  %1087 = vmatpush.msra.mxu1 %v10601_v32  ;;  %v6205_v32 = vld [vmem:[#allocation5 + $0x108] sm:$0xff] }
 0x10c   :  { %885 = vmatpush.msra.mxu2 %v6177_v39  ;;  %713 = vmatmul.f32.vlgmr.msrb.gmra.mxu0 %v616_v61  ;;  %10609 = vst [vmem:[#allocation23_spill] sm:$0xff] %v6205_v32 }
 0x10d   :  { %753 = vmatmul.f32.vlgmr.msrb.gmra.mxu2 %v616_v61  ;;  %846 = vmatpush.msra.mxu0 %v6180_v23 }
 0x10e   :  { %886 = vmatpush.msra.mxu2 %v6183_v57  ;;  %958 = vmatmul.f32.vlgmr.msrb.gmra.mxu1 %v616_v61 }
 0x10f   :  { %998 = vmatmul.f32.vlgmr.msrb.gmra.mxu3 %v616_v61  ;;  %847 = vmatpush.msra.mxu0 %v6186_v33  ;;  %v10606_v61 = vld [vmem:[#allocation35_spill] sm:$0xff] }
 0x110   :  { %887 = vmatpush.msra.mxu2 %v6189_v51  ;;  %1127 = vmatpush.msra.mxu3 %v10602_v6  ;;  %v10610_v6 = vld [vmem:[#allocation37_spill] sm:$0xff] }
 0x111   :  { %848 = vmatpush.msra.mxu0 %v6193_v34  ;;  %1088 = vmatpush.msra.mxu1 %v10604_v42  ;;  %v6209_v34 = vld [vmem:[#allocation5 + $0xe0] sm:$0xff]  ;;  %v10612_v42 = vld [vmem:[#allocation42_spill] sm:$0xff] }
 0x112   :  { %888 = vmatpush.msra.mxu2 %v6197_v0  ;;  %1128 = vmatpush.msra.mxu3 %v10606_v61  ;;  %10611 = vst [vmem:[#allocation26_spill] sm:$0xff] %v6209_v34  ;;  %v6213_v0 = vld [vmem:[#allocation5 + $0xe8] sm:$0xff]  ;;  %v10614_v61 = vld [vmem:[#allocation39_spill] sm:$0xff] }
 0x113   :  { %849 = vmatpush.msra.mxu0 %v6201_v35  ;;  %1089 = vmatpush.msra.mxu1 %v10608_v50  ;;  %10613 = vst [vmem:[#allocation24_spill] sm:$0xff] %v6213_v0  ;;  %v6217_v35 = vld [vmem:[#allocation5 + $0xc0] sm:$0xff]  ;;  %v10616_v50 = vld [vmem:[#allocation44_spill] sm:$0xff] }
 0x114   :  { %889 = vmatpush.msra.mxu2 %v6205_v32  ;;  %1129 = vmatpush.msra.mxu3 %v10610_v6  ;;  %10615 = vst [vmem:[#allocation28_spill] sm:$0xff] %v6217_v35  ;;  %v6221_v32 = vld [vmem:[#allocation5 + $0xc8] sm:$0xff]  ;;  %v10618_v6 = vld [vmem:[#allocation41_spill] sm:$0xff] }
 0x115   :  { %850 = vmatpush.msra.mxu0 %v6209_v34  ;;  %1090 = vmatpush.msra.mxu1 %v10612_v42  ;;  %10617 = vst [vmem:[#allocation25_spill] sm:$0xff] %v6221_v32  ;;  %v6225_v34 = vld [vmem:[#allocation5 + $0xa0] sm:$0xff]  ;;  %v10620_v42 = vld [vmem:[#allocation46_spill] sm:$0xff] }
 0x116   :  { %890 = vmatpush.msra.mxu2 %v6213_v0  ;;  %1130 = vmatpush.msra.mxu3 %v10614_v61  ;;  %10619 = vst [vmem:[#allocation30_spill] sm:$0xff] %v6225_v34  ;;  %v6229_v0 = vld [vmem:[#allocation5 + $0xa8] sm:$0xff]  ;;  %v10622_v61 = vld [vmem:[#allocation43_spill] sm:$0xff] }
 0x117   :  { %851 = vmatpush.msra.mxu0 %v6217_v35  ;;  %1091 = vmatpush.msra.mxu1 %v10616_v50  ;;  %10621 = vst [vmem:[#allocation27_spill] sm:$0xff] %v6229_v0  ;;  %v6233_v35 = vld [vmem:[#allocation5 + $0x80] sm:$0xff]  ;;  %v10624_v50 = vld [vmem:[#allocation48_spill] sm:$0xff] }
 0x118   :  { %891 = vmatpush.msra.mxu2 %v6221_v32  ;;  %1131 = vmatpush.msra.mxu3 %v10618_v6  ;;  %10623 = vst [vmem:[#allocation32_spill] sm:$0xff] %v6233_v35  ;;  %v6237_v32 = vld [vmem:[#allocation5 + $0x88] sm:$0xff]  ;;  %v10626_v6 = vld [vmem:[#allocation45_spill] sm:$0xff] }
 0x119   :  { %852 = vmatpush.msra.mxu0 %v6225_v34  ;;  %1092 = vmatpush.msra.mxu1 %v10620_v42  ;;  %10625 = vst [vmem:[#allocation29_spill] sm:$0xff] %v6237_v32  ;;  %v6241_v34 = vld [vmem:[#allocation5 + $0x60] sm:$0xff]  ;;  %v10628_v42 = vld [vmem:[#allocation50_spill] sm:$0xff] }
 0x11a   :  { %892 = vmatpush.msra.mxu2 %v6229_v0  ;;  %1132 = vmatpush.msra.mxu3 %v10622_v61  ;;  %10627 = vst [vmem:[#allocation34_spill] sm:$0xff] %v6241_v34  ;;  %v6245_v0 = vld [vmem:[#allocation5 + $0x68] sm:$0xff]  ;;  %v10630_v61 = vld [vmem:[#allocation47_spill] sm:$0xff] }
 0x11b   :  { %853 = vmatpush.msra.mxu0 %v6233_v35  ;;  %1093 = vmatpush.msra.mxu1 %v10624_v50  ;;  %10629 = vst [vmem:[#allocation31_spill] sm:$0xff] %v6245_v0  ;;  %v6249_v35 = vld [vmem:[#allocation5 + $0x40] sm:$0xff]  ;;  %v10632_v50 = vld [vmem:[#allocation52_spill] sm:$0xff] }
 0x11c   :  { %893 = vmatpush.msra.mxu2 %v6237_v32  ;;  %1133 = vmatpush.msra.mxu3 %v10626_v6  ;;  %10631 = vst [vmem:[#allocation36_spill] sm:$0xff] %v6249_v35  ;;  %v6253_v32 = vld [vmem:[#allocation5 + $0x48] sm:$0xff]  ;;  %v10634_v6 = vld [vmem:[#allocation49_spill] sm:$0xff] }
 0x11d   :  { %854 = vmatpush.msra.mxu0 %v6241_v34  ;;  %1094 = vmatpush.msra.mxu1 %v10628_v42  ;;  %10633 = vst [vmem:[#allocation33_spill] sm:$0xff] %v6253_v32  ;;  %v6257_v34 = vld [vmem:[#allocation5 + $0x20] sm:$0xff]  ;;  %v6260_v42 = vld [vmem:[#allocation2 + $0x8] sm:$0xff] }
 0x11e   :  { %894 = vmatpush.msra.mxu2 %v6245_v0  ;;  %1134 = vmatpush.msra.mxu3 %v10630_v61  ;;  %10635 = vst [vmem:[#allocation38_spill] sm:$0xff] %v6257_v34  ;;  %v10636_v0 = vld [vmem:[#allocation54_spill] sm:$0xff] }
 0x11f   :  { %855 = vmatpush.msra.mxu0 %v6249_v35  ;;  %1095 = vmatpush.msra.mxu1 %v10632_v50  ;;  %v6263_v61 = vld [vmem:[#allocation5 + $0x28] sm:$0xff]  ;;  %v10638_v35 = vld [vmem:[#allocation51_spill] sm:$0xff]  ;;  %v6267_v50 = vld [vmem:[#allocation5] sm:$0xff] }
 0x120   :  { %895 = vmatpush.msra.mxu2 %v6253_v32  ;;  %1135 = vmatpush.msra.mxu3 %v10634_v6  ;;  %10637 = vst [vmem:[#allocation35_spill] sm:$0xff] %v6263_v61  ;;  %v10640_v32 = vld [vmem:[#allocation56_spill] sm:$0xff]  ;;  %v6271_v6 = vld [vmem:[#allocation5 + $0x8] sm:$0xff] }
 0x121   :  { %856 = vmatpush.msra.mxu0 %v6257_v34  ;;  %1096 = vmatpush.msra.mxu1 %v10636_v0  ;;  %10639 = vst [vmem:[#allocation40_spill] sm:$0xff] %v6267_v50  ;;  %v6276_v0 = vld [vmem:[#allocation5 + $0x1f0] sm:$0xff] }
 0x122   :  { %896 = vmatpush.msra.mxu2 %v6263_v61  ;;  %1136 = vmatpush.msra.mxu3 %v10638_v35  ;;  %10641 = vst [vmem:[#allocation37_spill] sm:$0xff] %v6271_v6  ;;  %v6279_v61 = vld [vmem:[#allocation5 + $0x1f8] sm:$0xff]  ;;  %v10644_v35 = vld [vmem:[#allocation53_spill] sm:$0xff]  ;;  %v6291_v34 = vld [vmem:[#allocation5 + $0x1b0] sm:$0xff] }
 0x123   :  { %857 = vmatpush.msra.mxu0 %v6267_v50  ;;  %1097 = vmatpush.msra.mxu1 %v10640_v32  ;;  %10642 = vst [vmem:[#allocation42_spill] sm:$0xff] %v6276_v0  ;;  %v6283_v50 = vld [vmem:[#allocation5 + $0x1d0] sm:$0xff]  ;;  %v6287_v32 = vld [vmem:[#allocation5 + $0x1d8] sm:$0xff] }
 0x124   :  { %897 = vmatpush.msra.mxu2 %v6271_v6  ;;  %858 = vmatmul.f32.vlgmr.msra.gmra.mxu0 %v6260_v42  ;;  %10643 = vst [vmem:[#allocation39_spill] sm:$0xff] %v6279_v61  ;;  %v10647_v6 = vld [vmem:[#allocation55_spill] sm:$0xff] }
 0x125   :  { %898 = vmatmul.f32.vlgmr.msra.gmra.mxu2 %v6260_v42  ;;  %922 = vmatpush.msrb.mxu0 %v6276_v0  ;;  %10645 = vst [vmem:[#allocation44_spill] sm:$0xff] %v6283_v50  ;;  %v10649_v0 = vld [vmem:[#allocation63_spill] sm:$0xff] }
 0x126   :  { %962 = vmatpush.msrb.mxu2 %v6279_v61  ;;  %1137 = vmatpush.msra.mxu3 %v10644_v35  ;;  %10646 = vst [vmem:[#allocation41_spill] sm:$0xff] %v6287_v32  ;;  %v6295_v61 = vld [vmem:[#allocation5 + $0x1b8] sm:$0xff]  ;;  %v10651_v35 = vld [vmem:[#allocation59_spill] sm:$0xff] }
 0x127   :  { %923 = vmatpush.msrb.mxu0 %v6283_v50  ;;  %1098 = vmatpush.msra.mxu1 %v5722_v62  ;;  %10648 = vst [vmem:[#allocation46_spill] sm:$0xff] %v6291_v34  ;;  %v6299_v50 = vld [vmem:[#allocation5 + $0x190] sm:$0xff]  ;;  %v10653_v62 = vld [vmem:[#allocation65_spill] sm:$0xff] }
 0x128   :  { %963 = vmatpush.msrb.mxu2 %v6287_v32  ;;  %1138 = vmatpush.msra.mxu3 %v10647_v6  ;;  %10650 = vst [vmem:[#allocation43_spill] sm:$0xff] %v6295_v61  ;;  %v6303_v32 = vld [vmem:[#allocation5 + $0x198] sm:$0xff]  ;;  %v10655_v6 = vld [vmem:[#allocation62_spill] sm:$0xff] }
 0x129   :  { %924 = vmatpush.msrb.mxu0 %v6291_v34  ;;  %1099 = vmatpush.msra.mxu1 %v10649_v0  ;;  %10652 = vst [vmem:[#allocation48_spill] sm:$0xff] %v6299_v50  ;;  %v6307_v34 = vld [vmem:[#allocation5 + $0x170] sm:$0xff] }
 0x12a   :  { %964 = vmatpush.msrb.mxu2 %v6295_v61  ;;  %1139 = vmatpush.msra.mxu3 %v10651_v35  ;;  %10654 = vst [vmem:[#allocation45_spill] sm:$0xff] %v6303_v32  ;;  %v10657_v0 = vld [vmem:[#allocation67_spill] sm:$0xff]  ;;  %v6311_v61 = vld [vmem:[#allocation5 + $0x178] sm:$0xff] }
 0x12b   :  { %925 = vmatpush.msrb.mxu0 %v6299_v50  ;;  %1100 = vmatpush.msra.mxu1 %v10653_v62  ;;  %10656 = vst [vmem:[#allocation50_spill] sm:$0xff] %v6307_v34  ;;  %v10659_v35 = vld [vmem:[#allocation64_spill] sm:$0xff]  ;;  %v6315_v50 = vld [vmem:[#allocation5 + $0x150] sm:$0xff]  ;;  %v10661_v62 = vld [vmem:[#allocation69_spill] sm:$0xff] }
 0x12c   :  { %965 = vmatpush.msrb.mxu2 %v6303_v32  ;;  %1140 = vmatpush.msra.mxu3 %v10655_v6  ;;  %10658 = vst [vmem:[#allocation47_spill] sm:$0xff] %v6311_v61  ;;  %v6319_v32 = vld [vmem:[#allocation5 + $0x158] sm:$0xff]  ;;  %v10663_v6 = vld [vmem:[#allocation66_spill] sm:$0xff] }
 0x12d   :  { %926 = vmatpush.msrb.mxu0 %v6307_v34  ;;  %1165 = vmatpush.msrb.mxu1 %v10657_v0  ;;  %10660 = vst [vmem:[#allocation52_spill] sm:$0xff] %v6315_v50  ;;  %v6323_v34 = vld [vmem:[#allocation5 + $0x130] sm:$0xff] }
 0x12e   :  { %966 = vmatpush.msrb.mxu2 %v6311_v61  ;;  %1205 = vmatpush.msrb.mxu3 %v10659_v35  ;;  %10662 = vst [vmem:[#allocation49_spill] sm:$0xff] %v6319_v32  ;;  %v10665_v0 = vld [vmem:[#allocation71_spill] sm:$0xff]  ;;  %v6327_v61 = vld [vmem:[#allocation5 + $0x138] sm:$0xff] }
 0x12f   :  { %927 = vmatpush.msrb.mxu0 %v6315_v50  ;;  %1166 = vmatpush.msrb.mxu1 %v10661_v62  ;;  %10664 = vst [vmem:[#allocation54_spill] sm:$0xff] %v6323_v34  ;;  %v10667_v35 = vld [vmem:[#allocation68_spill] sm:$0xff]  ;;  %v6331_v50 = vld [vmem:[#allocation5 + $0x110] sm:$0xff]  ;;  %v10669_v62 = vld [vmem:[#allocation73_spill] sm:$0xff] }
 0x130   :  { %967 = vmatpush.msrb.mxu2 %v6319_v32  ;;  %1206 = vmatpush.msrb.mxu3 %v10663_v6  ;;  %10666 = vst [vmem:[#allocation51_spill] sm:$0xff] %v6327_v61  ;;  %v6335_v32 = vld [vmem:[#allocation5 + $0x118] sm:$0xff]  ;;  %v10671_v6 = vld [vmem:[#allocation70_spill] sm:$0xff] }
 0x131   :  { %928 = vmatpush.msrb.mxu0 %v6323_v34  ;;  %1167 = vmatpush.msrb.mxu1 %v10665_v0  ;;  %10668 = vst [vmem:[#allocation56_spill] sm:$0xff] %v6331_v50  ;;  %v6339_v34 = vld [vmem:[#allocation5 + $0xf0] sm:$0xff] }
 0x132   :  { %968 = vmatpush.msrb.mxu2 %v6327_v61  ;;  %1207 = vmatpush.msrb.mxu3 %v10667_v35  ;;  %10670 = vst [vmem:[#allocation53_spill] sm:$0xff] %v6335_v32  ;;  %v10673_v0 = vld [vmem:[#allocation75_spill] sm:$0xff]  ;;  %v6343_v61 = vld [vmem:[#allocation5 + $0xf8] sm:$0xff] }
 0x133   :  { %929 = vmatpush.msrb.mxu0 %v6331_v50  ;;  %1168 = vmatpush.msrb.mxu1 %v10669_v62  ;;  %10672 = vst [vmem:[#allocation55_spill] sm:$0xff] %v6339_v34  ;;  %v10675_v35 = vld [vmem:[#allocation72_spill] sm:$0xff]  ;;  %v6347_v50 = vld [vmem:[#allocation5 + $0xd0] sm:$0xff]  ;;  %v10677_v62 = vld [vmem:[#allocation77_spill] sm:$0xff] }
 0x134   :  { %969 = vmatpush.msrb.mxu2 %v6335_v32  ;;  %1208 = vmatpush.msrb.mxu3 %v10671_v6  ;;  %10674 = vst [vmem:[#allocation63_spill] sm:$0xff] %v6343_v61  ;;  %v6351_v32 = vld [vmem:[#allocation5 + $0xd8] sm:$0xff]  ;;  %v10679_v6 = vld [vmem:[#allocation74_spill] sm:$0xff] }
 0x135   :  { %930 = vmatpush.msrb.mxu0 %v6339_v34  ;;  %1169 = vmatpush.msrb.mxu1 %v10673_v0  ;;  %10676 = vst [vmem:[#allocation59_spill] sm:$0xff] %v6347_v50  ;;  %v6355_v34 = vld [vmem:[#allocation5 + $0xb0] sm:$0xff] }
 0x136   :  { %970 = vmatpush.msrb.mxu2 %v6343_v61  ;;  %1209 = vmatpush.msrb.mxu3 %v10675_v35  ;;  %10678 = vst [vmem:[#allocation65_spill] sm:$0xff] %v6351_v32  ;;  %v10681_v0 = vld [vmem:[#allocation79_spill] sm:$0xff]  ;;  %v6359_v61 = vld [vmem:[#allocation5 + $0xb8] sm:$0xff] }
 0x137   :  { %931 = vmatpush.msrb.mxu0 %v6347_v50  ;;  %1170 = vmatpush.msrb.mxu1 %v10677_v62  ;;  %10680 = vst [vmem:[#allocation62_spill] sm:$0xff] %v6355_v34  ;;  %v10683_v35 = vld [vmem:[#allocation76_spill] sm:$0xff]  ;;  %v6363_v50 = vld [vmem:[#allocation5 + $0x90] sm:$0xff]  ;;  %v10685_v62 = vld [vmem:[#allocation81_spill] sm:$0xff] }
 0x138   :  { %971 = vmatpush.msrb.mxu2 %v6351_v32  ;;  %1210 = vmatpush.msrb.mxu3 %v10679_v6  ;;  %10682 = vst [vmem:[#allocation67_spill] sm:$0xff] %v6359_v61  ;;  %v6367_v32 = vld [vmem:[#allocation5 + $0x98] sm:$0xff]  ;;  %v10687_v6 = vld [vmem:[#allocation78_spill] sm:$0xff] }
 0x139   :  { %932 = vmatpush.msrb.mxu0 %v6355_v34  ;;  %1171 = vmatpush.msrb.mxu1 %v10681_v0  ;;  %10684 = vst [vmem:[#allocation64_spill] sm:$0xff] %v6363_v50  ;;  %v6371_v34 = vld [vmem:[#allocation5 + $0x70] sm:$0xff]  ;;  %v6375_v0 = vld [vmem:[#allocation5 + $0x78] sm:$0xff] }
 0x13a   :  { %972 = vmatpush.msrb.mxu2 %v6359_v61  ;;  %1211 = vmatpush.msrb.mxu3 %v10683_v35  ;;  %10686 = vst [vmem:[#allocation69_spill] sm:$0xff] %v6367_v32  ;;  %v10690_v35 = vld [vmem:[#allocation80_spill] sm:$0xff] }
 0x13b   :  { %933 = vmatpush.msrb.mxu0 %v6363_v50  ;;  %1172 = vmatpush.msrb.mxu1 %v10685_v62  ;;  %10688 = vst [vmem:[#allocation66_spill] sm:$0xff] %v6371_v34  ;;  %v6379_v50 = vld [vmem:[#allocation5 + $0x50] sm:$0xff]  ;;  %v10692_v62 = vld [vmem:[#allocation84_spill] sm:$0xff] }
 0x13c   :  { %973 = vmatpush.msrb.mxu2 %v6367_v32  ;;  %1212 = vmatpush.msrb.mxu3 %v10687_v6  ;;  %10689 = vst [vmem:[#allocation71_spill] sm:$0xff] %v6375_v0  ;;  %v6383_v32 = vld [vmem:[#allocation5 + $0x58] sm:$0xff]  ;;  %v10694_v6 = vld [vmem:[#allocation82_spill] sm:$0xff] }
 0x13d   :  { %934 = vmatpush.msrb.mxu0 %v6371_v34  ;;  %1173 = vmatpush.msrb.mxu1 %v5797_v21  ;;  %10691 = vst [vmem:[#allocation68_spill] sm:$0xff] %v6379_v50  ;;  %v6387_v34 = vld [vmem:[#allocation5 + $0x30] sm:$0xff]  ;;  %v10696_v21 = vld [vmem:[#allocation86_spill] sm:$0xff]  ;;  %v10710_v61 = vld [vmem:[#allocation92_spill] sm:$0xff] }
 0x13e   :  { %974 = vmatpush.msrb.mxu2 %v6375_v0  ;;  %1213 = vmatpush.msrb.mxu3 %v10690_v35  ;;  %10693 = vst [vmem:[#allocation73_spill] sm:$0xff] %v6383_v32  ;;  %v6391_v0 = vld [vmem:[#allocation5 + $0x38] sm:$0xff]  ;;  %v10698_v35 = vld [vmem:[#allocation83_spill] sm:$0xff] }
 0x13f   :  { %935 = vmatpush.msrb.mxu0 %v6379_v50  ;;  %1174 = vmatpush.msrb.mxu1 %v10692_v62  ;;  %10695 = vst [vmem:[#allocation70_spill] sm:$0xff] %v6387_v34  ;;  %v6395_v50 = vld [vmem:[#allocation5 + $0x10] sm:$0xff]  ;;  %v10700_v62 = vld [vmem:[#allocation88_spill] sm:$0xff] }
 0x140   :  { %975 = vmatpush.msrb.mxu2 %v6383_v32  ;;  %1214 = vmatpush.msrb.mxu3 %v10694_v6  ;;  %10697 = vst [vmem:[#allocation75_spill] sm:$0xff] %v6391_v0  ;;  %v6399_v32 = vld [vmem:[#allocation5 + $0x18] sm:$0xff]  ;;  %v10702_v6 = vld [vmem:[#allocation57_spill] sm:$0xff] }
 0x141   :  { %936 = vmatpush.msrb.mxu0 %v6387_v34  ;;  %1175 = vmatpush.msrb.mxu1 %v10696_v21  ;;  %10699 = vst [vmem:[#allocation72_spill] sm:$0xff] %v6395_v50  ;;  %v10703_v21 = vld [vmem:[#allocation58_spill] sm:$0xff]  ;;  %v10706_v34 = vld [vmem:[#allocation89_spill] sm:$0xff] }
 0x142   :  { %976 = vmatpush.msrb.mxu2 %v6391_v0  ;;  %1215 = vmatpush.msrb.mxu3 %v10698_v35  ;;  %10701 = vst [vmem:[#allocation77_spill] sm:$0xff] %v6399_v32  ;;  %v10704_v0 = vld [vmem:[#allocation85_spill] sm:$0xff]  ;;  %v10705_v35 = vld [vmem:[#allocation60_spill] sm:$0xff] }
 0x143   :  { %937 = vmatpush.msrb.mxu0 %v6395_v50  ;;  %1176 = vmatpush.msrb.mxu1 %v10700_v62  ;;  %v10707_v50 = vld [vmem:[#allocation61_spill] sm:$0xff]  ;;  %v10708_v62 = vld [vmem:[#allocation87_spill] sm:$0xff] }
 0x144   :  { %977 = vmatpush.msrb.mxu2 %v6399_v32  ;;  %938 = vmatmul.f32.vlgmr.msrb.gmra.mxu0 %v6260_v42  ;;  %v10709_v32 = vld [vmem:[#allocation90_spill] sm:$0xff] }
 0x145   :  { %978 = vmatmul.f32.vlgmr.msrb.gmra.mxu2 %v6260_v42  ;;  %1065 = vmatpush.msra.mxu0 %v10702_v6  ;;  %v10711_v42 = vld [vmem:[#allocation91_spill] sm:$0xff]  ;;  %v10712_v6 = vld [vmem:[#allocation93_spill] sm:$0xff] }
 0x146   :  { %1105 = vmatpush.msra.mxu2 %v10703_v21  ;;  %1216 = vmatpush.msrb.mxu3 %v10704_v0  ;;  %v10713_v0 = vld [vmem:[#allocation95_spill] sm:$0xff]  ;;  %v10714_v21 = vld [vmem:[#allocation94_spill] sm:$0xff] }
 0x147   :  { %1066 = vmatpush.msra.mxu0 %v10705_v35  ;;  %1177 = vmatpush.msrb.mxu1 %v10706_v34  ;;  %v10715_v34 = vld [vmem:[#allocation96_spill] sm:$0xff] }
 0x148   :  { %1106 = vmatpush.msra.mxu2 %v10707_v50  ;;  %1217 = vmatpush.msrb.mxu3 %v10708_v62 }
 0x149   :  { %1067 = vmatpush.msra.mxu0 %v5828_v59  ;;  %1178 = vmatpush.msrb.mxu1 %v10709_v32  ;;  %v10716_v59 = vld [vmem:[#allocation97_spill] sm:$0xff] }
 0x14a   :  { %1107 = vmatpush.msra.mxu2 %v10710_v61  ;;  %1218 = vmatpush.msrb.mxu3 %v10711_v42 }
 0x14b   :  { %1068 = vmatpush.msra.mxu0 %v5842_v47  ;;  %1179 = vmatpush.msrb.mxu1 %v10712_v6  ;;  %v10722_v47 = vld [vmem:[#allocation103_spill] sm:$0xff] }
 0x14c   :  { %1108 = vmatpush.msra.mxu2 %v10713_v0  ;;  %1219 = vmatpush.msrb.mxu3 %v10714_v21 }
 0x14d   :  { %1069 = vmatpush.msra.mxu0 %v5854_v3  ;;  %1180 = vmatpush.msrb.mxu1 %v10715_v34  ;;  %v10718_v3 = vld [vmem:[#allocation99_spill] sm:$0xff] }
 0x14e   :  { %1109 = vmatpush.msra.mxu2 %v5856_v11  ;;  %1220 = vmatpush.msrb.mxu3 %v10716_v59  ;;  %v10720_v11 = vld [vmem:[#allocation101_spill] sm:$0xff] }
 0x14f   :  { %1070 = vmatpush.msra.mxu0 %v5862_v43  ;;  %v10717_v43 = vld [vmem:[#allocation98_spill] sm:$0xff] }
 0x150   :  { %1110 = vmatpush.msra.mxu2 %v5864_v29  ;;  %v10723_v29 = vld [vmem:[#allocation104_spill] sm:$0xff] }
 0x151   :  { %1071 = vmatpush.msra.mxu0 %v5870_v19  ;;  %v10719_v19 = vld [vmem:[#allocation100_spill] sm:$0xff] }
 0x152   :  { %1111 = vmatpush.msra.mxu2 %v5872_v37  ;;  %v10721_v37 = vld [vmem:[#allocation102_spill] sm:$0xff] }
 0x153   :  { %1072 = vmatpush.msra.mxu0 %v5878_v2  ;;  %v10724_v2 = vld [vmem:[#allocation107_spill] sm:$0xff] }
 0x154   :  { %1112 = vmatpush.msra.mxu2 %v5880_v7  ;;  %v10725_v7 = vld [vmem:[#allocation108_spill] sm:$0xff] }
 0x155   :  { %1073 = vmatpush.msra.mxu0 %v5886_v4  ;;  %v10726_v4 = vld [vmem:[#allocation109_spill] sm:$0xff] }
 0x156   :  { %1113 = vmatpush.msra.mxu2 %v5888_v10  ;;  %v10727_v10 = vld [vmem:[#allocation110_spill] sm:$0xff] }
 0x157   :  { %1074 = vmatpush.msra.mxu0 %v5894_v8  ;;  %v10728_v8 = vld [vmem:[#allocation111_spill] sm:$0xff] }
 0x158   :  { %1114 = vmatpush.msra.mxu2 %v5896_v14  ;;  %v383_v14 = vld [vmem:[#allocation10] sm:$0xf] }
 0x159   :  { %1075 = vmatpush.msra.mxu0 %v5902_v12  ;;  %v10729_v12 = vld [vmem:[#allocation112_spill] sm:$0xff] }
 0x15a   :  { %1115 = vmatpush.msra.mxu2 %v5904_v18  ;;  %v10730_v18 = vld [vmem:[#allocation113_spill] sm:$0xff] }
 0x15b   :  { %1076 = vmatpush.msra.mxu0 %v5910_v16  ;;  %v10731_v16 = vld [vmem:[#allocation114_spill] sm:$0xff] }
 0x15c   :  { %1116 = vmatpush.msra.mxu2 %v5912_v22  ;;  %v6471_v22 = vperm.slane %v383_v14, 0 }
 0x15d   :  { %1077 = vmatpush.msra.mxu0 %v5918_v20  ;;  %v10733_v20 = vld [vmem:[#allocation117_spill] sm:$0xff] }
 0x15e   :  { %1117 = vmatpush.msra.mxu2 %v10717_v43  ;;  %10732 = vst [vmem:[#allocation74_spill] sm:$0xff] %v6471_v22 }
 0x15f   :  { %1078 = vmatpush.msra.mxu0 %v10718_v3 }
 0x160   :  { %1118 = vmatpush.msra.mxu2 %v10719_v19 }
 0x161   :  { %1079 = vmatpush.msra.mxu0 %v10720_v11 }
 0x162   :  { %1119 = vmatpush.msra.mxu2 %v10721_v37 }
 0x163   :  { %1080 = vmatpush.msra.mxu0 %v10722_v47 }
 0x164   :  { %1120 = vmatpush.msra.mxu2 %v10723_v29 }
 0x165   :  { %1145 = vmatpush.msrb.mxu0 %v10724_v2 }
 0x166   :  { %1185 = vmatpush.msrb.mxu2 %v10725_v7 }
 0x167   :  { %1146 = vmatpush.msrb.mxu0 %v5964_v40 }
 0x168   :  { %1186 = vmatpush.msrb.mxu2 %v5966_v46  ;;  %v654_v46 = vpop.f32.mrf.mxu1 }
 0x169   :  { %1147 = vmatpush.msrb.mxu0 %v5974_v44  ;;  %v10734_v44 = vld [vmem:[#allocation19_spill] sm:$0xff] }
 0x16a   :  { %1187 = vmatpush.msrb.mxu2 %v5976_v26 }
 0x16b   :  { %1148 = vmatpush.msrb.mxu0 %v5982_v48 }
 0x16c   :  { %1188 = vmatpush.msrb.mxu2 %v5984_v30  ;;  %v6480_v30 = vperm.slane %v383_v14, 1 }
 0x16d   :  { %1149 = vmatpush.msrb.mxu0 %v5990_v52 }
 0x16e   :  { %1189 = vmatpush.msrb.mxu2 %v5992_v58  ;;  %10735 = vst [vmem:[#allocation79_spill] sm:$0xff] %v6480_v30 }
 0x16f   :  { %1150 = vmatpush.msrb.mxu0 %v5998_v56 }
 0x170   :  { %1190 = vmatpush.msrb.mxu2 %v6000_v63  ;;  %v694_v63 = vpop.f32.mrf.mxu3  ;;  %v734_v6 = vpop.f32.mrf.mxu1 }
 0x171   :  { %1151 = vmatpush.msrb.mxu0 %v6006_v5 }
 0x172   :  { %1191 = vmatpush.msrb.mxu2 %v6008_v60 }
 0x173   :  { %1152 = vmatpush.msrb.mxu0 %v6014_v24 }
 0x174   :  { %1192 = vmatpush.msrb.mxu2 %v6016_v38  ;;  %v6483_v38 = vperm.slane %v383_v14, 3 }
 0x175   :  { %1153 = vmatpush.msrb.mxu0 %v6022_v13 }
 0x176   :  { %1193 = vmatpush.msrb.mxu2 %v6024_v55  ;;  %10736 = vst [vmem:[#allocation76_spill] sm:$0xff] %v6483_v38 }
 0x177   :  { %1154 = vmatpush.msrb.mxu0 %v6034_v31 }
 0x178   :  { %1194 = vmatpush.msrb.mxu2 %v6036_v15  ;;  %v774_v15 = vpop.f32.mrf.mxu3 }
 0x179   :  { %1155 = vmatpush.msrb.mxu0 %v10726_v4 }
 0x17a   :  { %1195 = vmatpush.msrb.mxu2 %v10727_v10 }
 0x17b   :  { %1156 = vmatpush.msrb.mxu0 %v10728_v8 }
 0x17c   :  { %1196 = vmatpush.msrb.mxu2 %v10729_v12 }
 0x17d   :  { %1157 = vmatpush.msrb.mxu0 %v10730_v18 }
 0x17e   :  { %1197 = vmatpush.msrb.mxu2 %v10731_v16 }
 0x17f   :  { %1158 = vmatpush.msrb.mxu0 %v6080_v1 }
 0x180   :  { %1198 = vmatpush.msrb.mxu2 %v10733_v20 }
 0x181   :  { %1159 = vmatpush.msrb.mxu0 %v6090_v28  ;;  %v634_v26 = vpop.f32.mrf.mxu0  ;;  %v6486_v28 = vperm.slane %v383_v14, 2  ;;  %v10738_v14 = vld [vmem:[#allocation105_spill] sm:$0xff] }
 0x182   :  { %1199 = vmatpush.msrb.mxu2 %v6092_v17  ;;  %v635_v40 = vadd.f32 %v634_v26, %v6471_v22 }
 0x183   :  { %1160 = vmatpush.msrb.mxu0 %v6100_v9  ;;  %10737 = vst [vmem:[#allocation81_spill] sm:$0xff] %v6486_v28 }
 0x184   :  { %1200 = vmatpush.msrb.mxu2 %v10734_v44  ;;  %v655_v48 = vadd.f32 %v654_v46, %v635_v40  ;;  %v879_v40 = vpop.f32.mrf.mxu1 }
 0x186   :  { %v4040_v52 = vmul.f32 -1.442695, %v655_v48 }
 0x187   :  { %v674_v58 = vpop.f32.mrf.mxu2 }
 0x188   :  { %4114 = vpow2.f32 %v4040_v52  ;;  %v675_v56 = vadd.f32 %v674_v58, %v6480_v30 }
 0x189   :  { %v714_v61 = vpop.f32.mrf.mxu0 }
 0x18a   :  { %v695_v5 = vadd.f32 %v694_v63, %v675_v56  ;;  %v715_v62 = vadd.f32 %v714_v61, %v6486_v28 }
 0x18c   :  { %v4041_v60 = vmul.f32 -1.442695, %v695_v5  ;;  %v735_v0 = vadd.f32 %v734_v6, %v715_v62 }
 0x18e   :  { %v4115_v24 = vpop.eup %4114  ;;  %4116 = vpow2.f32 %v4041_v60  ;;  %v10739_v60 = vld [vmem:[#allocation106_spill] sm:$0xff] }
 0x18f   :  { %v780_v13 = vadd.f32 1.0, %v4115_v24 }
 0x190   :  { %v754_v55 = vpop.f32.mrf.mxu2 }
 0x191   :  { %4118 = vrcp.f32 %v780_v13  ;;  %v755_v31 = vadd.f32 %v754_v55, %v6483_v38  ;;  %v792_v19 = vand.u32 2147483648, %v780_v13  ;;  %vm786_vm13 = vweird.f32 %v780_v13 }
 0x192   :  { %v790_v47 = vand.u32 2147483647, %v780_v13 }
 0x193   :  { %v775_v17 = vadd.f32 %v774_v15, %v755_v31  ;;  %v793_v8 = vor.u32 1.1754944e-38, %v792_v19  ;;  %v6502_v19 = vld [vmem:[#allocation5 + $0x3c0] sm:$0xff] }
 0x194   :  { %v4117_v1 = vpop.eup %4116  ;;  %vm791_vm1 = vcmp.eq.f32.partialorder %v790_v47, 8.507059e+37  ;;  %v6510_v47 = vld [vmem:[#allocation5 + $0x3a0] sm:$0xff] }
 0x195   :  { %v799_v9 = vadd.f32 1.0, %v4117_v1  ;;  %v4042_v50 = vmul.f32 -1.442695, %v775_v17 }
 0x197   :  { %v4119_v32 = vpop.eup %4118  ;;  %4120 = vrcp.f32 %v799_v9  ;;  %v811_v29 = vand.u32 2147483648, %v799_v9  ;;  %v809_v10 = vand.u32 2147483647, %v799_v9  ;;  %vm805_vm0 = vweird.f32 %v799_v9 }
 0x198   :  { %v782_v35 = vmul.f32 %v4119_v32, %v780_v13  ;;  %4122 = vpow2.f32 %v4042_v50  ;;  %vm787_vm12 = vweird.f32 %v4119_v32  ;;  %v919_v13 = vpop.f32.mrf.mxu3 }
 0x199   :  { %4124 = vtanh.f32 %v735_v0  ;;  %vm788_vm14 = vmor %vm786_vm13, %vm787_vm12  ;;  %v812_v16 = vor.u32 1.1754944e-38, %v811_v29  ;;  %vm810_vm3 = vcmp.eq.f32.partialorder %v809_v10, 8.507059e+37  ;;  %v6513_v29 = vld [vmem:[#allocation5 + $0x3a8] sm:$0xff] }
 0x19a   :  { %v783_v42 = vsub.f32 1.0, %v782_v35  ;;  %v6527_v10 = vld [vmem:[#allocation5 + $0x368] sm:$0xff] }
 0x19c   :  { %v784_v21 = vmul.f32 %v4119_v32, %v783_v42 }
 0x19d   :  { %v4121_v34 = vpop.eup %4120 }
 0x19e   :  { %v4123_v59 = vpop.eup %4122  ;;  %v801_v43 = vmul.f32 %v4121_v34, %v799_v9  ;;  %v785_v3 = vadd.f32 %v4119_v32, %v784_v21  ;;  %vm806_vm15 = vweird.f32 %v4121_v34 }
 0x19f   :  { %v819_v11 = vadd.f32 1.0, %v4123_v59  ;;  %vm807_vm2 = vmor %vm805_vm0, %vm806_vm15  ;;  %v4125_v26 = vpop.eup %4124  ;;  %v6494_v59 = vld [vmem:[#allocation5 + $0x3e0] sm:$0xff] }
 0x1a0   :  { %v802_v37 = vsub.f32 1.0, %v801_v43  ;;  %v789_v4 = vsel %vm788_vm14, %v4119_v32, %v785_v3  ;;  %v6497_v43 = vld [vmem:[#allocation5 + $0x3e8] sm:$0xff] }
 0x1a1   :  { %4126 = vrcp.f32 %v819_v11  ;;  %v859_v2 = vpop.f32.mrf.mxu0  ;;  %v794_v20 = vsel %vm791_vm1, %v793_v8, %v789_v4  ;;  %v831_v9 = vand.u32 2147483648, %v819_v11  ;;  %v829_v50 = vand.u32 2147483647, %v819_v11  ;;  %v6524_v4 = vld [vmem:[#allocation5 + $0x360] sm:$0xff] }
 0x1a2   :  { %v803_v7 = vmul.f32 %v4121_v34, %v802_v37  ;;  %v860_v12 = vadd.f32 %v859_v2, %v10738_v14  ;;  %v836_v56 = vmul.f32 %v4125_v26, %v794_v20  ;;  %vm825_vm5 = vweird.f32 %v819_v11  ;;  %v6517_v2 = vld [vmem:[#allocation5 + $0x380] sm:$0xff]  ;;  %v6541_v20 = vld [vmem:[#allocation5 + $0x328] sm:$0xff] }
 0x1a3   :  { %v832_v62 = vor.u32 1.1754944e-38, %v831_v9  ;;  %vm830_vm7 = vcmp.eq.f32.partialorder %v829_v50, 8.507059e+37  ;;  %v6530_v8 = vld [vmem:[#allocation5 + $0x340] sm:$0xff] }
 0x1a4   :  { %v804_v18 = vadd.f32 %v4121_v34, %v803_v7  ;;  %v880_v52 = vadd.f32 %v879_v40, %v860_v12  ;;  %v6520_v7 = vld [vmem:[#allocation5 + $0x388] sm:$0xff]  ;;  %v6546_v40 = vld [vmem:[#allocation5 + $0x300] sm:$0xff] }
 0x1a5   :  { %v6533_v12 = vld [vmem:[#allocation5 + $0x348] sm:$0xff]  ;;  %v6570_v50 = vld [vmem:[#allocation5 + $0x2a0] sm:$0xff] }
 0x1a6   :  { %v808_v46 = vsel %vm807_vm2, %v4121_v34, %v804_v18  ;;  %v4043_v15 = vmul.f32 -1.442695, %v880_v52 }
 0x1a7   :  { %v4127_v44 = vpop.eup %4126  ;;  %v813_v48 = vsel %vm810_vm3, %v812_v16, %v808_v46  ;;  %v6538_v16 = vld [vmem:[#allocation5 + $0x320] sm:$0xff]  ;;  %v6549_v46 = vld [vmem:[#allocation5 + $0x308] sm:$0xff] }
 0x1a8   :  { %v835_v58 = vmul.f32 0.0, %v813_v48  ;;  %v821_v63 = vmul.f32 %v4127_v44, %v819_v11  ;;  %v899_v5 = vpop.f32.mrf.mxu2  ;;  %vm826_vm4 = vweird.f32 %v4127_v44  ;;  %v6505_v11 = vld [vmem:[#allocation5 + $0x3c8] sm:$0xff] }
 0x1a9   :  { %v900_v24 = vadd.f32 %v899_v5, %v10739_v60  ;;  %vm827_vm6 = vmor %vm825_vm5, %vm826_vm4  ;;  %v6562_v5 = vld [vmem:[#allocation5 + $0x2c0] sm:$0xff] }
 0x1aa   :  { %v6491_v55 = vadd.f32 %v836_v56, %v835_v58  ;;  %v822_v31 = vsub.f32 1.0, %v821_v63  ;;  %v6556_v58 = vld [vmem:[#allocation5 + $0x2e0] sm:$0xff]  ;;  %v6559_v56 = vld [vmem:[#allocation5 + $0x2e8] sm:$0xff] }
 0x1ab   :  { %v920_v1 = vadd.f32 %v919_v13, %v900_v24  ;;  %v6565_v24 = vld [vmem:[#allocation5 + $0x2c8] sm:$0xff]  ;;  %v10740_v13 = vld [vmem:[#allocation115_spill] sm:$0xff] }
 0x1ac   :  { %v823_v17 = vmul.f32 %v4127_v44, %v822_v31  ;;  %4128 = vtanh.f32 %v6491_v55 }
 0x1ad   :  { %v4044_v61 = vmul.f32 -1.442695, %v920_v1  ;;  %4130 = vpow2.f32 %v4043_v15  ;;  %v10741_v15 = vld [vmem:[#allocation116_spill] sm:$0xff] }
 0x1ae   :  { %v824_v32 = vadd.f32 %v4127_v44, %v823_v17  ;;  %v999_v17 = vpop.f32.mrf.mxu3 }
 0x1af   :  { %4132 = vpow2.f32 %v4044_v61 }
 0x1b0   :  { %v828_v35 = vsel %vm827_vm6, %v4127_v44, %v824_v32  ;;  %v6573_v32 = vld [vmem:[#allocation5 + $0x2a8] sm:$0xff] }
 0x1b1   :  { %v833_v6 = vsel %vm830_vm7, %v832_v62, %v828_v35  ;;  %v959_v62 = vpop.f32.mrf.mxu1 }
 0x1b2   :  { %v4129_v42 = vpop.eup %4128 }
 0x1b3   :  { %v839_v0 = vmul.f32 %v4129_v42, %v833_v6  ;;  %v4131_v21 = vpop.eup %4130  ;;  %v6576_v42 = vld [vmem:[#allocation5 + $0x280] sm:$0xff]  ;;  %v6579_v6 = vld [vmem:[#allocation5 + $0x288] sm:$0xff] }
 0x1b4   :  { %v6500_v3 = vadd.f32 1.0, %v4131_v21  ;;  %10742 = vst [vmem:[#allocation78_spill] sm:$0xff] %v6576_v42 }
 0x1b5   :  { %1101 = vmatmul.f32.vlgmr.msra.gmra.mxu1 %v839_v0  ;;  %1141 = vmatmul.f32.vlgmr.msra.gmra.mxu3 %v839_v0  ;;  %v4133_v34 = vpop.eup %4132  ;;  %10743 = vst [vmem:[#allocation80_spill] sm:$0xff] %v6579_v6 }
 0x1b6   :  { %1310 = vmatpush.msra.mxu1 %v6494_v59  ;;  %1350 = vmatpush.msra.mxu3 %v6497_v43  ;;  %v6508_v37 = vadd.f32 1.0, %v4133_v34  ;;  %4134 = vrcp.f32 %v6500_v3  ;;  %vm1011_vm10 = vweird.f32 %v6500_v3 }
 0x1b8   :  { %1311 = vmatpush.msra.mxu1 %v6502_v19  ;;  %1351 = vmatpush.msra.mxu3 %v6505_v11  ;;  %4136 = vrcp.f32 %v6508_v37  ;;  %vm1030_vm11 = vweird.f32 %v6508_v37 }
 0x1ba   :  { %1312 = vmatpush.msra.mxu1 %v6510_v47  ;;  %1352 = vmatpush.msra.mxu3 %v6513_v29 }
 0x1bc   :  { %1313 = vmatpush.msra.mxu1 %v6517_v2  ;;  %1353 = vmatpush.msra.mxu3 %v6520_v7  ;;  %v6536_v18 = vpop.eup %4134 }
 0x1bd   :  { %1181 = vmatmul.f32.vlgmr.msrb.gmra.mxu1 %v839_v0  ;;  %1221 = vmatmul.f32.vlgmr.msrb.gmra.mxu3 %v839_v0  ;;  %v1007_v44 = vmul.f32 %v6536_v18, %v6500_v3  ;;  %vm1012_vm8 = vweird.f32 %v6536_v18 }
 0x1be   :  { %1314 = vmatpush.msra.mxu1 %v6524_v4  ;;  %1354 = vmatpush.msra.mxu3 %v6527_v10  ;;  %v6544_v26 = vpop.eup %4136  ;;  %vm6610_vm12 = vmor %vm1011_vm10, %vm1012_vm8 }
 0x1bf   :  { %v1026_v48 = vmul.f32 %v6544_v26, %v6508_v37  ;;  %v1008_v9 = vsub.f32 1.0, %v1007_v44  ;;  %vm1031_vm9 = vweird.f32 %v6544_v26 }
 0x1c0   :  { %1315 = vmatpush.msra.mxu1 %v6530_v8  ;;  %1355 = vmatpush.msra.mxu3 %v6533_v12  ;;  %vm6624_vm13 = vmor %vm1030_vm11, %vm1031_vm9 }
 0x1c1   :  { %v939_v52 = vpop.f32.mrf.mxu0  ;;  %v1027_v61 = vsub.f32 1.0, %v1026_v48  ;;  %v1009_v44 = vmul.f32 %v6536_v18, %v1008_v9  ;;  %v6584_v48 = vld [vmem:[#allocation5 + $0x260] sm:$0xff] }
 0x1c2   :  { %1316 = vmatpush.msra.mxu1 %v6538_v16  ;;  %1356 = vmatpush.msra.mxu3 %v6541_v20  ;;  %v940_v31 = vadd.f32 %v939_v52, %v10740_v13  ;;  %10744 = vst [vmem:[#allocation84_spill] sm:$0xff] %v6584_v48  ;;  %v6587_v52 = vld [vmem:[#allocation5 + $0x268] sm:$0xff]  ;;  %v6600_v9 = vld [vmem:[#allocation5 + $0x220] sm:$0xff] }
 0x1c3   :  { %v1028_v34 = vmul.f32 %v6544_v26, %v1027_v61  ;;  %10745 = vst [vmem:[#allocation82_spill] sm:$0xff] %v6587_v52  ;;  %v6603_v61 = vld [vmem:[#allocation5 + $0x228] sm:$0xff] }
 0x1c4   :  { %1317 = vmatpush.msra.mxu1 %v6546_v40  ;;  %1357 = vmatpush.msra.mxu3 %v6549_v46  ;;  %v960_v0 = vadd.f32 %v959_v62, %v940_v31  ;;  %v1010_v31 = vadd.f32 %v6536_v18, %v1009_v44  ;;  %10748 = vst [vmem:[#allocation88_spill] sm:$0xff] %v6600_v9  ;;  %v1017_v62 = vand.u32 2147483648, %v6500_v3  ;;  %v6616_v44 = vld [vmem:[#allocation5 + $0x200] sm:$0xff] }
 0x1c5   :  { %10749 = vst [vmem:[#allocation57_spill] sm:$0xff] %v6603_v61 }
 0x1c6   :  { %1318 = vmatpush.msra.mxu1 %v6556_v58  ;;  %1358 = vmatpush.msra.mxu3 %v6559_v56  ;;  %10752 = vst [vmem:[#allocation58_spill] sm:$0xff] %v6616_v44 }
 0x1c8   :  { %v979_v63 = vpop.f32.mrf.mxu2  ;;  %1319 = vmatpush.msra.mxu1 %v6562_v5  ;;  %1359 = vmatpush.msra.mxu3 %v6565_v24 }
 0x1c9   :  { %v980_v1 = vadd.f32 %v979_v63, %v10741_v15  ;;  %v6590_v63 = vld [vmem:[#allocation5 + $0x240] sm:$0xff] }
 0x1ca   :  { %1320 = vmatpush.msra.mxu1 %v6570_v50  ;;  %1360 = vmatpush.msra.mxu3 %v6573_v32  ;;  %10746 = vst [vmem:[#allocation86_spill] sm:$0xff] %v6590_v63 }
 0x1cb   :  { %v1000_v35 = vadd.f32 %v999_v17, %v980_v1  ;;  %v6593_v1 = vld [vmem:[#allocation5 + $0x248] sm:$0xff]  ;;  %v1029_v17 = vadd.f32 %v6544_v26, %v1028_v34  ;;  %v1034_v34 = vand.u32 2147483647, %v6508_v37 }
 0x1cc   :  { %1321 = vmatpush.msra.mxu1 %v6576_v42  ;;  %1361 = vmatpush.msra.mxu3 %v6579_v6  ;;  %10747 = vst [vmem:[#allocation83_spill] sm:$0xff] %v6593_v1  ;;  %v1018_v6 = vor.u32 1.1754944e-38, %v1017_v62  ;;  %v6640_v42 = vld [vmem:[#allocation5 + $0x3d0] sm:$0xff] }
 0x1cd   :  { %v4045_v21 = vmul.f32 -1.442695, %v1000_v35  ;;  %v1036_v35 = vand.u32 2147483648, %v6508_v37  ;;  %v1014_v37 = vsel %vm6610_vm12, %v6536_v18, %v1010_v31  ;;  %vm1035_vm15 = vcmp.eq.f32.partialorder %v1034_v34, 8.507059e+37  ;;  %v6670_v34 = vld [vmem:[#allocation5 + $0x358] sm:$0xff] }
 0x1ce   :  { %1322 = vmatpush.msra.mxu1 %v6584_v48  ;;  %1362 = vmatpush.msra.mxu3 %v6587_v52  ;;  %10760 = vst [vmem:[#allocation90_spill] sm:$0xff] %v6670_v34 }
 0x1cf   :  { %4138 = vpow2.f32 %v4045_v21  ;;  %v1015_v21 = vand.u32 2147483647, %v6500_v3  ;;  %v6631_v3 = vld [vmem:[#allocation5 + $0x3f8] sm:$0xff]  ;;  %v1037_v48 = vor.u32 1.1754944e-38, %v1036_v35 }
 0x1d0   :  { %1323 = vmatpush.msra.mxu1 %v6590_v63  ;;  %1363 = vmatpush.msra.mxu3 %v6593_v1  ;;  %4140 = vtanh.f32 %v960_v0  ;;  %v6628_v63 = vld [vmem:[#allocation5 + $0x3f0] sm:$0xff] }
 0x1d1   :  { %10756 = vst [vmem:[#allocation60_spill] sm:$0xff] %v6628_v63  ;;  %vm1016_vm14 = vcmp.eq.f32.partialorder %v1015_v21, 8.507059e+37  ;;  %v6646_v0 = vld [vmem:[#allocation5 + $0x3b0] sm:$0xff] }
 0x1d2   :  { %1324 = vmatpush.msra.mxu1 %v6600_v9  ;;  %1364 = vmatpush.msra.mxu3 %v6603_v61  ;;  %v6619_v61 = vld [vmem:[#allocation5 + $0x208] sm:$0xff]  ;;  %v1019_v18 = vsel %vm1016_vm14, %v1018_v6, %v1014_v37  ;;  %v6667_v21 = vld [vmem:[#allocation5 + $0x350] sm:$0xff] }
 0x1d3   :  { %10753 = vst [vmem:[#allocation85_spill] sm:$0xff] %v6619_v61  ;;  %v6673_v37 = vld [vmem:[#allocation5 + $0x330] sm:$0xff] }
 0x1d4   :  { %1325 = vmatpush.msra.mxu1 %v6616_v44  ;;  %1365 = vmatpush.msra.mxu3 %v6619_v61  ;;  %v1033_v61 = vsel %vm6624_vm13, %v6544_v26, %v1029_v17  ;;  %v6649_v26 = vld [vmem:[#allocation5 + $0x3b8] sm:$0xff]  ;;  %v6652_v17 = vld [vmem:[#allocation5 + $0x390] sm:$0xff]  ;;  %10759 = vst [vmem:[#allocation87_spill] sm:$0xff] %v6667_v21 }
 0x1d5   :  { %v4139_v9 = vpop.eup %4138  ;;  %v1038_v31 = vsel %vm1035_vm15, %v1037_v48, %v1033_v61  ;;  %v6659_v48 = vld [vmem:[#allocation5 + $0x370] sm:$0xff]  ;;  %v6662_v61 = vld [vmem:[#allocation5 + $0x378] sm:$0xff]  ;;  %10761 = vst [vmem:[#allocation92_spill] sm:$0xff] %v6673_v37 }
 0x1d6   :  { %1390 = vmatpush.msrb.mxu1 %v6628_v63  ;;  %1430 = vmatpush.msrb.mxu3 %v6631_v3  ;;  %v1044_v44 = vadd.f32 1.0, %v4139_v9  ;;  %v4141_v52 = vpop.eup %4140  ;;  %v6643_v63 = vld [vmem:[#allocation5 + $0x3d8] sm:$0xff]  ;;  %v1060_v6 = vmul.f32 %v1038_v31, %v6148_v45  ;;  %10757 = vst [vmem:[#allocation89_spill] sm:$0xff] %v6659_v48 }
 0x1d7   :  { %v1061_v1 = vmul.f32 %v4141_v52, %v1019_v18  ;;  %v6655_v9 = vld [vmem:[#allocation5 + $0x398] sm:$0xff]  ;;  %10758 = vst [vmem:[#allocation61_spill] sm:$0xff] %v6662_v61 }
 0x1d8   :  { %1391 = vmatpush.msrb.mxu1 %v6640_v42  ;;  %1431 = vmatpush.msrb.mxu3 %v6643_v63  ;;  %4142 = vrcp.f32 %v1044_v44  ;;  %v6676_v18 = vld [vmem:[#allocation5 + $0x338] sm:$0xff]  ;;  %v1056_v31 = vand.u32 2147483648, %v1044_v44  ;;  %vm1050_vm1 = vweird.f32 %v1044_v44 }
 0x1d9   :  { %v6665_v52 = vadd.f32 %v1061_v1, %v1060_v6  ;;  %10762 = vst [vmem:[#allocation91_spill] sm:$0xff] %v6676_v18  ;;  %v1054_v6 = vand.u32 2147483647, %v1044_v44 }
 0x1da   :  { %1392 = vmatpush.msrb.mxu1 %v6646_v0  ;;  %1432 = vmatpush.msrb.mxu3 %v6649_v26 }
 0x1db   :  { %4144 = vtanh.f32 %v6665_v52  ;;  %vm1055_vm3 = vcmp.eq.f32.partialorder %v1054_v6, 8.507059e+37  ;;  %v10781_v6 = vld [vmem:[#allocation23_spill] sm:$0xff] }
 0x1dc   :  { %1393 = vmatpush.msrb.mxu1 %v6652_v17  ;;  %1433 = vmatpush.msrb.mxu3 %v6655_v9 }
 0x1de   :  { %1394 = vmatpush.msrb.mxu1 %v6659_v48  ;;  %1434 = vmatpush.msrb.mxu3 %v6662_v61  ;;  %v4143_v35 = vpop.eup %4142  ;;  %v6692_v48 = vld [vmem:[#allocation5 + $0x2d0] sm:$0xff] }
 0x1df   :  { %v1046_v62 = vmul.f32 %v4143_v35, %v1044_v44  ;;  %vm1051_vm0 = vweird.f32 %v4143_v35 }
 0x1e0   :  { %1395 = vmatpush.msrb.mxu1 %v6667_v21  ;;  %1435 = vmatpush.msrb.mxu3 %v6670_v34  ;;  %v6680_v21 = vld [vmem:[#allocation5 + $0x310] sm:$0xff]  ;;  %v6683_v34 = vld [vmem:[#allocation5 + $0x318] sm:$0xff]  ;;  %vm1052_vm2 = vmor %vm1050_vm1, %vm1051_vm0 }
 0x1e1   :  { %v1047_v45 = vsub.f32 1.0, %v1046_v62  ;;  %10763 = vst [vmem:[#allocation93_spill] sm:$0xff] %v6680_v21  ;;  %v4145_v44 = vpop.eup %4144 }
 0x1e2   :  { %1396 = vmatpush.msrb.mxu1 %v6673_v37  ;;  %1436 = vmatpush.msrb.mxu3 %v6676_v18  ;;  %10764 = vst [vmem:[#allocation95_spill] sm:$0xff] %v6683_v34  ;;  %v6686_v37 = vld [vmem:[#allocation5 + $0x2f0] sm:$0xff]  ;;  %v6689_v18 = vld [vmem:[#allocation5 + $0x2f8] sm:$0xff] }
 0x1e3   :  { %v1048_v1 = vmul.f32 %v4143_v35, %v1047_v45  ;;  %10765 = vst [vmem:[#allocation94_spill] sm:$0xff] %v6686_v37  ;;  %v1057_v45 = vor.u32 1.1754944e-38, %v1056_v31  ;;  %v6715_v31 = vld [vmem:[#allocation5 + $0x270] sm:$0xff] }
 0x1e4   :  { %1397 = vmatpush.msrb.mxu1 %v6680_v21  ;;  %1437 = vmatpush.msrb.mxu3 %v6683_v34  ;;  %10766 = vst [vmem:[#allocation96_spill] sm:$0xff] %v6689_v18  ;;  %v6695_v21 = vld [vmem:[#allocation5 + $0x2d8] sm:$0xff] }
 0x1e5   :  { %v1049_v62 = vadd.f32 %v4143_v35, %v1048_v1  ;;  %10768 = vst [vmem:[#allocation98_spill] sm:$0xff] %v6715_v31 }
 0x1e6   :  { %1398 = vmatpush.msrb.mxu1 %v6686_v37  ;;  %1438 = vmatpush.msrb.mxu3 %v6689_v18  ;;  %v6698_v37 = vld [vmem:[#allocation5 + $0x2b0] sm:$0xff]  ;;  %v6701_v18 = vld [vmem:[#allocation5 + $0x2b8] sm:$0xff] }
 0x1e7   :  { %v1053_v61 = vsel %vm1052_vm2, %v4143_v35, %v1049_v62  ;;  %v6711_v35 = vld [vmem:[#allocation5 + $0x298] sm:$0xff]  ;;  %v6756_v62 = vld [vmem:[#allocation8 + $0x3c0] sm:$0xff] }
 0x1e8   :  { %1399 = vmatpush.msrb.mxu1 %v6692_v48  ;;  %1439 = vmatpush.msrb.mxu3 %v6695_v21  ;;  %v1058_v1 = vsel %vm1055_vm3, %v1057_v45, %v1053_v61  ;;  %v6707_v61 = vld [vmem:[#allocation5 + $0x290] sm:$0xff]  ;;  %10767 = vst [vmem:[#allocation97_spill] sm:$0xff] %v6711_v35  ;;  %v10784_v45 = vld [vmem:[#allocation26_spill] sm:$0xff] }
 0x1e9   :  { %v1064_v34 = vmul.f32 %v4145_v44, %v1058_v1  ;;  %10782 = vst [vmem:[#allocation110_spill] sm:$0xff] %v6756_v62  ;;  %v10785_v44 = vld [vmem:[#allocation24_spill] sm:$0xff]  ;;  %v6764_v1 = vld [vmem:[#allocation8 + $0x3a0] sm:$0xff] }
 0x1ea   :  { %1400 = vmatpush.msrb.mxu1 %v6698_v37  ;;  %1440 = vmatpush.msrb.mxu3 %v6701_v18  ;;  %10786 = vst [vmem:[#allocation112_spill] sm:$0xff] %v6764_v1 }
 0x1eb   :  { %1081 = vmatmul.f32.vlgmr.msra.gmra.mxu0 %v1064_v34  ;;  %1121 = vmatmul.f32.vlgmr.msra.gmra.mxu2 %v1064_v34 }
 0x1ec   :  { %1290 = vmatpush.msra.mxu0 %v6151_v49  ;;  %1326 = vmatmul.f32.vlgmr.msra.gmra.mxu1 %v1064_v34  ;;  %v6719_v49 = vld [vmem:[#allocation5 + $0x278] sm:$0xff] }
 0x1ed   :  { %1330 = vmatpush.msra.mxu2 %v6154_v36  ;;  %1366 = vmatmul.f32.vlgmr.msra.gmra.mxu3 %v1064_v34  ;;  %10769 = vst [vmem:[#allocation99_spill] sm:$0xff] %v6719_v49  ;;  %v6723_v36 = vld [vmem:[#allocation5 + $0x250] sm:$0xff] }
 0x1ee   :  { %1291 = vmatpush.msra.mxu0 %v6157_v25  ;;  %1401 = vmatpush.msrb.mxu1 %v6707_v61  ;;  %10770 = vst [vmem:[#allocation100_spill] sm:$0xff] %v6723_v36  ;;  %v6727_v25 = vld [vmem:[#allocation5 + $0x258] sm:$0xff] }
 0x1ef   :  { %1331 = vmatpush.msra.mxu2 %v6161_v54  ;;  %1441 = vmatpush.msrb.mxu3 %v6711_v35  ;;  %10771 = vst [vmem:[#allocation101_spill] sm:$0xff] %v6727_v25  ;;  %v6732_v54 = vld [vmem:[#allocation5 + $0x230] sm:$0xff] }
 0x1f0   :  { %1292 = vmatpush.msra.mxu0 %v6165_v27  ;;  %1402 = vmatpush.msrb.mxu1 %v6715_v31  ;;  %10772 = vst [vmem:[#allocation102_spill] sm:$0xff] %v6732_v54  ;;  %v6735_v27 = vld [vmem:[#allocation5 + $0x238] sm:$0xff] }
 0x1f1   :  { %1332 = vmatpush.msra.mxu2 %v6169_v53  ;;  %1442 = vmatpush.msrb.mxu3 %v6719_v49  ;;  %10773 = vst [vmem:[#allocation103_spill] sm:$0xff] %v6735_v27  ;;  %v6740_v53 = vld [vmem:[#allocation5 + $0x210] sm:$0xff] }
 0x1f2   :  { %1293 = vmatpush.msra.mxu0 %v6173_v41  ;;  %1403 = vmatpush.msrb.mxu1 %v6723_v36  ;;  %10774 = vst [vmem:[#allocation104_spill] sm:$0xff] %v6740_v53  ;;  %v6743_v41 = vld [vmem:[#allocation5 + $0x218] sm:$0xff] }
 0x1f3   :  { %1333 = vmatpush.msra.mxu2 %v6177_v39  ;;  %1443 = vmatpush.msrb.mxu3 %v6727_v25  ;;  %10775 = vst [vmem:[#allocation107_spill] sm:$0xff] %v6743_v41  ;;  %v10776_v39 = vld [vmem:[#allocation22_spill] sm:$0xff] }
 0x1f4   :  { %1161 = vmatmul.f32.vlgmr.msrb.gmra.mxu0 %v1064_v34  ;;  %1201 = vmatmul.f32.vlgmr.msrb.gmra.mxu2 %v1064_v34 }
 0x1f5   :  { %1294 = vmatpush.msra.mxu0 %v6180_v23  ;;  %1334 = vmatpush.msra.mxu2 %v6183_v57  ;;  %v10777_v23 = vld [vmem:[#allocation20_spill] sm:$0xff]  ;;  %v6748_v57 = vld [vmem:[#allocation8 + $0x3e0] sm:$0xff] }
 0x1f6   :  { %1404 = vmatpush.msrb.mxu1 %v6732_v54  ;;  %1444 = vmatpush.msrb.mxu3 %v6735_v27  ;;  %10778 = vst [vmem:[#allocation108_spill] sm:$0xff] %v6748_v57 }
 0x1f7   :  { %1295 = vmatpush.msra.mxu0 %v6186_v33  ;;  %1335 = vmatpush.msra.mxu2 %v6189_v51  ;;  %v6751_v33 = vld [vmem:[#allocation8 + $0x3e8] sm:$0xff]  ;;  %v10780_v51 = vld [vmem:[#allocation21_spill] sm:$0xff] }
 0x1f8   :  { %1405 = vmatpush.msrb.mxu1 %v6740_v53  ;;  %1445 = vmatpush.msrb.mxu3 %v6743_v41  ;;  %10779 = vst [vmem:[#allocation109_spill] sm:$0xff] %v6751_v33 }
 0x1f9   :  { %1406 = vmatmul.f32.vlgmr.msrb.gmra.mxu1 %v1064_v34  ;;  %1446 = vmatmul.f32.vlgmr.msrb.gmra.mxu3 %v1064_v34  ;;  %v6759_v34 = vld [vmem:[#allocation8 + $0x3c8] sm:$0xff] }
 0x1fa   :  { %1296 = vmatpush.msra.mxu0 %v10776_v39  ;;  %1336 = vmatpush.msra.mxu2 %v10777_v23  ;;  %10783 = vst [vmem:[#allocation111_spill] sm:$0xff] %v6759_v34  ;;  %v6767_v39 = vld [vmem:[#allocation8 + $0x3a8] sm:$0xff]  ;;  %v10788_v23 = vld [vmem:[#allocation28_spill] sm:$0xff] }
 0x1fb   :  { %1533 = vmatpush.msra.mxu1 %v6748_v57  ;;  %1573 = vmatpush.msra.mxu3 %v6751_v33  ;;  %10787 = vst [vmem:[#allocation113_spill] sm:$0xff] %v6767_v39 }
 0x1fc   :  { %1297 = vmatpush.msra.mxu0 %v10780_v51  ;;  %1337 = vmatpush.msra.mxu2 %v10781_v6  ;;  %v10789_v51 = vld [vmem:[#allocation25_spill] sm:$0xff] }
 0x1fd   :  { %1534 = vmatpush.msra.mxu1 %v6756_v62  ;;  %1574 = vmatpush.msra.mxu3 %v6759_v34  ;;  %v6772_v6 = vld [vmem:[#allocation8 + $0x380] sm:$0xff]  ;;  %v6775_v34 = vld [vmem:[#allocation8 + $0x388] sm:$0xff] }
 0x1fe   :  { %1298 = vmatpush.msra.mxu0 %v10784_v45  ;;  %1338 = vmatpush.msra.mxu2 %v10785_v44  ;;  %10790 = vst [vmem:[#allocation114_spill] sm:$0xff] %v6772_v6  ;;  %v10792_v45 = vld [vmem:[#allocation30_spill] sm:$0xff]  ;;  %v10793_v44 = vld [vmem:[#allocation27_spill] sm:$0xff] }
 0x1ff   :  { %1535 = vmatpush.msra.mxu1 %v6764_v1  ;;  %1575 = vmatpush.msra.mxu3 %v6767_v39  ;;  %10791 = vst [vmem:[#allocation117_spill] sm:$0xff] %v6775_v34  ;;  %v6780_v1 = vld [vmem:[#allocation8 + $0x360] sm:$0xff]  ;;  %v6783_v39 = vld [vmem:[#allocation8 + $0x368] sm:$0xff] }
 0x200   :  { %1299 = vmatpush.msra.mxu0 %v10788_v23  ;;  %1339 = vmatpush.msra.mxu2 %v10789_v51  ;;  %10794 = vst [vmem:[#allocation19_spill] sm:$0xff] %v6780_v1  ;;  %v10796_v23 = vld [vmem:[#allocation32_spill] sm:$0xff]  ;;  %v10797_v51 = vld [vmem:[#allocation29_spill] sm:$0xff] }
 0x201   :  { %1536 = vmatpush.msra.mxu1 %v6772_v6  ;;  %1576 = vmatpush.msra.mxu3 %v6775_v34  ;;  %10795 = vst [vmem:[#allocation106_spill] sm:$0xff] %v6783_v39  ;;  %v6788_v6 = vld [vmem:[#allocation8 + $0x340] sm:$0xff]  ;;  %v6791_v34 = vld [vmem:[#allocation8 + $0x348] sm:$0xff] }
 0x202   :  { %1300 = vmatpush.msra.mxu0 %v10792_v45  ;;  %1340 = vmatpush.msra.mxu2 %v10793_v44  ;;  %10798 = vst [vmem:[#allocation22_spill] sm:$0xff] %v6788_v6  ;;  %v10800_v45 = vld [vmem:[#allocation34_spill] sm:$0xff]  ;;  %v10801_v44 = vld [vmem:[#allocation31_spill] sm:$0xff] }
 0x203   :  { %1537 = vmatpush.msra.mxu1 %v6780_v1  ;;  %1577 = vmatpush.msra.mxu3 %v6783_v39  ;;  %10799 = vst [vmem:[#allocation20_spill] sm:$0xff] %v6791_v34  ;;  %v6796_v1 = vld [vmem:[#allocation8 + $0x320] sm:$0xff]  ;;  %v6799_v39 = vld [vmem:[#allocation8 + $0x328] sm:$0xff] }
 0x204   :  { %1301 = vmatpush.msra.mxu0 %v10796_v23  ;;  %1341 = vmatpush.msra.mxu2 %v10797_v51  ;;  %10802 = vst [vmem:[#allocation21_spill] sm:$0xff] %v6796_v1  ;;  %v10804_v23 = vld [vmem:[#allocation36_spill] sm:$0xff]  ;;  %v10805_v51 = vld [vmem:[#allocation33_spill] sm:$0xff] }
 0x205   :  { %1538 = vmatpush.msra.mxu1 %v6788_v6  ;;  %1578 = vmatpush.msra.mxu3 %v6791_v34  ;;  %10803 = vst [vmem:[#allocation23_spill] sm:$0xff] %v6799_v39  ;;  %v6804_v6 = vld [vmem:[#allocation8 + $0x300] sm:$0xff]  ;;  %v6807_v34 = vld [vmem:[#allocation8 + $0x308] sm:$0xff] }
 0x206   :  { %1302 = vmatpush.msra.mxu0 %v10800_v45  ;;  %1342 = vmatpush.msra.mxu2 %v10801_v44  ;;  %10806 = vst [vmem:[#allocation26_spill] sm:$0xff] %v6804_v6  ;;  %v10808_v45 = vld [vmem:[#allocation38_spill] sm:$0xff]  ;;  %v10809_v44 = vld [vmem:[#allocation35_spill] sm:$0xff] }
 0x207   :  { %1539 = vmatpush.msra.mxu1 %v6796_v1  ;;  %1579 = vmatpush.msra.mxu3 %v6799_v39  ;;  %10807 = vst [vmem:[#allocation24_spill] sm:$0xff] %v6807_v34  ;;  %v6812_v1 = vld [vmem:[#allocation2 + $0x10] sm:$0xff]  ;;  %v6814_v62 = vld [vmem:[#allocation8 + $0x2e0] sm:$0xff] }
 0x208   :  { %1303 = vmatpush.msra.mxu0 %v10804_v23  ;;  %1343 = vmatpush.msra.mxu2 %v10805_v51  ;;  %10810 = vst [vmem:[#allocation28_spill] sm:$0xff] %v6814_v62  ;;  %v6817_v23 = vld [vmem:[#allocation8 + $0x2e8] sm:$0xff]  ;;  %v10812_v51 = vld [vmem:[#allocation40_spill] sm:$0xff] }
 0x209   :  { %1540 = vmatpush.msra.mxu1 %v6804_v6  ;;  %1580 = vmatpush.msra.mxu3 %v6807_v34  ;;  %10811 = vst [vmem:[#allocation25_spill] sm:$0xff] %v6817_v23  ;;  %v10813_v6 = vld [vmem:[#allocation37_spill] sm:$0xff]  ;;  %v6837_v39 = vld [vmem:[#allocation8 + $0x2a8] sm:$0xff] }
 0x20a   :  { %1304 = vmatpush.msra.mxu0 %v10808_v45  ;;  %1344 = vmatpush.msra.mxu2 %v10809_v44  ;;  %v10814_v45 = vld [vmem:[#allocation42_spill] sm:$0xff]  ;;  %v10815_v44 = vld [vmem:[#allocation39_spill] sm:$0xff]  ;;  %10821 = vst [vmem:[#allocation29_spill] sm:$0xff] %v6837_v39 }
 0x20b   :  { %1541 = vmatpush.msra.mxu1 %v6814_v62  ;;  %1581 = vmatpush.msra.mxu3 %v6817_v23  ;;  %v6826_v34 = vld [vmem:[#allocation8 + $0x2c0] sm:$0xff]  ;;  %v6829_v62 = vld [vmem:[#allocation8 + $0x2c8] sm:$0xff]  ;;  %v10818_v23 = vld [vmem:[#allocation44_spill] sm:$0xff] }
 0x20c   :  { %1305 = vmatpush.msra.mxu0 %v10812_v51  ;;  %1345 = vmatpush.msra.mxu2 %v10813_v6  ;;  %10816 = vst [vmem:[#allocation30_spill] sm:$0xff] %v6826_v34  ;;  %v10819_v51 = vld [vmem:[#allocation41_spill] sm:$0xff] }
 0x20d   :  { %1306 = vmatmul.f32.vlgmr.msra.gmra.mxu0 %v6812_v1  ;;  %1346 = vmatmul.f32.vlgmr.msra.gmra.mxu2 %v6812_v1  ;;  %10817 = vst [vmem:[#allocation27_spill] sm:$0xff] %v6829_v62  ;;  %v6834_v6 = vld [vmem:[#allocation8 + $0x2a0] sm:$0xff] }
 0x20e   :  { %1370 = vmatpush.msrb.mxu0 %v10814_v45  ;;  %1410 = vmatpush.msrb.mxu2 %v10815_v44  ;;  %10820 = vst [vmem:[#allocation32_spill] sm:$0xff] %v6834_v6  ;;  %v10822_v45 = vld [vmem:[#allocation46_spill] sm:$0xff]  ;;  %v10823_v44 = vld [vmem:[#allocation43_spill] sm:$0xff] }
 0x20f   :  { %1542 = vmatpush.msra.mxu1 %v6826_v34  ;;  %1582 = vmatpush.msra.mxu3 %v6829_v62  ;;  %v6842_v34 = vld [vmem:[#allocation8 + $0x280] sm:$0xff]  ;;  %v6845_v62 = vld [vmem:[#allocation8 + $0x288] sm:$0xff] }
 0x210   :  { %1371 = vmatpush.msrb.mxu0 %v10818_v23  ;;  %1411 = vmatpush.msrb.mxu2 %v10819_v51  ;;  %10824 = vst [vmem:[#allocation34_spill] sm:$0xff] %v6842_v34  ;;  %v10826_v23 = vld [vmem:[#allocation48_spill] sm:$0xff]  ;;  %v10827_v51 = vld [vmem:[#allocation45_spill] sm:$0xff] }
 0x211   :  { %1543 = vmatpush.msra.mxu1 %v6834_v6  ;;  %1583 = vmatpush.msra.mxu3 %v6837_v39  ;;  %10825 = vst [vmem:[#allocation31_spill] sm:$0xff] %v6845_v62  ;;  %v6850_v6 = vld [vmem:[#allocation8 + $0x260] sm:$0xff]  ;;  %v6853_v39 = vld [vmem:[#allocation8 + $0x268] sm:$0xff] }
 0x212   :  { %1372 = vmatpush.msrb.mxu0 %v10822_v45  ;;  %1412 = vmatpush.msrb.mxu2 %v10823_v44  ;;  %10828 = vst [vmem:[#allocation36_spill] sm:$0xff] %v6850_v6  ;;  %v10830_v45 = vld [vmem:[#allocation50_spill] sm:$0xff]  ;;  %v10831_v44 = vld [vmem:[#allocation47_spill] sm:$0xff] }
 0x213   :  { %1544 = vmatpush.msra.mxu1 %v6842_v34  ;;  %1584 = vmatpush.msra.mxu3 %v6845_v62  ;;  %10829 = vst [vmem:[#allocation33_spill] sm:$0xff] %v6853_v39  ;;  %v6858_v34 = vld [vmem:[#allocation8 + $0x240] sm:$0xff]  ;;  %v6861_v62 = vld [vmem:[#allocation8 + $0x248] sm:$0xff] }
 0x214   :  { %1373 = vmatpush.msrb.mxu0 %v10826_v23  ;;  %1413 = vmatpush.msrb.mxu2 %v10827_v51  ;;  %10832 = vst [vmem:[#allocation38_spill] sm:$0xff] %v6858_v34  ;;  %v10834_v23 = vld [vmem:[#allocation52_spill] sm:$0xff]  ;;  %v10835_v51 = vld [vmem:[#allocation49_spill] sm:$0xff] }
 0x215   :  { %1545 = vmatpush.msra.mxu1 %v6850_v6  ;;  %1585 = vmatpush.msra.mxu3 %v6853_v39  ;;  %10833 = vst [vmem:[#allocation35_spill] sm:$0xff] %v6861_v62  ;;  %v6866_v6 = vld [vmem:[#allocation8 + $0x220] sm:$0xff]  ;;  %v6869_v39 = vld [vmem:[#allocation8 + $0x228] sm:$0xff] }
 0x216   :  { %1374 = vmatpush.msrb.mxu0 %v10830_v45  ;;  %1414 = vmatpush.msrb.mxu2 %v10831_v44  ;;  %10836 = vst [vmem:[#allocation40_spill] sm:$0xff] %v6866_v6  ;;  %v10838_v45 = vld [vmem:[#allocation54_spill] sm:$0xff]  ;;  %v10839_v44 = vld [vmem:[#allocation51_spill] sm:$0xff] }
 0x217   :  { %1546 = vmatpush.msra.mxu1 %v6858_v34  ;;  %1586 = vmatpush.msra.mxu3 %v6861_v62  ;;  %10837 = vst [vmem:[#allocation37_spill] sm:$0xff] %v6869_v39  ;;  %v6874_v34 = vld [vmem:[#allocation8 + $0x200] sm:$0xff]  ;;  %v6877_v62 = vld [vmem:[#allocation8 + $0x208] sm:$0xff] }
 0x218   :  { %1375 = vmatpush.msrb.mxu0 %v10834_v23  ;;  %1415 = vmatpush.msrb.mxu2 %v10835_v51  ;;  %10840 = vst [vmem:[#allocation42_spill] sm:$0xff] %v6874_v34  ;;  %v10842_v23 = vld [vmem:[#allocation56_spill] sm:$0xff]  ;;  %v10843_v51 = vld [vmem:[#allocation53_spill] sm:$0xff] }
 0x219   :  { %1547 = vmatpush.msra.mxu1 %v6866_v6  ;;  %1587 = vmatpush.msra.mxu3 %v6869_v39  ;;  %10841 = vst [vmem:[#allocation39_spill] sm:$0xff] %v6877_v62  ;;  %v6882_v6 = vld [vmem:[#allocation8 + $0x3f0] sm:$0xff]  ;;  %v6885_v39 = vld [vmem:[#allocation8 + $0x3f8] sm:$0xff] }
 0x21a   :  { %1376 = vmatpush.msrb.mxu0 %v10838_v45  ;;  %1416 = vmatpush.msrb.mxu2 %v10839_v44  ;;  %10844 = vst [vmem:[#allocation44_spill] sm:$0xff] %v6882_v6  ;;  %v10846_v45 = vld [vmem:[#allocation55_spill] sm:$0xff] }
 0x21b   :  { %1548 = vmatpush.msra.mxu1 %v6874_v34  ;;  %1588 = vmatpush.msra.mxu3 %v6877_v62  ;;  %10845 = vst [vmem:[#allocation41_spill] sm:$0xff] %v6885_v39  ;;  %v10847_v44 = vld [vmem:[#allocation63_spill] sm:$0xff]  ;;  %v6893_v62 = vld [vmem:[#allocation8 + $0x3d8] sm:$0xff] }
 0x21c   :  { %1377 = vmatpush.msrb.mxu0 %v10842_v23  ;;  %1417 = vmatpush.msrb.mxu2 %v10843_v51  ;;  %v6890_v34 = vld [vmem:[#allocation8 + $0x3d0] sm:$0xff]  ;;  %10849 = vst [vmem:[#allocation43_spill] sm:$0xff] %v6893_v62  ;;  %v10851_v51 = vld [vmem:[#allocation65_spill] sm:$0xff] }
 0x21d   :  { %1613 = vmatpush.msrb.mxu1 %v6882_v6  ;;  %1653 = vmatpush.msrb.mxu3 %v6885_v39  ;;  %10848 = vst [vmem:[#allocation46_spill] sm:$0xff] %v6890_v34  ;;  %v10850_v23 = vld [vmem:[#allocation59_spill] sm:$0xff]  ;;  %v6901_v39 = vld [vmem:[#allocation8 + $0x3b8] sm:$0xff] }
 0x21e   :  { %1378 = vmatpush.msrb.mxu0 %v10846_v45  ;;  %1418 = vmatpush.msrb.mxu2 %v10847_v44  ;;  %v6898_v6 = vld [vmem:[#allocation8 + $0x3b0] sm:$0xff]  ;;  %10853 = vst [vmem:[#allocation45_spill] sm:$0xff] %v6901_v39  ;;  %v10854_v45 = vld [vmem:[#allocation62_spill] sm:$0xff] }
 0x21f   :  { %1614 = vmatpush.msrb.mxu1 %v6890_v34  ;;  %1654 = vmatpush.msrb.mxu3 %v6893_v62  ;;  %10852 = vst [vmem:[#allocation48_spill] sm:$0xff] %v6898_v6  ;;  %v10855_v44 = vld [vmem:[#allocation67_spill] sm:$0xff]  ;;  %v6909_v62 = vld [vmem:[#allocation8 + $0x398] sm:$0xff] }
 0x220   :  { %1379 = vmatpush.msrb.mxu0 %v10850_v23  ;;  %1419 = vmatpush.msrb.mxu2 %v10851_v51  ;;  %v6906_v34 = vld [vmem:[#allocation8 + $0x390] sm:$0xff]  ;;  %10857 = vst [vmem:[#allocation47_spill] sm:$0xff] %v6909_v62  ;;  %v10859_v51 = vld [vmem:[#allocation69_spill] sm:$0xff] }
 0x221   :  { %1615 = vmatpush.msrb.mxu1 %v6898_v6  ;;  %1655 = vmatpush.msrb.mxu3 %v6901_v39  ;;  %10856 = vst [vmem:[#allocation50_spill] sm:$0xff] %v6906_v34  ;;  %v10858_v23 = vld [vmem:[#allocation64_spill] sm:$0xff] }
 0x222   :  { %1380 = vmatpush.msrb.mxu0 %v10854_v45  ;;  %1420 = vmatpush.msrb.mxu2 %v10855_v44  ;;  %v6914_v6 = vld [vmem:[#allocation8 + $0x370] sm:$0xff]  ;;  %v6917_v39 = vld [vmem:[#allocation8 + $0x378] sm:$0xff]  ;;  %v10862_v45 = vld [vmem:[#allocation66_spill] sm:$0xff] }
 0x223   :  { %1616 = vmatpush.msrb.mxu1 %v6906_v34  ;;  %1656 = vmatpush.msrb.mxu3 %v6909_v62  ;;  %10860 = vst [vmem:[#allocation52_spill] sm:$0xff] %v6914_v6  ;;  %v10863_v44 = vld [vmem:[#allocation71_spill] sm:$0xff]  ;;  %v6925_v62 = vld [vmem:[#allocation8 + $0x358] sm:$0xff] }
 0x224   :  { %1381 = vmatpush.msrb.mxu0 %v10858_v23  ;;  %1421 = vmatpush.msrb.mxu2 %v10859_v51  ;;  %10861 = vst [vmem:[#allocation49_spill] sm:$0xff] %v6917_v39  ;;  %v6922_v34 = vld [vmem:[#allocation8 + $0x350] sm:$0xff]  ;;  %v10867_v51 = vld [vmem:[#allocation73_spill] sm:$0xff] }
 0x225   :  { %1617 = vmatpush.msrb.mxu1 %v6914_v6  ;;  %1657 = vmatpush.msrb.mxu3 %v6917_v39  ;;  %10864 = vst [vmem:[#allocation54_spill] sm:$0xff] %v6922_v34  ;;  %v10866_v23 = vld [vmem:[#allocation68_spill] sm:$0xff] }
 0x226   :  { %1382 = vmatpush.msrb.mxu0 %v10862_v45  ;;  %1422 = vmatpush.msrb.mxu2 %v10863_v44  ;;  %10865 = vst [vmem:[#allocation51_spill] sm:$0xff] %v6925_v62  ;;  %v6930_v6 = vld [vmem:[#allocation8 + $0x330] sm:$0xff]  ;;  %v6933_v39 = vld [vmem:[#allocation8 + $0x338] sm:$0xff]  ;;  %v10870_v45 = vld [vmem:[#allocation70_spill] sm:$0xff] }
 0x227   :  { %1618 = vmatpush.msrb.mxu1 %v6922_v34  ;;  %1658 = vmatpush.msrb.mxu3 %v6925_v62  ;;  %10868 = vst [vmem:[#allocation56_spill] sm:$0xff] %v6930_v6  ;;  %v10871_v44 = vld [vmem:[#allocation75_spill] sm:$0xff]  ;;  %v6941_v62 = vld [vmem:[#allocation8 + $0x318] sm:$0xff] }
 0x228   :  { %1383 = vmatpush.msrb.mxu0 %v10866_v23  ;;  %1423 = vmatpush.msrb.mxu2 %v10867_v51  ;;  %10869 = vst [vmem:[#allocation53_spill] sm:$0xff] %v6933_v39  ;;  %v6938_v34 = vld [vmem:[#allocation8 + $0x310] sm:$0xff]  ;;  %v10875_v51 = vld [vmem:[#allocation77_spill] sm:$0xff] }
 0x229   :  { %1619 = vmatpush.msrb.mxu1 %v6930_v6  ;;  %1659 = vmatpush.msrb.mxu3 %v6933_v39  ;;  %10872 = vst [vmem:[#allocation55_spill] sm:$0xff] %v6938_v34  ;;  %v10874_v23 = vld [vmem:[#allocation72_spill] sm:$0xff] }
 0x22a   :  { %1384 = vmatpush.msrb.mxu0 %v10870_v45  ;;  %1424 = vmatpush.msrb.mxu2 %v10871_v44  ;;  %10873 = vst [vmem:[#allocation63_spill] sm:$0xff] %v6941_v62  ;;  %v6948_v39 = vld [vmem:[#allocation8 + $0x2f0] sm:$0xff]  ;;  %v6951_v45 = vld [vmem:[#allocation8 + $0x2f8] sm:$0xff]  ;;  %v6954_v44 = vld [vmem:[#allocation8 + $0x1e0] sm:$0xff] }
 0x22b   :  { %1620 = vmatpush.msrb.mxu1 %v6938_v34  ;;  %1660 = vmatpush.msrb.mxu3 %v6941_v62  ;;  %10876 = vst [vmem:[#allocation59_spill] sm:$0xff] %v6948_v39  ;;  %v6957_v62 = vld [vmem:[#allocation8 + $0x1e8] sm:$0xff]  ;;  %v7177_v34 = vld [vmem:[#allocation8 + $0x30] sm:$0xff] }
 0x22c   :  { %1385 = vmatpush.msrb.mxu0 %v10874_v23  ;;  %1425 = vmatpush.msrb.mxu2 %v10875_v51  ;;  %10877 = vst [vmem:[#allocation65_spill] sm:$0xff] %v6951_v45  ;;  %v6960_v23 = vld [vmem:[#allocation8 + $0x2d0] sm:$0xff]  ;;  %v6966_v51 = vld [vmem:[#allocation8 + $0x1c0] sm:$0xff] }
 0x22d   :  { %1386 = vmatmul.f32.vlgmr.msrb.gmra.mxu0 %v6812_v1  ;;  %1426 = vmatmul.f32.vlgmr.msrb.gmra.mxu2 %v6812_v1  ;;  %10878 = vst [vmem:[#allocation62_spill] sm:$0xff] %v6954_v44  ;;  %v6963_v1 = vld [vmem:[#allocation8 + $0x2d8] sm:$0xff]  ;;  %v7183_v6 = vld [vmem:[#allocation8 + $0x10] sm:$0xff] }
 0x22e   :  { %1621 = vmatpush.msrb.mxu1 %v6948_v39  ;;  %1661 = vmatpush.msrb.mxu3 %v6951_v45  ;;  %10879 = vst [vmem:[#allocation67_spill] sm:$0xff] %v6957_v62  ;;  %v6969_v45 = vld [vmem:[#allocation8 + $0x1c8] sm:$0xff]  ;;  %v7170_v39 = vld [vmem:[#allocation8 + $0x50] sm:$0xff] }
 0x22f   :  { %1513 = vmatpush.msra.mxu0 %v6954_v44  ;;  %1553 = vmatpush.msra.mxu2 %v6957_v62  ;;  %10880 = vst [vmem:[#allocation64_spill] sm:$0xff] %v6960_v23  ;;  %v6972_v44 = vld [vmem:[#allocation8 + $0x2b0] sm:$0xff]  ;;  %v6975_v62 = vld [vmem:[#allocation8 + $0x2b8] sm:$0xff] }
 0x230   :  { %1622 = vmatpush.msrb.mxu1 %v6960_v23  ;;  %10881 = vst [vmem:[#allocation69_spill] sm:$0xff] %v6963_v1  ;;  %1662 = vmatpush.msrb.mxu3 %v6963_v1  ;;  %v6978_v23 = vld [vmem:[#allocation8 + $0x1a0] sm:$0xff]  ;;  %v6981_v1 = vld [vmem:[#allocation8 + $0x1a8] sm:$0xff] }
 0x231   :  { %10882 = vst [vmem:[#allocation66_spill] sm:$0xff] %v6966_v51  ;;  %1514 = vmatpush.msra.mxu0 %v6966_v51  ;;  %1554 = vmatpush.msra.mxu2 %v6969_v45  ;;  %v6984_v51 = vld [vmem:[#allocation8 + $0x290] sm:$0xff] }
 0x232   :  { %10883 = vst [vmem:[#allocation71_spill] sm:$0xff] %v6969_v45  ;;  %1623 = vmatpush.msrb.mxu1 %v6972_v44  ;;  %1663 = vmatpush.msrb.mxu3 %v6975_v62  ;;  %v6987_v45 = vld [vmem:[#allocation8 + $0x298] sm:$0xff] }
 0x233   :  { %10884 = vst [vmem:[#allocation68_spill] sm:$0xff] %v6972_v44  ;;  %1515 = vmatpush.msra.mxu0 %v6978_v23  ;;  %1555 = vmatpush.msra.mxu2 %v6981_v1  ;;  %v6990_v44 = vld [vmem:[#allocation8 + $0x180] sm:$0xff] }
 0x234   :  { %10885 = vst [vmem:[#allocation73_spill] sm:$0xff] %v6975_v62  ;;  %1624 = vmatpush.msrb.mxu1 %v6984_v51  ;;  %1664 = vmatpush.msrb.mxu3 %v6987_v45  ;;  %v6993_v62 = vld [vmem:[#allocation8 + $0x188] sm:$0xff] }
 0x235   :  { %10886 = vst [vmem:[#allocation70_spill] sm:$0xff] %v6978_v23  ;;  %1516 = vmatpush.msra.mxu0 %v6990_v44  ;;  %1556 = vmatpush.msra.mxu2 %v6993_v62  ;;  %v6996_v23 = vld [vmem:[#allocation8 + $0x270] sm:$0xff] }
 0x236   :  { %10887 = vst [vmem:[#allocation75_spill] sm:$0xff] %v6981_v1  ;;  %1625 = vmatpush.msrb.mxu1 %v6996_v23  ;;  %v6999_v1 = vld [vmem:[#allocation8 + $0x278] sm:$0xff] }
 0x237   :  { %10888 = vst [vmem:[#allocation72_spill] sm:$0xff] %v6984_v51  ;;  %1665 = vmatpush.msrb.mxu3 %v6999_v1  ;;  %v7002_v51 = vld [vmem:[#allocation8 + $0x160] sm:$0xff] }
 0x238   :  { %10889 = vst [vmem:[#allocation77_spill] sm:$0xff] %v6987_v45  ;;  %1517 = vmatpush.msra.mxu0 %v7002_v51  ;;  %v7005_v45 = vld [vmem:[#allocation8 + $0x168] sm:$0xff]  ;;  %v1142_v33 = vpop.f32.mrf.mxu3 }
 0x239   :  { %10890 = vst [vmem:[#allocation118_spill] sm:$0xff] %v6990_v44  ;;  %1557 = vmatpush.msra.mxu2 %v7005_v45  ;;  %v7008_v44 = vld [vmem:[#allocation8 + $0x250] sm:$0xff] }
 0x23a   :  { %10891 = vst [vmem:[#allocation119_spill] sm:$0xff] %v6993_v62  ;;  %1626 = vmatpush.msrb.mxu1 %v7008_v44  ;;  %v7011_v62 = vld [vmem:[#allocation8 + $0x258] sm:$0xff] }
 0x23b   :  { %10892 = vst [vmem:[#allocation120_spill] sm:$0xff] %v6996_v23  ;;  %1666 = vmatpush.msrb.mxu3 %v7011_v62  ;;  %v7014_v23 = vld [vmem:[#allocation8 + $0x140] sm:$0xff] }
 0x23c   :  { %10893 = vst [vmem:[#allocation121_spill] sm:$0xff] %v6999_v1  ;;  %1518 = vmatpush.msra.mxu0 %v7014_v23  ;;  %v7017_v1 = vld [vmem:[#allocation8 + $0x148] sm:$0xff] }
 0x23d   :  { %10894 = vst [vmem:[#allocation122_spill] sm:$0xff] %v7002_v51  ;;  %1558 = vmatpush.msra.mxu2 %v7017_v1  ;;  %v7020_v51 = vld [vmem:[#allocation8 + $0x230] sm:$0xff] }
 0x23e   :  { %10895 = vst [vmem:[#allocation123_spill] sm:$0xff] %v7005_v45  ;;  %1627 = vmatpush.msrb.mxu1 %v7020_v51  ;;  %v7023_v45 = vld [vmem:[#allocation8 + $0x238] sm:$0xff] }
 0x23f   :  { %10896 = vst [vmem:[#allocation124_spill] sm:$0xff] %v7008_v44  ;;  %1667 = vmatpush.msrb.mxu3 %v7023_v45  ;;  %v7026_v44 = vld [vmem:[#allocation8 + $0x120] sm:$0xff] }
 0x240   :  { %10897 = vst [vmem:[#allocation125_spill] sm:$0xff] %v7011_v62  ;;  %1519 = vmatpush.msra.mxu0 %v7026_v44  ;;  %v7029_v62 = vld [vmem:[#allocation8 + $0x128] sm:$0xff] }
 0x241   :  { %10898 = vst [vmem:[#allocation126_spill] sm:$0xff] %v7014_v23  ;;  %1559 = vmatpush.msra.mxu2 %v7029_v62  ;;  %v7032_v23 = vld [vmem:[#allocation8 + $0x210] sm:$0xff] }
 0x242   :  { %10899 = vst [vmem:[#allocation127_spill] sm:$0xff] %v7017_v1  ;;  %1628 = vmatpush.msrb.mxu1 %v7032_v23  ;;  %v7035_v1 = vld [vmem:[#allocation8 + $0x218] sm:$0xff] }
 0x243   :  { %10900 = vst [vmem:[#allocation128_spill] sm:$0xff] %v7020_v51  ;;  %1668 = vmatpush.msrb.mxu3 %v7035_v1  ;;  %v7038_v51 = vld [vmem:[#allocation8 + $0x100] sm:$0xff] }
 0x244   :  { %10901 = vst [vmem:[#allocation129_spill] sm:$0xff] %v7023_v45  ;;  %1520 = vmatpush.msra.mxu0 %v7038_v51  ;;  %v7041_v45 = vld [vmem:[#allocation8 + $0x108] sm:$0xff] }
 0x245   :  { %10902 = vst [vmem:[#allocation130_spill] sm:$0xff] %v7026_v44  ;;  %1560 = vmatpush.msra.mxu2 %v7041_v45  ;;  %v7044_v44 = vld [vmem:[#allocation8 + $0xe0] sm:$0xff] }
 0x246   :  { %10903 = vst [vmem:[#allocation131_spill] sm:$0xff] %v7029_v62  ;;  %1521 = vmatpush.msra.mxu0 %v7044_v44  ;;  %v7047_v62 = vld [vmem:[#allocation8 + $0xe8] sm:$0xff] }
 0x247   :  { %10904 = vst [vmem:[#allocation132_spill] sm:$0xff] %v7032_v23  ;;  %1561 = vmatpush.msra.mxu2 %v7047_v62  ;;  %v7050_v23 = vld [vmem:[#allocation8 + $0xc0] sm:$0xff] }
 0x248   :  { %10905 = vst [vmem:[#allocation133_spill] sm:$0xff] %v7035_v1  ;;  %1522 = vmatpush.msra.mxu0 %v7050_v23  ;;  %v7053_v1 = vld [vmem:[#allocation8 + $0xc8] sm:$0xff] }
 0x249   :  { %10906 = vst [vmem:[#allocation134_spill] sm:$0xff] %v7038_v51  ;;  %1562 = vmatpush.msra.mxu2 %v7053_v1  ;;  %v7056_v51 = vld [vmem:[#allocation8 + $0xa0] sm:$0xff] }
 0x24a   :  { %10907 = vst [vmem:[#allocation135_spill] sm:$0xff] %v7041_v45  ;;  %1523 = vmatpush.msra.mxu0 %v7056_v51  ;;  %v7059_v45 = vld [vmem:[#allocation8 + $0xa8] sm:$0xff] }
 0x24b   :  { %10908 = vst [vmem:[#allocation136_spill] sm:$0xff] %v7044_v44  ;;  %1563 = vmatpush.msra.mxu2 %v7059_v45  ;;  %v7062_v44 = vld [vmem:[#allocation8 + $0x80] sm:$0xff] }
 0x24c   :  { %10909 = vst [vmem:[#allocation137_spill] sm:$0xff] %v7047_v62  ;;  %1524 = vmatpush.msra.mxu0 %v7062_v44  ;;  %v7065_v62 = vld [vmem:[#allocation8 + $0x88] sm:$0xff] }
 0x24d   :  { %10910 = vst [vmem:[#allocation138_spill] sm:$0xff] %v7050_v23  ;;  %1564 = vmatpush.msra.mxu2 %v7065_v62  ;;  %v7068_v23 = vld [vmem:[#allocation8 + $0x60] sm:$0xff] }
 0x24e   :  { %10911 = vst [vmem:[#allocation139_spill] sm:$0xff] %v7053_v1  ;;  %1525 = vmatpush.msra.mxu0 %v7068_v23  ;;  %v7071_v1 = vld [vmem:[#allocation8 + $0x68] sm:$0xff] }
 0x24f   :  { %10912 = vst [vmem:[#allocation140_spill] sm:$0xff] %v7056_v51  ;;  %1565 = vmatpush.msra.mxu2 %v7071_v1  ;;  %v7074_v51 = vld [vmem:[#allocation8 + $0x40] sm:$0xff] }
 0x250   :  { %10913 = vst [vmem:[#allocation141_spill] sm:$0xff] %v7059_v45  ;;  %1526 = vmatpush.msra.mxu0 %v7074_v51  ;;  %v7077_v45 = vld [vmem:[#allocation8 + $0x48] sm:$0xff] }
 0x251   :  { %10914 = vst [vmem:[#allocation142_spill] sm:$0xff] %v7062_v44  ;;  %1566 = vmatpush.msra.mxu2 %v7077_v45  ;;  %v7080_v44 = vld [vmem:[#allocation8 + $0x20] sm:$0xff] }
 0x252   :  { %10915 = vst [vmem:[#allocation143_spill] sm:$0xff] %v7065_v62  ;;  %1527 = vmatpush.msra.mxu0 %v7080_v44  ;;  %v7083_v62 = vld [vmem:[#allocation8 + $0x28] sm:$0xff] }
 0x253   :  { %10916 = vst [vmem:[#allocation144_spill] sm:$0xff] %v7068_v23  ;;  %1567 = vmatpush.msra.mxu2 %v7083_v62  ;;  %v7086_v23 = vld [vmem:[#allocation8] sm:$0xff] }
 0x254   :  { %10917 = vst [vmem:[#allocation145_spill] sm:$0xff] %v7071_v1  ;;  %1528 = vmatpush.msra.mxu0 %v7086_v23  ;;  %v7089_v1 = vld [vmem:[#allocation8 + $0x8] sm:$0xff] }
 0x255   :  { %10918 = vst [vmem:[#allocation146_spill] sm:$0xff] %v7074_v51  ;;  %1568 = vmatpush.msra.mxu2 %v7089_v1  ;;  %v7092_v51 = vld [vmem:[#allocation8 + $0x1f0] sm:$0xff] }
 0x256   :  { %10919 = vst [vmem:[#allocation147_spill] sm:$0xff] %v7077_v45  ;;  %1593 = vmatpush.msrb.mxu0 %v7092_v51  ;;  %v7095_v45 = vld [vmem:[#allocation8 + $0x1f8] sm:$0xff] }
 0x257   :  { %10920 = vst [vmem:[#allocation148_spill] sm:$0xff] %v7080_v44  ;;  %1633 = vmatpush.msrb.mxu2 %v7095_v45  ;;  %v7098_v44 = vld [vmem:[#allocation8 + $0x1d0] sm:$0xff] }
 0x258   :  { %10921 = vst [vmem:[#allocation149_spill] sm:$0xff] %v7083_v62  ;;  %1594 = vmatpush.msrb.mxu0 %v7098_v44  ;;  %v7101_v62 = vld [vmem:[#allocation8 + $0x1d8] sm:$0xff] }
 0x259   :  { %10922 = vst [vmem:[#allocation150_spill] sm:$0xff] %v7086_v23  ;;  %1634 = vmatpush.msrb.mxu2 %v7101_v62  ;;  %v7104_v23 = vld [vmem:[#allocation8 + $0x1b0] sm:$0xff] }
 0x25a   :  { %10923 = vst [vmem:[#allocation151_spill] sm:$0xff] %v7089_v1  ;;  %1595 = vmatpush.msrb.mxu0 %v7104_v23  ;;  %v7107_v1 = vld [vmem:[#allocation8 + $0x1b8] sm:$0xff] }
 0x25b   :  { %10924 = vst [vmem:[#allocation152_spill] sm:$0xff] %v7092_v51  ;;  %1635 = vmatpush.msrb.mxu2 %v7107_v1  ;;  %v7110_v51 = vld [vmem:[#allocation8 + $0x190] sm:$0xff] }
 0x25c   :  { %10925 = vst [vmem:[#allocation153_spill] sm:$0xff] %v7095_v45  ;;  %1596 = vmatpush.msrb.mxu0 %v7110_v51  ;;  %v7113_v45 = vld [vmem:[#allocation8 + $0x198] sm:$0xff] }
 0x25d   :  { %10926 = vst [vmem:[#allocation154_spill] sm:$0xff] %v7098_v44  ;;  %1636 = vmatpush.msrb.mxu2 %v7113_v45  ;;  %v7116_v44 = vld [vmem:[#allocation8 + $0x170] sm:$0xff] }
 0x25e   :  { %10927 = vst [vmem:[#allocation155_spill] sm:$0xff] %v7101_v62  ;;  %1597 = vmatpush.msrb.mxu0 %v7116_v44  ;;  %v7119_v62 = vld [vmem:[#allocation8 + $0x178] sm:$0xff] }
 0x25f   :  { %10928 = vst [vmem:[#allocation156_spill] sm:$0xff] %v7104_v23  ;;  %1637 = vmatpush.msrb.mxu2 %v7119_v62  ;;  %v7122_v23 = vld [vmem:[#allocation8 + $0x150] sm:$0xff] }
 0x260   :  { %10929 = vst [vmem:[#allocation157_spill] sm:$0xff] %v7107_v1  ;;  %1598 = vmatpush.msrb.mxu0 %v7122_v23  ;;  %v7125_v1 = vld [vmem:[#allocation8 + $0x158] sm:$0xff] }
 0x261   :  { %10930 = vst [vmem:[#allocation158_spill] sm:$0xff] %v7110_v51  ;;  %1638 = vmatpush.msrb.mxu2 %v7125_v1  ;;  %v7128_v51 = vld [vmem:[#allocation8 + $0x130] sm:$0xff] }
 0x262   :  { %10931 = vst [vmem:[#allocation159_spill] sm:$0xff] %v7113_v45  ;;  %1599 = vmatpush.msrb.mxu0 %v7128_v51  ;;  %v7131_v45 = vld [vmem:[#allocation8 + $0x138] sm:$0xff] }
 0x263   :  { %10932 = vst [vmem:[#allocation160_spill] sm:$0xff] %v7116_v44  ;;  %1639 = vmatpush.msrb.mxu2 %v7131_v45  ;;  %v7134_v44 = vld [vmem:[#allocation8 + $0x110] sm:$0xff] }
 0x264   :  { %10933 = vst [vmem:[#allocation161_spill] sm:$0xff] %v7119_v62  ;;  %1600 = vmatpush.msrb.mxu0 %v7134_v44  ;;  %v7137_v62 = vld [vmem:[#allocation8 + $0x118] sm:$0xff] }
 0x265   :  { %10934 = vst [vmem:[#allocation162_spill] sm:$0xff] %v7122_v23  ;;  %1640 = vmatpush.msrb.mxu2 %v7137_v62  ;;  %v7140_v23 = vld [vmem:[#allocation8 + $0xf0] sm:$0xff] }
 0x266   :  { %10935 = vst [vmem:[#allocation163_spill] sm:$0xff] %v7125_v1  ;;  %1601 = vmatpush.msrb.mxu0 %v7140_v23  ;;  %v7143_v1 = vld [vmem:[#allocation8 + $0xf8] sm:$0xff] }
 0x267   :  { %10936 = vst [vmem:[#allocation164_spill] sm:$0xff] %v7128_v51  ;;  %1641 = vmatpush.msrb.mxu2 %v7143_v1  ;;  %v7146_v51 = vld [vmem:[#allocation8 + $0xd0] sm:$0xff] }
 0x268   :  { %10937 = vst [vmem:[#allocation165_spill] sm:$0xff] %v7131_v45  ;;  %1602 = vmatpush.msrb.mxu0 %v7146_v51  ;;  %v7149_v45 = vld [vmem:[#allocation8 + $0xd8] sm:$0xff] }
 0x269   :  { %10938 = vst [vmem:[#allocation166_spill] sm:$0xff] %v7134_v44  ;;  %1642 = vmatpush.msrb.mxu2 %v7149_v45  ;;  %v7152_v44 = vld [vmem:[#allocation8 + $0xb0] sm:$0xff] }
 0x26a   :  { %10939 = vst [vmem:[#allocation167_spill] sm:$0xff] %v7137_v62  ;;  %1603 = vmatpush.msrb.mxu0 %v7152_v44  ;;  %v7155_v62 = vld [vmem:[#allocation8 + $0xb8] sm:$0xff] }
 0x26b   :  { %10940 = vst [vmem:[#allocation168_spill] sm:$0xff] %v7140_v23  ;;  %1643 = vmatpush.msrb.mxu2 %v7155_v62  ;;  %v7158_v23 = vld [vmem:[#allocation8 + $0x90] sm:$0xff] }
 0x26c   :  { %10941 = vst [vmem:[#allocation169_spill] sm:$0xff] %v7143_v1  ;;  %1604 = vmatpush.msrb.mxu0 %v7158_v23  ;;  %v7161_v1 = vld [vmem:[#allocation8 + $0x98] sm:$0xff] }
 0x26d   :  { %10942 = vst [vmem:[#allocation170_spill] sm:$0xff] %v7146_v51  ;;  %1644 = vmatpush.msrb.mxu2 %v7161_v1  ;;  %v7164_v51 = vld [vmem:[#allocation8 + $0x70] sm:$0xff] }
 0x26e   :  { %10943 = vst [vmem:[#allocation171_spill] sm:$0xff] %v7149_v45  ;;  %1605 = vmatpush.msrb.mxu0 %v7164_v51  ;;  %v7167_v45 = vld [vmem:[#allocation8 + $0x78] sm:$0xff] }
 0x26f   :  { %10944 = vst [vmem:[#allocation172_spill] sm:$0xff] %v7152_v44  ;;  %1645 = vmatpush.msrb.mxu2 %v7167_v45  ;;  %v1082_v44 = vpop.f32.mrf.mxu0 }
 0x270   :  { %10945 = vst [vmem:[#allocation173_spill] sm:$0xff] %v7155_v62  ;;  %1606 = vmatpush.msrb.mxu0 %v7170_v39  ;;  %v7173_v62 = vld [vmem:[#allocation8 + $0x58] sm:$0xff] }
 0x271   :  { %10946 = vst [vmem:[#allocation174_spill] sm:$0xff] %v7158_v23  ;;  %1646 = vmatpush.msrb.mxu2 %v7173_v62  ;;  %v1083_v23 = vadd.f32 %v1082_v44, %v6471_v22  ;;  %v1122_v44 = vpop.f32.mrf.mxu2 }
 0x272   :  { %10947 = vst [vmem:[#allocation175_spill] sm:$0xff] %v7161_v1  ;;  %v1102_v1 = vpop.f32.mrf.mxu1  ;;  %1607 = vmatpush.msrb.mxu0 %v7177_v34  ;;  %v1123_v22 = vadd.f32 %v1122_v44, %v6480_v30 }
 0x273   :  { %10948 = vst [vmem:[#allocation176_spill] sm:$0xff] %v7164_v51  ;;  %v7180_v51 = vld [vmem:[#allocation8 + $0x38] sm:$0xff] }
 0x274   :  { %10949 = vst [vmem:[#allocation177_spill] sm:$0xff] %v7167_v45  ;;  %1647 = vmatpush.msrb.mxu2 %v7180_v51  ;;  %v1103_v45 = vadd.f32 %v1102_v1, %v1083_v23  ;;  %1608 = vmatpush.msrb.mxu0 %v7183_v6 }
 0x275   :  { %10950 = vst [vmem:[#allocation178_spill] sm:$0xff] %v7170_v39  ;;  %v7186_v39 = vld [vmem:[#allocation8 + $0x18] sm:$0xff] }
 0x276   :  { %10951 = vst [vmem:[#allocation179_spill] sm:$0xff] %v7173_v62  ;;  %1648 = vmatpush.msrb.mxu2 %v7186_v39  ;;  %v4046_v62 = vmul.f32 -1.442695, %v1103_v45 }
 0x277   :  { %10952 = vst [vmem:[#allocation180_spill] sm:$0xff] %v7177_v34  ;;  %v1143_v34 = vadd.f32 %v1142_v33, %v1123_v22 }
 0x278   :  { %10953 = vst [vmem:[#allocation181_spill] sm:$0xff] %v7180_v51  ;;  %4146 = vpow2.f32 %v4046_v62 }
 0x279   :  { %10954 = vst [vmem:[#allocation182_spill] sm:$0xff] %v7183_v6  ;;  %v4047_v57 = vmul.f32 -1.442695, %v1143_v34  ;;  %v1202_v23 = vpop.f32.mrf.mxu2  ;;  %v1222_v6 = vpop.f32.mrf.mxu3 }
 0x27a   :  { %10955 = vst [vmem:[#allocation183_spill] sm:$0xff] %v7186_v39  ;;  %v1203_v1 = vadd.f32 %v1202_v23, %v6483_v38  ;;  %v1162_v39 = vpop.f32.mrf.mxu0  ;;  %v1182_v33 = vpop.f32.mrf.mxu1 }
 0x27b   :  { %4148 = vpow2.f32 %v4047_v57  ;;  %v1163_v44 = vadd.f32 %v1162_v39, %v6486_v28 }
 0x27c   :  { %v1223_v27 = vadd.f32 %v1222_v6, %v1203_v1 }
 0x27d   :  { %v1183_v57 = vadd.f32 %v1182_v33, %v1163_v44 }
 0x27e   :  { %v4147_v41 = vpop.eup %4146  ;;  %v4048_v45 = vmul.f32 -1.442695, %v1223_v27 }
 0x27f   :  { %v1228_v51 = vadd.f32 1.0, %v4147_v41 }
 0x281   :  { %4150 = vrcp.f32 %v1228_v51  ;;  %v4149_v53 = vpop.eup %4148  ;;  %v1240_v38 = vand.u32 2147483648, %v1228_v51  ;;  %vm1234_vm5 = vweird.f32 %v1228_v51  ;;  %v1238_v27 = vand.u32 2147483647, %v1228_v51 }
 0x282   :  { %v1247_v54 = vadd.f32 1.0, %v4149_v53 }
 0x283   :  { %v1241_v44 = vor.u32 1.1754944e-38, %v1240_v38  ;;  %vm1239_vm9 = vcmp.eq.f32.partialorder %v1238_v27, 8.507059e+37 }
 0x284   :  { %4152 = vrcp.f32 %v1247_v54  ;;  %v1259_v1 = vand.u32 2147483648, %v1247_v54  ;;  %vm1253_vm8 = vweird.f32 %v1247_v54 }
 0x285   :  { %4154 = vpow2.f32 %v4048_v45 }
 0x286   :  { %4156 = vtanh.f32 %v1183_v57 }
 0x287   :  { %v4151_v25 = vpop.eup %4150 }
 0x288   :  { %v1230_v62 = vmul.f32 %v4151_v25, %v1228_v51  ;;  %vm1235_vm4 = vweird.f32 %v4151_v25  ;;  %v1327_v51 = vpop.f32.mrf.mxu1 }
 0x289   :  { %vm1236_vm6 = vmor %vm1234_vm5, %vm1235_vm4 }
 0x28a   :  { %v1231_v22 = vsub.f32 1.0, %v1230_v62  ;;  %v4153_v34 = vpop.eup %4152  ;;  %v1257_v62 = vand.u32 2147483647, %v1247_v54 }
 0x28b   :  { %v4155_v30 = vpop.eup %4154  ;;  %v1249_v36 = vmul.f32 %v4153_v34, %v1247_v54  ;;  %vm1254_vm7 = vweird.f32 %v4153_v34 }
 0x28c   :  { %v1232_v41 = vmul.f32 %v4151_v25, %v1231_v22  ;;  %v1267_v6 = vadd.f32 1.0, %v4155_v30  ;;  %v1307_v22 = vpop.f32.mrf.mxu0  ;;  %vm1255_vm10 = vmor %vm1253_vm8, %vm1254_vm7  ;;  %v1260_v30 = vor.u32 1.1754944e-38, %v1259_v1  ;;  %v4157_v28 = vpop.eup %4156  ;;  %vm1258_vm11 = vcmp.eq.f32.partialorder %v1257_v62, 8.507059e+37 }
 0x28d   :  { %v1250_v53 = vsub.f32 1.0, %v1249_v36 }
 0x28e   :  { %v1233_v23 = vadd.f32 %v4151_v25, %v1232_v41  ;;  %4158 = vrcp.f32 %v1267_v6  ;;  %v1308_v41 = vadd.f32 %v1307_v22, %v10738_v14  ;;  %v1367_v22 = vpop.f32.mrf.mxu3  ;;  %vm1273_vm13 = vweird.f32 %v1267_v6 }
 0x28f   :  { %v1251_v39 = vmul.f32 %v4153_v34, %v1250_v53 }
 0x290   :  { %v1237_v45 = vsel %vm1236_vm6, %v4151_v25, %v1233_v23  ;;  %v1328_v53 = vadd.f32 %v1327_v51, %v1308_v41  ;;  %v1347_v35 = vpop.f32.mrf.mxu2  ;;  %v10962_v51 = vld [vmem:[#allocation88_spill] sm:$0xff] }
 0x291   :  { %v1252_v33 = vadd.f32 %v4153_v34, %v1251_v39  ;;  %v1242_v36 = vsel %vm1239_vm9, %v1241_v44, %v1237_v45  ;;  %v1348_v27 = vadd.f32 %v1347_v35, %v10739_v60  ;;  %v1279_v45 = vand.u32 2147483648, %v1267_v6 }
 0x292   :  { %v1284_v23 = vmul.f32 %v4157_v28, %v1242_v36  ;;  %v4049_v1 = vmul.f32 -1.442695, %v1328_v53 }
 0x293   :  { %v1256_v57 = vsel %vm1255_vm10, %v4153_v34, %v1252_v33  ;;  %v1368_v44 = vadd.f32 %v1367_v22, %v1348_v27  ;;  %v1277_v34 = vand.u32 2147483647, %v1267_v6  ;;  %v10964_v27 = vld [vmem:[#allocation58_spill] sm:$0xff]  ;;  %v7346_v22 = vld [vmem:[#allocation5 + $0x120] sm:$0xff] }
 0x294   :  { %v4159_v49 = vpop.eup %4158  ;;  %v1261_v31 = vsel %vm1258_vm11, %v1260_v30, %v1256_v57  ;;  %v10963_v57 = vld [vmem:[#allocation57_spill] sm:$0xff] }
 0x295   :  { %v1283_v25 = vmul.f32 %v1261_v31, %v6491_v55  ;;  %v1269_v38 = vmul.f32 %v4159_v49, %v1267_v6  ;;  %vm1274_vm12 = vweird.f32 %v4159_v49  ;;  %v4050_v62 = vmul.f32 -1.442695, %v1368_v44  ;;  %v10961_v6 = vld [vmem:[#allocation83_spill] sm:$0xff]  ;;  %v10968_v44 = vld [vmem:[#allocation60_spill] sm:$0xff] }
 0x296   :  { %vm1275_vm14 = vmor %vm1273_vm13, %vm1274_vm12  ;;  %v1280_v55 = vor.u32 1.1754944e-38, %v1279_v45  ;;  %vm1278_vm15 = vcmp.eq.f32.partialorder %v1277_v34, 8.507059e+37 }
 0x297   :  { %v7194_v54 = vadd.f32 %v1284_v23, %v1283_v25  ;;  %v1270_v39 = vsub.f32 1.0, %v1269_v38 }
 0x299   :  { %v1271_v14 = vmul.f32 %v4159_v49, %v1270_v39  ;;  %4160 = vtanh.f32 %v7194_v54  ;;  %v10965_v39 = vld [vmem:[#allocation85_spill] sm:$0xff] }
 0x29a   :  { %4162 = vpow2.f32 %v4049_v1 }
 0x29b   :  { %v1272_v33 = vadd.f32 %v4159_v49, %v1271_v14  ;;  %4164 = vpow2.f32 %v4050_v62  ;;  %v7357_v62 = vld [vmem:[#allocation5 + $0x108] sm:$0xff] }
 0x29d   :  { %v1276_v28 = vsel %vm1275_vm14, %v4159_v49, %v1272_v33 }
 0x29e   :  { %v1281_v31 = vsel %vm1278_vm15, %v1280_v55, %v1276_v28 }
 0x29f   :  { %v4161_v35 = vpop.eup %4160 }
 0x2a0   :  { %v1287_v41 = vmul.f32 %v4161_v35, %v1281_v31  ;;  %v4163_v30 = vpop.eup %4162 }
 0x2a1   :  { %v4165_v36 = vpop.eup %4164  ;;  %v7202_v14 = vadd.f32 1.0, %v4163_v30 }
 0x2a2   :  { %1549 = vmatmul.f32.vlgmr.msra.gmra.mxu1 %v1287_v41  ;;  %1589 = vmatmul.f32.vlgmr.msra.gmra.mxu3 %v1287_v41  ;;  %v7204_v49 = vadd.f32 1.0, %v4165_v36 }
 0x2a3   :  { %1758 = vmatpush.msra.mxu1 %v6494_v59  ;;  %1798 = vmatpush.msra.mxu3 %v6497_v43  ;;  %4166 = vrcp.f32 %v7202_v14  ;;  %vm1459_vm2 = vweird.f32 %v7202_v14  ;;  %v1465_v38 = vand.u32 2147483648, %v7202_v14  ;;  %v1463_v1 = vand.u32 2147483647, %v7202_v14 }
 0x2a4   :  { %4168 = vrcp.f32 %v7204_v49  ;;  %v1484_v23 = vand.u32 2147483648, %v7204_v49  ;;  %vm1478_vm3 = vweird.f32 %v7204_v49  ;;  %v1482_v45 = vand.u32 2147483647, %v7204_v49 }
 0x2a5   :  { %1759 = vmatpush.msra.mxu1 %v6502_v19  ;;  %1799 = vmatpush.msra.mxu3 %v6505_v11  ;;  %v1466_v31 = vor.u32 1.1754944e-38, %v1465_v38  ;;  %vm1464_vm6 = vcmp.eq.f32.partialorder %v1463_v1, 8.507059e+37  ;;  %v10988_v38 = vld [vmem:[#allocation104_spill] sm:$0xff]  ;;  %v7349_v1 = vld [vmem:[#allocation5 + $0x128] sm:$0xff] }
 0x2a6   :  { %v1485_v35 = vor.u32 1.1754944e-38, %v1484_v23  ;;  %vm1483_vm7 = vcmp.eq.f32.partialorder %v1482_v45, 8.507059e+37  ;;  %v7338_v23 = vld [vmem:[#allocation5 + $0x140] sm:$0xff]  ;;  %v10990_v45 = vld [vmem:[#allocation108_spill] sm:$0xff] }
 0x2a7   :  { %1760 = vmatpush.msra.mxu1 %v6510_v47  ;;  %1800 = vmatpush.msra.mxu3 %v6513_v29 }
 0x2a9   :  { %1761 = vmatpush.msra.mxu1 %v6517_v2  ;;  %1801 = vmatpush.msra.mxu3 %v6520_v7  ;;  %v7218_v59 = vpop.eup %4166 }
 0x2aa   :  { %1629 = vmatmul.f32.vlgmr.msrb.gmra.mxu1 %v1287_v41  ;;  %1669 = vmatmul.f32.vlgmr.msrb.gmra.mxu3 %v1287_v41  ;;  %v7220_v43 = vpop.eup %4168  ;;  %v1455_v19 = vmul.f32 %v7218_v59, %v7202_v14  ;;  %v1387_v47 = vpop.f32.mrf.mxu0  ;;  %vm1460_vm0 = vweird.f32 %v7218_v59  ;;  %v10972_v14 = vld [vmem:[#allocation61_spill] sm:$0xff] }
 0x2ab   :  { %1762 = vmatpush.msra.mxu1 %v6524_v4  ;;  %1802 = vmatpush.msra.mxu3 %v6527_v10  ;;  %v1474_v11 = vmul.f32 %v7220_v43, %v7204_v49  ;;  %v1388_v2 = vadd.f32 %v1387_v47, %v10740_v13  ;;  %v1447_v4 = vpop.f32.mrf.mxu3  ;;  %vm1479_vm1 = vweird.f32 %v7220_v43  ;;  %vm7256_vm4 = vmor %vm1459_vm2, %vm1460_vm0  ;;  %v10978_v47 = vld [vmem:[#allocation95_spill] sm:$0xff] }
 0x2ac   :  { %v1456_v10 = vsub.f32 1.0, %v1455_v19  ;;  %vm7266_vm5 = vmor %vm1478_vm3, %vm1479_vm1  ;;  %v10975_v19 = vld [vmem:[#allocation92_spill] sm:$0xff] }
 0x2ad   :  { %1763 = vmatpush.msra.mxu1 %v6530_v8  ;;  %1803 = vmatpush.msra.mxu3 %v6533_v12  ;;  %v1475_v8 = vsub.f32 1.0, %v1474_v11  ;;  %v10976_v11 = vld [vmem:[#allocation91_spill] sm:$0xff] }
 0x2af   :  { %1764 = vmatpush.msra.mxu1 %v6538_v16  ;;  %1804 = vmatpush.msra.mxu3 %v6541_v20  ;;  %v10956_v16 = vld [vmem:[#allocation78_spill] sm:$0xff]  ;;  %v10957_v20 = vld [vmem:[#allocation80_spill] sm:$0xff] }
 0x2b0   :  { %v1427_v29 = vpop.f32.mrf.mxu2 }
 0x2b1   :  { %1765 = vmatpush.msra.mxu1 %v6546_v40  ;;  %1805 = vmatpush.msra.mxu3 %v6549_v46  ;;  %v1428_v7 = vadd.f32 %v1427_v29, %v10741_v15  ;;  %v1407_v40 = vpop.f32.mrf.mxu1 }
 0x2b2   :  { %v1408_v46 = vadd.f32 %v1407_v40, %v1388_v2 }
 0x2b3   :  { %1766 = vmatpush.msra.mxu1 %v6556_v58  ;;  %1806 = vmatpush.msra.mxu3 %v6559_v56  ;;  %v1448_v12 = vadd.f32 %v1447_v4, %v1428_v7  ;;  %v10958_v56 = vld [vmem:[#allocation84_spill] sm:$0xff]  ;;  %v10979_v7 = vld [vmem:[#allocation94_spill] sm:$0xff] }
 0x2b4   :  { %v10980_v4 = vld [vmem:[#allocation96_spill] sm:$0xff] }
 0x2b5   :  { %1767 = vmatpush.msra.mxu1 %v6562_v5  ;;  %1807 = vmatpush.msra.mxu3 %v6565_v24  ;;  %v4051_v58 = vmul.f32 -1.442695, %v1448_v12  ;;  %v10959_v5 = vld [vmem:[#allocation82_spill] sm:$0xff]  ;;  %v1476_v24 = vmul.f32 %v7220_v43, %v1475_v8 }
 0x2b7   :  { %1768 = vmatpush.msra.mxu1 %v6570_v50  ;;  %1808 = vmatpush.msra.mxu3 %v6573_v32  ;;  %v1457_v50 = vmul.f32 %v7218_v59, %v1456_v10  ;;  %4170 = vpow2.f32 %v4051_v58  ;;  %v10960_v32 = vld [vmem:[#allocation86_spill] sm:$0xff]  ;;  %v1477_v25 = vadd.f32 %v7220_v43, %v1476_v24  ;;  %v7302_v58 = vld [vmem:[#allocation5 + $0x1e0] sm:$0xff] }
 0x2b8   :  { %4172 = vtanh.f32 %v1408_v46  ;;  %v10981_v46 = vld [vmem:[#allocation97_spill] sm:$0xff]  ;;  %v7320_v24 = vld [vmem:[#allocation5 + $0x1a8] sm:$0xff] }
 0x2b9   :  { %1769 = vmatpush.msra.mxu1 %v10956_v16  ;;  %1809 = vmatpush.msra.mxu3 %v10957_v20  ;;  %v1458_v53 = vadd.f32 %v7218_v59, %v1457_v50  ;;  %v1481_v28 = vsel %vm7266_vm5, %v7220_v43, %v1477_v25  ;;  %v10973_v43 = vld [vmem:[#allocation87_spill] sm:$0xff]  ;;  %v10985_v50 = vld [vmem:[#allocation101_spill] sm:$0xff] }
 0x2ba   :  { %v1486_v30 = vsel %vm1483_vm7, %v1485_v35, %v1481_v28  ;;  %v10987_v25 = vld [vmem:[#allocation103_spill] sm:$0xff]  ;;  %v10994_v35 = vld [vmem:[#allocation112_spill] sm:$0xff] }
 0x2bb   :  { %1770 = vmatpush.msra.mxu1 %v10958_v56  ;;  %1810 = vmatpush.msra.mxu3 %v10959_v5  ;;  %v1462_v33 = vsel %vm7256_vm4, %v7218_v59, %v1458_v53  ;;  %v7316_v56 = vld [vmem:[#allocation5 + $0x1a0] sm:$0xff]  ;;  %v10984_v5 = vld [vmem:[#allocation100_spill] sm:$0xff]  ;;  %v7334_v53 = vld [vmem:[#allocation5 + $0x168] sm:$0xff] }
 0x2bc   :  { %v1467_v41 = vsel %vm1464_vm6, %v1466_v31, %v1462_v33  ;;  %v10992_v33 = vld [vmem:[#allocation110_spill] sm:$0xff]  ;;  %v10993_v28 = vld [vmem:[#allocation111_spill] sm:$0xff]  ;;  %v10995_v31 = vld [vmem:[#allocation113_spill] sm:$0xff] }
 0x2bd   :  { %1771 = vmatpush.msra.mxu1 %v10960_v32  ;;  %1811 = vmatpush.msra.mxu3 %v10961_v6  ;;  %v4171_v34 = vpop.eup %4170  ;;  %v7324_v32 = vld [vmem:[#allocation5 + $0x180] sm:$0xff]  ;;  %v10986_v6 = vld [vmem:[#allocation102_spill] sm:$0xff] }
 0x2be   :  { %v1492_v55 = vadd.f32 1.0, %v4171_v34  ;;  %v7354_v34 = vld [vmem:[#allocation5 + $0x100] sm:$0xff] }
 0x2bf   :  { %1772 = vmatpush.msra.mxu1 %v10962_v51  ;;  %1812 = vmatpush.msra.mxu3 %v10963_v57  ;;  %v7328_v51 = vld [vmem:[#allocation5 + $0x188] sm:$0xff]  ;;  %v7331_v57 = vld [vmem:[#allocation5 + $0x160] sm:$0xff] }
 0x2c0   :  { %4174 = vrcp.f32 %v1492_v55  ;;  %v1502_v2 = vand.u32 2147483647, %v1492_v55  ;;  %vm1498_vm9 = vweird.f32 %v1492_v55 }
 0x2c1   :  { %1773 = vmatpush.msra.mxu1 %v10964_v27  ;;  %1813 = vmatpush.msra.mxu3 %v10965_v39  ;;  %v7342_v27 = vld [vmem:[#allocation5 + $0x148] sm:$0xff]  ;;  %v10989_v39 = vld [vmem:[#allocation107_spill] sm:$0xff] }
 0x2c2   :  { %vm1503_vm11 = vcmp.eq.f32.partialorder %v1502_v2, 8.507059e+37  ;;  %v7405_v2 = vld [vmem:[#allocation5 + $0x48] sm:$0xff] }
 0x2c3   :  { %1838 = vmatpush.msrb.mxu1 %v10968_v44  ;;  %1878 = vmatpush.msrb.mxu3 %v6631_v3  ;;  %v4173_v3 = vpop.eup %4172  ;;  %v10991_v44 = vld [vmem:[#allocation109_spill] sm:$0xff] }
 0x2c4   :  { %v1509_v36 = vmul.f32 %v4173_v3, %v1467_v41  ;;  %v7365_v3 = vld [vmem:[#allocation5 + $0xe8] sm:$0xff]  ;;  %v7370_v41 = vld [vmem:[#allocation5 + $0xc0] sm:$0xff] }
 0x2c5   :  { %1839 = vmatpush.msrb.mxu1 %v6640_v42  ;;  %1879 = vmatpush.msrb.mxu3 %v6643_v63  ;;  %v1508_v42 = vmul.f32 %v1486_v30, %v6665_v52  ;;  %v10971_v63 = vld [vmem:[#allocation89_spill] sm:$0xff]  ;;  %v7373_v30 = vld [vmem:[#allocation5 + $0xc8] sm:$0xff] }
 0x2c6   :  { %v4175_v49 = vpop.eup %4174  ;;  %v10977_v52 = vld [vmem:[#allocation93_spill] sm:$0xff] }
 0x2c7   :  { %1840 = vmatpush.msrb.mxu1 %v6646_v0  ;;  %1880 = vmatpush.msrb.mxu3 %v6649_v26  ;;  %v7285_v59 = vadd.f32 %v1509_v36, %v1508_v42  ;;  %v10974_v0 = vld [vmem:[#allocation90_spill] sm:$0xff]  ;;  %v1494_v26 = vmul.f32 %v4175_v49, %v1492_v55  ;;  %vm1499_vm8 = vweird.f32 %v4175_v49  ;;  %v10997_v42 = vld [vmem:[#allocation117_spill] sm:$0xff] }
 0x2c8   :  { %vm1500_vm10 = vmor %vm1498_vm9, %vm1499_vm8  ;;  %v10996_v36 = vld [vmem:[#allocation114_spill] sm:$0xff] }
 0x2c9   :  { %1841 = vmatpush.msrb.mxu1 %v6652_v17  ;;  %1881 = vmatpush.msrb.mxu3 %v6655_v9  ;;  %v1495_v17 = vsub.f32 1.0, %v1494_v26  ;;  %4176 = vtanh.f32 %v7285_v59  ;;  %v1504_v9 = vand.u32 2147483648, %v1492_v55  ;;  %v7362_v55 = vld [vmem:[#allocation5 + $0xe0] sm:$0xff]  ;;  %v7389_v26 = vld [vmem:[#allocation5 + $0x88] sm:$0xff] }
 0x2cb   :  { %1842 = vmatpush.msrb.mxu1 %v10971_v63  ;;  %1882 = vmatpush.msrb.mxu3 %v10972_v14  ;;  %v1496_v29 = vmul.f32 %v4175_v49, %v1495_v17  ;;  %v1505_v8 = vor.u32 1.1754944e-38, %v1504_v9  ;;  %v7378_v63 = vld [vmem:[#allocation5 + $0xa0] sm:$0xff]  ;;  %v7381_v14 = vld [vmem:[#allocation5 + $0xa8] sm:$0xff] }
 0x2cc   :  { %v7394_v17 = vld [vmem:[#allocation5 + $0x60] sm:$0xff]  ;;  %v7397_v9 = vld [vmem:[#allocation5 + $0x68] sm:$0xff] }
 0x2cd   :  { %1843 = vmatpush.msrb.mxu1 %v10973_v43  ;;  %1883 = vmatpush.msrb.mxu3 %v10974_v0  ;;  %v1497_v10 = vadd.f32 %v4175_v49, %v1496_v29  ;;  %v10999_v43 = vld [vmem:[#allocation106_spill] sm:$0xff]  ;;  %v7386_v0 = vld [vmem:[#allocation5 + $0x80] sm:$0xff] }
 0x2ce   :  { %v7402_v29 = vld [vmem:[#allocation5 + $0x40] sm:$0xff] }
 0x2cf   :  { %1844 = vmatpush.msrb.mxu1 %v10975_v19  ;;  %1884 = vmatpush.msrb.mxu3 %v10976_v11  ;;  %v1501_v12 = vsel %vm1500_vm10, %v4175_v49, %v1497_v10  ;;  %v4177_v16 = vpop.eup %4176  ;;  %v10998_v49 = vld [vmem:[#allocation19_spill] sm:$0xff]  ;;  %v11000_v19 = vld [vmem:[#allocation22_spill] sm:$0xff]  ;;  %v11001_v11 = vld [vmem:[#allocation20_spill] sm:$0xff] }
 0x2d0   :  { %v1506_v20 = vsel %vm1503_vm11, %v1505_v8, %v1501_v12  ;;  %v7410_v10 = vld [vmem:[#allocation5 + $0x20] sm:$0xff]  ;;  %v7413_v8 = vld [vmem:[#allocation5 + $0x28] sm:$0xff]  ;;  %v7416_v12 = vld [vmem:[#allocation2 + $0x18] sm:$0xff] }
 0x2d1   :  { %1845 = vmatpush.msrb.mxu1 %v10977_v52  ;;  %1885 = vmatpush.msrb.mxu3 %v10978_v47  ;;  %v1512_v40 = vmul.f32 %v4177_v16, %v1506_v20  ;;  %v11002_v52 = vld [vmem:[#allocation21_spill] sm:$0xff]  ;;  %v11003_v47 = vld [vmem:[#allocation23_spill] sm:$0xff]  ;;  %v11006_v16 = vld [vmem:[#allocation28_spill] sm:$0xff] }
 0x2d2   :  { %v11007_v20 = vld [vmem:[#allocation25_spill] sm:$0xff] }
 0x2d3   :  { %1846 = vmatpush.msrb.mxu1 %v10979_v7  ;;  %1886 = vmatpush.msrb.mxu3 %v10980_v4  ;;  %v11004_v7 = vld [vmem:[#allocation26_spill] sm:$0xff]  ;;  %v11005_v4 = vld [vmem:[#allocation24_spill] sm:$0xff] }
 0x2d4   :  { %1529 = vmatmul.f32.vlgmr.msra.gmra.mxu0 %v1512_v40  ;;  %1569 = vmatmul.f32.vlgmr.msra.gmra.mxu2 %v1512_v40 }
 0x2d5   :  { %1847 = vmatpush.msrb.mxu1 %v6692_v48  ;;  %1887 = vmatpush.msrb.mxu3 %v6695_v21  ;;  %v7305_v48 = vld [vmem:[#allocation5 + $0x1e8] sm:$0xff]  ;;  %v7308_v21 = vld [vmem:[#allocation5 + $0x1c0] sm:$0xff] }
 0x2d6   :  { %1738 = vmatpush.msra.mxu0 %v7302_v58  ;;  %1774 = vmatmul.f32.vlgmr.msra.gmra.mxu1 %v1512_v40 }
 0x2d7   :  { %1848 = vmatpush.msrb.mxu1 %v6698_v37  ;;  %1888 = vmatpush.msrb.mxu3 %v6701_v18  ;;  %v10982_v37 = vld [vmem:[#allocation98_spill] sm:$0xff] }
 0x2d8   :  { %1778 = vmatpush.msra.mxu2 %v7305_v48  ;;  %1814 = vmatmul.f32.vlgmr.msra.gmra.mxu3 %v1512_v40  ;;  %v7312_v18 = vld [vmem:[#allocation5 + $0x1c8] sm:$0xff] }
 0x2d9   :  { %1849 = vmatpush.msrb.mxu1 %v6707_v61  ;;  %1889 = vmatpush.msrb.mxu3 %v10981_v46  ;;  %v10983_v61 = vld [vmem:[#allocation99_spill] sm:$0xff]  ;;  %v7423_v46 = vld [vmem:[#allocation5 + $0x8] sm:$0xff] }
 0x2da   :  { %1739 = vmatpush.msra.mxu0 %v7308_v21  ;;  %1779 = vmatpush.msra.mxu2 %v7312_v18 }
 0x2db   :  { %1850 = vmatpush.msrb.mxu1 %v10982_v37  ;;  %1890 = vmatpush.msrb.mxu3 %v10983_v61  ;;  %v7428_v37 = vld [vmem:[#allocation5 + $0x1f0] sm:$0xff]  ;;  %v7431_v61 = vld [vmem:[#allocation5 + $0x1f8] sm:$0xff] }
 0x2dc   :  { %1740 = vmatpush.msra.mxu0 %v7316_v56  ;;  %1780 = vmatpush.msra.mxu2 %v7320_v24 }
 0x2dd   :  { %1851 = vmatpush.msrb.mxu1 %v10984_v5  ;;  %1891 = vmatpush.msrb.mxu3 %v10985_v50  ;;  %v11008_v5 = vld [vmem:[#allocation30_spill] sm:$0xff]  ;;  %v11009_v50 = vld [vmem:[#allocation27_spill] sm:$0xff] }
 0x2de   :  { %1741 = vmatpush.msra.mxu0 %v7324_v32  ;;  %1781 = vmatpush.msra.mxu2 %v7328_v51 }
 0x2df   :  { %1852 = vmatpush.msrb.mxu1 %v10986_v6  ;;  %1609 = vmatmul.f32.vlgmr.msrb.gmra.mxu0 %v1512_v40  ;;  %v7436_v6 = vld [vmem:[#allocation5 + $0x1d0] sm:$0xff] }
 0x2e0   :  { %1649 = vmatmul.f32.vlgmr.msrb.gmra.mxu2 %v1512_v40  ;;  %1742 = vmatpush.msra.mxu0 %v7331_v57  ;;  %11010 = vst [vmem:[#allocation78_spill] sm:$0xff] %v7436_v6 }
 0x2e1   :  { %1782 = vmatpush.msra.mxu2 %v7334_v53  ;;  %1892 = vmatpush.msrb.mxu3 %v10987_v25  ;;  %v7439_v25 = vld [vmem:[#allocation5 + $0x1d8] sm:$0xff] }
 0x2e2   :  { %1743 = vmatpush.msra.mxu0 %v7338_v23  ;;  %1853 = vmatpush.msrb.mxu1 %v10988_v38  ;;  %11011 = vst [vmem:[#allocation80_spill] sm:$0xff] %v7439_v25  ;;  %v11012_v38 = vld [vmem:[#allocation32_spill] sm:$0xff] }
 0x2e3   :  { %1783 = vmatpush.msra.mxu2 %v7342_v27  ;;  %1893 = vmatpush.msrb.mxu3 %v10989_v39  ;;  %v11013_v39 = vld [vmem:[#allocation29_spill] sm:$0xff] }
 0x2e4   :  { %1854 = vmatmul.f32.vlgmr.msrb.gmra.mxu1 %v1512_v40  ;;  %1894 = vmatmul.f32.vlgmr.msrb.gmra.mxu3 %v1512_v40  ;;  %v7420_v40 = vld [vmem:[#allocation5] sm:$0xff] }
 0x2e5   :  { %1744 = vmatpush.msra.mxu0 %v7346_v22  ;;  %1784 = vmatpush.msra.mxu2 %v7349_v1 }
 0x2e6   :  { %1981 = vmatpush.msra.mxu1 %v10990_v45  ;;  %2021 = vmatpush.msra.mxu3 %v10991_v44  ;;  %v7444_v45 = vld [vmem:[#allocation5 + $0x1b0] sm:$0xff]  ;;  %v7447_v44 = vld [vmem:[#allocation5 + $0x1b8] sm:$0xff] }
 0x2e7   :  { %1745 = vmatpush.msra.mxu0 %v7354_v34  ;;  %1785 = vmatpush.msra.mxu2 %v7357_v62  ;;  %11014 = vst [vmem:[#allocation84_spill] sm:$0xff] %v7444_v45 }
 0x2e8   :  { %1982 = vmatpush.msra.mxu1 %v10992_v33  ;;  %2022 = vmatpush.msra.mxu3 %v10993_v28  ;;  %11015 = vst [vmem:[#allocation82_spill] sm:$0xff] %v7447_v44  ;;  %v11016_v33 = vld [vmem:[#allocation34_spill] sm:$0xff]  ;;  %v11017_v28 = vld [vmem:[#allocation31_spill] sm:$0xff] }
 0x2e9   :  { %1746 = vmatpush.msra.mxu0 %v7362_v55  ;;  %1786 = vmatpush.msra.mxu2 %v7365_v3 }
 0x2ea   :  { %1983 = vmatpush.msra.mxu1 %v10994_v35  ;;  %2023 = vmatpush.msra.mxu3 %v10995_v31  ;;  %v7452_v35 = vld [vmem:[#allocation5 + $0x190] sm:$0xff]  ;;  %v7455_v31 = vld [vmem:[#allocation5 + $0x198] sm:$0xff] }
 0x2eb   :  { %1747 = vmatpush.msra.mxu0 %v7370_v41  ;;  %1787 = vmatpush.msra.mxu2 %v7373_v30  ;;  %11018 = vst [vmem:[#allocation86_spill] sm:$0xff] %v7452_v35 }
 0x2ec   :  { %1984 = vmatpush.msra.mxu1 %v10996_v36  ;;  %2024 = vmatpush.msra.mxu3 %v10997_v42  ;;  %11019 = vst [vmem:[#allocation83_spill] sm:$0xff] %v7455_v31  ;;  %v11020_v36 = vld [vmem:[#allocation36_spill] sm:$0xff]  ;;  %v11021_v42 = vld [vmem:[#allocation33_spill] sm:$0xff] }
 0x2ed   :  { %1748 = vmatpush.msra.mxu0 %v7378_v63  ;;  %1788 = vmatpush.msra.mxu2 %v7381_v14 }
 0x2ee   :  { %1985 = vmatpush.msra.mxu1 %v10998_v49  ;;  %2025 = vmatpush.msra.mxu3 %v10999_v43  ;;  %v7460_v49 = vld [vmem:[#allocation5 + $0x170] sm:$0xff]  ;;  %v7463_v43 = vld [vmem:[#allocation5 + $0x178] sm:$0xff] }
 0x2ef   :  { %1749 = vmatpush.msra.mxu0 %v7386_v0  ;;  %1789 = vmatpush.msra.mxu2 %v7389_v26  ;;  %11022 = vst [vmem:[#allocation88_spill] sm:$0xff] %v7460_v49 }
 0x2f0   :  { %1986 = vmatpush.msra.mxu1 %v11000_v19  ;;  %2026 = vmatpush.msra.mxu3 %v11001_v11  ;;  %11023 = vst [vmem:[#allocation57_spill] sm:$0xff] %v7463_v43  ;;  %v11024_v19 = vld [vmem:[#allocation38_spill] sm:$0xff]  ;;  %v11025_v11 = vld [vmem:[#allocation35_spill] sm:$0xff] }
 0x2f1   :  { %1750 = vmatpush.msra.mxu0 %v7394_v17  ;;  %1790 = vmatpush.msra.mxu2 %v7397_v9 }
 0x2f2   :  { %1987 = vmatpush.msra.mxu1 %v11002_v52  ;;  %2027 = vmatpush.msra.mxu3 %v11003_v47  ;;  %v7468_v52 = vld [vmem:[#allocation5 + $0x150] sm:$0xff]  ;;  %v7471_v47 = vld [vmem:[#allocation5 + $0x158] sm:$0xff] }
 0x2f3   :  { %1751 = vmatpush.msra.mxu0 %v7402_v29  ;;  %1791 = vmatpush.msra.mxu2 %v7405_v2  ;;  %11026 = vst [vmem:[#allocation58_spill] sm:$0xff] %v7468_v52 }
 0x2f4   :  { %1988 = vmatpush.msra.mxu1 %v11004_v7  ;;  %2028 = vmatpush.msra.mxu3 %v11005_v4  ;;  %11027 = vst [vmem:[#allocation85_spill] sm:$0xff] %v7471_v47  ;;  %v11028_v7 = vld [vmem:[#allocation40_spill] sm:$0xff]  ;;  %v11029_v4 = vld [vmem:[#allocation37_spill] sm:$0xff] }
 0x2f5   :  { %1752 = vmatpush.msra.mxu0 %v7410_v10  ;;  %1792 = vmatpush.msra.mxu2 %v7413_v8 }
 0x2f6   :  { %1989 = vmatpush.msra.mxu1 %v11006_v16  ;;  %2029 = vmatpush.msra.mxu3 %v11007_v20  ;;  %v7476_v16 = vld [vmem:[#allocation5 + $0x130] sm:$0xff]  ;;  %v7479_v20 = vld [vmem:[#allocation5 + $0x138] sm:$0xff] }
 0x2f7   :  { %1753 = vmatpush.msra.mxu0 %v7420_v40  ;;  %1793 = vmatpush.msra.mxu2 %v7423_v46  ;;  %11030 = vst [vmem:[#allocation60_spill] sm:$0xff] %v7476_v16 }
 0x2f8   :  { %1754 = vmatmul.f32.vlgmr.msra.gmra.mxu0 %v7416_v12  ;;  %1794 = vmatmul.f32.vlgmr.msra.gmra.mxu2 %v7416_v12  ;;  %11031 = vst [vmem:[#allocation89_spill] sm:$0xff] %v7479_v20 }
 0x2f9   :  { %1818 = vmatpush.msrb.mxu0 %v7428_v37  ;;  %1858 = vmatpush.msrb.mxu2 %v7431_v61 }
 0x2fa   :  { %1990 = vmatpush.msra.mxu1 %v11008_v5  ;;  %2030 = vmatpush.msra.mxu3 %v11009_v50  ;;  %v11032_v5 = vld [vmem:[#allocation42_spill] sm:$0xff]  ;;  %v11033_v50 = vld [vmem:[#allocation39_spill] sm:$0xff] }
 0x2fb   :  { %1819 = vmatpush.msrb.mxu0 %v7436_v6  ;;  %1859 = vmatpush.msrb.mxu2 %v7439_v25 }
 0x2fc   :  { %1991 = vmatpush.msra.mxu1 %v11012_v38  ;;  %2031 = vmatpush.msra.mxu3 %v11013_v39  ;;  %v7484_v38 = vld [vmem:[#allocation5 + $0x110] sm:$0xff]  ;;  %v7487_v39 = vld [vmem:[#allocation5 + $0x118] sm:$0xff] }
 0x2fd   :  { %1820 = vmatpush.msrb.mxu0 %v7444_v45  ;;  %1860 = vmatpush.msrb.mxu2 %v7447_v44  ;;  %11034 = vst [vmem:[#allocation61_spill] sm:$0xff] %v7484_v38 }
 0x2fe   :  { %1992 = vmatpush.msra.mxu1 %v11016_v33  ;;  %2032 = vmatpush.msra.mxu3 %v11017_v28  ;;  %11035 = vst [vmem:[#allocation87_spill] sm:$0xff] %v7487_v39  ;;  %v11036_v33 = vld [vmem:[#allocation44_spill] sm:$0xff]  ;;  %v11037_v28 = vld [vmem:[#allocation41_spill] sm:$0xff] }
 0x2ff   :  { %1821 = vmatpush.msrb.mxu0 %v7452_v35  ;;  %1861 = vmatpush.msrb.mxu2 %v7455_v31 }
 0x300   :  { %1993 = vmatpush.msra.mxu1 %v11020_v36  ;;  %2033 = vmatpush.msra.mxu3 %v11021_v42  ;;  %v7492_v36 = vld [vmem:[#allocation5 + $0xf0] sm:$0xff]  ;;  %v7495_v42 = vld [vmem:[#allocation5 + $0xf8] sm:$0xff] }
 0x301   :  { %1822 = vmatpush.msrb.mxu0 %v7460_v49  ;;  %1862 = vmatpush.msrb.mxu2 %v7463_v43  ;;  %11038 = vst [vmem:[#allocation90_spill] sm:$0xff] %v7492_v36 }
 0x302   :  { %1994 = vmatpush.msra.mxu1 %v11024_v19  ;;  %2034 = vmatpush.msra.mxu3 %v11025_v11  ;;  %11039 = vst [vmem:[#allocation92_spill] sm:$0xff] %v7495_v42  ;;  %v11040_v19 = vld [vmem:[#allocation46_spill] sm:$0xff]  ;;  %v11041_v11 = vld [vmem:[#allocation43_spill] sm:$0xff] }
 0x303   :  { %1823 = vmatpush.msrb.mxu0 %v7468_v52  ;;  %1863 = vmatpush.msrb.mxu2 %v7471_v47 }
 0x304   :  { %1995 = vmatpush.msra.mxu1 %v11028_v7  ;;  %2035 = vmatpush.msra.mxu3 %v11029_v4  ;;  %v7500_v7 = vld [vmem:[#allocation5 + $0xd0] sm:$0xff]  ;;  %v7503_v4 = vld [vmem:[#allocation5 + $0xd8] sm:$0xff] }
 0x305   :  { %1824 = vmatpush.msrb.mxu0 %v7476_v16  ;;  %1864 = vmatpush.msrb.mxu2 %v7479_v20  ;;  %11042 = vst [vmem:[#allocation91_spill] sm:$0xff] %v7500_v7 }
 0x306   :  { %1996 = vmatpush.msra.mxu1 %v11032_v5  ;;  %2036 = vmatpush.msra.mxu3 %v11033_v50  ;;  %11043 = vst [vmem:[#allocation93_spill] sm:$0xff] %v7503_v4  ;;  %v11044_v5 = vld [vmem:[#allocation48_spill] sm:$0xff]  ;;  %v11045_v50 = vld [vmem:[#allocation45_spill] sm:$0xff] }
 0x307   :  { %1825 = vmatpush.msrb.mxu0 %v7484_v38  ;;  %1865 = vmatpush.msrb.mxu2 %v7487_v39 }
 0x308   :  { %2061 = vmatpush.msrb.mxu1 %v11036_v33  ;;  %2101 = vmatpush.msrb.mxu3 %v11037_v28  ;;  %v7508_v33 = vld [vmem:[#allocation5 + $0xb0] sm:$0xff]  ;;  %v7511_v28 = vld [vmem:[#allocation5 + $0xb8] sm:$0xff] }
 0x309   :  { %1826 = vmatpush.msrb.mxu0 %v7492_v36  ;;  %1866 = vmatpush.msrb.mxu2 %v7495_v42  ;;  %11046 = vst [vmem:[#allocation95_spill] sm:$0xff] %v7508_v33  ;;  %v11075_v42 = vld [vmem:[#allocation71_spill] sm:$0xff]  ;;  %v11077_v36 = vld [vmem:[#allocation73_spill] sm:$0xff] }
 0x30a   :  { %2062 = vmatpush.msrb.mxu1 %v11040_v19  ;;  %2102 = vmatpush.msrb.mxu3 %v11041_v11  ;;  %11047 = vst [vmem:[#allocation94_spill] sm:$0xff] %v7511_v28  ;;  %v11048_v19 = vld [vmem:[#allocation50_spill] sm:$0xff]  ;;  %v11049_v11 = vld [vmem:[#allocation47_spill] sm:$0xff] }
 0x30b   :  { %1827 = vmatpush.msrb.mxu0 %v7500_v7  ;;  %1867 = vmatpush.msrb.mxu2 %v7503_v4  ;;  %v7516_v7 = vld [vmem:[#allocation5 + $0x90] sm:$0xff]  ;;  %v7519_v4 = vld [vmem:[#allocation5 + $0x98] sm:$0xff] }
 0x30c   :  { %2063 = vmatpush.msrb.mxu1 %v11044_v5  ;;  %2103 = vmatpush.msrb.mxu3 %v11045_v50  ;;  %11050 = vst [vmem:[#allocation96_spill] sm:$0xff] %v7516_v7  ;;  %v11052_v5 = vld [vmem:[#allocation52_spill] sm:$0xff]  ;;  %v11053_v50 = vld [vmem:[#allocation49_spill] sm:$0xff] }
 0x30d   :  { %1828 = vmatpush.msrb.mxu0 %v7508_v33  ;;  %1868 = vmatpush.msrb.mxu2 %v7511_v28  ;;  %11051 = vst [vmem:[#allocation97_spill] sm:$0xff] %v7519_v4  ;;  %v7524_v33 = vld [vmem:[#allocation5 + $0x70] sm:$0xff]  ;;  %v7527_v28 = vld [vmem:[#allocation5 + $0x78] sm:$0xff] }
 0x30e   :  { %2064 = vmatpush.msrb.mxu1 %v11048_v19  ;;  %2104 = vmatpush.msrb.mxu3 %v11049_v11  ;;  %11054 = vst [vmem:[#allocation98_spill] sm:$0xff] %v7524_v33  ;;  %v11056_v19 = vld [vmem:[#allocation54_spill] sm:$0xff]  ;;  %v11057_v11 = vld [vmem:[#allocation51_spill] sm:$0xff] }
 0x30f   :  { %1829 = vmatpush.msrb.mxu0 %v7516_v7  ;;  %1869 = vmatpush.msrb.mxu2 %v7519_v4  ;;  %11055 = vst [vmem:[#allocation99_spill] sm:$0xff] %v7527_v28  ;;  %v7532_v7 = vld [vmem:[#allocation5 + $0x50] sm:$0xff]  ;;  %v7535_v4 = vld [vmem:[#allocation5 + $0x58] sm:$0xff] }
 0x310   :  { %2065 = vmatpush.msrb.mxu1 %v11052_v5  ;;  %2105 = vmatpush.msrb.mxu3 %v11053_v50  ;;  %11058 = vst [vmem:[#allocation100_spill] sm:$0xff] %v7532_v7  ;;  %v11060_v5 = vld [vmem:[#allocation56_spill] sm:$0xff]  ;;  %v11061_v50 = vld [vmem:[#allocation53_spill] sm:$0xff] }
 0x311   :  { %1830 = vmatpush.msrb.mxu0 %v7524_v33  ;;  %1870 = vmatpush.msrb.mxu2 %v7527_v28  ;;  %11059 = vst [vmem:[#allocation101_spill] sm:$0xff] %v7535_v4  ;;  %v7540_v33 = vld [vmem:[#allocation5 + $0x30] sm:$0xff]  ;;  %v7543_v28 = vld [vmem:[#allocation5 + $0x38] sm:$0xff] }
 0x312   :  { %2066 = vmatpush.msrb.mxu1 %v11056_v19  ;;  %2106 = vmatpush.msrb.mxu3 %v11057_v11  ;;  %11062 = vst [vmem:[#allocation102_spill] sm:$0xff] %v7540_v33  ;;  %v11064_v19 = vld [vmem:[#allocation55_spill] sm:$0xff] }
 0x313   :  { %1831 = vmatpush.msrb.mxu0 %v7532_v7  ;;  %1871 = vmatpush.msrb.mxu2 %v7535_v4  ;;  %11063 = vst [vmem:[#allocation103_spill] sm:$0xff] %v7543_v28  ;;  %v11065_v11 = vld [vmem:[#allocation63_spill] sm:$0xff]  ;;  %v7551_v4 = vld [vmem:[#allocation5 + $0x18] sm:$0xff] }
 0x314   :  { %2067 = vmatpush.msrb.mxu1 %v11060_v5  ;;  %2107 = vmatpush.msrb.mxu3 %v11061_v50  ;;  %v7548_v7 = vld [vmem:[#allocation5 + $0x10] sm:$0xff]  ;;  %11067 = vst [vmem:[#allocation107_spill] sm:$0xff] %v7551_v4  ;;  %v11069_v50 = vld [vmem:[#allocation65_spill] sm:$0xff] }
 0x315   :  { %1832 = vmatpush.msrb.mxu0 %v7540_v33  ;;  %1872 = vmatpush.msrb.mxu2 %v7543_v28  ;;  %11066 = vst [vmem:[#allocation104_spill] sm:$0xff] %v7548_v7  ;;  %v11068_v5 = vld [vmem:[#allocation59_spill] sm:$0xff]  ;;  %v11070_v28 = vld [vmem:[#allocation62_spill] sm:$0xff]  ;;  %v11073_v33 = vld [vmem:[#allocation69_spill] sm:$0xff] }
 0x316   :  { %2068 = vmatpush.msrb.mxu1 %v11064_v19  ;;  %2108 = vmatpush.msrb.mxu3 %v11065_v11  ;;  %v11071_v19 = vld [vmem:[#allocation67_spill] sm:$0xff]  ;;  %v11072_v11 = vld [vmem:[#allocation64_spill] sm:$0xff] }
 0x317   :  { %1833 = vmatpush.msrb.mxu0 %v7548_v7  ;;  %1873 = vmatpush.msrb.mxu2 %v7551_v4  ;;  %v11074_v7 = vld [vmem:[#allocation66_spill] sm:$0xff]  ;;  %v11076_v4 = vld [vmem:[#allocation68_spill] sm:$0xff] }
 0x318   :  { %1834 = vmatmul.f32.vlgmr.msrb.gmra.mxu0 %v7416_v12  ;;  %1874 = vmatmul.f32.vlgmr.msrb.gmra.mxu2 %v7416_v12  ;;  %v11078_v12 = vld [vmem:[#allocation70_spill] sm:$0xff] }
 0x319   :  { %2069 = vmatpush.msrb.mxu1 %v11068_v5  ;;  %2109 = vmatpush.msrb.mxu3 %v11069_v50  ;;  %v11079_v5 = vld [vmem:[#allocation75_spill] sm:$0xff]  ;;  %v11080_v50 = vld [vmem:[#allocation72_spill] sm:$0xff] }
 0x31a   :  { %1961 = vmatpush.msra.mxu0 %v11070_v28  ;;  %2001 = vmatpush.msra.mxu2 %v11071_v19  ;;  %v11081_v28 = vld [vmem:[#allocation77_spill] sm:$0xff]  ;;  %v11082_v19 = vld [vmem:[#allocation118_spill] sm:$0xff] }
 0x31b   :  { %2070 = vmatpush.msrb.mxu1 %v11072_v11  ;;  %2110 = vmatpush.msrb.mxu3 %v11073_v33  ;;  %v11083_v11 = vld [vmem:[#allocation119_spill] sm:$0xff]  ;;  %v11084_v33 = vld [vmem:[#allocation120_spill] sm:$0xff] }
 0x31c   :  { %1962 = vmatpush.msra.mxu0 %v11074_v7  ;;  %2002 = vmatpush.msra.mxu2 %v11075_v42  ;;  %v11085_v7 = vld [vmem:[#allocation121_spill] sm:$0xff]  ;;  %v11086_v42 = vld [vmem:[#allocation122_spill] sm:$0xff] }
 0x31d   :  { %2071 = vmatpush.msrb.mxu1 %v11076_v4  ;;  %2111 = vmatpush.msrb.mxu3 %v11077_v36  ;;  %v11087_v4 = vld [vmem:[#allocation123_spill] sm:$0xff]  ;;  %v11088_v36 = vld [vmem:[#allocation124_spill] sm:$0xff] }
 0x31e   :  { %1963 = vmatpush.msra.mxu0 %v11078_v12  ;;  %2003 = vmatpush.msra.mxu2 %v11079_v5  ;;  %v11089_v12 = vld [vmem:[#allocation125_spill] sm:$0xff]  ;;  %v11090_v5 = vld [vmem:[#allocation126_spill] sm:$0xff] }
 0x31f   :  { %2072 = vmatpush.msrb.mxu1 %v11080_v50  ;;  %2112 = vmatpush.msrb.mxu3 %v11081_v28  ;;  %v11091_v50 = vld [vmem:[#allocation127_spill] sm:$0xff]  ;;  %v11092_v28 = vld [vmem:[#allocation128_spill] sm:$0xff] }
 0x320   :  { %1964 = vmatpush.msra.mxu0 %v11082_v19  ;;  %2004 = vmatpush.msra.mxu2 %v11083_v11  ;;  %v11093_v19 = vld [vmem:[#allocation129_spill] sm:$0xff]  ;;  %v11094_v11 = vld [vmem:[#allocation130_spill] sm:$0xff] }
 0x321   :  { %2073 = vmatpush.msrb.mxu1 %v11084_v33  ;;  %2113 = vmatpush.msrb.mxu3 %v11085_v7  ;;  %v11095_v33 = vld [vmem:[#allocation131_spill] sm:$0xff]  ;;  %v11096_v7 = vld [vmem:[#allocation132_spill] sm:$0xff] }
 0x322   :  { %1965 = vmatpush.msra.mxu0 %v11086_v42  ;;  %2005 = vmatpush.msra.mxu2 %v11087_v4  ;;  %v11097_v42 = vld [vmem:[#allocation133_spill] sm:$0xff]  ;;  %v11098_v4 = vld [vmem:[#allocation134_spill] sm:$0xff] }
 0x323   :  { %2074 = vmatpush.msrb.mxu1 %v11088_v36  ;;  %2114 = vmatpush.msrb.mxu3 %v11089_v12  ;;  %v11099_v36 = vld [vmem:[#allocation135_spill] sm:$0xff]  ;;  %v11100_v12 = vld [vmem:[#allocation136_spill] sm:$0xff] }
 0x324   :  { %1966 = vmatpush.msra.mxu0 %v11090_v5  ;;  %2006 = vmatpush.msra.mxu2 %v11091_v50  ;;  %v11101_v5 = vld [vmem:[#allocation137_spill] sm:$0xff]  ;;  %v11102_v50 = vld [vmem:[#allocation138_spill] sm:$0xff] }
 0x325   :  { %2075 = vmatpush.msrb.mxu1 %v11092_v28  ;;  %2115 = vmatpush.msrb.mxu3 %v11093_v19  ;;  %v11103_v28 = vld [vmem:[#allocation139_spill] sm:$0xff]  ;;  %v11104_v19 = vld [vmem:[#allocation140_spill] sm:$0xff]  ;;  %v1590_v16 = vpop.f32.mrf.mxu3 }
 0x326   :  { %1967 = vmatpush.msra.mxu0 %v11094_v11  ;;  %2007 = vmatpush.msra.mxu2 %v11095_v33  ;;  %v11105_v11 = vld [vmem:[#allocation141_spill] sm:$0xff]  ;;  %v11106_v33 = vld [vmem:[#allocation142_spill] sm:$0xff] }
 0x327   :  { %2076 = vmatpush.msrb.mxu1 %v11096_v7  ;;  %2116 = vmatpush.msrb.mxu3 %v11097_v42  ;;  %v11107_v7 = vld [vmem:[#allocation143_spill] sm:$0xff]  ;;  %v11108_v42 = vld [vmem:[#allocation144_spill] sm:$0xff] }
 0x328   :  { %1968 = vmatpush.msra.mxu0 %v11098_v4  ;;  %2008 = vmatpush.msra.mxu2 %v11099_v36  ;;  %v11109_v4 = vld [vmem:[#allocation145_spill] sm:$0xff]  ;;  %v11110_v36 = vld [vmem:[#allocation146_spill] sm:$0xff] }
 0x32a   :  { %1969 = vmatpush.msra.mxu0 %v11100_v12  ;;  %2009 = vmatpush.msra.mxu2 %v11101_v5  ;;  %v11111_v12 = vld [vmem:[#allocation147_spill] sm:$0xff]  ;;  %v11112_v5 = vld [vmem:[#allocation148_spill] sm:$0xff] }
 0x32c   :  { %1970 = vmatpush.msra.mxu0 %v11102_v50  ;;  %2010 = vmatpush.msra.mxu2 %v11103_v28  ;;  %v11113_v50 = vld [vmem:[#allocation149_spill] sm:$0xff]  ;;  %v11114_v28 = vld [vmem:[#allocation150_spill] sm:$0xff] }
 0x32e   :  { %1971 = vmatpush.msra.mxu0 %v11104_v19  ;;  %2011 = vmatpush.msra.mxu2 %v11105_v11  ;;  %v11115_v19 = vld [vmem:[#allocation151_spill] sm:$0xff]  ;;  %v11116_v11 = vld [vmem:[#allocation152_spill] sm:$0xff] }
 0x330   :  { %1972 = vmatpush.msra.mxu0 %v11106_v33  ;;  %2012 = vmatpush.msra.mxu2 %v11107_v7  ;;  %v11117_v33 = vld [vmem:[#allocation153_spill] sm:$0xff]  ;;  %v11118_v7 = vld [vmem:[#allocation154_spill] sm:$0xff] }
 0x332   :  { %1973 = vmatpush.msra.mxu0 %v11108_v42  ;;  %2013 = vmatpush.msra.mxu2 %v11109_v4  ;;  %v11119_v42 = vld [vmem:[#allocation155_spill] sm:$0xff]  ;;  %v11120_v4 = vld [vmem:[#allocation156_spill] sm:$0xff] }
 0x334   :  { %1974 = vmatpush.msra.mxu0 %v11110_v36  ;;  %2014 = vmatpush.msra.mxu2 %v11111_v12  ;;  %v11121_v36 = vld [vmem:[#allocation157_spill] sm:$0xff]  ;;  %v11122_v12 = vld [vmem:[#allocation158_spill] sm:$0xff] }
 0x336   :  { %1975 = vmatpush.msra.mxu0 %v11112_v5  ;;  %2015 = vmatpush.msra.mxu2 %v11113_v50  ;;  %v11123_v5 = vld [vmem:[#allocation159_spill] sm:$0xff]  ;;  %v11124_v50 = vld [vmem:[#allocation160_spill] sm:$0xff] }
 0x338   :  { %1976 = vmatpush.msra.mxu0 %v11114_v28  ;;  %2016 = vmatpush.msra.mxu2 %v11115_v19  ;;  %v11125_v28 = vld [vmem:[#allocation161_spill] sm:$0xff]  ;;  %v11126_v19 = vld [vmem:[#allocation162_spill] sm:$0xff] }
 0x33a   :  { %2041 = vmatpush.msrb.mxu0 %v11116_v11  ;;  %2081 = vmatpush.msrb.mxu2 %v11117_v33  ;;  %v11127_v11 = vld [vmem:[#allocation163_spill] sm:$0xff]  ;;  %v11128_v33 = vld [vmem:[#allocation164_spill] sm:$0xff] }
 0x33c   :  { %2042 = vmatpush.msrb.mxu0 %v11118_v7  ;;  %2082 = vmatpush.msrb.mxu2 %v11119_v42  ;;  %v11129_v7 = vld [vmem:[#allocation165_spill] sm:$0xff]  ;;  %v11130_v42 = vld [vmem:[#allocation166_spill] sm:$0xff] }
 0x33e   :  { %2043 = vmatpush.msrb.mxu0 %v11120_v4  ;;  %2083 = vmatpush.msrb.mxu2 %v11121_v36  ;;  %v11131_v4 = vld [vmem:[#allocation167_spill] sm:$0xff]  ;;  %v11132_v36 = vld [vmem:[#allocation168_spill] sm:$0xff] }
 0x340   :  { %2044 = vmatpush.msrb.mxu0 %v11122_v12  ;;  %2084 = vmatpush.msrb.mxu2 %v11123_v5  ;;  %v11133_v12 = vld [vmem:[#allocation169_spill] sm:$0xff]  ;;  %v11134_v5 = vld [vmem:[#allocation170_spill] sm:$0xff] }
 0x342   :  { %2045 = vmatpush.msrb.mxu0 %v11124_v50  ;;  %2085 = vmatpush.msrb.mxu2 %v11125_v28  ;;  %v11135_v50 = vld [vmem:[#allocation171_spill] sm:$0xff]  ;;  %v11136_v28 = vld [vmem:[#allocation172_spill] sm:$0xff] }
 0x344   :  { %2046 = vmatpush.msrb.mxu0 %v11126_v19  ;;  %2086 = vmatpush.msrb.mxu2 %v11127_v11  ;;  %v11137_v19 = vld [vmem:[#allocation173_spill] sm:$0xff]  ;;  %v11138_v11 = vld [vmem:[#allocation174_spill] sm:$0xff] }
 0x346   :  { %2047 = vmatpush.msrb.mxu0 %v11128_v33  ;;  %2087 = vmatpush.msrb.mxu2 %v11129_v7  ;;  %v11139_v33 = vld [vmem:[#allocation175_spill] sm:$0xff]  ;;  %v11140_v7 = vld [vmem:[#allocation176_spill] sm:$0xff] }
 0x348   :  { %2048 = vmatpush.msrb.mxu0 %v11130_v42  ;;  %2088 = vmatpush.msrb.mxu2 %v11131_v4  ;;  %v11141_v42 = vld [vmem:[#allocation177_spill] sm:$0xff]  ;;  %v11142_v4 = vld [vmem:[#allocation178_spill] sm:$0xff] }
 0x34a   :  { %2049 = vmatpush.msrb.mxu0 %v11132_v36  ;;  %2089 = vmatpush.msrb.mxu2 %v11133_v12  ;;  %v11143_v36 = vld [vmem:[#allocation179_spill] sm:$0xff] }
 0x34c   :  { %2050 = vmatpush.msrb.mxu0 %v11134_v5  ;;  %2090 = vmatpush.msrb.mxu2 %v11135_v50  ;;  %v11144_v5 = vld [vmem:[#allocation74_spill] sm:$0xff]  ;;  %v11145_v50 = vld [vmem:[#allocation180_spill] sm:$0xff] }
 0x34e   :  { %2051 = vmatpush.msrb.mxu0 %v11136_v28  ;;  %2091 = vmatpush.msrb.mxu2 %v11137_v19  ;;  %v11146_v28 = vld [vmem:[#allocation181_spill] sm:$0xff]  ;;  %v1550_v19 = vpop.f32.mrf.mxu1 }
 0x350   :  { %2052 = vmatpush.msrb.mxu0 %v11138_v11  ;;  %2092 = vmatpush.msrb.mxu2 %v11139_v33  ;;  %v11147_v11 = vld [vmem:[#allocation182_spill] sm:$0xff]  ;;  %v11148_v33 = vld [vmem:[#allocation183_spill] sm:$0xff] }
 0x351   :  { %v1530_v12 = vpop.f32.mrf.mxu0 }
 0x352   :  { %2053 = vmatpush.msrb.mxu0 %v11140_v7  ;;  %2093 = vmatpush.msrb.mxu2 %v11141_v42  ;;  %v1531_v39 = vadd.f32 %v1530_v12, %v11144_v5  ;;  %v11149_v42 = vld [vmem:[#allocation79_spill] sm:$0xff] }
 0x354   :  { %2054 = vmatpush.msrb.mxu0 %v11142_v4  ;;  %2094 = vmatpush.msrb.mxu2 %v11143_v36  ;;  %v1551_v38 = vadd.f32 %v1550_v19, %v1531_v39  ;;  %v1670_v39 = vpop.f32.mrf.mxu3 }
 0x356   :  { %2055 = vmatpush.msrb.mxu0 %v11145_v50  ;;  %2095 = vmatpush.msrb.mxu2 %v11146_v28  ;;  %v4052_v7 = vmul.f32 -1.442695, %v1551_v38  ;;  %v11150_v28 = vld [vmem:[#allocation76_spill] sm:$0xff] }
 0x357   :  { %v1570_v20 = vpop.f32.mrf.mxu2 }
 0x358   :  { %2056 = vmatpush.msrb.mxu0 %v11147_v11  ;;  %2096 = vmatpush.msrb.mxu2 %v11148_v33  ;;  %4178 = vpow2.f32 %v4052_v7  ;;  %v1571_v4 = vadd.f32 %v1570_v20, %v11149_v42  ;;  %v11151_v20 = vld [vmem:[#allocation81_spill] sm:$0xff] }
 0x35a   :  { %v1591_v36 = vadd.f32 %v1590_v16, %v1571_v4  ;;  %v1630_v4 = vpop.f32.mrf.mxu1 }
 0x35c   :  { %v4053_v47 = vmul.f32 -1.442695, %v1591_v36  ;;  %v1610_v33 = vpop.f32.mrf.mxu0 }
 0x35d   :  { %v1611_v42 = vadd.f32 %v1610_v33, %v11151_v20 }
 0x35e   :  { %v4179_v52 = vpop.eup %4178  ;;  %4180 = vpow2.f32 %v4053_v47 }
 0x35f   :  { %v1676_v12 = vadd.f32 1.0, %v4179_v52  ;;  %v1631_v47 = vadd.f32 %v1630_v4, %v1611_v42  ;;  %v11152_v4 = vld [vmem:[#allocation105_spill] sm:$0xff] }
 0x361   :  { %4182 = vrcp.f32 %v1676_v12  ;;  %vm1682_vm13 = vweird.f32 %v1676_v12 }
 0x363   :  { %v1650_v50 = vpop.f32.mrf.mxu2 }
 0x364   :  { %v1651_v5 = vadd.f32 %v1650_v50, %v11150_v28  ;;  %v4181_v19 = vpop.eup %4180  ;;  %v1688_v28 = vand.u32 2147483648, %v1676_v12 }
 0x365   :  { %v1695_v43 = vadd.f32 1.0, %v4181_v19  ;;  %v1686_v19 = vand.u32 2147483647, %v1676_v12 }
 0x366   :  { %v1671_v11 = vadd.f32 %v1670_v39, %v1651_v5 }
 0x367   :  { %v4183_v49 = vpop.eup %4182  ;;  %4184 = vrcp.f32 %v1695_v43  ;;  %vm1701_vm0 = vweird.f32 %v1695_v43  ;;  %vm1687_vm1 = vcmp.eq.f32.partialorder %v1686_v19, 8.507059e+37 }
 0x368   :  { %v4054_v38 = vmul.f32 -1.442695, %v1671_v11  ;;  %v1678_v7 = vmul.f32 %v4183_v49, %v1676_v12  ;;  %vm1683_vm12 = vweird.f32 %v4183_v49  ;;  %v1707_v11 = vand.u32 2147483648, %v1695_v43  ;;  %v1775_v12 = vpop.f32.mrf.mxu1 }
 0x369   :  { %vm1684_vm14 = vmor %vm1682_vm13, %vm1683_vm12 }
 0x36a   :  { %4186 = vpow2.f32 %v4054_v38  ;;  %v1679_v16 = vsub.f32 1.0, %v1678_v7  ;;  %v1705_v7 = vand.u32 2147483647, %v1695_v43 }
 0x36b   :  { %4188 = vtanh.f32 %v1631_v47 }
 0x36c   :  { %v1680_v52 = vmul.f32 %v4183_v49, %v1679_v16  ;;  %v1689_v16 = vor.u32 1.1754944e-38, %v1688_v28  ;;  %vm1706_vm3 = vcmp.eq.f32.partialorder %v1705_v7, 8.507059e+37 }
 0x36d   :  { %v4185_v36 = vpop.eup %4184 }
 0x36e   :  { %v1697_v35 = vmul.f32 %v4185_v36, %v1695_v43  ;;  %v1681_v50 = vadd.f32 %v4183_v49, %v1680_v52  ;;  %vm1702_vm15 = vweird.f32 %v4185_v36  ;;  %v1815_v43 = vpop.f32.mrf.mxu3 }
 0x36f   :  { %vm1703_vm2 = vmor %vm1701_vm0, %vm1702_vm15 }
 0x370   :  { %v4187_v31 = vpop.eup %4186  ;;  %v1698_v39 = vsub.f32 1.0, %v1697_v35  ;;  %v1685_v38 = vsel %vm1684_vm14, %v4183_v49, %v1681_v50 }
 0x371   :  { %v1715_v5 = vadd.f32 1.0, %v4187_v31  ;;  %v1708_v31 = vor.u32 1.1754944e-38, %v1707_v11  ;;  %v1690_v35 = vsel %vm1687_vm1, %v1689_v16, %v1685_v38  ;;  %v4189_v44 = vpop.eup %4188 }
 0x372   :  { %v1699_v33 = vmul.f32 %v4185_v36, %v1698_v39  ;;  %v1732_v50 = vmul.f32 %v4189_v44, %v1690_v35 }
 0x373   :  { %4190 = vrcp.f32 %v1715_v5  ;;  %v1727_v7 = vand.u32 2147483648, %v1715_v5  ;;  %vm1721_vm5 = vweird.f32 %v1715_v5 }
 0x374   :  { %v1700_v52 = vadd.f32 %v4185_v36, %v1699_v33 }
 0x375   :  { %v1755_v42 = vpop.f32.mrf.mxu0 }
 0x376   :  { %v1756_v20 = vadd.f32 %v1755_v42, %v11152_v4  ;;  %v1704_v47 = vsel %vm1703_vm2, %v4185_v36, %v1700_v52 }
 0x377   :  { %v1709_v25 = vsel %vm1706_vm3, %v1708_v31, %v1704_v47  ;;  %v7646_v47 = vld [vmem:[#allocation5 + $0x3e0] sm:$0xff] }
 0x378   :  { %v1776_v39 = vadd.f32 %v1775_v12, %v1756_v20  ;;  %v1731_v49 = vmul.f32 %v1709_v25, %v7194_v54  ;;  %v1725_v20 = vand.u32 2147483647, %v1715_v5  ;;  %v1728_v25 = vor.u32 1.1754944e-38, %v1727_v7  ;;  %v7685_v7 = vld [vmem:[#allocation5 + $0x348] sm:$0xff] }
 0x379   :  { %v4191_v45 = vpop.eup %4190  ;;  %11159 = vst [vmem:[#allocation114_spill] sm:$0xff] %v7685_v7 }
 0x37a   :  { %v1717_v6 = vmul.f32 %v4191_v45, %v1715_v5  ;;  %v7643_v19 = vadd.f32 %v1732_v50, %v1731_v49  ;;  %v4055_v11 = vmul.f32 -1.442695, %v1776_v39  ;;  %vm1722_vm4 = vweird.f32 %v4191_v45  ;;  %v7649_v39 = vld [vmem:[#allocation5 + $0x3e8] sm:$0xff] }
 0x37b   :  { %v1795_v28 = vpop.f32.mrf.mxu2  ;;  %vm1723_vm6 = vmor %vm1721_vm5, %vm1722_vm4  ;;  %vm1726_vm7 = vcmp.eq.f32.partialorder %v1725_v20, 8.507059e+37  ;;  %v7657_v49 = vld [vmem:[#allocation5 + $0x3c8] sm:$0xff]  ;;  %v7690_v20 = vld [vmem:[#allocation5 + $0x320] sm:$0xff] }
 0x37c   :  { %v1796_v42 = vadd.f32 %v1795_v28, %v10739_v60  ;;  %v1718_v33 = vsub.f32 1.0, %v1717_v6  ;;  %4192 = vtanh.f32 %v7643_v19  ;;  %v7662_v28 = vld [vmem:[#allocation5 + $0x3a0] sm:$0xff]  ;;  %11160 = vst [vmem:[#allocation117_spill] sm:$0xff] %v7690_v20 }
 0x37d   :  { %4194 = vpow2.f32 %v4055_v11  ;;  %v7676_v11 = vld [vmem:[#allocation5 + $0x360] sm:$0xff] }
 0x37e   :  { %v1816_v38 = vadd.f32 %v1815_v43, %v1796_v42  ;;  %v1719_v36 = vmul.f32 %v4191_v45, %v1718_v33  ;;  %v7665_v42 = vld [vmem:[#allocation5 + $0x3a8] sm:$0xff]  ;;  %v7669_v43 = vld [vmem:[#allocation5 + $0x380] sm:$0xff]  ;;  %11156 = vst [vmem:[#allocation111_spill] sm:$0xff] %v7676_v11 }
 0x37f   :  { %11153 = vst [vmem:[#allocation108_spill] sm:$0xff] %v7665_v42  ;;  %v7672_v33 = vld [vmem:[#allocation5 + $0x388] sm:$0xff] }
 0x380   :  { %v4056_v16 = vmul.f32 -1.442695, %v1816_v38  ;;  %v1720_v52 = vadd.f32 %v4191_v45, %v1719_v36  ;;  %11154 = vst [vmem:[#allocation109_spill] sm:$0xff] %v7669_v43  ;;  %v7679_v38 = vld [vmem:[#allocation5 + $0x368] sm:$0xff]  ;;  %v7682_v36 = vld [vmem:[#allocation5 + $0x340] sm:$0xff] }
 0x381   :  { %11155 = vst [vmem:[#allocation110_spill] sm:$0xff] %v7672_v33 }
 0x382   :  { %4196 = vpow2.f32 %v4056_v16  ;;  %v1724_v54 = vsel %vm1723_vm6, %v4191_v45, %v1720_v52  ;;  %v4193_v44 = vpop.eup %4192  ;;  %v7654_v45 = vld [vmem:[#allocation5 + $0x3c0] sm:$0xff]  ;;  %11157 = vst [vmem:[#allocation112_spill] sm:$0xff] %v7679_v38  ;;  %v7693_v52 = vld [vmem:[#allocation5 + $0x328] sm:$0xff] }
 0x383   :  { %v1729_v31 = vsel %vm1726_vm7, %v1728_v25, %v1724_v54  ;;  %v4195_v35 = vpop.eup %4194  ;;  %11158 = vst [vmem:[#allocation113_spill] sm:$0xff] %v7682_v36  ;;  %v7698_v25 = vld [vmem:[#allocation5 + $0x300] sm:$0xff] }
 0x384   :  { %v1735_v6 = vmul.f32 %v4193_v44, %v1729_v31  ;;  %v7652_v5 = vadd.f32 1.0, %v4195_v35  ;;  %11161 = vst [vmem:[#allocation19_spill] sm:$0xff] %v7693_v52  ;;  %v7701_v44 = vld [vmem:[#allocation5 + $0x308] sm:$0xff] }
 0x385   :  { %11162 = vst [vmem:[#allocation106_spill] sm:$0xff] %v7698_v25 }
 0x386   :  { %1997 = vmatmul.f32.vlgmr.msra.gmra.mxu1 %v1735_v6  ;;  %2037 = vmatmul.f32.vlgmr.msra.gmra.mxu3 %v1735_v6  ;;  %4198 = vrcp.f32 %v7652_v5  ;;  %11163 = vst [vmem:[#allocation22_spill] sm:$0xff] %v7701_v44  ;;  %vm1907_vm10 = vweird.f32 %v7652_v5 }
 0x387   :  { %2206 = vmatpush.msra.mxu1 %v7646_v47  ;;  %2246 = vmatpush.msra.mxu3 %v7649_v39 }
 0x388   :  { %v4197_v12 = vpop.eup %4196 }
 0x389   :  { %2207 = vmatpush.msra.mxu1 %v7654_v45  ;;  %2247 = vmatpush.msra.mxu3 %v7657_v49  ;;  %v7660_v50 = vadd.f32 1.0, %v4197_v12  ;;  %v7708_v12 = vld [vmem:[#allocation5 + $0x2e0] sm:$0xff] }
 0x38a   :  { %11164 = vst [vmem:[#allocation20_spill] sm:$0xff] %v7708_v12 }
 0x38b   :  { %2208 = vmatpush.msra.mxu1 %v7662_v28  ;;  %2248 = vmatpush.msra.mxu3 %v7665_v42  ;;  %4200 = vrcp.f32 %v7660_v50  ;;  %v7728_v42 = vld [vmem:[#allocation5 + $0x280] sm:$0xff]  ;;  %vm1926_vm11 = vweird.f32 %v7660_v50 }
 0x38c   :  { %v7688_v16 = vpop.eup %4198  ;;  %11169 = vst [vmem:[#allocation28_spill] sm:$0xff] %v7728_v42 }
 0x38d   :  { %2209 = vmatpush.msra.mxu1 %v7669_v43  ;;  %2249 = vmatpush.msra.mxu3 %v7672_v33  ;;  %v1903_v31 = vmul.f32 %v7688_v16, %v7652_v5  ;;  %v7722_v33 = vld [vmem:[#allocation5 + $0x2a0] sm:$0xff]  ;;  %v1855_v43 = vpop.f32.mrf.mxu1  ;;  %vm1908_vm8 = vweird.f32 %v7688_v16 }
 0x38e   :  { %2077 = vmatmul.f32.vlgmr.msrb.gmra.mxu1 %v1735_v6  ;;  %2117 = vmatmul.f32.vlgmr.msrb.gmra.mxu3 %v1735_v6  ;;  %11167 = vst [vmem:[#allocation26_spill] sm:$0xff] %v7722_v33  ;;  %vm7762_vm12 = vmor %vm1907_vm10, %vm1908_vm8 }
 0x38f   :  { %2210 = vmatpush.msra.mxu1 %v7676_v11  ;;  %2250 = vmatpush.msra.mxu3 %v7679_v38  ;;  %v1895_v38 = vpop.f32.mrf.mxu3  ;;  %v1904_v11 = vsub.f32 1.0, %v1903_v31 }
 0x391   :  { %2211 = vmatpush.msra.mxu1 %v7682_v36  ;;  %2251 = vmatpush.msra.mxu3 %v7685_v7  ;;  %v7696_v54 = vpop.eup %4200 }
 0x392   :  { %v1922_v6 = vmul.f32 %v7696_v54, %v7660_v50  ;;  %vm1927_vm9 = vweird.f32 %v7696_v54 }
 0x393   :  { %2212 = vmatpush.msra.mxu1 %v7690_v20  ;;  %2252 = vmatpush.msra.mxu3 %v7693_v52  ;;  %v7711_v52 = vld [vmem:[#allocation5 + $0x2e8] sm:$0xff]  ;;  %v7714_v20 = vld [vmem:[#allocation5 + $0x2c0] sm:$0xff]  ;;  %vm7776_vm13 = vmor %vm1926_vm11, %vm1927_vm9 }
 0x394   :  { %11165 = vst [vmem:[#allocation21_spill] sm:$0xff] %v7711_v52 }
 0x395   :  { %2213 = vmatpush.msra.mxu1 %v7698_v25  ;;  %2253 = vmatpush.msra.mxu3 %v7701_v44  ;;  %v1835_v35 = vpop.f32.mrf.mxu0  ;;  %11166 = vst [vmem:[#allocation23_spill] sm:$0xff] %v7714_v20  ;;  %v7717_v44 = vld [vmem:[#allocation5 + $0x2c8] sm:$0xff] }
 0x396   :  { %v1836_v7 = vadd.f32 %v1835_v35, %v10740_v13  ;;  %v7731_v35 = vld [vmem:[#allocation5 + $0x288] sm:$0xff]  ;;  %v7792_v13 = vld [vmem:[#allocation5 + $0x3d0] sm:$0xff] }
 0x397   :  { %2214 = vmatpush.msra.mxu1 %v7708_v12  ;;  %2254 = vmatpush.msra.mxu3 %v7711_v52  ;;  %v1923_v12 = vsub.f32 1.0, %v1922_v6  ;;  %v7725_v52 = vld [vmem:[#allocation5 + $0x2a8] sm:$0xff]  ;;  %11170 = vst [vmem:[#allocation25_spill] sm:$0xff] %v7731_v35 }
 0x398   :  { %11168 = vst [vmem:[#allocation24_spill] sm:$0xff] %v7725_v52 }
 0x399   :  { %2215 = vmatpush.msra.mxu1 %v7714_v20  ;;  %2255 = vmatpush.msra.mxu3 %v7717_v44  ;;  %v1924_v6 = vmul.f32 %v7696_v54, %v1923_v12  ;;  %v1932_v12 = vand.u32 2147483648, %v7660_v50 }
 0x39b   :  { %v1875_v25 = vpop.f32.mrf.mxu2  ;;  %2216 = vmatpush.msra.mxu1 %v7722_v33  ;;  %2256 = vmatpush.msra.mxu3 %v7725_v52  ;;  %v1905_v33 = vmul.f32 %v7688_v16, %v1904_v11  ;;  %v1925_v11 = vadd.f32 %v7696_v54, %v1924_v6  ;;  %v1930_v6 = vand.u32 2147483647, %v7660_v50 }
 0x39c   :  { %v1876_v36 = vadd.f32 %v1875_v25, %v10741_v15  ;;  %v1856_v25 = vadd.f32 %v1855_v43, %v1836_v7  ;;  %v7736_v15 = vld [vmem:[#allocation5 + $0x260] sm:$0xff] }
 0x39d   :  { %2217 = vmatpush.msra.mxu1 %v7728_v42  ;;  %2257 = vmatpush.msra.mxu3 %v7731_v35  ;;  %11171 = vst [vmem:[#allocation30_spill] sm:$0xff] %v7736_v15  ;;  %v7745_v35 = vld [vmem:[#allocation5 + $0x248] sm:$0xff]  ;;  %v1906_v43 = vadd.f32 %v7688_v16, %v1905_v33  ;;  %v7752_v7 = vld [vmem:[#allocation5 + $0x220] sm:$0xff]  ;;  %v1933_v42 = vor.u32 1.1754944e-38, %v1932_v12  ;;  %vm1931_vm15 = vcmp.eq.f32.partialorder %v1930_v6, 8.507059e+37  ;;  %v7798_v33 = vld [vmem:[#allocation5 + $0x3b0] sm:$0xff] }
 0x39e   :  { %v1896_v20 = vadd.f32 %v1895_v38, %v1876_v36  ;;  %v7739_v38 = vld [vmem:[#allocation5 + $0x268] sm:$0xff]  ;;  %v7742_v36 = vld [vmem:[#allocation5 + $0x240] sm:$0xff]  ;;  %11174 = vst [vmem:[#allocation29_spill] sm:$0xff] %v7745_v35  ;;  %v7822_v6 = vld [vmem:[#allocation5 + $0x358] sm:$0xff] }
 0x39f   :  { %2218 = vmatpush.msra.mxu1 %v7736_v15  ;;  %11172 = vst [vmem:[#allocation27_spill] sm:$0xff] %v7739_v38  ;;  %2258 = vmatpush.msra.mxu3 %v7739_v38  ;;  %v7780_v38 = vld [vmem:[#allocation5 + $0x3f0] sm:$0xff]  ;;  %v1910_v50 = vsel %vm7762_vm12, %v7688_v16, %v1906_v43 }
 0x3a0   :  { %v4057_v31 = vmul.f32 -1.442695, %v1896_v20  ;;  %11173 = vst [vmem:[#allocation32_spill] sm:$0xff] %v7742_v36  ;;  %v7755_v20 = vld [vmem:[#allocation5 + $0x228] sm:$0xff] }
 0x3a1   :  { %2219 = vmatpush.msra.mxu1 %v7742_v36  ;;  %2259 = vmatpush.msra.mxu3 %v7745_v35  ;;  %11175 = vst [vmem:[#allocation34_spill] sm:$0xff] %v7752_v7  ;;  %v7804_v36 = vld [vmem:[#allocation5 + $0x390] sm:$0xff] }
 0x3a2   :  { %4202 = vpow2.f32 %v4057_v31  ;;  %11176 = vst [vmem:[#allocation31_spill] sm:$0xff] %v7755_v20  ;;  %v1911_v31 = vand.u32 2147483647, %v7652_v5 }
 0x3a3   :  { %4204 = vtanh.f32 %v1856_v25  ;;  %2220 = vmatpush.msra.mxu1 %v7752_v7  ;;  %2260 = vmatpush.msra.mxu3 %v7755_v20  ;;  %v1913_v25 = vand.u32 2147483648, %v7652_v5  ;;  %v7768_v7 = vld [vmem:[#allocation5 + $0x200] sm:$0xff]  ;;  %v7771_v20 = vld [vmem:[#allocation5 + $0x208] sm:$0xff]  ;;  %11183 = vst [vmem:[#allocation38_spill] sm:$0xff] %v7780_v38  ;;  %v7783_v5 = vld [vmem:[#allocation5 + $0x3f8] sm:$0xff] }
 0x3a4   :  { %11179 = vst [vmem:[#allocation36_spill] sm:$0xff] %v7768_v7  ;;  %vm1912_vm14 = vcmp.eq.f32.partialorder %v1911_v31, 8.507059e+37  ;;  %v7819_v31 = vld [vmem:[#allocation5 + $0x350] sm:$0xff] }
 0x3a5   :  { %2221 = vmatpush.msra.mxu1 %v7768_v7  ;;  %11180 = vst [vmem:[#allocation33_spill] sm:$0xff] %v7771_v20  ;;  %2261 = vmatpush.msra.mxu3 %v7771_v20  ;;  %v1929_v20 = vsel %vm7776_vm13, %v7696_v54, %v1925_v11  ;;  %v1914_v52 = vor.u32 1.1754944e-38, %v1913_v25  ;;  %v7801_v54 = vld [vmem:[#allocation5 + $0x3b8] sm:$0xff] }
 0x3a6   :  { %v1934_v43 = vsel %vm1931_vm15, %v1933_v42, %v1929_v20  ;;  %v7807_v11 = vld [vmem:[#allocation5 + $0x398] sm:$0xff]  ;;  %v7811_v42 = vld [vmem:[#allocation5 + $0x370] sm:$0xff]  ;;  %11186 = vst [vmem:[#allocation37_spill] sm:$0xff] %v7819_v31 }
 0x3a7   :  { %2286 = vmatpush.msrb.mxu1 %v7780_v38  ;;  %2326 = vmatpush.msrb.mxu3 %v7783_v5  ;;  %v7795_v38 = vld [vmem:[#allocation5 + $0x3d8] sm:$0xff]  ;;  %v1915_v16 = vsel %vm1912_vm14, %v1914_v52, %v1910_v50  ;;  %v1956_v52 = vmul.f32 %v1934_v43, %v7285_v59  ;;  %11184 = vst [vmem:[#allocation35_spill] sm:$0xff] %v7811_v42  ;;  %v7825_v50 = vld [vmem:[#allocation5 + $0x330] sm:$0xff] }
 0x3a8   :  { %v4203_v35 = vpop.eup %4202  ;;  %v7814_v20 = vld [vmem:[#allocation5 + $0x378] sm:$0xff]  ;;  %11187 = vst [vmem:[#allocation42_spill] sm:$0xff] %v7822_v6 }
 0x3a9   :  { %v1940_v7 = vadd.f32 1.0, %v4203_v35  ;;  %v4205_v15 = vpop.eup %4204  ;;  %2287 = vmatpush.msrb.mxu1 %v7792_v13  ;;  %2327 = vmatpush.msrb.mxu3 %v7795_v38  ;;  %11185 = vst [vmem:[#allocation40_spill] sm:$0xff] %v7814_v20 }
 0x3aa   :  { %v1957_v35 = vmul.f32 %v4205_v15, %v1915_v16  ;;  %11188 = vst [vmem:[#allocation39_spill] sm:$0xff] %v7825_v50  ;;  %v7828_v16 = vld [vmem:[#allocation5 + $0x338] sm:$0xff] }
 0x3ab   :  { %4206 = vrcp.f32 %v1940_v7  ;;  %2288 = vmatpush.msrb.mxu1 %v7798_v33  ;;  %2328 = vmatpush.msrb.mxu3 %v7801_v54  ;;  %11189 = vst [vmem:[#allocation44_spill] sm:$0xff] %v7828_v16  ;;  %v1952_v43 = vand.u32 2147483648, %v1940_v7  ;;  %vm1946_vm1 = vweird.f32 %v1940_v7 }
 0x3ac   :  { %v7817_v15 = vadd.f32 %v1957_v35, %v1956_v52  ;;  %v1950_v52 = vand.u32 2147483647, %v1940_v7 }
 0x3ad   :  { %2289 = vmatpush.msrb.mxu1 %v7804_v36  ;;  %2329 = vmatpush.msrb.mxu3 %v7807_v11 }
 0x3ae   :  { %4208 = vtanh.f32 %v7817_v15  ;;  %vm1951_vm3 = vcmp.eq.f32.partialorder %v1950_v52, 8.507059e+37  ;;  %v7997_v52 = vld [vmem:[#allocation8 + $0x288] sm:$0xff] }
 0x3af   :  { %2290 = vmatpush.msrb.mxu1 %v7811_v42  ;;  %2330 = vmatpush.msrb.mxu3 %v7814_v20  ;;  %v7844_v42 = vld [vmem:[#allocation5 + $0x2d0] sm:$0xff]  ;;  %11212 = vst [vmem:[#allocation67_spill] sm:$0xff] %v7997_v52 }
 0x3b1   :  { %v4207_v12 = vpop.eup %4206  ;;  %2291 = vmatpush.msrb.mxu1 %v7819_v31  ;;  %2331 = vmatpush.msrb.mxu3 %v7822_v6  ;;  %v7832_v31 = vld [vmem:[#allocation5 + $0x310] sm:$0xff]  ;;  %v7835_v6 = vld [vmem:[#allocation5 + $0x318] sm:$0xff] }
 0x3b2   :  { %v1942_v25 = vmul.f32 %v4207_v12, %v1940_v7  ;;  %vm1947_vm0 = vweird.f32 %v4207_v12  ;;  %11190 = vst [vmem:[#allocation41_spill] sm:$0xff] %v7832_v31 }
 0x3b3   :  { %2292 = vmatpush.msrb.mxu1 %v7825_v50  ;;  %2332 = vmatpush.msrb.mxu3 %v7828_v16  ;;  %11191 = vst [vmem:[#allocation46_spill] sm:$0xff] %v7835_v6  ;;  %v7838_v50 = vld [vmem:[#allocation5 + $0x2f0] sm:$0xff]  ;;  %v7841_v16 = vld [vmem:[#allocation5 + $0x2f8] sm:$0xff]  ;;  %vm1948_vm2 = vmor %vm1946_vm1, %vm1947_vm0 }
 0x3b4   :  { %v1943_v59 = vsub.f32 1.0, %v1942_v25  ;;  %11192 = vst [vmem:[#allocation43_spill] sm:$0xff] %v7838_v50  ;;  %v4209_v7 = vpop.eup %4208 }
 0x3b5   :  { %2293 = vmatpush.msrb.mxu1 %v7832_v31  ;;  %2333 = vmatpush.msrb.mxu3 %v7835_v6  ;;  %11193 = vst [vmem:[#allocation48_spill] sm:$0xff] %v7841_v16  ;;  %v7847_v31 = vld [vmem:[#allocation5 + $0x2d8] sm:$0xff] }
 0x3b6   :  { %v1944_v35 = vmul.f32 %v4207_v12, %v1943_v59  ;;  %v1953_v59 = vor.u32 1.1754944e-38, %v1952_v43  ;;  %v7867_v43 = vld [vmem:[#allocation5 + $0x270] sm:$0xff] }
 0x3b7   :  { %2294 = vmatpush.msrb.mxu1 %v7838_v50  ;;  %2334 = vmatpush.msrb.mxu3 %v7841_v16  ;;  %v7850_v50 = vld [vmem:[#allocation5 + $0x2b0] sm:$0xff]  ;;  %v7853_v16 = vld [vmem:[#allocation5 + $0x2b8] sm:$0xff] }
 0x3b8   :  { %v1945_v25 = vadd.f32 %v4207_v12, %v1944_v35 }
 0x3b9   :  { %2295 = vmatpush.msrb.mxu1 %v7844_v42  ;;  %2335 = vmatpush.msrb.mxu3 %v7847_v31 }
 0x3ba   :  { %v1949_v20 = vsel %vm1948_vm2, %v4207_v12, %v1945_v25  ;;  %v7863_v12 = vld [vmem:[#allocation5 + $0x298] sm:$0xff]  ;;  %v11213_v25 = vld [vmem:[#allocation86_spill] sm:$0xff] }
 0x3bb   :  { %v1954_v35 = vsel %vm1951_vm3, %v1953_v59, %v1949_v20  ;;  %2296 = vmatpush.msrb.mxu1 %v7850_v50  ;;  %2336 = vmatpush.msrb.mxu3 %v7853_v16  ;;  %v7859_v20 = vld [vmem:[#allocation5 + $0x290] sm:$0xff] }
 0x3bc   :  { %v1960_v6 = vmul.f32 %v4209_v7, %v1954_v35  ;;  %v11214_v59 = vld [vmem:[#allocation83_spill] sm:$0xff]  ;;  %v8002_v7 = vld [vmem:[#allocation8 + $0x260] sm:$0xff] }
 0x3bd   :  { %2297 = vmatpush.msrb.mxu1 %v7859_v20  ;;  %2337 = vmatpush.msrb.mxu3 %v7863_v12  ;;  %11215 = vst [vmem:[#allocation64_spill] sm:$0xff] %v8002_v7  ;;  %v8005_v35 = vld [vmem:[#allocation8 + $0x268] sm:$0xff] }
 0x3be   :  { %1977 = vmatmul.f32.vlgmr.msra.gmra.mxu0 %v1960_v6  ;;  %2017 = vmatmul.f32.vlgmr.msra.gmra.mxu2 %v1960_v6  ;;  %11216 = vst [vmem:[#allocation69_spill] sm:$0xff] %v8005_v35 }
 0x3bf   :  { %2186 = vmatpush.msra.mxu0 %v7302_v58  ;;  %2222 = vmatmul.f32.vlgmr.msra.gmra.mxu1 %v1960_v6  ;;  %v7871_v58 = vld [vmem:[#allocation5 + $0x278] sm:$0xff] }
 0x3c0   :  { %2226 = vmatpush.msra.mxu2 %v7305_v48  ;;  %2262 = vmatmul.f32.vlgmr.msra.gmra.mxu3 %v1960_v6  ;;  %v7875_v48 = vld [vmem:[#allocation5 + $0x250] sm:$0xff] }
 0x3c1   :  { %2187 = vmatpush.msra.mxu0 %v7308_v21  ;;  %2298 = vmatpush.msrb.mxu1 %v7867_v43  ;;  %v7879_v21 = vld [vmem:[#allocation5 + $0x258] sm:$0xff] }
 0x3c2   :  { %2227 = vmatpush.msra.mxu2 %v7312_v18  ;;  %2338 = vmatpush.msrb.mxu3 %v7871_v58  ;;  %v7884_v18 = vld [vmem:[#allocation5 + $0x230] sm:$0xff] }
 0x3c3   :  { %2188 = vmatpush.msra.mxu0 %v7316_v56  ;;  %2299 = vmatpush.msrb.mxu1 %v7875_v48  ;;  %v7887_v56 = vld [vmem:[#allocation5 + $0x238] sm:$0xff] }
 0x3c4   :  { %2228 = vmatpush.msra.mxu2 %v7320_v24  ;;  %2339 = vmatpush.msrb.mxu3 %v7879_v21  ;;  %v7892_v24 = vld [vmem:[#allocation5 + $0x210] sm:$0xff] }
 0x3c5   :  { %2189 = vmatpush.msra.mxu0 %v7324_v32  ;;  %2300 = vmatpush.msrb.mxu1 %v7884_v18  ;;  %v7895_v32 = vld [vmem:[#allocation5 + $0x218] sm:$0xff] }
 0x3c6   :  { %2229 = vmatpush.msra.mxu2 %v7328_v51  ;;  %2057 = vmatmul.f32.vlgmr.msrb.gmra.mxu0 %v1960_v6  ;;  %v7900_v51 = vld [vmem:[#allocation8 + $0x3e0] sm:$0xff] }
 0x3c7   :  { %2097 = vmatmul.f32.vlgmr.msrb.gmra.mxu2 %v1960_v6  ;;  %2190 = vmatpush.msra.mxu0 %v7331_v57  ;;  %v7903_v57 = vld [vmem:[#allocation8 + $0x3e8] sm:$0xff] }
 0x3c8   :  { %2230 = vmatpush.msra.mxu2 %v7334_v53  ;;  %2340 = vmatpush.msrb.mxu3 %v7887_v56  ;;  %v7908_v53 = vld [vmem:[#allocation8 + $0x3c0] sm:$0xff] }
 0x3c9   :  { %2191 = vmatpush.msra.mxu0 %v7338_v23  ;;  %2301 = vmatpush.msrb.mxu1 %v7892_v24  ;;  %v7911_v23 = vld [vmem:[#allocation8 + $0x3c8] sm:$0xff] }
 0x3ca   :  { %2231 = vmatpush.msra.mxu2 %v7342_v27  ;;  %2341 = vmatpush.msrb.mxu3 %v7895_v32  ;;  %v7916_v27 = vld [vmem:[#allocation8 + $0x3a0] sm:$0xff] }
 0x3cb   :  { %2302 = vmatmul.f32.vlgmr.msrb.gmra.mxu1 %v1960_v6  ;;  %2342 = vmatmul.f32.vlgmr.msrb.gmra.mxu3 %v1960_v6  ;;  %v7994_v6 = vld [vmem:[#allocation8 + $0x280] sm:$0xff] }
 0x3cc   :  { %2192 = vmatpush.msra.mxu0 %v7346_v22  ;;  %2232 = vmatpush.msra.mxu2 %v7349_v1  ;;  %v7919_v22 = vld [vmem:[#allocation8 + $0x3a8] sm:$0xff]  ;;  %v7924_v1 = vld [vmem:[#allocation8 + $0x380] sm:$0xff]  ;;  %11211 = vst [vmem:[#allocation62_spill] sm:$0xff] %v7994_v6 }
 0x3cd   :  { %2429 = vmatpush.msra.mxu1 %v7900_v51  ;;  %2469 = vmatpush.msra.mxu3 %v7903_v57 }
 0x3ce   :  { %2193 = vmatpush.msra.mxu0 %v7354_v34  ;;  %2233 = vmatpush.msra.mxu2 %v7357_v62  ;;  %v7927_v34 = vld [vmem:[#allocation8 + $0x388] sm:$0xff]  ;;  %v7932_v62 = vld [vmem:[#allocation8 + $0x360] sm:$0xff] }
 0x3cf   :  { %2430 = vmatpush.msra.mxu1 %v7908_v53  ;;  %2470 = vmatpush.msra.mxu3 %v7911_v23 }
 0x3d0   :  { %2194 = vmatpush.msra.mxu0 %v7362_v55  ;;  %2234 = vmatpush.msra.mxu2 %v7365_v3  ;;  %v7935_v55 = vld [vmem:[#allocation8 + $0x368] sm:$0xff]  ;;  %v7940_v3 = vld [vmem:[#allocation8 + $0x340] sm:$0xff] }
 0x3d1   :  { %2431 = vmatpush.msra.mxu1 %v7916_v27  ;;  %2471 = vmatpush.msra.mxu3 %v7919_v22  ;;  %11194 = vst [vmem:[#allocation45_spill] sm:$0xff] %v7935_v55 }
 0x3d2   :  { %2195 = vmatpush.msra.mxu0 %v7370_v41  ;;  %2235 = vmatpush.msra.mxu2 %v7373_v30  ;;  %11195 = vst [vmem:[#allocation50_spill] sm:$0xff] %v7940_v3  ;;  %v7943_v41 = vld [vmem:[#allocation8 + $0x348] sm:$0xff]  ;;  %v7948_v30 = vld [vmem:[#allocation8 + $0x320] sm:$0xff] }
 0x3d3   :  { %2432 = vmatpush.msra.mxu1 %v7924_v1  ;;  %2472 = vmatpush.msra.mxu3 %v7927_v34  ;;  %11196 = vst [vmem:[#allocation47_spill] sm:$0xff] %v7943_v41 }
 0x3d4   :  { %2196 = vmatpush.msra.mxu0 %v7378_v63  ;;  %2236 = vmatpush.msra.mxu2 %v7381_v14  ;;  %11197 = vst [vmem:[#allocation52_spill] sm:$0xff] %v7948_v30  ;;  %v7951_v63 = vld [vmem:[#allocation8 + $0x328] sm:$0xff]  ;;  %v7956_v14 = vld [vmem:[#allocation8 + $0x300] sm:$0xff] }
 0x3d5   :  { %2433 = vmatpush.msra.mxu1 %v7932_v62  ;;  %2473 = vmatpush.msra.mxu3 %v7935_v55  ;;  %11198 = vst [vmem:[#allocation49_spill] sm:$0xff] %v7951_v63 }
 0x3d6   :  { %2197 = vmatpush.msra.mxu0 %v7386_v0  ;;  %2237 = vmatpush.msra.mxu2 %v7389_v26  ;;  %11199 = vst [vmem:[#allocation54_spill] sm:$0xff] %v7956_v14  ;;  %v7959_v0 = vld [vmem:[#allocation8 + $0x308] sm:$0xff]  ;;  %v7964_v26 = vld [vmem:[#allocation2 + $0x20] sm:$0xff] }
 0x3d7   :  { %2434 = vmatpush.msra.mxu1 %v7940_v3  ;;  %2474 = vmatpush.msra.mxu3 %v7943_v41  ;;  %11200 = vst [vmem:[#allocation51_spill] sm:$0xff] %v7959_v0 }
 0x3d8   :  { %2198 = vmatpush.msra.mxu0 %v7394_v17  ;;  %2238 = vmatpush.msra.mxu2 %v7397_v9  ;;  %v7966_v17 = vld [vmem:[#allocation8 + $0x2e0] sm:$0xff]  ;;  %v7969_v9 = vld [vmem:[#allocation8 + $0x2e8] sm:$0xff] }
 0x3d9   :  { %2435 = vmatpush.msra.mxu1 %v7948_v30  ;;  %2475 = vmatpush.msra.mxu3 %v7951_v63  ;;  %11201 = vst [vmem:[#allocation56_spill] sm:$0xff] %v7966_v17 }
 0x3da   :  { %2199 = vmatpush.msra.mxu0 %v7402_v29  ;;  %2239 = vmatpush.msra.mxu2 %v7405_v2  ;;  %11202 = vst [vmem:[#allocation53_spill] sm:$0xff] %v7969_v9  ;;  %v7978_v29 = vld [vmem:[#allocation8 + $0x2c0] sm:$0xff]  ;;  %v7981_v2 = vld [vmem:[#allocation8 + $0x2c8] sm:$0xff] }
 0x3db   :  { %2436 = vmatpush.msra.mxu1 %v7956_v14  ;;  %2476 = vmatpush.msra.mxu3 %v7959_v0  ;;  %11203 = vst [vmem:[#allocation55_spill] sm:$0xff] %v7978_v29 }
 0x3dc   :  { %2200 = vmatpush.msra.mxu0 %v7410_v10  ;;  %2240 = vmatpush.msra.mxu2 %v7413_v8  ;;  %11204 = vst [vmem:[#allocation63_spill] sm:$0xff] %v7981_v2  ;;  %v11205_v10 = vld [vmem:[#allocation78_spill] sm:$0xff]  ;;  %v11206_v8 = vld [vmem:[#allocation80_spill] sm:$0xff] }
 0x3dd   :  { %2437 = vmatpush.msra.mxu1 %v7966_v17  ;;  %2477 = vmatpush.msra.mxu3 %v7969_v9 }
 0x3de   :  { %2201 = vmatpush.msra.mxu0 %v7420_v40  ;;  %2241 = vmatpush.msra.mxu2 %v7423_v46  ;;  %v7986_v40 = vld [vmem:[#allocation8 + $0x2a0] sm:$0xff]  ;;  %v7989_v46 = vld [vmem:[#allocation8 + $0x2a8] sm:$0xff] }
 0x3df   :  { %2202 = vmatmul.f32.vlgmr.msra.gmra.mxu0 %v7964_v26  ;;  %2242 = vmatmul.f32.vlgmr.msra.gmra.mxu2 %v7964_v26  ;;  %11207 = vst [vmem:[#allocation59_spill] sm:$0xff] %v7986_v40 }
 0x3e0   :  { %2266 = vmatpush.msrb.mxu0 %v7428_v37  ;;  %2306 = vmatpush.msrb.mxu2 %v7431_v61  ;;  %11208 = vst [vmem:[#allocation65_spill] sm:$0xff] %v7989_v46  ;;  %v11209_v37 = vld [vmem:[#allocation84_spill] sm:$0xff]  ;;  %v11210_v61 = vld [vmem:[#allocation82_spill] sm:$0xff] }
 0x3e1   :  { %2438 = vmatpush.msra.mxu1 %v7978_v29  ;;  %2478 = vmatpush.msra.mxu3 %v7981_v2 }
 0x3e2   :  { %2267 = vmatpush.msrb.mxu0 %v11205_v10  ;;  %2307 = vmatpush.msrb.mxu2 %v11206_v8  ;;  %v11217_v10 = vld [vmem:[#allocation88_spill] sm:$0xff]  ;;  %v11218_v8 = vld [vmem:[#allocation57_spill] sm:$0xff] }
 0x3e3   :  { %2439 = vmatpush.msra.mxu1 %v7986_v40  ;;  %2479 = vmatpush.msra.mxu3 %v7989_v46 }
 0x3e4   :  { %2268 = vmatpush.msrb.mxu0 %v11209_v37  ;;  %2308 = vmatpush.msrb.mxu2 %v11210_v61  ;;  %v8010_v37 = vld [vmem:[#allocation8 + $0x240] sm:$0xff]  ;;  %v8013_v61 = vld [vmem:[#allocation8 + $0x248] sm:$0xff] }
 0x3e5   :  { %2440 = vmatpush.msra.mxu1 %v7994_v6  ;;  %2480 = vmatpush.msra.mxu3 %v7997_v52  ;;  %11219 = vst [vmem:[#allocation66_spill] sm:$0xff] %v8010_v37  ;;  %v8335_v52 = vld [vmem:[#allocation8 + $0x10] sm:$0xff] }
 0x3e6   :  { %2269 = vmatpush.msrb.mxu0 %v11213_v25  ;;  %2309 = vmatpush.msrb.mxu2 %v11214_v59  ;;  %11220 = vst [vmem:[#allocation71_spill] sm:$0xff] %v8013_v61  ;;  %v11221_v25 = vld [vmem:[#allocation58_spill] sm:$0xff]  ;;  %v11222_v59 = vld [vmem:[#allocation85_spill] sm:$0xff] }
 0x3e7   :  { %2441 = vmatpush.msra.mxu1 %v8002_v7  ;;  %2481 = vmatpush.msra.mxu3 %v8005_v35  ;;  %v8018_v7 = vld [vmem:[#allocation8 + $0x220] sm:$0xff]  ;;  %v8021_v35 = vld [vmem:[#allocation8 + $0x228] sm:$0xff] }
 0x3e8   :  { %2270 = vmatpush.msrb.mxu0 %v11217_v10  ;;  %2310 = vmatpush.msrb.mxu2 %v11218_v8  ;;  %11223 = vst [vmem:[#allocation68_spill] sm:$0xff] %v8018_v7  ;;  %v11225_v10 = vld [vmem:[#allocation60_spill] sm:$0xff]  ;;  %v11226_v8 = vld [vmem:[#allocation89_spill] sm:$0xff] }
 0x3e9   :  { %2442 = vmatpush.msra.mxu1 %v8010_v37  ;;  %2482 = vmatpush.msra.mxu3 %v8013_v61  ;;  %11224 = vst [vmem:[#allocation73_spill] sm:$0xff] %v8021_v35  ;;  %v8026_v37 = vld [vmem:[#allocation8 + $0x200] sm:$0xff]  ;;  %v8029_v61 = vld [vmem:[#allocation8 + $0x208] sm:$0xff] }
 0x3ea   :  { %2271 = vmatpush.msrb.mxu0 %v11221_v25  ;;  %2311 = vmatpush.msrb.mxu2 %v11222_v59  ;;  %11227 = vst [vmem:[#allocation70_spill] sm:$0xff] %v8026_v37  ;;  %v11229_v25 = vld [vmem:[#allocation61_spill] sm:$0xff]  ;;  %v11230_v59 = vld [vmem:[#allocation87_spill] sm:$0xff] }
 0x3eb   :  { %2443 = vmatpush.msra.mxu1 %v8018_v7  ;;  %2483 = vmatpush.msra.mxu3 %v8021_v35  ;;  %11228 = vst [vmem:[#allocation75_spill] sm:$0xff] %v8029_v61  ;;  %v8034_v7 = vld [vmem:[#allocation8 + $0x3f0] sm:$0xff]  ;;  %v8037_v35 = vld [vmem:[#allocation8 + $0x3f8] sm:$0xff] }
 0x3ec   :  { %2272 = vmatpush.msrb.mxu0 %v11225_v10  ;;  %2312 = vmatpush.msrb.mxu2 %v11226_v8  ;;  %11231 = vst [vmem:[#allocation72_spill] sm:$0xff] %v8034_v7  ;;  %v11233_v10 = vld [vmem:[#allocation90_spill] sm:$0xff]  ;;  %v11234_v8 = vld [vmem:[#allocation92_spill] sm:$0xff] }
 0x3ed   :  { %2444 = vmatpush.msra.mxu1 %v8026_v37  ;;  %2484 = vmatpush.msra.mxu3 %v8029_v61  ;;  %11232 = vst [vmem:[#allocation77_spill] sm:$0xff] %v8037_v35  ;;  %v8042_v37 = vld [vmem:[#allocation8 + $0x3d0] sm:$0xff]  ;;  %v8045_v61 = vld [vmem:[#allocation8 + $0x3d8] sm:$0xff] }
 0x3ee   :  { %2273 = vmatpush.msrb.mxu0 %v11229_v25  ;;  %2313 = vmatpush.msrb.mxu2 %v11230_v59  ;;  %11235 = vst [vmem:[#allocation118_spill] sm:$0xff] %v8042_v37  ;;  %v11237_v25 = vld [vmem:[#allocation91_spill] sm:$0xff]  ;;  %v11238_v59 = vld [vmem:[#allocation93_spill] sm:$0xff] }
 0x3ef   :  { %2509 = vmatpush.msrb.mxu1 %v8034_v7  ;;  %2549 = vmatpush.msrb.mxu3 %v8037_v35  ;;  %11236 = vst [vmem:[#allocation119_spill] sm:$0xff] %v8045_v61  ;;  %v8050_v7 = vld [vmem:[#allocation8 + $0x3b0] sm:$0xff]  ;;  %v8053_v35 = vld [vmem:[#allocation8 + $0x3b8] sm:$0xff] }
 0x3f0   :  { %2274 = vmatpush.msrb.mxu0 %v11233_v10  ;;  %2314 = vmatpush.msrb.mxu2 %v11234_v8  ;;  %11239 = vst [vmem:[#allocation120_spill] sm:$0xff] %v8050_v7  ;;  %v11241_v10 = vld [vmem:[#allocation95_spill] sm:$0xff]  ;;  %v11242_v8 = vld [vmem:[#allocation94_spill] sm:$0xff] }
 0x3f1   :  { %2510 = vmatpush.msrb.mxu1 %v8042_v37  ;;  %2550 = vmatpush.msrb.mxu3 %v8045_v61  ;;  %11240 = vst [vmem:[#allocation121_spill] sm:$0xff] %v8053_v35  ;;  %v8058_v37 = vld [vmem:[#allocation8 + $0x390] sm:$0xff]  ;;  %v8061_v61 = vld [vmem:[#allocation8 + $0x398] sm:$0xff] }
 0x3f2   :  { %2275 = vmatpush.msrb.mxu0 %v11237_v25  ;;  %2315 = vmatpush.msrb.mxu2 %v11238_v59  ;;  %11243 = vst [vmem:[#allocation122_spill] sm:$0xff] %v8058_v37  ;;  %v11245_v25 = vld [vmem:[#allocation96_spill] sm:$0xff]  ;;  %v11246_v59 = vld [vmem:[#allocation97_spill] sm:$0xff] }
 0x3f3   :  { %2511 = vmatpush.msrb.mxu1 %v8050_v7  ;;  %2551 = vmatpush.msrb.mxu3 %v8053_v35  ;;  %11244 = vst [vmem:[#allocation123_spill] sm:$0xff] %v8061_v61  ;;  %v8066_v7 = vld [vmem:[#allocation8 + $0x370] sm:$0xff]  ;;  %v8069_v35 = vld [vmem:[#allocation8 + $0x378] sm:$0xff] }
 0x3f4   :  { %2276 = vmatpush.msrb.mxu0 %v11241_v10  ;;  %2316 = vmatpush.msrb.mxu2 %v11242_v8  ;;  %11247 = vst [vmem:[#allocation124_spill] sm:$0xff] %v8066_v7  ;;  %v11249_v10 = vld [vmem:[#allocation98_spill] sm:$0xff]  ;;  %v11250_v8 = vld [vmem:[#allocation99_spill] sm:$0xff] }
 0x3f5   :  { %2512 = vmatpush.msrb.mxu1 %v8058_v37  ;;  %2552 = vmatpush.msrb.mxu3 %v8061_v61  ;;  %11248 = vst [vmem:[#allocation125_spill] sm:$0xff] %v8069_v35  ;;  %v8074_v37 = vld [vmem:[#allocation8 + $0x350] sm:$0xff]  ;;  %v8077_v61 = vld [vmem:[#allocation8 + $0x358] sm:$0xff] }
 0x3f6   :  { %2277 = vmatpush.msrb.mxu0 %v11245_v25  ;;  %2317 = vmatpush.msrb.mxu2 %v11246_v59  ;;  %11251 = vst [vmem:[#allocation126_spill] sm:$0xff] %v8074_v37  ;;  %v11253_v25 = vld [vmem:[#allocation100_spill] sm:$0xff]  ;;  %v11254_v59 = vld [vmem:[#allocation101_spill] sm:$0xff] }
 0x3f7   :  { %2513 = vmatpush.msrb.mxu1 %v8066_v7  ;;  %2553 = vmatpush.msrb.mxu3 %v8069_v35  ;;  %11252 = vst [vmem:[#allocation127_spill] sm:$0xff] %v8077_v61  ;;  %v8082_v7 = vld [vmem:[#allocation8 + $0x330] sm:$0xff]  ;;  %v8085_v35 = vld [vmem:[#allocation8 + $0x338] sm:$0xff] }
 0x3f8   :  { %2278 = vmatpush.msrb.mxu0 %v11249_v10  ;;  %2318 = vmatpush.msrb.mxu2 %v11250_v8  ;;  %11255 = vst [vmem:[#allocation128_spill] sm:$0xff] %v8082_v7  ;;  %v11257_v10 = vld [vmem:[#allocation102_spill] sm:$0xff]  ;;  %v11258_v8 = vld [vmem:[#allocation103_spill] sm:$0xff] }
 0x3f9   :  { %2514 = vmatpush.msrb.mxu1 %v8074_v37  ;;  %2554 = vmatpush.msrb.mxu3 %v8077_v61  ;;  %11256 = vst [vmem:[#allocation129_spill] sm:$0xff] %v8085_v35  ;;  %v8090_v37 = vld [vmem:[#allocation8 + $0x310] sm:$0xff]  ;;  %v8093_v61 = vld [vmem:[#allocation8 + $0x318] sm:$0xff] }
 0x3fa   :  { %2279 = vmatpush.msrb.mxu0 %v11253_v25  ;;  %2319 = vmatpush.msrb.mxu2 %v11254_v59  ;;  %11259 = vst [vmem:[#allocation130_spill] sm:$0xff] %v8090_v37  ;;  %v11261_v25 = vld [vmem:[#allocation104_spill] sm:$0xff]  ;;  %v11262_v59 = vld [vmem:[#allocation107_spill] sm:$0xff] }
 0x3fb   :  { %2515 = vmatpush.msrb.mxu1 %v8082_v7  ;;  %2555 = vmatpush.msrb.mxu3 %v8085_v35  ;;  %11260 = vst [vmem:[#allocation131_spill] sm:$0xff] %v8093_v61  ;;  %v8100_v35 = vld [vmem:[#allocation8 + $0x2f0] sm:$0xff] }
 0x3fc   :  { %2280 = vmatpush.msrb.mxu0 %v11257_v10  ;;  %2320 = vmatpush.msrb.mxu2 %v11258_v8  ;;  %11263 = vst [vmem:[#allocation132_spill] sm:$0xff] %v8100_v35  ;;  %v8103_v10 = vld [vmem:[#allocation8 + $0x2f8] sm:$0xff]  ;;  %v8106_v8 = vld [vmem:[#allocation8 + $0x1e0] sm:$0xff]  ;;  %v8329_v7 = vld [vmem:[#allocation8 + $0x30] sm:$0xff] }
 0x3fd   :  { %2516 = vmatpush.msrb.mxu1 %v8090_v37  ;;  %2556 = vmatpush.msrb.mxu3 %v8093_v61  ;;  %11264 = vst [vmem:[#allocation133_spill] sm:$0xff] %v8103_v10  ;;  %v8109_v61 = vld [vmem:[#allocation8 + $0x1e8] sm:$0xff] }
 0x3fe   :  { %2281 = vmatpush.msrb.mxu0 %v11261_v25  ;;  %2321 = vmatpush.msrb.mxu2 %v11262_v59  ;;  %11265 = vst [vmem:[#allocation134_spill] sm:$0xff] %v8106_v8  ;;  %v8112_v25 = vld [vmem:[#allocation8 + $0x2d0] sm:$0xff]  ;;  %v8118_v59 = vld [vmem:[#allocation8 + $0x1c0] sm:$0xff] }
 0x3ff   :  { %2282 = vmatmul.f32.vlgmr.msrb.gmra.mxu0 %v7964_v26  ;;  %2322 = vmatmul.f32.vlgmr.msrb.gmra.mxu2 %v7964_v26  ;;  %11266 = vst [vmem:[#allocation135_spill] sm:$0xff] %v8109_v61  ;;  %v8115_v26 = vld [vmem:[#allocation8 + $0x2d8] sm:$0xff] }
 0x400   :  { %2517 = vmatpush.msrb.mxu1 %v8100_v35  ;;  %2557 = vmatpush.msrb.mxu3 %v8103_v10  ;;  %11267 = vst [vmem:[#allocation136_spill] sm:$0xff] %v8112_v25  ;;  %v8121_v10 = vld [vmem:[#allocation8 + $0x1c8] sm:$0xff]  ;;  %v8322_v35 = vld [vmem:[#allocation8 + $0x50] sm:$0xff] }
 0x401   :  { %2409 = vmatpush.msra.mxu0 %v8106_v8  ;;  %2449 = vmatpush.msra.mxu2 %v8109_v61  ;;  %11268 = vst [vmem:[#allocation137_spill] sm:$0xff] %v8115_v26  ;;  %v8124_v8 = vld [vmem:[#allocation8 + $0x2b0] sm:$0xff]  ;;  %v8127_v61 = vld [vmem:[#allocation8 + $0x2b8] sm:$0xff] }
 0x402   :  { %2518 = vmatpush.msrb.mxu1 %v8112_v25  ;;  %2558 = vmatpush.msrb.mxu3 %v8115_v26  ;;  %11269 = vst [vmem:[#allocation138_spill] sm:$0xff] %v8118_v59  ;;  %v8130_v25 = vld [vmem:[#allocation8 + $0x1a0] sm:$0xff]  ;;  %v8133_v26 = vld [vmem:[#allocation8 + $0x1a8] sm:$0xff] }
 0x403   :  { %2410 = vmatpush.msra.mxu0 %v8118_v59  ;;  %11270 = vst [vmem:[#allocation139_spill] sm:$0xff] %v8121_v10  ;;  %2450 = vmatpush.msra.mxu2 %v8121_v10  ;;  %v8136_v59 = vld [vmem:[#allocation8 + $0x290] sm:$0xff]  ;;  %v8139_v10 = vld [vmem:[#allocation8 + $0x298] sm:$0xff] }
 0x404   :  { %11271 = vst [vmem:[#allocation140_spill] sm:$0xff] %v8124_v8  ;;  %2519 = vmatpush.msrb.mxu1 %v8124_v8  ;;  %2559 = vmatpush.msrb.mxu3 %v8127_v61  ;;  %v8142_v8 = vld [vmem:[#allocation8 + $0x180] sm:$0xff] }
 0x405   :  { %11272 = vst [vmem:[#allocation141_spill] sm:$0xff] %v8127_v61  ;;  %2411 = vmatpush.msra.mxu0 %v8130_v25  ;;  %2451 = vmatpush.msra.mxu2 %v8133_v26  ;;  %v8145_v61 = vld [vmem:[#allocation8 + $0x188] sm:$0xff] }
 0x406   :  { %11273 = vst [vmem:[#allocation142_spill] sm:$0xff] %v8130_v25  ;;  %2520 = vmatpush.msrb.mxu1 %v8136_v59  ;;  %2560 = vmatpush.msrb.mxu3 %v8139_v10  ;;  %v8148_v25 = vld [vmem:[#allocation8 + $0x270] sm:$0xff] }
 0x407   :  { %11274 = vst [vmem:[#allocation143_spill] sm:$0xff] %v8133_v26  ;;  %2412 = vmatpush.msra.mxu0 %v8142_v8  ;;  %2452 = vmatpush.msra.mxu2 %v8145_v61  ;;  %v8151_v26 = vld [vmem:[#allocation8 + $0x278] sm:$0xff] }
 0x408   :  { %11275 = vst [vmem:[#allocation144_spill] sm:$0xff] %v8136_v59  ;;  %2521 = vmatpush.msrb.mxu1 %v8148_v25  ;;  %2561 = vmatpush.msrb.mxu3 %v8151_v26  ;;  %v8154_v59 = vld [vmem:[#allocation8 + $0x160] sm:$0xff] }
 0x409   :  { %11276 = vst [vmem:[#allocation145_spill] sm:$0xff] %v8139_v10  ;;  %2413 = vmatpush.msra.mxu0 %v8154_v59  ;;  %v8157_v10 = vld [vmem:[#allocation8 + $0x168] sm:$0xff]  ;;  %v2038_v46 = vpop.f32.mrf.mxu3 }
 0x40a   :  { %11277 = vst [vmem:[#allocation146_spill] sm:$0xff] %v8142_v8  ;;  %2453 = vmatpush.msra.mxu2 %v8157_v10  ;;  %v8160_v8 = vld [vmem:[#allocation8 + $0x250] sm:$0xff] }
 0x40b   :  { %11278 = vst [vmem:[#allocation147_spill] sm:$0xff] %v8145_v61  ;;  %2522 = vmatpush.msrb.mxu1 %v8160_v8  ;;  %v8163_v61 = vld [vmem:[#allocation8 + $0x258] sm:$0xff] }
 0x40c   :  { %11279 = vst [vmem:[#allocation148_spill] sm:$0xff] %v8148_v25  ;;  %2562 = vmatpush.msrb.mxu3 %v8163_v61  ;;  %v8166_v25 = vld [vmem:[#allocation8 + $0x140] sm:$0xff] }
 0x40d   :  { %11280 = vst [vmem:[#allocation149_spill] sm:$0xff] %v8151_v26  ;;  %2414 = vmatpush.msra.mxu0 %v8166_v25  ;;  %v8169_v26 = vld [vmem:[#allocation8 + $0x148] sm:$0xff] }
 0x40e   :  { %11281 = vst [vmem:[#allocation150_spill] sm:$0xff] %v8154_v59  ;;  %2454 = vmatpush.msra.mxu2 %v8169_v26  ;;  %v8172_v59 = vld [vmem:[#allocation8 + $0x230] sm:$0xff] }
 0x40f   :  { %11282 = vst [vmem:[#allocation151_spill] sm:$0xff] %v8157_v10  ;;  %2523 = vmatpush.msrb.mxu1 %v8172_v59  ;;  %v8175_v10 = vld [vmem:[#allocation8 + $0x238] sm:$0xff] }
 0x410   :  { %11283 = vst [vmem:[#allocation152_spill] sm:$0xff] %v8160_v8  ;;  %2563 = vmatpush.msrb.mxu3 %v8175_v10  ;;  %v8178_v8 = vld [vmem:[#allocation8 + $0x120] sm:$0xff] }
 0x411   :  { %11284 = vst [vmem:[#allocation153_spill] sm:$0xff] %v8163_v61  ;;  %2415 = vmatpush.msra.mxu0 %v8178_v8  ;;  %v8181_v61 = vld [vmem:[#allocation8 + $0x128] sm:$0xff] }
 0x412   :  { %11285 = vst [vmem:[#allocation154_spill] sm:$0xff] %v8166_v25  ;;  %2455 = vmatpush.msra.mxu2 %v8181_v61  ;;  %v8184_v25 = vld [vmem:[#allocation8 + $0x210] sm:$0xff] }
 0x413   :  { %11286 = vst [vmem:[#allocation155_spill] sm:$0xff] %v8169_v26  ;;  %2524 = vmatpush.msrb.mxu1 %v8184_v25  ;;  %v8187_v26 = vld [vmem:[#allocation8 + $0x218] sm:$0xff] }
 0x414   :  { %11287 = vst [vmem:[#allocation156_spill] sm:$0xff] %v8172_v59  ;;  %2564 = vmatpush.msrb.mxu3 %v8187_v26  ;;  %v8190_v59 = vld [vmem:[#allocation8 + $0x100] sm:$0xff] }
 0x415   :  { %11288 = vst [vmem:[#allocation157_spill] sm:$0xff] %v8175_v10  ;;  %2416 = vmatpush.msra.mxu0 %v8190_v59  ;;  %v8193_v10 = vld [vmem:[#allocation8 + $0x108] sm:$0xff] }
 0x416   :  { %11289 = vst [vmem:[#allocation158_spill] sm:$0xff] %v8178_v8  ;;  %2456 = vmatpush.msra.mxu2 %v8193_v10  ;;  %v8196_v8 = vld [vmem:[#allocation8 + $0xe0] sm:$0xff] }
 0x417   :  { %11290 = vst [vmem:[#allocation159_spill] sm:$0xff] %v8181_v61  ;;  %2417 = vmatpush.msra.mxu0 %v8196_v8  ;;  %v8199_v61 = vld [vmem:[#allocation8 + $0xe8] sm:$0xff] }
 0x418   :  { %11291 = vst [vmem:[#allocation160_spill] sm:$0xff] %v8184_v25  ;;  %2457 = vmatpush.msra.mxu2 %v8199_v61  ;;  %v8202_v25 = vld [vmem:[#allocation8 + $0xc0] sm:$0xff] }
 0x419   :  { %11292 = vst [vmem:[#allocation161_spill] sm:$0xff] %v8187_v26  ;;  %2418 = vmatpush.msra.mxu0 %v8202_v25  ;;  %v8205_v26 = vld [vmem:[#allocation8 + $0xc8] sm:$0xff] }
 0x41a   :  { %11293 = vst [vmem:[#allocation162_spill] sm:$0xff] %v8190_v59  ;;  %2458 = vmatpush.msra.mxu2 %v8205_v26  ;;  %v8208_v59 = vld [vmem:[#allocation8 + $0xa0] sm:$0xff] }
 0x41b   :  { %11294 = vst [vmem:[#allocation163_spill] sm:$0xff] %v8193_v10  ;;  %2419 = vmatpush.msra.mxu0 %v8208_v59  ;;  %v8211_v10 = vld [vmem:[#allocation8 + $0xa8] sm:$0xff] }
 0x41c   :  { %11295 = vst [vmem:[#allocation164_spill] sm:$0xff] %v8196_v8  ;;  %2459 = vmatpush.msra.mxu2 %v8211_v10  ;;  %v8214_v8 = vld [vmem:[#allocation8 + $0x80] sm:$0xff] }
 0x41d   :  { %11296 = vst [vmem:[#allocation165_spill] sm:$0xff] %v8199_v61  ;;  %2420 = vmatpush.msra.mxu0 %v8214_v8  ;;  %v8217_v61 = vld [vmem:[#allocation8 + $0x88] sm:$0xff] }
 0x41e   :  { %11297 = vst [vmem:[#allocation166_spill] sm:$0xff] %v8202_v25  ;;  %2460 = vmatpush.msra.mxu2 %v8217_v61  ;;  %v8220_v25 = vld [vmem:[#allocation8 + $0x60] sm:$0xff] }
 0x41f   :  { %11298 = vst [vmem:[#allocation167_spill] sm:$0xff] %v8205_v26  ;;  %2421 = vmatpush.msra.mxu0 %v8220_v25  ;;  %v8223_v26 = vld [vmem:[#allocation8 + $0x68] sm:$0xff] }
 0x420   :  { %11299 = vst [vmem:[#allocation168_spill] sm:$0xff] %v8208_v59  ;;  %2461 = vmatpush.msra.mxu2 %v8223_v26  ;;  %v8226_v59 = vld [vmem:[#allocation8 + $0x40] sm:$0xff] }
 0x421   :  { %11300 = vst [vmem:[#allocation169_spill] sm:$0xff] %v8211_v10  ;;  %2422 = vmatpush.msra.mxu0 %v8226_v59  ;;  %v8229_v10 = vld [vmem:[#allocation8 + $0x48] sm:$0xff] }
 0x422   :  { %11301 = vst [vmem:[#allocation170_spill] sm:$0xff] %v8214_v8  ;;  %2462 = vmatpush.msra.mxu2 %v8229_v10  ;;  %v8232_v8 = vld [vmem:[#allocation8 + $0x20] sm:$0xff] }
 0x423   :  { %11302 = vst [vmem:[#allocation171_spill] sm:$0xff] %v8217_v61  ;;  %2423 = vmatpush.msra.mxu0 %v8232_v8  ;;  %v8235_v61 = vld [vmem:[#allocation8 + $0x28] sm:$0xff] }
 0x424   :  { %11303 = vst [vmem:[#allocation172_spill] sm:$0xff] %v8220_v25  ;;  %2463 = vmatpush.msra.mxu2 %v8235_v61  ;;  %v8238_v25 = vld [vmem:[#allocation8] sm:$0xff] }
 0x425   :  { %11304 = vst [vmem:[#allocation173_spill] sm:$0xff] %v8223_v26  ;;  %2424 = vmatpush.msra.mxu0 %v8238_v25  ;;  %v8241_v26 = vld [vmem:[#allocation8 + $0x8] sm:$0xff] }
 0x426   :  { %11305 = vst [vmem:[#allocation174_spill] sm:$0xff] %v8226_v59  ;;  %2464 = vmatpush.msra.mxu2 %v8241_v26  ;;  %v8244_v59 = vld [vmem:[#allocation8 + $0x1f0] sm:$0xff] }
 0x427   :  { %11306 = vst [vmem:[#allocation175_spill] sm:$0xff] %v8229_v10  ;;  %2489 = vmatpush.msrb.mxu0 %v8244_v59  ;;  %v8247_v10 = vld [vmem:[#allocation8 + $0x1f8] sm:$0xff] }
 0x428   :  { %11307 = vst [vmem:[#allocation176_spill] sm:$0xff] %v8232_v8  ;;  %2529 = vmatpush.msrb.mxu2 %v8247_v10  ;;  %v8250_v8 = vld [vmem:[#allocation8 + $0x1d0] sm:$0xff] }
 0x429   :  { %11308 = vst [vmem:[#allocation177_spill] sm:$0xff] %v8235_v61  ;;  %2490 = vmatpush.msrb.mxu0 %v8250_v8  ;;  %v8253_v61 = vld [vmem:[#allocation8 + $0x1d8] sm:$0xff] }
 0x42a   :  { %11309 = vst [vmem:[#allocation178_spill] sm:$0xff] %v8238_v25  ;;  %2530 = vmatpush.msrb.mxu2 %v8253_v61  ;;  %v8256_v25 = vld [vmem:[#allocation8 + $0x1b0] sm:$0xff] }
 0x42b   :  { %11310 = vst [vmem:[#allocation179_spill] sm:$0xff] %v8241_v26  ;;  %2491 = vmatpush.msrb.mxu0 %v8256_v25  ;;  %v8259_v26 = vld [vmem:[#allocation8 + $0x1b8] sm:$0xff] }
 0x42c   :  { %11311 = vst [vmem:[#allocation180_spill] sm:$0xff] %v8244_v59  ;;  %2531 = vmatpush.msrb.mxu2 %v8259_v26  ;;  %v8262_v59 = vld [vmem:[#allocation8 + $0x190] sm:$0xff] }
 0x42d   :  { %11312 = vst [vmem:[#allocation181_spill] sm:$0xff] %v8247_v10  ;;  %2492 = vmatpush.msrb.mxu0 %v8262_v59  ;;  %v8265_v10 = vld [vmem:[#allocation8 + $0x198] sm:$0xff] }
 0x42e   :  { %11313 = vst [vmem:[#allocation182_spill] sm:$0xff] %v8250_v8  ;;  %2532 = vmatpush.msrb.mxu2 %v8265_v10  ;;  %v8268_v8 = vld [vmem:[#allocation8 + $0x170] sm:$0xff] }
 0x42f   :  { %11314 = vst [vmem:[#allocation183_spill] sm:$0xff] %v8253_v61  ;;  %2493 = vmatpush.msrb.mxu0 %v8268_v8  ;;  %v8271_v61 = vld [vmem:[#allocation8 + $0x178] sm:$0xff] }
 0x430   :  { %11315 = vst [vmem:[#allocation105_spill] sm:$0xff] %v8256_v25  ;;  %2533 = vmatpush.msrb.mxu2 %v8271_v61  ;;  %v8274_v25 = vld [vmem:[#allocation8 + $0x150] sm:$0xff] }
 0x431   :  { %11316 = vst [vmem:[#allocation78_spill] sm:$0xff] %v8259_v26  ;;  %2494 = vmatpush.msrb.mxu0 %v8274_v25  ;;  %v8277_v26 = vld [vmem:[#allocation8 + $0x158] sm:$0xff] }
 0x432   :  { %11317 = vst [vmem:[#allocation80_spill] sm:$0xff] %v8262_v59  ;;  %2534 = vmatpush.msrb.mxu2 %v8277_v26  ;;  %v8280_v59 = vld [vmem:[#allocation8 + $0x130] sm:$0xff] }
 0x433   :  { %11318 = vst [vmem:[#allocation84_spill] sm:$0xff] %v8265_v10  ;;  %2495 = vmatpush.msrb.mxu0 %v8280_v59  ;;  %v8283_v10 = vld [vmem:[#allocation8 + $0x138] sm:$0xff] }
 0x434   :  { %11319 = vst [vmem:[#allocation82_spill] sm:$0xff] %v8268_v8  ;;  %2535 = vmatpush.msrb.mxu2 %v8283_v10  ;;  %v8286_v8 = vld [vmem:[#allocation8 + $0x110] sm:$0xff] }
 0x435   :  { %11320 = vst [vmem:[#allocation86_spill] sm:$0xff] %v8271_v61  ;;  %2496 = vmatpush.msrb.mxu0 %v8286_v8  ;;  %v8289_v61 = vld [vmem:[#allocation8 + $0x118] sm:$0xff] }
 0x436   :  { %11321 = vst [vmem:[#allocation83_spill] sm:$0xff] %v8274_v25  ;;  %2536 = vmatpush.msrb.mxu2 %v8289_v61  ;;  %v8292_v25 = vld [vmem:[#allocation8 + $0xf0] sm:$0xff] }
 0x437   :  { %11322 = vst [vmem:[#allocation88_spill] sm:$0xff] %v8277_v26  ;;  %2497 = vmatpush.msrb.mxu0 %v8292_v25  ;;  %v8295_v26 = vld [vmem:[#allocation8 + $0xf8] sm:$0xff] }
 0x438   :  { %11323 = vst [vmem:[#allocation57_spill] sm:$0xff] %v8280_v59  ;;  %2537 = vmatpush.msrb.mxu2 %v8295_v26  ;;  %v8298_v59 = vld [vmem:[#allocation8 + $0xd0] sm:$0xff] }
 0x439   :  { %11324 = vst [vmem:[#allocation58_spill] sm:$0xff] %v8283_v10  ;;  %2498 = vmatpush.msrb.mxu0 %v8298_v59  ;;  %v8301_v10 = vld [vmem:[#allocation8 + $0xd8] sm:$0xff] }
 0x43a   :  { %11325 = vst [vmem:[#allocation85_spill] sm:$0xff] %v8286_v8  ;;  %2538 = vmatpush.msrb.mxu2 %v8301_v10  ;;  %v8304_v8 = vld [vmem:[#allocation8 + $0xb0] sm:$0xff] }
 0x43b   :  { %11326 = vst [vmem:[#allocation60_spill] sm:$0xff] %v8289_v61  ;;  %2499 = vmatpush.msrb.mxu0 %v8304_v8  ;;  %v8307_v61 = vld [vmem:[#allocation8 + $0xb8] sm:$0xff] }
 0x43c   :  { %11327 = vst [vmem:[#allocation89_spill] sm:$0xff] %v8292_v25  ;;  %2539 = vmatpush.msrb.mxu2 %v8307_v61  ;;  %v8310_v25 = vld [vmem:[#allocation8 + $0x90] sm:$0xff] }
 0x43d   :  { %11328 = vst [vmem:[#allocation61_spill] sm:$0xff] %v8295_v26  ;;  %2500 = vmatpush.msrb.mxu0 %v8310_v25  ;;  %v8313_v26 = vld [vmem:[#allocation8 + $0x98] sm:$0xff] }
 0x43e   :  { %11329 = vst [vmem:[#allocation87_spill] sm:$0xff] %v8298_v59  ;;  %2540 = vmatpush.msrb.mxu2 %v8313_v26  ;;  %v8316_v59 = vld [vmem:[#allocation8 + $0x70] sm:$0xff] }
 0x43f   :  { %11330 = vst [vmem:[#allocation90_spill] sm:$0xff] %v8301_v10  ;;  %2501 = vmatpush.msrb.mxu0 %v8316_v59  ;;  %v8319_v10 = vld [vmem:[#allocation8 + $0x78] sm:$0xff] }
 0x440   :  { %11331 = vst [vmem:[#allocation92_spill] sm:$0xff] %v8304_v8  ;;  %2541 = vmatpush.msrb.mxu2 %v8319_v10  ;;  %v1978_v8 = vpop.f32.mrf.mxu0 }
 0x441   :  { %11332 = vst [vmem:[#allocation91_spill] sm:$0xff] %v8307_v61  ;;  %2502 = vmatpush.msrb.mxu0 %v8322_v35  ;;  %v8325_v61 = vld [vmem:[#allocation8 + $0x58] sm:$0xff] }
 0x442   :  { %11333 = vst [vmem:[#allocation93_spill] sm:$0xff] %v8310_v25  ;;  %2542 = vmatpush.msrb.mxu2 %v8325_v61  ;;  %v11339_v25 = vld [vmem:[#allocation74_spill] sm:$0xff] }
 0x443   :  { %11334 = vst [vmem:[#allocation95_spill] sm:$0xff] %v8313_v26  ;;  %v1979_v37 = vadd.f32 %v1978_v8, %v11339_v25  ;;  %v1998_v26 = vpop.f32.mrf.mxu1  ;;  %2503 = vmatpush.msrb.mxu0 %v8329_v7  ;;  %v2018_v8 = vpop.f32.mrf.mxu2  ;;  %v11344_v25 = vld [vmem:[#allocation79_spill] sm:$0xff] }
 0x444   :  { %11335 = vst [vmem:[#allocation94_spill] sm:$0xff] %v8316_v59  ;;  %v8332_v59 = vld [vmem:[#allocation8 + $0x38] sm:$0xff]  ;;  %v2019_v6 = vadd.f32 %v2018_v8, %v11344_v25 }
 0x445   :  { %11336 = vst [vmem:[#allocation96_spill] sm:$0xff] %v8319_v10  ;;  %2543 = vmatpush.msrb.mxu2 %v8332_v59  ;;  %v1999_v10 = vadd.f32 %v1998_v26, %v1979_v37  ;;  %2504 = vmatpush.msrb.mxu0 %v8335_v52  ;;  %v11345_v26 = vld [vmem:[#allocation76_spill] sm:$0xff]  ;;  %v11346_v8 = vld [vmem:[#allocation81_spill] sm:$0xff] }
 0x446   :  { %11337 = vst [vmem:[#allocation97_spill] sm:$0xff] %v8322_v35  ;;  %v8338_v35 = vld [vmem:[#allocation8 + $0x18] sm:$0xff] }
 0x447   :  { %11338 = vst [vmem:[#allocation98_spill] sm:$0xff] %v8325_v61  ;;  %2544 = vmatpush.msrb.mxu2 %v8338_v35  ;;  %v4058_v61 = vmul.f32 -1.442695, %v1999_v10 }
 0x448   :  { %11340 = vst [vmem:[#allocation99_spill] sm:$0xff] %v8329_v7  ;;  %v2039_v7 = vadd.f32 %v2038_v46, %v2019_v6 }
 0x449   :  { %11341 = vst [vmem:[#allocation100_spill] sm:$0xff] %v8332_v59  ;;  %4210 = vpow2.f32 %v4058_v61 }
 0x44a   :  { %11342 = vst [vmem:[#allocation101_spill] sm:$0xff] %v8335_v52  ;;  %v4059_v40 = vmul.f32 -1.442695, %v2039_v7  ;;  %v2118_v52 = vpop.f32.mrf.mxu3 }
 0x44b   :  { %11343 = vst [vmem:[#allocation102_spill] sm:$0xff] %v8338_v35  ;;  %v2098_v37 = vpop.f32.mrf.mxu2  ;;  %v2058_v35 = vpop.f32.mrf.mxu0 }
 0x44c   :  { %4212 = vpow2.f32 %v4059_v40  ;;  %v2099_v29 = vadd.f32 %v2098_v37, %v11345_v26  ;;  %v2059_v25 = vadd.f32 %v2058_v35, %v11346_v8  ;;  %v2078_v6 = vpop.f32.mrf.mxu1 }
 0x44e   :  { %v2119_v17 = vadd.f32 %v2118_v52, %v2099_v29  ;;  %v2079_v40 = vadd.f32 %v2078_v6, %v2059_v25 }
 0x44f   :  { %v4211_v2 = vpop.eup %4210 }
 0x450   :  { %v2124_v59 = vadd.f32 1.0, %v4211_v2  ;;  %v4060_v10 = vmul.f32 -1.442695, %v2119_v17 }
 0x452   :  { %4214 = vrcp.f32 %v2124_v59  ;;  %v4213_v9 = vpop.eup %4212  ;;  %v2136_v26 = vand.u32 2147483648, %v2124_v59  ;;  %vm2130_vm5 = vweird.f32 %v2124_v59  ;;  %v2134_v17 = vand.u32 2147483647, %v2124_v59 }
 0x453   :  { %v2143_v0 = vadd.f32 1.0, %v4213_v9 }
 0x454   :  { %v2137_v25 = vor.u32 1.1754944e-38, %v2136_v26  ;;  %vm2135_vm9 = vcmp.eq.f32.partialorder %v2134_v17, 8.507059e+37 }
 0x455   :  { %4216 = vrcp.f32 %v2143_v0  ;;  %v2155_v52 = vand.u32 2147483648, %v2143_v0  ;;  %vm2149_vm8 = vweird.f32 %v2143_v0 }
 0x456   :  { %4218 = vpow2.f32 %v4060_v10 }
 0x457   :  { %4220 = vtanh.f32 %v2079_v40 }
 0x458   :  { %v4215_v14 = vpop.eup %4214 }
 0x459   :  { %v2126_v61 = vmul.f32 %v4215_v14, %v2124_v59  ;;  %vm2131_vm4 = vweird.f32 %v4215_v14  ;;  %v2223_v59 = vpop.f32.mrf.mxu1 }
 0x45a   :  { %vm2132_vm6 = vmor %vm2130_vm5, %vm2131_vm4 }
 0x45b   :  { %v2127_v46 = vsub.f32 1.0, %v2126_v61  ;;  %v4217_v7 = vpop.eup %4216  ;;  %v2153_v61 = vand.u32 2147483647, %v2143_v0 }
 0x45c   :  { %v4219_v63 = vpop.eup %4218  ;;  %v2145_v30 = vmul.f32 %v4217_v7, %v2143_v0  ;;  %vm2150_vm7 = vweird.f32 %v4217_v7 }
 0x45d   :  { %v2128_v2 = vmul.f32 %v4215_v14, %v2127_v46  ;;  %v2163_v29 = vadd.f32 1.0, %v4219_v63  ;;  %v2203_v46 = vpop.f32.mrf.mxu0  ;;  %vm2151_vm10 = vmor %vm2149_vm8, %vm2150_vm7  ;;  %v2156_v63 = vor.u32 1.1754944e-38, %v2155_v52  ;;  %v4221_v8 = vpop.eup %4220  ;;  %vm2154_vm11 = vcmp.eq.f32.partialorder %v2153_v61, 8.507059e+37 }
 0x45e   :  { %v2146_v9 = vsub.f32 1.0, %v2145_v30 }
 0x45f   :  { %v2129_v37 = vadd.f32 %v4215_v14, %v2128_v2  ;;  %4222 = vrcp.f32 %v2163_v29  ;;  %v2204_v2 = vadd.f32 %v2203_v46, %v11152_v4  ;;  %v2263_v46 = vpop.f32.mrf.mxu3  ;;  %vm2169_vm13 = vweird.f32 %v2163_v29 }
 0x460   :  { %v2147_v35 = vmul.f32 %v4217_v7, %v2146_v9 }
 0x461   :  { %v2133_v10 = vsel %vm2132_vm6, %v4215_v14, %v2129_v37  ;;  %v2224_v9 = vadd.f32 %v2223_v59, %v2204_v2 }
 0x462   :  { %v2148_v6 = vadd.f32 %v4217_v7, %v2147_v35  ;;  %v2138_v30 = vsel %vm2135_vm9, %v2137_v25, %v2133_v10  ;;  %v2243_v55 = vpop.f32.mrf.mxu2  ;;  %v2175_v10 = vand.u32 2147483648, %v2163_v29  ;;  %v2173_v25 = vand.u32 2147483647, %v2163_v29 }
 0x463   :  { %v2180_v37 = vmul.f32 %v4221_v8, %v2138_v30  ;;  %v2244_v35 = vadd.f32 %v2243_v55, %v10739_v60  ;;  %v4061_v52 = vmul.f32 -1.442695, %v2224_v9  ;;  %v11348_v9 = vld [vmem:[#allocation109_spill] sm:$0xff] }
 0x464   :  { %v2152_v40 = vsel %vm2151_vm10, %v4217_v7, %v2148_v6  ;;  %vm2174_vm15 = vcmp.eq.f32.partialorder %v2173_v25, 8.507059e+37 }
 0x465   :  { %v4223_v41 = vpop.eup %4222  ;;  %v2157_v3 = vsel %vm2154_vm11, %v2156_v63, %v2152_v40  ;;  %v2264_v7 = vadd.f32 %v2263_v46, %v2244_v35  ;;  %v11347_v40 = vld [vmem:[#allocation108_spill] sm:$0xff]  ;;  %v11356_v35 = vld [vmem:[#allocation106_spill] sm:$0xff] }
 0x466   :  { %v2179_v14 = vmul.f32 %v2157_v3, %v7643_v19  ;;  %v2165_v26 = vmul.f32 %v4223_v41, %v2163_v29  ;;  %vm2170_vm12 = vweird.f32 %v4223_v41  ;;  %v2176_v3 = vor.u32 1.1754944e-38, %v2175_v10  ;;  %v11357_v46 = vld [vmem:[#allocation22_spill] sm:$0xff]  ;;  %v11359_v10 = vld [vmem:[#allocation21_spill] sm:$0xff] }
 0x467   :  { %v4062_v6 = vmul.f32 -1.442695, %v2264_v7  ;;  %vm2171_vm14 = vmor %vm2169_vm13, %vm2170_vm12 }
 0x468   :  { %v8346_v0 = vadd.f32 %v2180_v37, %v2179_v14  ;;  %v2166_v17 = vsub.f32 1.0, %v2165_v26  ;;  %v11349_v14 = vld [vmem:[#allocation110_spill] sm:$0xff]  ;;  %v11355_v37 = vld [vmem:[#allocation19_spill] sm:$0xff] }
 0x46a   :  { %4224 = vtanh.f32 %v8346_v0  ;;  %v2167_v61 = vmul.f32 %v4223_v41, %v2166_v17 }
 0x46b   :  { %4226 = vpow2.f32 %v4061_v52  ;;  %v11358_v52 = vld [vmem:[#allocation20_spill] sm:$0xff] }
 0x46c   :  { %v2168_v2 = vadd.f32 %v4223_v41, %v2167_v61  ;;  %4228 = vpow2.f32 %v4062_v6  ;;  %v11360_v6 = vld [vmem:[#allocation23_spill] sm:$0xff] }
 0x46e   :  { %v2172_v19 = vsel %vm2171_vm14, %v4223_v41, %v2168_v2 }
 0x46f   :  { %v2177_v55 = vsel %vm2174_vm15, %v2176_v3, %v2172_v19  ;;  %v11361_v19 = vld [vmem:[#allocation115_spill] sm:$0xff] }
 0x470   :  { %v4225_v8 = vpop.eup %4224 }
 0x471   :  { %v2183_v63 = vmul.f32 %v4225_v8, %v2177_v55  ;;  %v4227_v30 = vpop.eup %4226  ;;  %v11362_v8 = vld [vmem:[#allocation116_spill] sm:$0xff] }
 0x472   :  { %v4229_v59 = vpop.eup %4228  ;;  %v8354_v29 = vadd.f32 1.0, %v4227_v30  ;;  %v11364_v30 = vld [vmem:[#allocation24_spill] sm:$0xff] }
 0x473   :  { %2445 = vmatmul.f32.vlgmr.msra.gmra.mxu1 %v2183_v63  ;;  %2485 = vmatmul.f32.vlgmr.msra.gmra.mxu3 %v2183_v63  ;;  %v8356_v41 = vadd.f32 1.0, %v4229_v59  ;;  %v2343_v59 = vpop.f32.mrf.mxu3 }
 0x474   :  { %2654 = vmatpush.msra.mxu1 %v7646_v47  ;;  %2694 = vmatpush.msra.mxu3 %v7649_v39  ;;  %4230 = vrcp.f32 %v8354_v29  ;;  %v11350_v47 = vld [vmem:[#allocation111_spill] sm:$0xff]  ;;  %v11351_v39 = vld [vmem:[#allocation112_spill] sm:$0xff]  ;;  %vm2355_vm2 = vweird.f32 %v8354_v29 }
 0x475   :  { %4232 = vrcp.f32 %v8356_v41  ;;  %vm2374_vm3 = vweird.f32 %v8356_v41 }
 0x476   :  { %2655 = vmatpush.msra.mxu1 %v7654_v45  ;;  %2695 = vmatpush.msra.mxu3 %v7657_v49  ;;  %v11352_v45 = vld [vmem:[#allocation113_spill] sm:$0xff]  ;;  %v11353_v49 = vld [vmem:[#allocation114_spill] sm:$0xff] }
 0x478   :  { %2656 = vmatpush.msra.mxu1 %v7662_v28  ;;  %2696 = vmatpush.msra.mxu3 %v11347_v40  ;;  %v11354_v28 = vld [vmem:[#allocation117_spill] sm:$0xff] }
 0x47a   :  { %2657 = vmatpush.msra.mxu1 %v11348_v9  ;;  %2697 = vmatpush.msra.mxu3 %v11349_v14  ;;  %v8370_v26 = vpop.eup %4230 }
 0x47b   :  { %2525 = vmatmul.f32.vlgmr.msrb.gmra.mxu1 %v2183_v63  ;;  %2565 = vmatmul.f32.vlgmr.msrb.gmra.mxu3 %v2183_v63  ;;  %v8372_v17 = vpop.eup %4232  ;;  %v2351_v7 = vmul.f32 %v8370_v26, %v8354_v29  ;;  %v11363_v63 = vld [vmem:[#allocation26_spill] sm:$0xff]  ;;  %vm2356_vm0 = vweird.f32 %v8370_v26 }
 0x47c   :  { %2658 = vmatpush.msra.mxu1 %v11350_v47  ;;  %2698 = vmatpush.msra.mxu3 %v11351_v39  ;;  %v2370_v61 = vmul.f32 %v8372_v17, %v8356_v41  ;;  %v2283_v25 = vpop.f32.mrf.mxu0  ;;  %v11365_v47 = vld [vmem:[#allocation28_spill] sm:$0xff]  ;;  %v11366_v39 = vld [vmem:[#allocation25_spill] sm:$0xff]  ;;  %vm2375_vm1 = vweird.f32 %v8372_v17  ;;  %vm8408_vm4 = vmor %vm2355_vm2, %vm2356_vm0 }
 0x47d   :  { %v2284_v3 = vadd.f32 %v2283_v25, %v11361_v19  ;;  %v2352_v40 = vsub.f32 1.0, %v2351_v7  ;;  %v11371_v7 = vld [vmem:[#allocation34_spill] sm:$0xff]  ;;  %vm8418_vm5 = vmor %vm2374_vm3, %vm2375_vm1 }
 0x47e   :  { %2659 = vmatpush.msra.mxu1 %v11352_v45  ;;  %2699 = vmatpush.msra.mxu3 %v11353_v49  ;;  %v2371_v9 = vsub.f32 1.0, %v2370_v61  ;;  %v2303_v45 = vpop.f32.mrf.mxu1  ;;  %v11372_v61 = vld [vmem:[#allocation31_spill] sm:$0xff] }
 0x47f   :  { %v2304_v49 = vadd.f32 %v2303_v45, %v2284_v3  ;;  %v2361_v3 = vand.u32 2147483648, %v8354_v29 }
 0x480   :  { %2660 = vmatpush.msra.mxu1 %v11354_v28  ;;  %2700 = vmatpush.msra.mxu3 %v11355_v37  ;;  %v11367_v28 = vld [vmem:[#allocation30_spill] sm:$0xff]  ;;  %v11368_v37 = vld [vmem:[#allocation27_spill] sm:$0xff] }
 0x482   :  { %2661 = vmatpush.msra.mxu1 %v11356_v35  ;;  %2701 = vmatpush.msra.mxu3 %v11357_v46  ;;  %v2323_v2 = vpop.f32.mrf.mxu2  ;;  %v2372_v35 = vmul.f32 %v8372_v17, %v2371_v9  ;;  %v2353_v46 = vmul.f32 %v8370_v26, %v2352_v40  ;;  %v2378_v40 = vand.u32 2147483647, %v8356_v41  ;;  %v11377_v9 = vld [vmem:[#allocation38_spill] sm:$0xff] }
 0x483   :  { %v2324_v55 = vadd.f32 %v2323_v2, %v11362_v8  ;;  %v2380_v2 = vand.u32 2147483648, %v8356_v41 }
 0x484   :  { %2662 = vmatpush.msra.mxu1 %v11358_v52  ;;  %2702 = vmatpush.msra.mxu3 %v11359_v10  ;;  %v11369_v52 = vld [vmem:[#allocation32_spill] sm:$0xff]  ;;  %v11370_v10 = vld [vmem:[#allocation29_spill] sm:$0xff]  ;;  %v2354_v25 = vadd.f32 %v8370_v26, %v2353_v46  ;;  %vm2379_vm7 = vcmp.eq.f32.partialorder %v2378_v40, 8.507059e+37 }
 0x485   :  { %v2344_v14 = vadd.f32 %v2343_v59, %v2324_v55  ;;  %v11373_v55 = vld [vmem:[#allocation36_spill] sm:$0xff]  ;;  %v2359_v59 = vand.u32 2147483647, %v8354_v29  ;;  %v2381_v45 = vor.u32 1.1754944e-38, %v2380_v2  ;;  %v11382_v46 = vld [vmem:[#allocation37_spill] sm:$0xff] }
 0x486   :  { %2663 = vmatpush.msra.mxu1 %v11360_v6  ;;  %2703 = vmatpush.msra.mxu3 %v7717_v44  ;;  %v2373_v6 = vadd.f32 %v8372_v17, %v2372_v35  ;;  %v11389_v2 = vld [vmem:[#allocation48_spill] sm:$0xff] }
 0x487   :  { %v4063_v44 = vmul.f32 -1.442695, %v2344_v14  ;;  %vm2360_vm6 = vcmp.eq.f32.partialorder %v2359_v59, 8.507059e+37 }
 0x488   :  { %2664 = vmatpush.msra.mxu1 %v11363_v63  ;;  %2704 = vmatpush.msra.mxu3 %v11364_v30  ;;  %v11374_v63 = vld [vmem:[#allocation33_spill] sm:$0xff]  ;;  %v2377_v29 = vsel %vm8418_vm5, %v8372_v17, %v2373_v6  ;;  %v11381_v17 = vld [vmem:[#allocation40_spill] sm:$0xff]  ;;  %v11388_v6 = vld [vmem:[#allocation43_spill] sm:$0xff] }
 0x489   :  { %4234 = vpow2.f32 %v4063_v44  ;;  %v2382_v44 = vsel %vm2379_vm7, %v2381_v45, %v2377_v29  ;;  %v8541_v29 = vld [vmem:[#allocation5 + $0x88] sm:$0xff]  ;;  %v11394_v45 = vld [vmem:[#allocation49_spill] sm:$0xff] }
 0x48a   :  { %2665 = vmatpush.msra.mxu1 %v11365_v47  ;;  %2705 = vmatpush.msra.mxu3 %v11366_v39  ;;  %4236 = vtanh.f32 %v2304_v49  ;;  %v2358_v39 = vsel %vm8408_vm4, %v8370_v26, %v2354_v25  ;;  %v2362_v49 = vor.u32 1.1754944e-38, %v2361_v3  ;;  %v8501_v47 = vld [vmem:[#allocation5 + $0x128] sm:$0xff] }
 0x48c   :  { %2666 = vmatpush.msra.mxu1 %v11367_v28  ;;  %2706 = vmatpush.msra.mxu3 %v11368_v37  ;;  %v2363_v26 = vsel %vm2360_vm6, %v2362_v49, %v2358_v39  ;;  %v8517_v39 = vld [vmem:[#allocation5 + $0xe8] sm:$0xff]  ;;  %v8554_v49 = vld [vmem:[#allocation5 + $0x40] sm:$0xff] }
 0x48e   :  { %2667 = vmatpush.msra.mxu1 %v11369_v52  ;;  %2707 = vmatpush.msra.mxu3 %v11370_v10  ;;  %v11384_v52 = vld [vmem:[#allocation39_spill] sm:$0xff]  ;;  %v11385_v10 = vld [vmem:[#allocation44_spill] sm:$0xff] }
 0x48f   :  { %v4235_v14 = vpop.eup %4234 }
 0x490   :  { %2668 = vmatpush.msra.mxu1 %v11371_v7  ;;  %2708 = vmatpush.msra.mxu3 %v11372_v61  ;;  %v2388_v41 = vadd.f32 1.0, %v4235_v14  ;;  %v11387_v7 = vld [vmem:[#allocation46_spill] sm:$0xff]  ;;  %v8498_v14 = vld [vmem:[#allocation5 + $0x120] sm:$0xff] }
 0x492   :  { %2669 = vmatpush.msra.mxu1 %v11373_v55  ;;  %2709 = vmatpush.msra.mxu3 %v11374_v63  ;;  %4238 = vrcp.f32 %v2388_v41  ;;  %v2398_v25 = vand.u32 2147483647, %v2388_v41  ;;  %vm2394_vm9 = vweird.f32 %v2388_v41 }
 0x494   :  { %2734 = vmatpush.msrb.mxu1 %v11377_v9  ;;  %2774 = vmatpush.msrb.mxu3 %v7783_v5  ;;  %v4237_v5 = vpop.eup %4236  ;;  %vm2399_vm11 = vcmp.eq.f32.partialorder %v2398_v25, 8.507059e+37  ;;  %v8454_v9 = vld [vmem:[#allocation5 + $0x1e0] sm:$0xff] }
 0x495   :  { %v2405_v28 = vmul.f32 %v4237_v5, %v2363_v26  ;;  %v8549_v5 = vld [vmem:[#allocation5 + $0x68] sm:$0xff]  ;;  %v11404_v25 = vld [vmem:[#allocation65_spill] sm:$0xff] }
 0x496   :  { %2735 = vmatpush.msrb.mxu1 %v7792_v13  ;;  %2775 = vmatpush.msrb.mxu3 %v7795_v38  ;;  %v2404_v13 = vmul.f32 %v2382_v44, %v7817_v15  ;;  %v11380_v38 = vld [vmem:[#allocation35_spill] sm:$0xff]  ;;  %v11386_v15 = vld [vmem:[#allocation41_spill] sm:$0xff]  ;;  %v8557_v26 = vld [vmem:[#allocation5 + $0x48] sm:$0xff] }
 0x497   :  { %v11395_v44 = vld [vmem:[#allocation54_spill] sm:$0xff] }
 0x498   :  { %2736 = vmatpush.msrb.mxu1 %v7798_v33  ;;  %2776 = vmatpush.msrb.mxu3 %v7801_v54  ;;  %v4239_v37 = vpop.eup %4238  ;;  %v8437_v35 = vadd.f32 %v2405_v28, %v2404_v13  ;;  %v11383_v33 = vld [vmem:[#allocation42_spill] sm:$0xff]  ;;  %v11396_v28 = vld [vmem:[#allocation51_spill] sm:$0xff]  ;;  %v8562_v13 = vld [vmem:[#allocation5 + $0x20] sm:$0xff] }
 0x499   :  { %v2390_v54 = vmul.f32 %v4239_v37, %v2388_v41  ;;  %vm2395_vm8 = vweird.f32 %v4239_v37 }
 0x49a   :  { %2737 = vmatpush.msrb.mxu1 %v7804_v36  ;;  %2777 = vmatpush.msrb.mxu3 %v7807_v11  ;;  %4240 = vtanh.f32 %v8437_v35  ;;  %v2400_v11 = vand.u32 2147483648, %v2388_v41  ;;  %vm2396_vm10 = vmor %vm2394_vm9, %vm2395_vm8  ;;  %v8546_v41 = vld [vmem:[#allocation5 + $0x60] sm:$0xff] }
 0x49b   :  { %v2391_v36 = vsub.f32 1.0, %v2390_v54  ;;  %v8575_v54 = vld [vmem:[#allocation5 + $0x8] sm:$0xff] }
 0x49c   :  { %2738 = vmatpush.msrb.mxu1 %v11380_v38  ;;  %2778 = vmatpush.msrb.mxu3 %v11381_v17  ;;  %v2401_v55 = vor.u32 1.1754944e-38, %v2400_v11  ;;  %v8565_v38 = vld [vmem:[#allocation5 + $0x28] sm:$0xff]  ;;  %v11400_v11 = vld [vmem:[#allocation63_spill] sm:$0xff] }
 0x49d   :  { %v2392_v61 = vmul.f32 %v4239_v37, %v2391_v36  ;;  %v8568_v17 = vld [vmem:[#allocation2 + $0x28] sm:$0xff]  ;;  %v11399_v36 = vld [vmem:[#allocation55_spill] sm:$0xff] }
 0x49e   :  { %2739 = vmatpush.msrb.mxu1 %v11382_v46  ;;  %2779 = vmatpush.msrb.mxu3 %v11383_v33  ;;  %v11398_v46 = vld [vmem:[#allocation53_spill] sm:$0xff] }
 0x49f   :  { %v2393_v3 = vadd.f32 %v4239_v37, %v2392_v61  ;;  %v8572_v33 = vld [vmem:[#allocation5] sm:$0xff]  ;;  %v11403_v61 = vld [vmem:[#allocation59_spill] sm:$0xff] }
 0x4a0   :  { %2740 = vmatpush.msrb.mxu1 %v11384_v52  ;;  %2780 = vmatpush.msrb.mxu3 %v11385_v10  ;;  %v4241_v30 = vpop.eup %4240  ;;  %v8580_v52 = vld [vmem:[#allocation5 + $0x1f0] sm:$0xff]  ;;  %v8583_v10 = vld [vmem:[#allocation5 + $0x1f8] sm:$0xff] }
 0x4a1   :  { %v2397_v63 = vsel %vm2396_vm10, %v4239_v37, %v2393_v3  ;;  %v11397_v37 = vld [vmem:[#allocation56_spill] sm:$0xff]  ;;  %v11407_v3 = vld [vmem:[#allocation62_spill] sm:$0xff] }
 0x4a2   :  { %2741 = vmatpush.msrb.mxu1 %v11386_v15  ;;  %2781 = vmatpush.msrb.mxu3 %v11387_v7  ;;  %v2402_v59 = vsel %vm2399_vm11, %v2401_v55, %v2397_v63  ;;  %v8588_v15 = vld [vmem:[#allocation5 + $0x1d0] sm:$0xff]  ;;  %v8591_v7 = vld [vmem:[#allocation5 + $0x1d8] sm:$0xff] }
 0x4a3   :  { %v2408_v40 = vmul.f32 %v4241_v30, %v2402_v59  ;;  %11401 = vst [vmem:[#allocation103_spill] sm:$0xff] %v8588_v15  ;;  %v11408_v55 = vld [vmem:[#allocation67_spill] sm:$0xff]  ;;  %v8607_v30 = vld [vmem:[#allocation5 + $0x198] sm:$0xff] }
 0x4a4   :  { %2742 = vmatpush.msrb.mxu1 %v11388_v6  ;;  %2782 = vmatpush.msrb.mxu3 %v11389_v2  ;;  %11402 = vst [vmem:[#allocation104_spill] sm:$0xff] %v8591_v7  ;;  %v8596_v6 = vld [vmem:[#allocation5 + $0x1b0] sm:$0xff]  ;;  %v8599_v2 = vld [vmem:[#allocation5 + $0x1b8] sm:$0xff] }
 0x4a5   :  { %2425 = vmatmul.f32.vlgmr.msra.gmra.mxu0 %v2408_v40  ;;  %2465 = vmatmul.f32.vlgmr.msra.gmra.mxu2 %v2408_v40  ;;  %11405 = vst [vmem:[#allocation107_spill] sm:$0xff] %v8596_v6  ;;  %v8604_v63 = vld [vmem:[#allocation5 + $0x190] sm:$0xff]  ;;  %v11411_v59 = vld [vmem:[#allocation64_spill] sm:$0xff] }
 0x4a6   :  { %2743 = vmatpush.msrb.mxu1 %v7844_v42  ;;  %2783 = vmatpush.msrb.mxu3 %v7847_v31  ;;  %v8457_v42 = vld [vmem:[#allocation5 + $0x1e8] sm:$0xff]  ;;  %v8460_v31 = vld [vmem:[#allocation5 + $0x1c0] sm:$0xff]  ;;  %11406 = vst [vmem:[#allocation108_spill] sm:$0xff] %v8599_v2 }
 0x4a7   :  { %2634 = vmatpush.msra.mxu0 %v8454_v9  ;;  %2670 = vmatmul.f32.vlgmr.msra.gmra.mxu1 %v2408_v40  ;;  %11409 = vst [vmem:[#allocation109_spill] sm:$0xff] %v8604_v63 }
 0x4a8   :  { %2744 = vmatpush.msrb.mxu1 %v7850_v50  ;;  %2784 = vmatpush.msrb.mxu3 %v7853_v16  ;;  %v8464_v50 = vld [vmem:[#allocation5 + $0x1c8] sm:$0xff]  ;;  %v8468_v16 = vld [vmem:[#allocation5 + $0x1a0] sm:$0xff]  ;;  %11410 = vst [vmem:[#allocation110_spill] sm:$0xff] %v8607_v30 }
 0x4a9   :  { %2674 = vmatpush.msra.mxu2 %v8457_v42  ;;  %2710 = vmatmul.f32.vlgmr.msra.gmra.mxu3 %v2408_v40 }
 0x4aa   :  { %2745 = vmatpush.msrb.mxu1 %v7859_v20  ;;  %2785 = vmatpush.msrb.mxu3 %v7863_v12  ;;  %v8472_v20 = vld [vmem:[#allocation5 + $0x1a8] sm:$0xff]  ;;  %v8476_v12 = vld [vmem:[#allocation5 + $0x180] sm:$0xff] }
 0x4ab   :  { %2635 = vmatpush.msra.mxu0 %v8460_v31  ;;  %2675 = vmatpush.msra.mxu2 %v8464_v50 }
 0x4ac   :  { %2746 = vmatpush.msrb.mxu1 %v7867_v43  ;;  %2786 = vmatpush.msrb.mxu3 %v7871_v58  ;;  %v8480_v43 = vld [vmem:[#allocation5 + $0x188] sm:$0xff]  ;;  %v8483_v58 = vld [vmem:[#allocation5 + $0x160] sm:$0xff] }
 0x4ad   :  { %2636 = vmatpush.msra.mxu0 %v8468_v16  ;;  %2676 = vmatpush.msra.mxu2 %v8472_v20 }
 0x4ae   :  { %2747 = vmatpush.msrb.mxu1 %v7875_v48  ;;  %2787 = vmatpush.msrb.mxu3 %v7879_v21  ;;  %v8486_v48 = vld [vmem:[#allocation5 + $0x168] sm:$0xff]  ;;  %v8490_v21 = vld [vmem:[#allocation5 + $0x140] sm:$0xff] }
 0x4af   :  { %2637 = vmatpush.msra.mxu0 %v8476_v12  ;;  %2677 = vmatpush.msra.mxu2 %v8480_v43 }
 0x4b0   :  { %2748 = vmatpush.msrb.mxu1 %v7884_v18  ;;  %2505 = vmatmul.f32.vlgmr.msrb.gmra.mxu0 %v2408_v40  ;;  %v8494_v18 = vld [vmem:[#allocation5 + $0x148] sm:$0xff] }
 0x4b1   :  { %2545 = vmatmul.f32.vlgmr.msrb.gmra.mxu2 %v2408_v40  ;;  %2638 = vmatpush.msra.mxu0 %v8483_v58 }
 0x4b2   :  { %2678 = vmatpush.msra.mxu2 %v8486_v48  ;;  %2788 = vmatpush.msrb.mxu3 %v7887_v56  ;;  %v8506_v56 = vld [vmem:[#allocation5 + $0x100] sm:$0xff] }
 0x4b3   :  { %2639 = vmatpush.msra.mxu0 %v8490_v21  ;;  %2749 = vmatpush.msrb.mxu1 %v7892_v24  ;;  %v8509_v24 = vld [vmem:[#allocation5 + $0x108] sm:$0xff] }
 0x4b4   :  { %2679 = vmatpush.msra.mxu2 %v8494_v18  ;;  %2789 = vmatpush.msrb.mxu3 %v7895_v32  ;;  %v8514_v32 = vld [vmem:[#allocation5 + $0xe0] sm:$0xff] }
 0x4b5   :  { %2750 = vmatmul.f32.vlgmr.msrb.gmra.mxu1 %v2408_v40  ;;  %2790 = vmatmul.f32.vlgmr.msrb.gmra.mxu3 %v2408_v40  ;;  %v11412_v40 = vld [vmem:[#allocation69_spill] sm:$0xff] }
 0x4b6   :  { %2640 = vmatpush.msra.mxu0 %v8498_v14  ;;  %2680 = vmatpush.msra.mxu2 %v8501_v47 }
 0x4b7   :  { %2877 = vmatpush.msra.mxu1 %v7900_v51  ;;  %2917 = vmatpush.msra.mxu3 %v7903_v57  ;;  %v8522_v51 = vld [vmem:[#allocation5 + $0xc0] sm:$0xff]  ;;  %v8525_v57 = vld [vmem:[#allocation5 + $0xc8] sm:$0xff] }
 0x4b8   :  { %2641 = vmatpush.msra.mxu0 %v8506_v56  ;;  %2681 = vmatpush.msra.mxu2 %v8509_v24 }
 0x4b9   :  { %2878 = vmatpush.msra.mxu1 %v7908_v53  ;;  %2918 = vmatpush.msra.mxu3 %v7911_v23  ;;  %v8530_v53 = vld [vmem:[#allocation5 + $0xa0] sm:$0xff]  ;;  %v8533_v23 = vld [vmem:[#allocation5 + $0xa8] sm:$0xff] }
 0x4ba   :  { %2642 = vmatpush.msra.mxu0 %v8514_v32  ;;  %2682 = vmatpush.msra.mxu2 %v8517_v39 }
 0x4bb   :  { %2879 = vmatpush.msra.mxu1 %v7916_v27  ;;  %2919 = vmatpush.msra.mxu3 %v7919_v22  ;;  %v11390_v27 = vld [vmem:[#allocation45_spill] sm:$0xff] }
 0x4bc   :  { %2643 = vmatpush.msra.mxu0 %v8522_v51  ;;  %2683 = vmatpush.msra.mxu2 %v8525_v57  ;;  %v8538_v22 = vld [vmem:[#allocation5 + $0x80] sm:$0xff] }
 0x4bd   :  { %2880 = vmatpush.msra.mxu1 %v7924_v1  ;;  %2920 = vmatpush.msra.mxu3 %v7927_v34  ;;  %v11391_v1 = vld [vmem:[#allocation50_spill] sm:$0xff]  ;;  %v11392_v34 = vld [vmem:[#allocation47_spill] sm:$0xff] }
 0x4be   :  { %2644 = vmatpush.msra.mxu0 %v8530_v53  ;;  %2684 = vmatpush.msra.mxu2 %v8533_v23 }
 0x4bf   :  { %2881 = vmatpush.msra.mxu1 %v7932_v62  ;;  %2921 = vmatpush.msra.mxu3 %v11390_v27  ;;  %v11393_v62 = vld [vmem:[#allocation52_spill] sm:$0xff]  ;;  %v8612_v27 = vld [vmem:[#allocation5 + $0x170] sm:$0xff] }
 0x4c0   :  { %2645 = vmatpush.msra.mxu0 %v8538_v22  ;;  %2685 = vmatpush.msra.mxu2 %v8541_v29  ;;  %11413 = vst [vmem:[#allocation111_spill] sm:$0xff] %v8612_v27 }
 0x4c1   :  { %2882 = vmatpush.msra.mxu1 %v11391_v1  ;;  %2922 = vmatpush.msra.mxu3 %v11392_v34  ;;  %v8615_v1 = vld [vmem:[#allocation5 + $0x178] sm:$0xff]  ;;  %v11415_v34 = vld [vmem:[#allocation66_spill] sm:$0xff] }
 0x4c2   :  { %2646 = vmatpush.msra.mxu0 %v8546_v41  ;;  %2686 = vmatpush.msra.mxu2 %v8549_v5  ;;  %11414 = vst [vmem:[#allocation112_spill] sm:$0xff] %v8615_v1 }
 0x4c3   :  { %2883 = vmatpush.msra.mxu1 %v11393_v62  ;;  %2923 = vmatpush.msra.mxu3 %v11394_v45  ;;  %v11416_v62 = vld [vmem:[#allocation71_spill] sm:$0xff] }
 0x4c4   :  { %2647 = vmatpush.msra.mxu0 %v8554_v49  ;;  %2687 = vmatpush.msra.mxu2 %v8557_v26  ;;  %v8620_v45 = vld [vmem:[#allocation5 + $0x150] sm:$0xff] }
 0x4c5   :  { %2884 = vmatpush.msra.mxu1 %v11395_v44  ;;  %2924 = vmatpush.msra.mxu3 %v11396_v28  ;;  %11417 = vst [vmem:[#allocation113_spill] sm:$0xff] %v8620_v45  ;;  %v8623_v44 = vld [vmem:[#allocation5 + $0x158] sm:$0xff] }
 0x4c6   :  { %2648 = vmatpush.msra.mxu0 %v8562_v13  ;;  %2688 = vmatpush.msra.mxu2 %v8565_v38  ;;  %11418 = vst [vmem:[#allocation114_spill] sm:$0xff] %v8623_v44  ;;  %v11419_v28 = vld [vmem:[#allocation68_spill] sm:$0xff] }
 0x4c7   :  { %2885 = vmatpush.msra.mxu1 %v11397_v37  ;;  %2925 = vmatpush.msra.mxu3 %v11398_v46  ;;  %v11420_v37 = vld [vmem:[#allocation73_spill] sm:$0xff]  ;;  %v8628_v46 = vld [vmem:[#allocation5 + $0x130] sm:$0xff] }
 0x4c8   :  { %2649 = vmatpush.msra.mxu0 %v8572_v33  ;;  %2689 = vmatpush.msra.mxu2 %v8575_v54  ;;  %11421 = vst [vmem:[#allocation117_spill] sm:$0xff] %v8628_v46 }
 0x4c9   :  { %2650 = vmatmul.f32.vlgmr.msra.gmra.mxu0 %v8568_v17  ;;  %2690 = vmatmul.f32.vlgmr.msra.gmra.mxu2 %v8568_v17 }
 0x4ca   :  { %2714 = vmatpush.msrb.mxu0 %v8580_v52  ;;  %2754 = vmatpush.msrb.mxu2 %v8583_v10 }
 0x4cb   :  { %2886 = vmatpush.msra.mxu1 %v11399_v36  ;;  %2926 = vmatpush.msra.mxu3 %v11400_v11  ;;  %v8631_v36 = vld [vmem:[#allocation5 + $0x138] sm:$0xff]  ;;  %v11423_v11 = vld [vmem:[#allocation70_spill] sm:$0xff] }
 0x4cc   :  { %2715 = vmatpush.msrb.mxu0 %v8588_v15  ;;  %2755 = vmatpush.msrb.mxu2 %v8591_v7  ;;  %11422 = vst [vmem:[#allocation19_spill] sm:$0xff] %v8631_v36 }
 0x4cd   :  { %2887 = vmatpush.msra.mxu1 %v11403_v61  ;;  %2927 = vmatpush.msra.mxu3 %v11404_v25  ;;  %v11424_v61 = vld [vmem:[#allocation75_spill] sm:$0xff] }
 0x4ce   :  { %2716 = vmatpush.msrb.mxu0 %v8596_v6  ;;  %2756 = vmatpush.msrb.mxu2 %v8599_v2  ;;  %v8636_v25 = vld [vmem:[#allocation5 + $0x110] sm:$0xff] }
 0x4cf   :  { %2888 = vmatpush.msra.mxu1 %v11407_v3  ;;  %2928 = vmatpush.msra.mxu3 %v11408_v55  ;;  %11425 = vst [vmem:[#allocation106_spill] sm:$0xff] %v8636_v25  ;;  %v8639_v3 = vld [vmem:[#allocation5 + $0x118] sm:$0xff] }
 0x4d0   :  { %2717 = vmatpush.msrb.mxu0 %v8604_v63  ;;  %2757 = vmatpush.msrb.mxu2 %v8607_v30  ;;  %11426 = vst [vmem:[#allocation22_spill] sm:$0xff] %v8639_v3  ;;  %v11427_v55 = vld [vmem:[#allocation72_spill] sm:$0xff] }
 0x4d1   :  { %2889 = vmatpush.msra.mxu1 %v11411_v59  ;;  %2929 = vmatpush.msra.mxu3 %v11412_v40  ;;  %v11428_v59 = vld [vmem:[#allocation77_spill] sm:$0xff]  ;;  %v8644_v40 = vld [vmem:[#allocation5 + $0xf0] sm:$0xff] }
 0x4d2   :  { %2718 = vmatpush.msrb.mxu0 %v8612_v27  ;;  %2758 = vmatpush.msrb.mxu2 %v8615_v1  ;;  %11429 = vst [vmem:[#allocation20_spill] sm:$0xff] %v8644_v40 }
 0x4d3   :  { %2890 = vmatpush.msra.mxu1 %v11415_v34  ;;  %2930 = vmatpush.msra.mxu3 %v11416_v62  ;;  %v8647_v34 = vld [vmem:[#allocation5 + $0xf8] sm:$0xff]  ;;  %v11431_v62 = vld [vmem:[#allocation118_spill] sm:$0xff] }
 0x4d4   :  { %2719 = vmatpush.msrb.mxu0 %v8620_v45  ;;  %2759 = vmatpush.msrb.mxu2 %v8623_v44  ;;  %11430 = vst [vmem:[#allocation21_spill] sm:$0xff] %v8647_v34 }
 0x4d5   :  { %2891 = vmatpush.msra.mxu1 %v11419_v28  ;;  %2931 = vmatpush.msra.mxu3 %v11420_v37  ;;  %v11432_v28 = vld [vmem:[#allocation119_spill] sm:$0xff] }
 0x4d6   :  { %2720 = vmatpush.msrb.mxu0 %v8628_v46  ;;  %2760 = vmatpush.msrb.mxu2 %v8631_v36  ;;  %v8652_v37 = vld [vmem:[#allocation5 + $0xd0] sm:$0xff] }
 0x4d7   :  { %2892 = vmatpush.msra.mxu1 %v11423_v11  ;;  %2932 = vmatpush.msra.mxu3 %v11424_v61  ;;  %11433 = vst [vmem:[#allocation23_spill] sm:$0xff] %v8652_v37  ;;  %v8655_v11 = vld [vmem:[#allocation5 + $0xd8] sm:$0xff] }
 0x4d8   :  { %2721 = vmatpush.msrb.mxu0 %v8636_v25  ;;  %2761 = vmatpush.msrb.mxu2 %v8639_v3  ;;  %11434 = vst [vmem:[#allocation26_spill] sm:$0xff] %v8655_v11  ;;  %v11435_v61 = vld [vmem:[#allocation120_spill] sm:$0xff]  ;;  %v11468_v3 = vld [vmem:[#allocation141_spill] sm:$0xff] }
 0x4d9   :  { %2957 = vmatpush.msrb.mxu1 %v11427_v55  ;;  %2997 = vmatpush.msrb.mxu3 %v11428_v59  ;;  %v11436_v55 = vld [vmem:[#allocation121_spill] sm:$0xff]  ;;  %v8660_v59 = vld [vmem:[#allocation5 + $0xb0] sm:$0xff] }
 0x4da   :  { %2722 = vmatpush.msrb.mxu0 %v8644_v40  ;;  %2762 = vmatpush.msrb.mxu2 %v8647_v34  ;;  %11437 = vst [vmem:[#allocation24_spill] sm:$0xff] %v8660_v59  ;;  %v8663_v34 = vld [vmem:[#allocation5 + $0xb8] sm:$0xff]  ;;  %v11466_v40 = vld [vmem:[#allocation139_spill] sm:$0xff] }
 0x4db   :  { %2958 = vmatpush.msrb.mxu1 %v11431_v62  ;;  %2998 = vmatpush.msrb.mxu3 %v11432_v28  ;;  %11438 = vst [vmem:[#allocation28_spill] sm:$0xff] %v8663_v34  ;;  %v11439_v62 = vld [vmem:[#allocation122_spill] sm:$0xff]  ;;  %v11440_v28 = vld [vmem:[#allocation123_spill] sm:$0xff] }
 0x4dc   :  { %2723 = vmatpush.msrb.mxu0 %v8652_v37  ;;  %2763 = vmatpush.msrb.mxu2 %v8655_v11  ;;  %v8668_v37 = vld [vmem:[#allocation5 + $0x90] sm:$0xff]  ;;  %v8671_v11 = vld [vmem:[#allocation5 + $0x98] sm:$0xff] }
 0x4dd   :  { %2959 = vmatpush.msrb.mxu1 %v11435_v61  ;;  %2999 = vmatpush.msrb.mxu3 %v11436_v55  ;;  %11441 = vst [vmem:[#allocation25_spill] sm:$0xff] %v8668_v37  ;;  %v11443_v61 = vld [vmem:[#allocation124_spill] sm:$0xff]  ;;  %v11444_v55 = vld [vmem:[#allocation125_spill] sm:$0xff] }
 0x4de   :  { %2724 = vmatpush.msrb.mxu0 %v8660_v59  ;;  %2764 = vmatpush.msrb.mxu2 %v8663_v34  ;;  %11442 = vst [vmem:[#allocation30_spill] sm:$0xff] %v8671_v11  ;;  %v8676_v59 = vld [vmem:[#allocation5 + $0x70] sm:$0xff]  ;;  %v8679_v34 = vld [vmem:[#allocation5 + $0x78] sm:$0xff] }
 0x4df   :  { %2960 = vmatpush.msrb.mxu1 %v11439_v62  ;;  %3000 = vmatpush.msrb.mxu3 %v11440_v28  ;;  %11445 = vst [vmem:[#allocation27_spill] sm:$0xff] %v8676_v59  ;;  %v11447_v62 = vld [vmem:[#allocation126_spill] sm:$0xff]  ;;  %v11448_v28 = vld [vmem:[#allocation127_spill] sm:$0xff] }
 0x4e0   :  { %2725 = vmatpush.msrb.mxu0 %v8668_v37  ;;  %2765 = vmatpush.msrb.mxu2 %v8671_v11  ;;  %11446 = vst [vmem:[#allocation32_spill] sm:$0xff] %v8679_v34  ;;  %v8684_v37 = vld [vmem:[#allocation5 + $0x50] sm:$0xff]  ;;  %v8687_v11 = vld [vmem:[#allocation5 + $0x58] sm:$0xff] }
 0x4e1   :  { %2961 = vmatpush.msrb.mxu1 %v11443_v61  ;;  %3001 = vmatpush.msrb.mxu3 %v11444_v55  ;;  %11449 = vst [vmem:[#allocation29_spill] sm:$0xff] %v8684_v37  ;;  %v11451_v61 = vld [vmem:[#allocation128_spill] sm:$0xff]  ;;  %v11452_v55 = vld [vmem:[#allocation129_spill] sm:$0xff] }
 0x4e2   :  { %2726 = vmatpush.msrb.mxu0 %v8676_v59  ;;  %2766 = vmatpush.msrb.mxu2 %v8679_v34  ;;  %11450 = vst [vmem:[#allocation34_spill] sm:$0xff] %v8687_v11  ;;  %v8692_v59 = vld [vmem:[#allocation5 + $0x30] sm:$0xff]  ;;  %v8695_v34 = vld [vmem:[#allocation5 + $0x38] sm:$0xff] }
 0x4e3   :  { %2962 = vmatpush.msrb.mxu1 %v11447_v62  ;;  %3002 = vmatpush.msrb.mxu3 %v11448_v28  ;;  %11453 = vst [vmem:[#allocation31_spill] sm:$0xff] %v8692_v59  ;;  %v11455_v62 = vld [vmem:[#allocation130_spill] sm:$0xff]  ;;  %v11456_v28 = vld [vmem:[#allocation131_spill] sm:$0xff] }
 0x4e4   :  { %2727 = vmatpush.msrb.mxu0 %v8684_v37  ;;  %2767 = vmatpush.msrb.mxu2 %v8687_v11  ;;  %11454 = vst [vmem:[#allocation36_spill] sm:$0xff] %v8695_v34  ;;  %v8700_v37 = vld [vmem:[#allocation5 + $0x10] sm:$0xff]  ;;  %v8703_v11 = vld [vmem:[#allocation5 + $0x18] sm:$0xff] }
 0x4e5   :  { %2963 = vmatpush.msrb.mxu1 %v11451_v61  ;;  %3003 = vmatpush.msrb.mxu3 %v11452_v55  ;;  %11457 = vst [vmem:[#allocation33_spill] sm:$0xff] %v8700_v37  ;;  %v11459_v61 = vld [vmem:[#allocation132_spill] sm:$0xff]  ;;  %v11460_v55 = vld [vmem:[#allocation133_spill] sm:$0xff] }
 0x4e6   :  { %2728 = vmatpush.msrb.mxu0 %v8692_v59  ;;  %2768 = vmatpush.msrb.mxu2 %v8695_v34  ;;  %11458 = vst [vmem:[#allocation38_spill] sm:$0xff] %v8703_v11  ;;  %v11461_v34 = vld [vmem:[#allocation134_spill] sm:$0xff]  ;;  %v11464_v59 = vld [vmem:[#allocation137_spill] sm:$0xff] }
 0x4e7   :  { %2964 = vmatpush.msrb.mxu1 %v11455_v62  ;;  %3004 = vmatpush.msrb.mxu3 %v11456_v28  ;;  %v11462_v62 = vld [vmem:[#allocation135_spill] sm:$0xff]  ;;  %v11463_v28 = vld [vmem:[#allocation136_spill] sm:$0xff] }
 0x4e8   :  { %2729 = vmatpush.msrb.mxu0 %v8700_v37  ;;  %2769 = vmatpush.msrb.mxu2 %v8703_v11  ;;  %v11465_v37 = vld [vmem:[#allocation138_spill] sm:$0xff]  ;;  %v11467_v11 = vld [vmem:[#allocation140_spill] sm:$0xff] }
 0x4e9   :  { %2730 = vmatmul.f32.vlgmr.msrb.gmra.mxu0 %v8568_v17  ;;  %2770 = vmatmul.f32.vlgmr.msrb.gmra.mxu2 %v8568_v17  ;;  %v11469_v17 = vld [vmem:[#allocation142_spill] sm:$0xff] }
 0x4ea   :  { %2965 = vmatpush.msrb.mxu1 %v11459_v61  ;;  %3005 = vmatpush.msrb.mxu3 %v11460_v55  ;;  %v11470_v61 = vld [vmem:[#allocation143_spill] sm:$0xff]  ;;  %v11471_v55 = vld [vmem:[#allocation144_spill] sm:$0xff] }
 0x4eb   :  { %2857 = vmatpush.msra.mxu0 %v11461_v34  ;;  %2897 = vmatpush.msra.mxu2 %v11462_v62  ;;  %v11472_v34 = vld [vmem:[#allocation145_spill] sm:$0xff]  ;;  %v11473_v62 = vld [vmem:[#allocation146_spill] sm:$0xff] }
 0x4ec   :  { %2966 = vmatpush.msrb.mxu1 %v11463_v28  ;;  %3006 = vmatpush.msrb.mxu3 %v11464_v59  ;;  %v11474_v28 = vld [vmem:[#allocation147_spill] sm:$0xff]  ;;  %v11475_v59 = vld [vmem:[#allocation148_spill] sm:$0xff] }
 0x4ed   :  { %2858 = vmatpush.msra.mxu0 %v11465_v37  ;;  %2898 = vmatpush.msra.mxu2 %v11466_v40  ;;  %v11476_v37 = vld [vmem:[#allocation149_spill] sm:$0xff]  ;;  %v11477_v40 = vld [vmem:[#allocation150_spill] sm:$0xff] }
 0x4ee   :  { %2967 = vmatpush.msrb.mxu1 %v11467_v11  ;;  %3007 = vmatpush.msrb.mxu3 %v11468_v3  ;;  %v11478_v11 = vld [vmem:[#allocation151_spill] sm:$0xff]  ;;  %v11479_v3 = vld [vmem:[#allocation152_spill] sm:$0xff] }
 0x4ef   :  { %2859 = vmatpush.msra.mxu0 %v11469_v17  ;;  %2899 = vmatpush.msra.mxu2 %v11470_v61  ;;  %v11480_v17 = vld [vmem:[#allocation153_spill] sm:$0xff]  ;;  %v11481_v61 = vld [vmem:[#allocation154_spill] sm:$0xff] }
 0x4f0   :  { %2968 = vmatpush.msrb.mxu1 %v11471_v55  ;;  %3008 = vmatpush.msrb.mxu3 %v11472_v34  ;;  %v11482_v55 = vld [vmem:[#allocation155_spill] sm:$0xff]  ;;  %v11483_v34 = vld [vmem:[#allocation156_spill] sm:$0xff] }
 0x4f1   :  { %2860 = vmatpush.msra.mxu0 %v11473_v62  ;;  %2900 = vmatpush.msra.mxu2 %v11474_v28  ;;  %v11484_v62 = vld [vmem:[#allocation157_spill] sm:$0xff]  ;;  %v11485_v28 = vld [vmem:[#allocation158_spill] sm:$0xff] }
 0x4f2   :  { %2969 = vmatpush.msrb.mxu1 %v11475_v59  ;;  %3009 = vmatpush.msrb.mxu3 %v11476_v37  ;;  %v11486_v59 = vld [vmem:[#allocation159_spill] sm:$0xff]  ;;  %v11487_v37 = vld [vmem:[#allocation160_spill] sm:$0xff] }
 0x4f3   :  { %2861 = vmatpush.msra.mxu0 %v11477_v40  ;;  %2901 = vmatpush.msra.mxu2 %v11478_v11  ;;  %v11488_v40 = vld [vmem:[#allocation161_spill] sm:$0xff]  ;;  %v11489_v11 = vld [vmem:[#allocation162_spill] sm:$0xff] }
 0x4f4   :  { %2970 = vmatpush.msrb.mxu1 %v11479_v3  ;;  %3010 = vmatpush.msrb.mxu3 %v11480_v17  ;;  %v11490_v3 = vld [vmem:[#allocation163_spill] sm:$0xff]  ;;  %v11491_v17 = vld [vmem:[#allocation164_spill] sm:$0xff] }
 0x4f5   :  { %2862 = vmatpush.msra.mxu0 %v11481_v61  ;;  %2902 = vmatpush.msra.mxu2 %v11482_v55  ;;  %v11492_v61 = vld [vmem:[#allocation165_spill] sm:$0xff]  ;;  %v11493_v55 = vld [vmem:[#allocation166_spill] sm:$0xff] }
 0x4f6   :  { %2971 = vmatpush.msrb.mxu1 %v11483_v34  ;;  %3011 = vmatpush.msrb.mxu3 %v11484_v62  ;;  %v11494_v34 = vld [vmem:[#allocation167_spill] sm:$0xff]  ;;  %v11495_v62 = vld [vmem:[#allocation168_spill] sm:$0xff]  ;;  %v2486_v44 = vpop.f32.mrf.mxu3 }
 0x4f7   :  { %2863 = vmatpush.msra.mxu0 %v11485_v28  ;;  %2903 = vmatpush.msra.mxu2 %v11486_v59  ;;  %v11496_v28 = vld [vmem:[#allocation169_spill] sm:$0xff]  ;;  %v11497_v59 = vld [vmem:[#allocation170_spill] sm:$0xff] }
 0x4f8   :  { %2972 = vmatpush.msrb.mxu1 %v11487_v37  ;;  %3012 = vmatpush.msrb.mxu3 %v11488_v40  ;;  %v11498_v37 = vld [vmem:[#allocation171_spill] sm:$0xff]  ;;  %v11499_v40 = vld [vmem:[#allocation172_spill] sm:$0xff] }
 0x4f9   :  { %2864 = vmatpush.msra.mxu0 %v11489_v11  ;;  %2904 = vmatpush.msra.mxu2 %v11490_v3  ;;  %v11500_v11 = vld [vmem:[#allocation173_spill] sm:$0xff]  ;;  %v11501_v3 = vld [vmem:[#allocation174_spill] sm:$0xff] }
 0x4fb   :  { %2865 = vmatpush.msra.mxu0 %v11491_v17  ;;  %2905 = vmatpush.msra.mxu2 %v11492_v61  ;;  %v11502_v17 = vld [vmem:[#allocation175_spill] sm:$0xff]  ;;  %v11503_v61 = vld [vmem:[#allocation176_spill] sm:$0xff] }
 0x4fd   :  { %2866 = vmatpush.msra.mxu0 %v11493_v55  ;;  %2906 = vmatpush.msra.mxu2 %v11494_v34  ;;  %v11504_v55 = vld [vmem:[#allocation177_spill] sm:$0xff]  ;;  %v11505_v34 = vld [vmem:[#allocation178_spill] sm:$0xff] }
 0x4ff   :  { %2867 = vmatpush.msra.mxu0 %v11495_v62  ;;  %2907 = vmatpush.msra.mxu2 %v11496_v28  ;;  %v11506_v62 = vld [vmem:[#allocation179_spill] sm:$0xff]  ;;  %v11507_v28 = vld [vmem:[#allocation180_spill] sm:$0xff] }
 0x501   :  { %2868 = vmatpush.msra.mxu0 %v11497_v59  ;;  %2908 = vmatpush.msra.mxu2 %v11498_v37  ;;  %v11508_v59 = vld [vmem:[#allocation181_spill] sm:$0xff]  ;;  %v11509_v37 = vld [vmem:[#allocation182_spill] sm:$0xff] }
 0x503   :  { %2869 = vmatpush.msra.mxu0 %v11499_v40  ;;  %2909 = vmatpush.msra.mxu2 %v11500_v11  ;;  %v11510_v40 = vld [vmem:[#allocation183_spill] sm:$0xff]  ;;  %v11511_v11 = vld [vmem:[#allocation105_spill] sm:$0xff] }
 0x505   :  { %2870 = vmatpush.msra.mxu0 %v11501_v3  ;;  %2910 = vmatpush.msra.mxu2 %v11502_v17  ;;  %v11512_v3 = vld [vmem:[#allocation78_spill] sm:$0xff]  ;;  %v11513_v17 = vld [vmem:[#allocation80_spill] sm:$0xff] }
 0x507   :  { %2871 = vmatpush.msra.mxu0 %v11503_v61  ;;  %2911 = vmatpush.msra.mxu2 %v11504_v55  ;;  %v11514_v61 = vld [vmem:[#allocation84_spill] sm:$0xff]  ;;  %v11515_v55 = vld [vmem:[#allocation82_spill] sm:$0xff] }
 0x509   :  { %2872 = vmatpush.msra.mxu0 %v11505_v34  ;;  %2912 = vmatpush.msra.mxu2 %v11506_v62  ;;  %v11516_v34 = vld [vmem:[#allocation86_spill] sm:$0xff]  ;;  %v11517_v62 = vld [vmem:[#allocation83_spill] sm:$0xff] }
 0x50b   :  { %2937 = vmatpush.msrb.mxu0 %v11507_v28  ;;  %2977 = vmatpush.msrb.mxu2 %v11508_v59  ;;  %v11518_v28 = vld [vmem:[#allocation88_spill] sm:$0xff]  ;;  %v11519_v59 = vld [vmem:[#allocation57_spill] sm:$0xff] }
 0x50d   :  { %2938 = vmatpush.msrb.mxu0 %v11509_v37  ;;  %2978 = vmatpush.msrb.mxu2 %v11510_v40  ;;  %v11520_v37 = vld [vmem:[#allocation58_spill] sm:$0xff]  ;;  %v11521_v40 = vld [vmem:[#allocation85_spill] sm:$0xff] }
 0x50f   :  { %2939 = vmatpush.msrb.mxu0 %v11511_v11  ;;  %2979 = vmatpush.msrb.mxu2 %v11512_v3  ;;  %v11522_v11 = vld [vmem:[#allocation60_spill] sm:$0xff]  ;;  %v11523_v3 = vld [vmem:[#allocation89_spill] sm:$0xff] }
 0x511   :  { %2940 = vmatpush.msrb.mxu0 %v11513_v17  ;;  %2980 = vmatpush.msrb.mxu2 %v11514_v61  ;;  %v11524_v17 = vld [vmem:[#allocation61_spill] sm:$0xff]  ;;  %v11525_v61 = vld [vmem:[#allocation87_spill] sm:$0xff] }
 0x513   :  { %2941 = vmatpush.msrb.mxu0 %v11515_v55  ;;  %2981 = vmatpush.msrb.mxu2 %v11516_v34  ;;  %v11526_v55 = vld [vmem:[#allocation90_spill] sm:$0xff]  ;;  %v11527_v34 = vld [vmem:[#allocation92_spill] sm:$0xff] }
 0x515   :  { %2942 = vmatpush.msrb.mxu0 %v11517_v62  ;;  %2982 = vmatpush.msrb.mxu2 %v11518_v28  ;;  %v11528_v62 = vld [vmem:[#allocation91_spill] sm:$0xff]  ;;  %v11529_v28 = vld [vmem:[#allocation93_spill] sm:$0xff] }
 0x517   :  { %2943 = vmatpush.msrb.mxu0 %v11519_v59  ;;  %2983 = vmatpush.msrb.mxu2 %v11520_v37  ;;  %v11530_v59 = vld [vmem:[#allocation95_spill] sm:$0xff]  ;;  %v11531_v37 = vld [vmem:[#allocation94_spill] sm:$0xff] }
 0x519   :  { %2944 = vmatpush.msrb.mxu0 %v11521_v40  ;;  %2984 = vmatpush.msrb.mxu2 %v11522_v11  ;;  %v11532_v40 = vld [vmem:[#allocation96_spill] sm:$0xff]  ;;  %v11533_v11 = vld [vmem:[#allocation97_spill] sm:$0xff] }
 0x51b   :  { %2945 = vmatpush.msrb.mxu0 %v11523_v3  ;;  %2985 = vmatpush.msrb.mxu2 %v11524_v17  ;;  %v11534_v3 = vld [vmem:[#allocation98_spill] sm:$0xff] }
 0x51d   :  { %2946 = vmatpush.msrb.mxu0 %v11525_v61  ;;  %2986 = vmatpush.msrb.mxu2 %v11526_v55  ;;  %v11535_v61 = vld [vmem:[#allocation74_spill] sm:$0xff]  ;;  %v11536_v55 = vld [vmem:[#allocation99_spill] sm:$0xff] }
 0x51f   :  { %2947 = vmatpush.msrb.mxu0 %v11527_v34  ;;  %2987 = vmatpush.msrb.mxu2 %v11528_v62  ;;  %v11537_v34 = vld [vmem:[#allocation100_spill] sm:$0xff]  ;;  %v2446_v62 = vpop.f32.mrf.mxu1 }
 0x521   :  { %2948 = vmatpush.msrb.mxu0 %v11529_v28  ;;  %2988 = vmatpush.msrb.mxu2 %v11530_v59  ;;  %v11538_v28 = vld [vmem:[#allocation101_spill] sm:$0xff]  ;;  %v11539_v59 = vld [vmem:[#allocation102_spill] sm:$0xff] }
 0x522   :  { %v2426_v17 = vpop.f32.mrf.mxu0 }
 0x523   :  { %2949 = vmatpush.msrb.mxu0 %v11531_v37  ;;  %2989 = vmatpush.msrb.mxu2 %v11532_v40  ;;  %v2427_v25 = vadd.f32 %v2426_v17, %v11535_v61  ;;  %v11540_v40 = vld [vmem:[#allocation79_spill] sm:$0xff] }
 0x525   :  { %2950 = vmatpush.msrb.mxu0 %v11533_v11  ;;  %2990 = vmatpush.msrb.mxu2 %v11534_v3  ;;  %v2447_v36 = vadd.f32 %v2446_v62, %v2427_v25  ;;  %v2566_v25 = vpop.f32.mrf.mxu3 }
 0x527   :  { %2951 = vmatpush.msrb.mxu0 %v11536_v55  ;;  %2991 = vmatpush.msrb.mxu2 %v11537_v34  ;;  %v4064_v37 = vmul.f32 -1.442695, %v2447_v36  ;;  %v11541_v34 = vld [vmem:[#allocation76_spill] sm:$0xff] }
 0x528   :  { %v2466_v46 = vpop.f32.mrf.mxu2 }
 0x529   :  { %2952 = vmatpush.msrb.mxu0 %v11538_v28  ;;  %2992 = vmatpush.msrb.mxu2 %v11539_v59  ;;  %4242 = vpow2.f32 %v4064_v37  ;;  %v2467_v11 = vadd.f32 %v2466_v46, %v11540_v40  ;;  %v11542_v46 = vld [vmem:[#allocation81_spill] sm:$0xff] }
 0x52b   :  { %v2487_v3 = vadd.f32 %v2486_v44, %v2467_v11  ;;  %v2526_v11 = vpop.f32.mrf.mxu1 }
 0x52d   :  { %v4065_v45 = vmul.f32 -1.442695, %v2487_v3  ;;  %v2506_v59 = vpop.f32.mrf.mxu0 }
 0x52e   :  { %v2507_v40 = vadd.f32 %v2506_v59, %v11542_v46 }
 0x52f   :  { %v4243_v1 = vpop.eup %4242  ;;  %4244 = vpow2.f32 %v4065_v45 }
 0x530   :  { %v2572_v17 = vadd.f32 1.0, %v4243_v1  ;;  %v2527_v45 = vadd.f32 %v2526_v11, %v2507_v40 }
 0x532   :  { %4246 = vrcp.f32 %v2572_v17  ;;  %vm2578_vm13 = vweird.f32 %v2572_v17 }
 0x534   :  { %v2546_v55 = vpop.f32.mrf.mxu2 }
 0x535   :  { %v2547_v61 = vadd.f32 %v2546_v55, %v11541_v34  ;;  %v4245_v62 = vpop.eup %4244  ;;  %v2584_v34 = vand.u32 2147483648, %v2572_v17 }
 0x536   :  { %v2591_v27 = vadd.f32 1.0, %v4245_v62  ;;  %v2582_v62 = vand.u32 2147483647, %v2572_v17 }
 0x537   :  { %v2567_v28 = vadd.f32 %v2566_v25, %v2547_v61 }
 0x538   :  { %v4247_v30 = vpop.eup %4246  ;;  %4248 = vrcp.f32 %v2591_v27  ;;  %vm2597_vm0 = vweird.f32 %v2591_v27  ;;  %vm2583_vm1 = vcmp.eq.f32.partialorder %v2582_v62, 8.507059e+37 }
 0x539   :  { %v4066_v36 = vmul.f32 -1.442695, %v2567_v28  ;;  %v2574_v37 = vmul.f32 %v4247_v30, %v2572_v17  ;;  %vm2579_vm12 = vweird.f32 %v4247_v30  ;;  %v2603_v28 = vand.u32 2147483648, %v2591_v27  ;;  %v2671_v17 = vpop.f32.mrf.mxu1 }
 0x53a   :  { %vm2580_vm14 = vmor %vm2578_vm13, %vm2579_vm12 }
 0x53b   :  { %4250 = vpow2.f32 %v4066_v36  ;;  %v2575_v44 = vsub.f32 1.0, %v2574_v37  ;;  %v2601_v37 = vand.u32 2147483647, %v2591_v27 }
 0x53c   :  { %4252 = vtanh.f32 %v2527_v45 }
 0x53d   :  { %v2576_v1 = vmul.f32 %v4247_v30, %v2575_v44  ;;  %v2585_v44 = vor.u32 1.1754944e-38, %v2584_v34  ;;  %vm2602_vm3 = vcmp.eq.f32.partialorder %v2601_v37, 8.507059e+37 }
 0x53e   :  { %v4249_v3 = vpop.eup %4248 }
 0x53f   :  { %v2593_v2 = vmul.f32 %v4249_v3, %v2591_v27  ;;  %v2577_v55 = vadd.f32 %v4247_v30, %v2576_v1  ;;  %vm2598_vm15 = vweird.f32 %v4249_v3  ;;  %v2711_v27 = vpop.f32.mrf.mxu3 }
 0x540   :  { %vm2599_vm2 = vmor %vm2597_vm0, %vm2598_vm15 }
 0x541   :  { %v4251_v63 = vpop.eup %4250  ;;  %v2594_v25 = vsub.f32 1.0, %v2593_v2  ;;  %v2581_v36 = vsel %vm2580_vm14, %v4247_v30, %v2577_v55 }
 0x542   :  { %v2611_v61 = vadd.f32 1.0, %v4251_v63  ;;  %v2604_v63 = vor.u32 1.1754944e-38, %v2603_v28  ;;  %v2586_v2 = vsel %vm2583_vm1, %v2585_v44, %v2581_v36  ;;  %v4253_v46 = vpop.eup %4252 }
 0x543   :  { %v2595_v59 = vmul.f32 %v4249_v3, %v2594_v25  ;;  %v2628_v55 = vmul.f32 %v4253_v46, %v2586_v2 }
 0x544   :  { %4254 = vrcp.f32 %v2611_v61  ;;  %v2623_v37 = vand.u32 2147483648, %v2611_v61  ;;  %vm2617_vm5 = vweird.f32 %v2611_v61 }
 0x545   :  { %v2596_v1 = vadd.f32 %v4249_v3, %v2595_v59 }
 0x546   :  { %v2651_v40 = vpop.f32.mrf.mxu0 }
 0x547   :  { %v2652_v11 = vadd.f32 %v2651_v40, %v11152_v4  ;;  %v2600_v45 = vsel %vm2599_vm2, %v4249_v3, %v2596_v1 }
 0x548   :  { %v2605_v7 = vsel %vm2602_vm3, %v2604_v63, %v2600_v45  ;;  %v8798_v45 = vld [vmem:[#allocation5 + $0x3e0] sm:$0xff] }
 0x549   :  { %v2672_v25 = vadd.f32 %v2671_v17, %v2652_v11  ;;  %v2627_v30 = vmul.f32 %v2605_v7, %v8346_v0  ;;  %v2621_v11 = vand.u32 2147483647, %v2611_v61  ;;  %v2624_v7 = vor.u32 1.1754944e-38, %v2623_v37  ;;  %v8837_v37 = vld [vmem:[#allocation5 + $0x348] sm:$0xff] }
 0x54a   :  { %v4255_v6 = vpop.eup %4254  ;;  %11549 = vst [vmem:[#allocation41_spill] sm:$0xff] %v8837_v37 }
 0x54b   :  { %v2613_v15 = vmul.f32 %v4255_v6, %v2611_v61  ;;  %v8795_v62 = vadd.f32 %v2628_v55, %v2627_v30  ;;  %v4067_v28 = vmul.f32 -1.442695, %v2672_v25  ;;  %vm2618_vm4 = vweird.f32 %v4255_v6  ;;  %v8801_v25 = vld [vmem:[#allocation5 + $0x3e8] sm:$0xff] }
 0x54c   :  { %v2691_v34 = vpop.f32.mrf.mxu2  ;;  %vm2619_vm6 = vmor %vm2617_vm5, %vm2618_vm4  ;;  %vm2622_vm7 = vcmp.eq.f32.partialorder %v2621_v11, 8.507059e+37  ;;  %v8809_v30 = vld [vmem:[#allocation5 + $0x3c8] sm:$0xff]  ;;  %v8842_v11 = vld [vmem:[#allocation5 + $0x320] sm:$0xff] }
 0x54d   :  { %v2692_v40 = vadd.f32 %v2691_v34, %v10739_v60  ;;  %v2614_v59 = vsub.f32 1.0, %v2613_v15  ;;  %4256 = vtanh.f32 %v8795_v62  ;;  %v8814_v34 = vld [vmem:[#allocation5 + $0x3a0] sm:$0xff]  ;;  %11550 = vst [vmem:[#allocation46_spill] sm:$0xff] %v8842_v11 }
 0x54e   :  { %4258 = vpow2.f32 %v4067_v28  ;;  %v8828_v28 = vld [vmem:[#allocation5 + $0x360] sm:$0xff] }
 0x54f   :  { %v2712_v36 = vadd.f32 %v2711_v27, %v2692_v40  ;;  %v2615_v3 = vmul.f32 %v4255_v6, %v2614_v59  ;;  %v8817_v40 = vld [vmem:[#allocation5 + $0x3a8] sm:$0xff]  ;;  %v8821_v27 = vld [vmem:[#allocation5 + $0x380] sm:$0xff]  ;;  %11546 = vst [vmem:[#allocation42_spill] sm:$0xff] %v8828_v28 }
 0x550   :  { %11543 = vst [vmem:[#allocation35_spill] sm:$0xff] %v8817_v40  ;;  %v8824_v59 = vld [vmem:[#allocation5 + $0x388] sm:$0xff] }
 0x551   :  { %v4068_v44 = vmul.f32 -1.442695, %v2712_v36  ;;  %v2616_v1 = vadd.f32 %v4255_v6, %v2615_v3  ;;  %11544 = vst [vmem:[#allocation40_spill] sm:$0xff] %v8821_v27  ;;  %v8831_v36 = vld [vmem:[#allocation5 + $0x368] sm:$0xff]  ;;  %v8834_v3 = vld [vmem:[#allocation5 + $0x340] sm:$0xff] }
 0x552   :  { %11545 = vst [vmem:[#allocation37_spill] sm:$0xff] %v8824_v59 }
 0x553   :  { %4260 = vpow2.f32 %v4068_v44  ;;  %v2620_v0 = vsel %vm2619_vm6, %v4255_v6, %v2616_v1  ;;  %v4257_v46 = vpop.eup %4256  ;;  %v8806_v6 = vld [vmem:[#allocation5 + $0x3c0] sm:$0xff]  ;;  %11547 = vst [vmem:[#allocation39_spill] sm:$0xff] %v8831_v36  ;;  %v8845_v1 = vld [vmem:[#allocation5 + $0x328] sm:$0xff] }
 0x554   :  { %v2625_v63 = vsel %vm2622_vm7, %v2624_v7, %v2620_v0  ;;  %v4259_v2 = vpop.eup %4258  ;;  %11548 = vst [vmem:[#allocation44_spill] sm:$0xff] %v8834_v3  ;;  %v8850_v7 = vld [vmem:[#allocation5 + $0x300] sm:$0xff] }
 0x555   :  { %v2631_v15 = vmul.f32 %v4257_v46, %v2625_v63  ;;  %v8804_v61 = vadd.f32 1.0, %v4259_v2  ;;  %11551 = vst [vmem:[#allocation43_spill] sm:$0xff] %v8845_v1  ;;  %v8853_v46 = vld [vmem:[#allocation5 + $0x308] sm:$0xff] }
 0x556   :  { %11552 = vst [vmem:[#allocation48_spill] sm:$0xff] %v8850_v7 }
 0x557   :  { %2893 = vmatmul.f32.vlgmr.msra.gmra.mxu1 %v2631_v15  ;;  %2933 = vmatmul.f32.vlgmr.msra.gmra.mxu3 %v2631_v15  ;;  %4262 = vrcp.f32 %v8804_v61  ;;  %11553 = vst [vmem:[#allocation45_spill] sm:$0xff] %v8853_v46  ;;  %vm2803_vm10 = vweird.f32 %v8804_v61 }
 0x558   :  { %3102 = vmatpush.msra.mxu1 %v8798_v45  ;;  %3142 = vmatpush.msra.mxu3 %v8801_v25 }
 0x559   :  { %v4261_v17 = vpop.eup %4260 }
 0x55a   :  { %3103 = vmatpush.msra.mxu1 %v8806_v6  ;;  %3143 = vmatpush.msra.mxu3 %v8809_v30  ;;  %v8812_v55 = vadd.f32 1.0, %v4261_v17  ;;  %v8860_v17 = vld [vmem:[#allocation5 + $0x2e0] sm:$0xff] }
 0x55b   :  { %11554 = vst [vmem:[#allocation50_spill] sm:$0xff] %v8860_v17 }
 0x55c   :  { %3104 = vmatpush.msra.mxu1 %v8814_v34  ;;  %3144 = vmatpush.msra.mxu3 %v8817_v40  ;;  %4264 = vrcp.f32 %v8812_v55  ;;  %v8880_v40 = vld [vmem:[#allocation5 + $0x280] sm:$0xff]  ;;  %vm2822_vm11 = vweird.f32 %v8812_v55 }
 0x55d   :  { %v8840_v44 = vpop.eup %4262  ;;  %11559 = vst [vmem:[#allocation51_spill] sm:$0xff] %v8880_v40 }
 0x55e   :  { %3105 = vmatpush.msra.mxu1 %v8821_v27  ;;  %3145 = vmatpush.msra.mxu3 %v8824_v59  ;;  %v2799_v63 = vmul.f32 %v8840_v44, %v8804_v61  ;;  %v8874_v59 = vld [vmem:[#allocation5 + $0x2a0] sm:$0xff]  ;;  %v2751_v27 = vpop.f32.mrf.mxu1  ;;  %vm2804_vm8 = vweird.f32 %v8840_v44 }
 0x55f   :  { %2973 = vmatmul.f32.vlgmr.msrb.gmra.mxu1 %v2631_v15  ;;  %3013 = vmatmul.f32.vlgmr.msrb.gmra.mxu3 %v2631_v15  ;;  %11557 = vst [vmem:[#allocation49_spill] sm:$0xff] %v8874_v59  ;;  %vm8914_vm12 = vmor %vm2803_vm10, %vm2804_vm8 }
 0x560   :  { %3106 = vmatpush.msra.mxu1 %v8828_v28  ;;  %3146 = vmatpush.msra.mxu3 %v8831_v36  ;;  %v2791_v36 = vpop.f32.mrf.mxu3  ;;  %v2800_v28 = vsub.f32 1.0, %v2799_v63 }
 0x562   :  { %3107 = vmatpush.msra.mxu1 %v8834_v3  ;;  %3147 = vmatpush.msra.mxu3 %v8837_v37  ;;  %v8848_v0 = vpop.eup %4264 }
 0x563   :  { %v2818_v15 = vmul.f32 %v8848_v0, %v8812_v55  ;;  %vm2823_vm9 = vweird.f32 %v8848_v0 }
 0x564   :  { %3108 = vmatpush.msra.mxu1 %v8842_v11  ;;  %3148 = vmatpush.msra.mxu3 %v8845_v1  ;;  %v8863_v1 = vld [vmem:[#allocation5 + $0x2e8] sm:$0xff]  ;;  %v8866_v11 = vld [vmem:[#allocation5 + $0x2c0] sm:$0xff]  ;;  %vm8928_vm13 = vmor %vm2822_vm11, %vm2823_vm9 }
 0x565   :  { %11555 = vst [vmem:[#allocation47_spill] sm:$0xff] %v8863_v1 }
 0x566   :  { %3109 = vmatpush.msra.mxu1 %v8850_v7  ;;  %3149 = vmatpush.msra.mxu3 %v8853_v46  ;;  %v2731_v2 = vpop.f32.mrf.mxu0  ;;  %11556 = vst [vmem:[#allocation52_spill] sm:$0xff] %v8866_v11  ;;  %v8869_v46 = vld [vmem:[#allocation5 + $0x2c8] sm:$0xff] }
 0x567   :  { %v2732_v37 = vadd.f32 %v2731_v2, %v11361_v19  ;;  %v8883_v2 = vld [vmem:[#allocation5 + $0x288] sm:$0xff]  ;;  %v8944_v19 = vld [vmem:[#allocation5 + $0x3d0] sm:$0xff] }
 0x568   :  { %3110 = vmatpush.msra.mxu1 %v8860_v17  ;;  %3150 = vmatpush.msra.mxu3 %v8863_v1  ;;  %v2819_v17 = vsub.f32 1.0, %v2818_v15  ;;  %v8877_v1 = vld [vmem:[#allocation5 + $0x2a8] sm:$0xff]  ;;  %11560 = vst [vmem:[#allocation56_spill] sm:$0xff] %v8883_v2 }
 0x569   :  { %11558 = vst [vmem:[#allocation54_spill] sm:$0xff] %v8877_v1 }
 0x56a   :  { %3111 = vmatpush.msra.mxu1 %v8866_v11  ;;  %3151 = vmatpush.msra.mxu3 %v8869_v46  ;;  %v2820_v15 = vmul.f32 %v8848_v0, %v2819_v17  ;;  %v2828_v17 = vand.u32 2147483648, %v8812_v55 }
 0x56c   :  { %v2771_v7 = vpop.f32.mrf.mxu2  ;;  %3112 = vmatpush.msra.mxu1 %v8874_v59  ;;  %3152 = vmatpush.msra.mxu3 %v8877_v1  ;;  %v2801_v59 = vmul.f32 %v8840_v44, %v2800_v28  ;;  %v2821_v28 = vadd.f32 %v8848_v0, %v2820_v15  ;;  %v2826_v15 = vand.u32 2147483647, %v8812_v55 }
 0x56d   :  { %v2772_v3 = vadd.f32 %v2771_v7, %v11362_v8  ;;  %v2752_v7 = vadd.f32 %v2751_v27, %v2732_v37  ;;  %v8888_v8 = vld [vmem:[#allocation5 + $0x260] sm:$0xff] }
 0x56e   :  { %3113 = vmatpush.msra.mxu1 %v8880_v40  ;;  %3153 = vmatpush.msra.mxu3 %v8883_v2  ;;  %11561 = vst [vmem:[#allocation53_spill] sm:$0xff] %v8888_v8  ;;  %v8897_v2 = vld [vmem:[#allocation5 + $0x248] sm:$0xff]  ;;  %v2802_v27 = vadd.f32 %v8840_v44, %v2801_v59  ;;  %v8904_v37 = vld [vmem:[#allocation5 + $0x220] sm:$0xff]  ;;  %v2829_v40 = vor.u32 1.1754944e-38, %v2828_v17  ;;  %vm2827_vm15 = vcmp.eq.f32.partialorder %v2826_v15, 8.507059e+37  ;;  %v8950_v59 = vld [vmem:[#allocation5 + $0x3b0] sm:$0xff] }
 0x56f   :  { %v2792_v11 = vadd.f32 %v2791_v36, %v2772_v3  ;;  %v8891_v36 = vld [vmem:[#allocation5 + $0x268] sm:$0xff]  ;;  %v8894_v3 = vld [vmem:[#allocation5 + $0x240] sm:$0xff]  ;;  %11564 = vst [vmem:[#allocation59_spill] sm:$0xff] %v8897_v2  ;;  %v8974_v15 = vld [vmem:[#allocation5 + $0x358] sm:$0xff] }
 0x570   :  { %3114 = vmatpush.msra.mxu1 %v8888_v8  ;;  %11562 = vst [vmem:[#allocation55_spill] sm:$0xff] %v8891_v36  ;;  %3154 = vmatpush.msra.mxu3 %v8891_v36  ;;  %v8932_v36 = vld [vmem:[#allocation5 + $0x3f0] sm:$0xff]  ;;  %v2806_v55 = vsel %vm8914_vm12, %v8840_v44, %v2802_v27 }
 0x571   :  { %v4069_v63 = vmul.f32 -1.442695, %v2792_v11  ;;  %11563 = vst [vmem:[#allocation63_spill] sm:$0xff] %v8894_v3  ;;  %v8907_v11 = vld [vmem:[#allocation5 + $0x228] sm:$0xff] }
 0x572   :  { %3115 = vmatpush.msra.mxu1 %v8894_v3  ;;  %3155 = vmatpush.msra.mxu3 %v8897_v2  ;;  %11565 = vst [vmem:[#allocation65_spill] sm:$0xff] %v8904_v37  ;;  %v8956_v3 = vld [vmem:[#allocation5 + $0x390] sm:$0xff] }
 0x573   :  { %4266 = vpow2.f32 %v4069_v63  ;;  %11566 = vst [vmem:[#allocation62_spill] sm:$0xff] %v8907_v11  ;;  %v2807_v63 = vand.u32 2147483647, %v8804_v61 }
 0x574   :  { %4268 = vtanh.f32 %v2752_v7  ;;  %3116 = vmatpush.msra.mxu1 %v8904_v37  ;;  %3156 = vmatpush.msra.mxu3 %v8907_v11  ;;  %v2809_v7 = vand.u32 2147483648, %v8804_v61  ;;  %v8920_v37 = vld [vmem:[#allocation5 + $0x200] sm:$0xff]  ;;  %v8923_v11 = vld [vmem:[#allocation5 + $0x208] sm:$0xff]  ;;  %11573 = vst [vmem:[#allocation69_spill] sm:$0xff] %v8932_v36  ;;  %v8935_v61 = vld [vmem:[#allocation5 + $0x3f8] sm:$0xff] }
 0x575   :  { %11569 = vst [vmem:[#allocation67_spill] sm:$0xff] %v8920_v37  ;;  %vm2808_vm14 = vcmp.eq.f32.partialorder %v2807_v63, 8.507059e+37  ;;  %v8971_v63 = vld [vmem:[#allocation5 + $0x350] sm:$0xff] }
 0x576   :  { %3117 = vmatpush.msra.mxu1 %v8920_v37  ;;  %11570 = vst [vmem:[#allocation64_spill] sm:$0xff] %v8923_v11  ;;  %3157 = vmatpush.msra.mxu3 %v8923_v11  ;;  %v2825_v11 = vsel %vm8928_vm13, %v8848_v0, %v2821_v28  ;;  %v2810_v1 = vor.u32 1.1754944e-38, %v2809_v7  ;;  %v8953_v0 = vld [vmem:[#allocation5 + $0x3b8] sm:$0xff] }
 0x577   :  { %v2830_v27 = vsel %vm2827_vm15, %v2829_v40, %v2825_v11  ;;  %v8959_v28 = vld [vmem:[#allocation5 + $0x398] sm:$0xff]  ;;  %v8963_v40 = vld [vmem:[#allocation5 + $0x370] sm:$0xff]  ;;  %11576 = vst [vmem:[#allocation68_spill] sm:$0xff] %v8971_v63 }
 0x578   :  { %3182 = vmatpush.msrb.mxu1 %v8932_v36  ;;  %3222 = vmatpush.msrb.mxu3 %v8935_v61  ;;  %v8947_v36 = vld [vmem:[#allocation5 + $0x3d8] sm:$0xff]  ;;  %v2811_v44 = vsel %vm2808_vm14, %v2810_v1, %v2806_v55  ;;  %v2852_v1 = vmul.f32 %v2830_v27, %v8437_v35  ;;  %11574 = vst [vmem:[#allocation66_spill] sm:$0xff] %v8963_v40  ;;  %v8977_v55 = vld [vmem:[#allocation5 + $0x330] sm:$0xff] }
 0x579   :  { %v4267_v2 = vpop.eup %4266  ;;  %v8966_v11 = vld [vmem:[#allocation5 + $0x378] sm:$0xff]  ;;  %11577 = vst [vmem:[#allocation73_spill] sm:$0xff] %v8974_v15 }
 0x57a   :  { %v2836_v37 = vadd.f32 1.0, %v4267_v2  ;;  %v4269_v8 = vpop.eup %4268  ;;  %3183 = vmatpush.msrb.mxu1 %v8944_v19  ;;  %3223 = vmatpush.msrb.mxu3 %v8947_v36  ;;  %11575 = vst [vmem:[#allocation71_spill] sm:$0xff] %v8966_v11 }
 0x57b   :  { %v2853_v2 = vmul.f32 %v4269_v8, %v2811_v44  ;;  %11578 = vst [vmem:[#allocation70_spill] sm:$0xff] %v8977_v55  ;;  %v8980_v44 = vld [vmem:[#allocation5 + $0x338] sm:$0xff] }
 0x57c   :  { %4270 = vrcp.f32 %v2836_v37  ;;  %3184 = vmatpush.msrb.mxu1 %v8950_v59  ;;  %3224 = vmatpush.msrb.mxu3 %v8953_v0  ;;  %11579 = vst [vmem:[#allocation75_spill] sm:$0xff] %v8980_v44  ;;  %v2848_v27 = vand.u32 2147483648, %v2836_v37  ;;  %vm2842_vm1 = vweird.f32 %v2836_v37 }
 0x57d   :  { %v8969_v8 = vadd.f32 %v2853_v2, %v2852_v1  ;;  %v2846_v1 = vand.u32 2147483647, %v2836_v37 }
 0x57e   :  { %3185 = vmatpush.msrb.mxu1 %v8956_v3  ;;  %3225 = vmatpush.msrb.mxu3 %v8959_v28 }
 0x57f   :  { %4272 = vtanh.f32 %v8969_v8  ;;  %vm2847_vm3 = vcmp.eq.f32.partialorder %v2846_v1, 8.507059e+37  ;;  %v9149_v1 = vld [vmem:[#allocation8 + $0x288] sm:$0xff] }
 0x580   :  { %3186 = vmatpush.msrb.mxu1 %v8963_v40  ;;  %3226 = vmatpush.msrb.mxu3 %v8966_v11  ;;  %v8996_v40 = vld [vmem:[#allocation5 + $0x2d0] sm:$0xff]  ;;  %11602 = vst [vmem:[#allocation134_spill] sm:$0xff] %v9149_v1 }
 0x582   :  { %v4271_v17 = vpop.eup %4270  ;;  %3187 = vmatpush.msrb.mxu1 %v8971_v63  ;;  %3227 = vmatpush.msrb.mxu3 %v8974_v15  ;;  %v8984_v63 = vld [vmem:[#allocation5 + $0x310] sm:$0xff]  ;;  %v8987_v15 = vld [vmem:[#allocation5 + $0x318] sm:$0xff] }
 0x583   :  { %v2838_v7 = vmul.f32 %v4271_v17, %v2836_v37  ;;  %vm2843_vm0 = vweird.f32 %v4271_v17  ;;  %11580 = vst [vmem:[#allocation72_spill] sm:$0xff] %v8984_v63 }
 0x584   :  { %3188 = vmatpush.msrb.mxu1 %v8977_v55  ;;  %3228 = vmatpush.msrb.mxu3 %v8980_v44  ;;  %11581 = vst [vmem:[#allocation77_spill] sm:$0xff] %v8987_v15  ;;  %v8990_v55 = vld [vmem:[#allocation5 + $0x2f0] sm:$0xff]  ;;  %v8993_v44 = vld [vmem:[#allocation5 + $0x2f8] sm:$0xff]  ;;  %vm2844_vm2 = vmor %vm2842_vm1, %vm2843_vm0 }
 0x585   :  { %v2839_v35 = vsub.f32 1.0, %v2838_v7  ;;  %11582 = vst [vmem:[#allocation118_spill] sm:$0xff] %v8990_v55  ;;  %v4273_v37 = vpop.eup %4272 }
 0x586   :  { %3189 = vmatpush.msrb.mxu1 %v8984_v63  ;;  %3229 = vmatpush.msrb.mxu3 %v8987_v15  ;;  %11583 = vst [vmem:[#allocation119_spill] sm:$0xff] %v8993_v44  ;;  %v8999_v63 = vld [vmem:[#allocation5 + $0x2d8] sm:$0xff] }
 0x587   :  { %v2840_v2 = vmul.f32 %v4271_v17, %v2839_v35  ;;  %v2849_v35 = vor.u32 1.1754944e-38, %v2848_v27  ;;  %v9019_v27 = vld [vmem:[#allocation5 + $0x270] sm:$0xff] }
 0x588   :  { %3190 = vmatpush.msrb.mxu1 %v8990_v55  ;;  %3230 = vmatpush.msrb.mxu3 %v8993_v44  ;;  %v9002_v55 = vld [vmem:[#allocation5 + $0x2b0] sm:$0xff]  ;;  %v9005_v44 = vld [vmem:[#allocation5 + $0x2b8] sm:$0xff] }
 0x589   :  { %v2841_v7 = vadd.f32 %v4271_v17, %v2840_v2 }
 0x58a   :  { %3191 = vmatpush.msrb.mxu1 %v8996_v40  ;;  %3231 = vmatpush.msrb.mxu3 %v8999_v63 }
 0x58b   :  { %v2845_v11 = vsel %vm2844_vm2, %v4271_v17, %v2841_v7  ;;  %v9015_v17 = vld [vmem:[#allocation5 + $0x298] sm:$0xff]  ;;  %v11603_v7 = vld [vmem:[#allocation109_spill] sm:$0xff] }
 0x58c   :  { %v2850_v2 = vsel %vm2847_vm3, %v2849_v35, %v2845_v11  ;;  %3192 = vmatpush.msrb.mxu1 %v9002_v55  ;;  %3232 = vmatpush.msrb.mxu3 %v9005_v44  ;;  %v9011_v11 = vld [vmem:[#allocation5 + $0x290] sm:$0xff]  ;;  %v11604_v35 = vld [vmem:[#allocation110_spill] sm:$0xff] }
 0x58d   :  { %v2856_v15 = vmul.f32 %v4273_v37, %v2850_v2  ;;  %v9154_v37 = vld [vmem:[#allocation8 + $0x260] sm:$0xff]  ;;  %v9157_v2 = vld [vmem:[#allocation8 + $0x268] sm:$0xff] }
 0x58e   :  { %3193 = vmatpush.msrb.mxu1 %v9011_v11  ;;  %3233 = vmatpush.msrb.mxu3 %v9015_v17  ;;  %11605 = vst [vmem:[#allocation135_spill] sm:$0xff] %v9154_v37 }
 0x58f   :  { %2873 = vmatmul.f32.vlgmr.msra.gmra.mxu0 %v2856_v15  ;;  %2913 = vmatmul.f32.vlgmr.msra.gmra.mxu2 %v2856_v15  ;;  %11606 = vst [vmem:[#allocation136_spill] sm:$0xff] %v9157_v2 }
 0x590   :  { %3082 = vmatpush.msra.mxu0 %v8454_v9  ;;  %3118 = vmatmul.f32.vlgmr.msra.gmra.mxu1 %v2856_v15  ;;  %v9023_v9 = vld [vmem:[#allocation5 + $0x278] sm:$0xff] }
 0x591   :  { %3122 = vmatpush.msra.mxu2 %v8457_v42  ;;  %3158 = vmatmul.f32.vlgmr.msra.gmra.mxu3 %v2856_v15  ;;  %v9027_v42 = vld [vmem:[#allocation5 + $0x250] sm:$0xff] }
 0x592   :  { %3083 = vmatpush.msra.mxu0 %v8460_v31  ;;  %3194 = vmatpush.msrb.mxu1 %v9019_v27  ;;  %v9031_v31 = vld [vmem:[#allocation5 + $0x258] sm:$0xff] }
 0x593   :  { %3123 = vmatpush.msra.mxu2 %v8464_v50  ;;  %3234 = vmatpush.msrb.mxu3 %v9023_v9  ;;  %v9036_v50 = vld [vmem:[#allocation5 + $0x230] sm:$0xff] }
 0x594   :  { %3084 = vmatpush.msra.mxu0 %v8468_v16  ;;  %3195 = vmatpush.msrb.mxu1 %v9027_v42  ;;  %v9039_v16 = vld [vmem:[#allocation5 + $0x238] sm:$0xff] }
 0x595   :  { %3124 = vmatpush.msra.mxu2 %v8472_v20  ;;  %3235 = vmatpush.msrb.mxu3 %v9031_v31  ;;  %v9044_v20 = vld [vmem:[#allocation5 + $0x210] sm:$0xff] }
 0x596   :  { %3085 = vmatpush.msra.mxu0 %v8476_v12  ;;  %3196 = vmatpush.msrb.mxu1 %v9036_v50  ;;  %v9047_v12 = vld [vmem:[#allocation5 + $0x218] sm:$0xff] }
 0x597   :  { %3125 = vmatpush.msra.mxu2 %v8480_v43  ;;  %2953 = vmatmul.f32.vlgmr.msrb.gmra.mxu0 %v2856_v15  ;;  %v9052_v43 = vld [vmem:[#allocation8 + $0x3e0] sm:$0xff] }
 0x598   :  { %2993 = vmatmul.f32.vlgmr.msrb.gmra.mxu2 %v2856_v15  ;;  %3086 = vmatpush.msra.mxu0 %v8483_v58  ;;  %v9055_v58 = vld [vmem:[#allocation8 + $0x3e8] sm:$0xff] }
 0x599   :  { %3126 = vmatpush.msra.mxu2 %v8486_v48  ;;  %3236 = vmatpush.msrb.mxu3 %v9039_v16  ;;  %v9060_v48 = vld [vmem:[#allocation8 + $0x3c0] sm:$0xff] }
 0x59a   :  { %3087 = vmatpush.msra.mxu0 %v8490_v21  ;;  %3197 = vmatpush.msrb.mxu1 %v9044_v20  ;;  %v9063_v21 = vld [vmem:[#allocation8 + $0x3c8] sm:$0xff] }
 0x59b   :  { %3127 = vmatpush.msra.mxu2 %v8494_v18  ;;  %3237 = vmatpush.msrb.mxu3 %v9047_v12  ;;  %v9068_v18 = vld [vmem:[#allocation8 + $0x3a0] sm:$0xff] }
 0x59c   :  { %3198 = vmatmul.f32.vlgmr.msrb.gmra.mxu1 %v2856_v15  ;;  %3238 = vmatmul.f32.vlgmr.msrb.gmra.mxu3 %v2856_v15  ;;  %v9146_v15 = vld [vmem:[#allocation8 + $0x280] sm:$0xff] }
 0x59d   :  { %3088 = vmatpush.msra.mxu0 %v8498_v14  ;;  %3128 = vmatpush.msra.mxu2 %v8501_v47  ;;  %v9071_v14 = vld [vmem:[#allocation8 + $0x3a8] sm:$0xff]  ;;  %v9076_v47 = vld [vmem:[#allocation8 + $0x380] sm:$0xff]  ;;  %11601 = vst [vmem:[#allocation133_spill] sm:$0xff] %v9146_v15 }
 0x59e   :  { %3325 = vmatpush.msra.mxu1 %v9052_v43  ;;  %3365 = vmatpush.msra.mxu3 %v9055_v58 }
 0x59f   :  { %3089 = vmatpush.msra.mxu0 %v8506_v56  ;;  %3129 = vmatpush.msra.mxu2 %v8509_v24  ;;  %v9079_v56 = vld [vmem:[#allocation8 + $0x388] sm:$0xff]  ;;  %v9084_v24 = vld [vmem:[#allocation8 + $0x360] sm:$0xff] }
 0x5a0   :  { %3326 = vmatpush.msra.mxu1 %v9060_v48  ;;  %3366 = vmatpush.msra.mxu3 %v9063_v21 }
 0x5a1   :  { %3090 = vmatpush.msra.mxu0 %v8514_v32  ;;  %3130 = vmatpush.msra.mxu2 %v8517_v39  ;;  %v9087_v32 = vld [vmem:[#allocation8 + $0x368] sm:$0xff]  ;;  %v9092_v39 = vld [vmem:[#allocation8 + $0x340] sm:$0xff] }
 0x5a2   :  { %3327 = vmatpush.msra.mxu1 %v9068_v18  ;;  %3367 = vmatpush.msra.mxu3 %v9071_v14  ;;  %11584 = vst [vmem:[#allocation120_spill] sm:$0xff] %v9087_v32 }
 0x5a3   :  { %3091 = vmatpush.msra.mxu0 %v8522_v51  ;;  %3131 = vmatpush.msra.mxu2 %v8525_v57  ;;  %11585 = vst [vmem:[#allocation121_spill] sm:$0xff] %v9092_v39  ;;  %v9095_v51 = vld [vmem:[#allocation8 + $0x348] sm:$0xff]  ;;  %v9100_v57 = vld [vmem:[#allocation8 + $0x320] sm:$0xff] }
 0x5a4   :  { %3328 = vmatpush.msra.mxu1 %v9076_v47  ;;  %3368 = vmatpush.msra.mxu3 %v9079_v56  ;;  %11586 = vst [vmem:[#allocation122_spill] sm:$0xff] %v9095_v51 }
 0x5a5   :  { %3092 = vmatpush.msra.mxu0 %v8530_v53  ;;  %3132 = vmatpush.msra.mxu2 %v8533_v23  ;;  %11587 = vst [vmem:[#allocation123_spill] sm:$0xff] %v9100_v57  ;;  %v9103_v53 = vld [vmem:[#allocation8 + $0x328] sm:$0xff]  ;;  %v9108_v23 = vld [vmem:[#allocation8 + $0x300] sm:$0xff] }
 0x5a6   :  { %3329 = vmatpush.msra.mxu1 %v9084_v24  ;;  %3369 = vmatpush.msra.mxu3 %v9087_v32  ;;  %11588 = vst [vmem:[#allocation124_spill] sm:$0xff] %v9103_v53 }
 0x5a7   :  { %3093 = vmatpush.msra.mxu0 %v8538_v22  ;;  %3133 = vmatpush.msra.mxu2 %v8541_v29  ;;  %11589 = vst [vmem:[#allocation125_spill] sm:$0xff] %v9108_v23  ;;  %v9111_v22 = vld [vmem:[#allocation8 + $0x308] sm:$0xff] }
 0x5a8   :  { %3330 = vmatpush.msra.mxu1 %v9092_v39  ;;  %3370 = vmatpush.msra.mxu3 %v9095_v51  ;;  %11590 = vst [vmem:[#allocation126_spill] sm:$0xff] %v9111_v22  ;;  %v9116_v29 = vld [vmem:[#allocation2 + $0x30] sm:$0xff] }
 0x5a9   :  { %3094 = vmatpush.msra.mxu0 %v8546_v41  ;;  %3134 = vmatpush.msra.mxu2 %v8549_v5  ;;  %v9118_v41 = vld [vmem:[#allocation8 + $0x2e0] sm:$0xff]  ;;  %v9121_v5 = vld [vmem:[#allocation8 + $0x2e8] sm:$0xff] }
 0x5aa   :  { %3331 = vmatpush.msra.mxu1 %v9100_v57  ;;  %3371 = vmatpush.msra.mxu3 %v9103_v53  ;;  %11591 = vst [vmem:[#allocation127_spill] sm:$0xff] %v9118_v41 }
 0x5ab   :  { %3095 = vmatpush.msra.mxu0 %v8554_v49  ;;  %3135 = vmatpush.msra.mxu2 %v8557_v26  ;;  %11592 = vst [vmem:[#allocation128_spill] sm:$0xff] %v9121_v5  ;;  %v9130_v49 = vld [vmem:[#allocation8 + $0x2c0] sm:$0xff]  ;;  %v9133_v26 = vld [vmem:[#allocation8 + $0x2c8] sm:$0xff] }
 0x5ac   :  { %3332 = vmatpush.msra.mxu1 %v9108_v23  ;;  %3372 = vmatpush.msra.mxu3 %v9111_v22  ;;  %11593 = vst [vmem:[#allocation129_spill] sm:$0xff] %v9130_v49 }
 0x5ad   :  { %3096 = vmatpush.msra.mxu0 %v8562_v13  ;;  %3136 = vmatpush.msra.mxu2 %v8565_v38  ;;  %11594 = vst [vmem:[#allocation130_spill] sm:$0xff] %v9133_v26  ;;  %v11595_v13 = vld [vmem:[#allocation103_spill] sm:$0xff]  ;;  %v11596_v38 = vld [vmem:[#allocation104_spill] sm:$0xff] }
 0x5ae   :  { %3333 = vmatpush.msra.mxu1 %v9118_v41  ;;  %3373 = vmatpush.msra.mxu3 %v9121_v5 }
 0x5af   :  { %3097 = vmatpush.msra.mxu0 %v8572_v33  ;;  %3137 = vmatpush.msra.mxu2 %v8575_v54  ;;  %v9138_v33 = vld [vmem:[#allocation8 + $0x2a0] sm:$0xff]  ;;  %v9141_v54 = vld [vmem:[#allocation8 + $0x2a8] sm:$0xff] }
 0x5b0   :  { %3098 = vmatmul.f32.vlgmr.msra.gmra.mxu0 %v9116_v29  ;;  %3138 = vmatmul.f32.vlgmr.msra.gmra.mxu2 %v9116_v29  ;;  %11597 = vst [vmem:[#allocation131_spill] sm:$0xff] %v9138_v33 }
 0x5b1   :  { %3162 = vmatpush.msrb.mxu0 %v8580_v52  ;;  %3202 = vmatpush.msrb.mxu2 %v8583_v10  ;;  %11598 = vst [vmem:[#allocation132_spill] sm:$0xff] %v9141_v54  ;;  %v11599_v52 = vld [vmem:[#allocation107_spill] sm:$0xff]  ;;  %v11600_v10 = vld [vmem:[#allocation108_spill] sm:$0xff] }
 0x5b2   :  { %3334 = vmatpush.msra.mxu1 %v9130_v49  ;;  %3374 = vmatpush.msra.mxu3 %v9133_v26 }
 0x5b3   :  { %3163 = vmatpush.msrb.mxu0 %v11595_v13  ;;  %3203 = vmatpush.msrb.mxu2 %v11596_v38  ;;  %v11607_v13 = vld [vmem:[#allocation111_spill] sm:$0xff]  ;;  %v11608_v38 = vld [vmem:[#allocation112_spill] sm:$0xff] }
 0x5b4   :  { %3335 = vmatpush.msra.mxu1 %v9138_v33  ;;  %3375 = vmatpush.msra.mxu3 %v9141_v54 }
 0x5b5   :  { %3164 = vmatpush.msrb.mxu0 %v11599_v52  ;;  %3204 = vmatpush.msrb.mxu2 %v11600_v10  ;;  %v9162_v52 = vld [vmem:[#allocation8 + $0x240] sm:$0xff]  ;;  %v9165_v10 = vld [vmem:[#allocation8 + $0x248] sm:$0xff] }
 0x5b6   :  { %3336 = vmatpush.msra.mxu1 %v9146_v15  ;;  %3376 = vmatpush.msra.mxu3 %v9149_v1  ;;  %11609 = vst [vmem:[#allocation137_spill] sm:$0xff] %v9162_v52  ;;  %v9487_v1 = vld [vmem:[#allocation8 + $0x10] sm:$0xff] }
 0x5b7   :  { %3165 = vmatpush.msrb.mxu0 %v11603_v7  ;;  %3205 = vmatpush.msrb.mxu2 %v11604_v35  ;;  %11610 = vst [vmem:[#allocation138_spill] sm:$0xff] %v9165_v10  ;;  %v11611_v7 = vld [vmem:[#allocation113_spill] sm:$0xff]  ;;  %v11612_v35 = vld [vmem:[#allocation114_spill] sm:$0xff] }
 0x5b8   :  { %3337 = vmatpush.msra.mxu1 %v9154_v37  ;;  %3377 = vmatpush.msra.mxu3 %v9157_v2  ;;  %v9170_v37 = vld [vmem:[#allocation8 + $0x220] sm:$0xff]  ;;  %v9173_v2 = vld [vmem:[#allocation8 + $0x228] sm:$0xff] }
 0x5b9   :  { %3166 = vmatpush.msrb.mxu0 %v11607_v13  ;;  %3206 = vmatpush.msrb.mxu2 %v11608_v38  ;;  %11613 = vst [vmem:[#allocation139_spill] sm:$0xff] %v9170_v37  ;;  %v11615_v13 = vld [vmem:[#allocation117_spill] sm:$0xff]  ;;  %v11616_v38 = vld [vmem:[#allocation19_spill] sm:$0xff] }
 0x5ba   :  { %3338 = vmatpush.msra.mxu1 %v9162_v52  ;;  %3378 = vmatpush.msra.mxu3 %v9165_v10  ;;  %11614 = vst [vmem:[#allocation140_spill] sm:$0xff] %v9173_v2  ;;  %v9178_v52 = vld [vmem:[#allocation8 + $0x200] sm:$0xff]  ;;  %v9181_v10 = vld [vmem:[#allocation8 + $0x208] sm:$0xff] }
 0x5bb   :  { %3167 = vmatpush.msrb.mxu0 %v11611_v7  ;;  %3207 = vmatpush.msrb.mxu2 %v11612_v35  ;;  %11617 = vst [vmem:[#allocation141_spill] sm:$0xff] %v9178_v52  ;;  %v11619_v7 = vld [vmem:[#allocation106_spill] sm:$0xff] }
 0x5bc   :  { %3339 = vmatpush.msra.mxu1 %v9170_v37  ;;  %3379 = vmatpush.msra.mxu3 %v9173_v2  ;;  %11618 = vst [vmem:[#allocation142_spill] sm:$0xff] %v9181_v10  ;;  %v11620_v35 = vld [vmem:[#allocation22_spill] sm:$0xff]  ;;  %v9186_v37 = vld [vmem:[#allocation8 + $0x3f0] sm:$0xff]  ;;  %v9189_v2 = vld [vmem:[#allocation8 + $0x3f8] sm:$0xff] }
 0x5bd   :  { %3168 = vmatpush.msrb.mxu0 %v11615_v13  ;;  %3208 = vmatpush.msrb.mxu2 %v11616_v38  ;;  %11621 = vst [vmem:[#allocation143_spill] sm:$0xff] %v9186_v37  ;;  %v11623_v13 = vld [vmem:[#allocation20_spill] sm:$0xff]  ;;  %v11624_v38 = vld [vmem:[#allocation21_spill] sm:$0xff] }
 0x5be   :  { %3340 = vmatpush.msra.mxu1 %v9178_v52  ;;  %3380 = vmatpush.msra.mxu3 %v9181_v10  ;;  %11622 = vst [vmem:[#allocation144_spill] sm:$0xff] %v9189_v2  ;;  %v9194_v52 = vld [vmem:[#allocation8 + $0x3d0] sm:$0xff]  ;;  %v9197_v10 = vld [vmem:[#allocation8 + $0x3d8] sm:$0xff] }
 0x5bf   :  { %3169 = vmatpush.msrb.mxu0 %v11619_v7  ;;  %3209 = vmatpush.msrb.mxu2 %v11620_v35  ;;  %11625 = vst [vmem:[#allocation145_spill] sm:$0xff] %v9194_v52  ;;  %v11627_v7 = vld [vmem:[#allocation23_spill] sm:$0xff]  ;;  %v11628_v35 = vld [vmem:[#allocation26_spill] sm:$0xff] }
 0x5c0   :  { %3405 = vmatpush.msrb.mxu1 %v9186_v37  ;;  %3445 = vmatpush.msrb.mxu3 %v9189_v2  ;;  %11626 = vst [vmem:[#allocation146_spill] sm:$0xff] %v9197_v10  ;;  %v9202_v37 = vld [vmem:[#allocation8 + $0x3b0] sm:$0xff]  ;;  %v9205_v2 = vld [vmem:[#allocation8 + $0x3b8] sm:$0xff] }
 0x5c1   :  { %3170 = vmatpush.msrb.mxu0 %v11623_v13  ;;  %3210 = vmatpush.msrb.mxu2 %v11624_v38  ;;  %11629 = vst [vmem:[#allocation147_spill] sm:$0xff] %v9202_v37  ;;  %v11631_v13 = vld [vmem:[#allocation24_spill] sm:$0xff] }
 0x5c2   :  { %3406 = vmatpush.msrb.mxu1 %v9194_v52  ;;  %3446 = vmatpush.msrb.mxu3 %v9197_v10  ;;  %11630 = vst [vmem:[#allocation148_spill] sm:$0xff] %v9205_v2  ;;  %v11632_v38 = vld [vmem:[#allocation28_spill] sm:$0xff] }
 0x5c3   :  { %3171 = vmatpush.msrb.mxu0 %v11627_v7  ;;  %3211 = vmatpush.msrb.mxu2 %v11628_v35  ;;  %v9210_v52 = vld [vmem:[#allocation8 + $0x390] sm:$0xff]  ;;  %v9213_v10 = vld [vmem:[#allocation8 + $0x398] sm:$0xff]  ;;  %v11636_v35 = vld [vmem:[#allocation30_spill] sm:$0xff] }
 0x5c4   :  { %3407 = vmatpush.msrb.mxu1 %v9202_v37  ;;  %3447 = vmatpush.msrb.mxu3 %v9205_v2  ;;  %11633 = vst [vmem:[#allocation149_spill] sm:$0xff] %v9210_v52  ;;  %v11635_v7 = vld [vmem:[#allocation25_spill] sm:$0xff]  ;;  %v9218_v37 = vld [vmem:[#allocation8 + $0x370] sm:$0xff] }
 0x5c5   :  { %3172 = vmatpush.msrb.mxu0 %v11631_v13  ;;  %3212 = vmatpush.msrb.mxu2 %v11632_v38  ;;  %11634 = vst [vmem:[#allocation150_spill] sm:$0xff] %v9213_v10  ;;  %v9221_v2 = vld [vmem:[#allocation8 + $0x378] sm:$0xff]  ;;  %v11639_v13 = vld [vmem:[#allocation27_spill] sm:$0xff] }
 0x5c6   :  { %3408 = vmatpush.msrb.mxu1 %v9210_v52  ;;  %3448 = vmatpush.msrb.mxu3 %v9213_v10  ;;  %11637 = vst [vmem:[#allocation151_spill] sm:$0xff] %v9218_v37  ;;  %v11640_v38 = vld [vmem:[#allocation32_spill] sm:$0xff] }
 0x5c7   :  { %3173 = vmatpush.msrb.mxu0 %v11635_v7  ;;  %3213 = vmatpush.msrb.mxu2 %v11636_v35  ;;  %11638 = vst [vmem:[#allocation152_spill] sm:$0xff] %v9221_v2  ;;  %v9226_v52 = vld [vmem:[#allocation8 + $0x350] sm:$0xff]  ;;  %v9229_v10 = vld [vmem:[#allocation8 + $0x358] sm:$0xff]  ;;  %v11644_v35 = vld [vmem:[#allocation34_spill] sm:$0xff] }
 0x5c8   :  { %3409 = vmatpush.msrb.mxu1 %v9218_v37  ;;  %3449 = vmatpush.msrb.mxu3 %v9221_v2  ;;  %11641 = vst [vmem:[#allocation153_spill] sm:$0xff] %v9226_v52  ;;  %v11643_v7 = vld [vmem:[#allocation29_spill] sm:$0xff]  ;;  %v9234_v37 = vld [vmem:[#allocation8 + $0x330] sm:$0xff] }
 0x5c9   :  { %3174 = vmatpush.msrb.mxu0 %v11639_v13  ;;  %3214 = vmatpush.msrb.mxu2 %v11640_v38  ;;  %11642 = vst [vmem:[#allocation154_spill] sm:$0xff] %v9229_v10  ;;  %v9237_v2 = vld [vmem:[#allocation8 + $0x338] sm:$0xff]  ;;  %v11647_v13 = vld [vmem:[#allocation31_spill] sm:$0xff] }
 0x5ca   :  { %3410 = vmatpush.msrb.mxu1 %v9226_v52  ;;  %3450 = vmatpush.msrb.mxu3 %v9229_v10  ;;  %11645 = vst [vmem:[#allocation155_spill] sm:$0xff] %v9234_v37  ;;  %v11648_v38 = vld [vmem:[#allocation36_spill] sm:$0xff] }
 0x5cb   :  { %3175 = vmatpush.msrb.mxu0 %v11643_v7  ;;  %3215 = vmatpush.msrb.mxu2 %v11644_v35  ;;  %11646 = vst [vmem:[#allocation156_spill] sm:$0xff] %v9237_v2  ;;  %v9242_v52 = vld [vmem:[#allocation8 + $0x310] sm:$0xff]  ;;  %v9245_v10 = vld [vmem:[#allocation8 + $0x318] sm:$0xff]  ;;  %v11652_v35 = vld [vmem:[#allocation38_spill] sm:$0xff] }
 0x5cc   :  { %3411 = vmatpush.msrb.mxu1 %v9234_v37  ;;  %3451 = vmatpush.msrb.mxu3 %v9237_v2  ;;  %11649 = vst [vmem:[#allocation157_spill] sm:$0xff] %v9242_v52  ;;  %v11651_v7 = vld [vmem:[#allocation33_spill] sm:$0xff]  ;;  %v9252_v2 = vld [vmem:[#allocation8 + $0x2f0] sm:$0xff] }
 0x5cd   :  { %3176 = vmatpush.msrb.mxu0 %v11647_v13  ;;  %3216 = vmatpush.msrb.mxu2 %v11648_v38  ;;  %11650 = vst [vmem:[#allocation158_spill] sm:$0xff] %v9245_v10  ;;  %v9255_v13 = vld [vmem:[#allocation8 + $0x2f8] sm:$0xff]  ;;  %v9258_v38 = vld [vmem:[#allocation8 + $0x1e0] sm:$0xff]  ;;  %v9481_v37 = vld [vmem:[#allocation8 + $0x30] sm:$0xff] }
 0x5ce   :  { %3412 = vmatpush.msrb.mxu1 %v9242_v52  ;;  %3452 = vmatpush.msrb.mxu3 %v9245_v10  ;;  %11653 = vst [vmem:[#allocation159_spill] sm:$0xff] %v9252_v2  ;;  %v9261_v10 = vld [vmem:[#allocation8 + $0x1e8] sm:$0xff] }
 0x5cf   :  { %3177 = vmatpush.msrb.mxu0 %v11651_v7  ;;  %3217 = vmatpush.msrb.mxu2 %v11652_v35  ;;  %11654 = vst [vmem:[#allocation160_spill] sm:$0xff] %v9255_v13  ;;  %v9264_v7 = vld [vmem:[#allocation8 + $0x2d0] sm:$0xff]  ;;  %v9270_v35 = vld [vmem:[#allocation8 + $0x1c0] sm:$0xff] }
 0x5d0   :  { %3178 = vmatmul.f32.vlgmr.msrb.gmra.mxu0 %v9116_v29  ;;  %3218 = vmatmul.f32.vlgmr.msrb.gmra.mxu2 %v9116_v29  ;;  %11655 = vst [vmem:[#allocation161_spill] sm:$0xff] %v9258_v38  ;;  %v9267_v29 = vld [vmem:[#allocation8 + $0x2d8] sm:$0xff] }
 0x5d1   :  { %3413 = vmatpush.msrb.mxu1 %v9252_v2  ;;  %3453 = vmatpush.msrb.mxu3 %v9255_v13  ;;  %11656 = vst [vmem:[#allocation162_spill] sm:$0xff] %v9261_v10  ;;  %v9273_v13 = vld [vmem:[#allocation8 + $0x1c8] sm:$0xff]  ;;  %v9474_v2 = vld [vmem:[#allocation8 + $0x50] sm:$0xff] }
 0x5d2   :  { %3305 = vmatpush.msra.mxu0 %v9258_v38  ;;  %3345 = vmatpush.msra.mxu2 %v9261_v10  ;;  %11657 = vst [vmem:[#allocation163_spill] sm:$0xff] %v9264_v7  ;;  %v9276_v38 = vld [vmem:[#allocation8 + $0x2b0] sm:$0xff]  ;;  %v9279_v10 = vld [vmem:[#allocation8 + $0x2b8] sm:$0xff] }
 0x5d3   :  { %3414 = vmatpush.msrb.mxu1 %v9264_v7  ;;  %11658 = vst [vmem:[#allocation164_spill] sm:$0xff] %v9267_v29  ;;  %3454 = vmatpush.msrb.mxu3 %v9267_v29  ;;  %v9282_v7 = vld [vmem:[#allocation8 + $0x1a0] sm:$0xff]  ;;  %v9285_v29 = vld [vmem:[#allocation8 + $0x1a8] sm:$0xff] }
 0x5d4   :  { %11659 = vst [vmem:[#allocation165_spill] sm:$0xff] %v9270_v35  ;;  %3306 = vmatpush.msra.mxu0 %v9270_v35  ;;  %3346 = vmatpush.msra.mxu2 %v9273_v13  ;;  %v9288_v35 = vld [vmem:[#allocation8 + $0x290] sm:$0xff] }
 0x5d5   :  { %11660 = vst [vmem:[#allocation166_spill] sm:$0xff] %v9273_v13  ;;  %3415 = vmatpush.msrb.mxu1 %v9276_v38  ;;  %3455 = vmatpush.msrb.mxu3 %v9279_v10  ;;  %v9291_v13 = vld [vmem:[#allocation8 + $0x298] sm:$0xff] }
 0x5d6   :  { %11661 = vst [vmem:[#allocation167_spill] sm:$0xff] %v9276_v38  ;;  %3307 = vmatpush.msra.mxu0 %v9282_v7  ;;  %3347 = vmatpush.msra.mxu2 %v9285_v29  ;;  %v9294_v38 = vld [vmem:[#allocation8 + $0x180] sm:$0xff] }
 0x5d7   :  { %11662 = vst [vmem:[#allocation168_spill] sm:$0xff] %v9279_v10  ;;  %3416 = vmatpush.msrb.mxu1 %v9288_v35  ;;  %3456 = vmatpush.msrb.mxu3 %v9291_v13  ;;  %v9297_v10 = vld [vmem:[#allocation8 + $0x188] sm:$0xff] }
 0x5d8   :  { %11663 = vst [vmem:[#allocation169_spill] sm:$0xff] %v9282_v7  ;;  %3308 = vmatpush.msra.mxu0 %v9294_v38  ;;  %3348 = vmatpush.msra.mxu2 %v9297_v10  ;;  %v9300_v7 = vld [vmem:[#allocation8 + $0x270] sm:$0xff] }
 0x5d9   :  { %11664 = vst [vmem:[#allocation170_spill] sm:$0xff] %v9285_v29  ;;  %3417 = vmatpush.msrb.mxu1 %v9300_v7  ;;  %v9303_v29 = vld [vmem:[#allocation8 + $0x278] sm:$0xff] }
 0x5da   :  { %11665 = vst [vmem:[#allocation171_spill] sm:$0xff] %v9288_v35  ;;  %3457 = vmatpush.msrb.mxu3 %v9303_v29  ;;  %v9306_v35 = vld [vmem:[#allocation8 + $0x160] sm:$0xff]  ;;  %v2934_v54 = vpop.f32.mrf.mxu3 }
 0x5db   :  { %11666 = vst [vmem:[#allocation172_spill] sm:$0xff] %v9291_v13  ;;  %3309 = vmatpush.msra.mxu0 %v9306_v35  ;;  %v9309_v13 = vld [vmem:[#allocation8 + $0x168] sm:$0xff] }
 0x5dc   :  { %11667 = vst [vmem:[#allocation173_spill] sm:$0xff] %v9294_v38  ;;  %3349 = vmatpush.msra.mxu2 %v9309_v13  ;;  %v9312_v38 = vld [vmem:[#allocation8 + $0x250] sm:$0xff] }
 0x5dd   :  { %11668 = vst [vmem:[#allocation174_spill] sm:$0xff] %v9297_v10  ;;  %3418 = vmatpush.msrb.mxu1 %v9312_v38  ;;  %v9315_v10 = vld [vmem:[#allocation8 + $0x258] sm:$0xff] }
 0x5de   :  { %11669 = vst [vmem:[#allocation175_spill] sm:$0xff] %v9300_v7  ;;  %3458 = vmatpush.msrb.mxu3 %v9315_v10  ;;  %v9318_v7 = vld [vmem:[#allocation8 + $0x140] sm:$0xff] }
 0x5df   :  { %11670 = vst [vmem:[#allocation176_spill] sm:$0xff] %v9303_v29  ;;  %3310 = vmatpush.msra.mxu0 %v9318_v7  ;;  %v9321_v29 = vld [vmem:[#allocation8 + $0x148] sm:$0xff] }
 0x5e0   :  { %11671 = vst [vmem:[#allocation177_spill] sm:$0xff] %v9306_v35  ;;  %3350 = vmatpush.msra.mxu2 %v9321_v29  ;;  %v9324_v35 = vld [vmem:[#allocation8 + $0x230] sm:$0xff] }
 0x5e1   :  { %11672 = vst [vmem:[#allocation178_spill] sm:$0xff] %v9309_v13  ;;  %3419 = vmatpush.msrb.mxu1 %v9324_v35  ;;  %v9327_v13 = vld [vmem:[#allocation8 + $0x238] sm:$0xff] }
 0x5e2   :  { %11673 = vst [vmem:[#allocation179_spill] sm:$0xff] %v9312_v38  ;;  %3459 = vmatpush.msrb.mxu3 %v9327_v13  ;;  %v9330_v38 = vld [vmem:[#allocation8 + $0x120] sm:$0xff] }
 0x5e3   :  { %11674 = vst [vmem:[#allocation180_spill] sm:$0xff] %v9315_v10  ;;  %3311 = vmatpush.msra.mxu0 %v9330_v38  ;;  %v9333_v10 = vld [vmem:[#allocation8 + $0x128] sm:$0xff] }
 0x5e4   :  { %11675 = vst [vmem:[#allocation181_spill] sm:$0xff] %v9318_v7  ;;  %3351 = vmatpush.msra.mxu2 %v9333_v10  ;;  %v9336_v7 = vld [vmem:[#allocation8 + $0x210] sm:$0xff] }
 0x5e5   :  { %11676 = vst [vmem:[#allocation182_spill] sm:$0xff] %v9321_v29  ;;  %3420 = vmatpush.msrb.mxu1 %v9336_v7  ;;  %v9339_v29 = vld [vmem:[#allocation8 + $0x218] sm:$0xff] }
 0x5e6   :  { %11677 = vst [vmem:[#allocation183_spill] sm:$0xff] %v9324_v35  ;;  %3460 = vmatpush.msrb.mxu3 %v9339_v29  ;;  %v9342_v35 = vld [vmem:[#allocation8 + $0x100] sm:$0xff] }
 0x5e7   :  { %11678 = vst [vmem:[#allocation105_spill] sm:$0xff] %v9327_v13  ;;  %3312 = vmatpush.msra.mxu0 %v9342_v35  ;;  %v9345_v13 = vld [vmem:[#allocation8 + $0x108] sm:$0xff] }
 0x5e8   :  { %11679 = vst [vmem:[#allocation78_spill] sm:$0xff] %v9330_v38  ;;  %3352 = vmatpush.msra.mxu2 %v9345_v13  ;;  %v9348_v38 = vld [vmem:[#allocation8 + $0xe0] sm:$0xff] }
 0x5e9   :  { %11680 = vst [vmem:[#allocation80_spill] sm:$0xff] %v9333_v10  ;;  %3313 = vmatpush.msra.mxu0 %v9348_v38  ;;  %v9351_v10 = vld [vmem:[#allocation8 + $0xe8] sm:$0xff] }
 0x5ea   :  { %11681 = vst [vmem:[#allocation84_spill] sm:$0xff] %v9336_v7  ;;  %3353 = vmatpush.msra.mxu2 %v9351_v10  ;;  %v9354_v7 = vld [vmem:[#allocation8 + $0xc0] sm:$0xff] }
 0x5eb   :  { %11682 = vst [vmem:[#allocation82_spill] sm:$0xff] %v9339_v29  ;;  %3314 = vmatpush.msra.mxu0 %v9354_v7  ;;  %v9357_v29 = vld [vmem:[#allocation8 + $0xc8] sm:$0xff] }
 0x5ec   :  { %11683 = vst [vmem:[#allocation86_spill] sm:$0xff] %v9342_v35  ;;  %3354 = vmatpush.msra.mxu2 %v9357_v29  ;;  %v9360_v35 = vld [vmem:[#allocation8 + $0xa0] sm:$0xff] }
 0x5ed   :  { %11684 = vst [vmem:[#allocation83_spill] sm:$0xff] %v9345_v13  ;;  %3315 = vmatpush.msra.mxu0 %v9360_v35  ;;  %v9363_v13 = vld [vmem:[#allocation8 + $0xa8] sm:$0xff] }
 0x5ee   :  { %11685 = vst [vmem:[#allocation88_spill] sm:$0xff] %v9348_v38  ;;  %3355 = vmatpush.msra.mxu2 %v9363_v13  ;;  %v9366_v38 = vld [vmem:[#allocation8 + $0x80] sm:$0xff] }
 0x5ef   :  { %11686 = vst [vmem:[#allocation57_spill] sm:$0xff] %v9351_v10  ;;  %3316 = vmatpush.msra.mxu0 %v9366_v38  ;;  %v9369_v10 = vld [vmem:[#allocation8 + $0x88] sm:$0xff] }
 0x5f0   :  { %11687 = vst [vmem:[#allocation58_spill] sm:$0xff] %v9354_v7  ;;  %3356 = vmatpush.msra.mxu2 %v9369_v10  ;;  %v9372_v7 = vld [vmem:[#allocation8 + $0x60] sm:$0xff] }
 0x5f1   :  { %11688 = vst [vmem:[#allocation85_spill] sm:$0xff] %v9357_v29  ;;  %3317 = vmatpush.msra.mxu0 %v9372_v7  ;;  %v9375_v29 = vld [vmem:[#allocation8 + $0x68] sm:$0xff] }
 0x5f2   :  { %11689 = vst [vmem:[#allocation60_spill] sm:$0xff] %v9360_v35  ;;  %3357 = vmatpush.msra.mxu2 %v9375_v29  ;;  %v9378_v35 = vld [vmem:[#allocation8 + $0x40] sm:$0xff] }
 0x5f3   :  { %11690 = vst [vmem:[#allocation89_spill] sm:$0xff] %v9363_v13  ;;  %3318 = vmatpush.msra.mxu0 %v9378_v35  ;;  %v9381_v13 = vld [vmem:[#allocation8 + $0x48] sm:$0xff] }
 0x5f4   :  { %11691 = vst [vmem:[#allocation61_spill] sm:$0xff] %v9366_v38  ;;  %3358 = vmatpush.msra.mxu2 %v9381_v13  ;;  %v9384_v38 = vld [vmem:[#allocation8 + $0x20] sm:$0xff] }
 0x5f5   :  { %11692 = vst [vmem:[#allocation87_spill] sm:$0xff] %v9369_v10  ;;  %3319 = vmatpush.msra.mxu0 %v9384_v38  ;;  %v9387_v10 = vld [vmem:[#allocation8 + $0x28] sm:$0xff] }
 0x5f6   :  { %11693 = vst [vmem:[#allocation90_spill] sm:$0xff] %v9372_v7  ;;  %3359 = vmatpush.msra.mxu2 %v9387_v10  ;;  %v9390_v7 = vld [vmem:[#allocation8] sm:$0xff] }
 0x5f7   :  { %11694 = vst [vmem:[#allocation92_spill] sm:$0xff] %v9375_v29  ;;  %3320 = vmatpush.msra.mxu0 %v9390_v7  ;;  %v9393_v29 = vld [vmem:[#allocation8 + $0x8] sm:$0xff] }
 0x5f8   :  { %11695 = vst [vmem:[#allocation91_spill] sm:$0xff] %v9378_v35  ;;  %3360 = vmatpush.msra.mxu2 %v9393_v29  ;;  %v9396_v35 = vld [vmem:[#allocation8 + $0x1f0] sm:$0xff] }
 0x5f9   :  { %11696 = vst [vmem:[#allocation93_spill] sm:$0xff] %v9381_v13  ;;  %3385 = vmatpush.msrb.mxu0 %v9396_v35  ;;  %v9399_v13 = vld [vmem:[#allocation8 + $0x1f8] sm:$0xff] }
 0x5fa   :  { %11697 = vst [vmem:[#allocation95_spill] sm:$0xff] %v9384_v38  ;;  %3425 = vmatpush.msrb.mxu2 %v9399_v13  ;;  %v9402_v38 = vld [vmem:[#allocation8 + $0x1d0] sm:$0xff] }
 0x5fb   :  { %11698 = vst [vmem:[#allocation94_spill] sm:$0xff] %v9387_v10  ;;  %3386 = vmatpush.msrb.mxu0 %v9402_v38  ;;  %v9405_v10 = vld [vmem:[#allocation8 + $0x1d8] sm:$0xff] }
 0x5fc   :  { %11699 = vst [vmem:[#allocation96_spill] sm:$0xff] %v9390_v7  ;;  %3426 = vmatpush.msrb.mxu2 %v9405_v10  ;;  %v9408_v7 = vld [vmem:[#allocation8 + $0x1b0] sm:$0xff] }
 0x5fd   :  { %11700 = vst [vmem:[#allocation97_spill] sm:$0xff] %v9393_v29  ;;  %3387 = vmatpush.msrb.mxu0 %v9408_v7  ;;  %v9411_v29 = vld [vmem:[#allocation8 + $0x1b8] sm:$0xff] }
 0x5fe   :  { %11701 = vst [vmem:[#allocation98_spill] sm:$0xff] %v9396_v35  ;;  %3427 = vmatpush.msrb.mxu2 %v9411_v29  ;;  %v9414_v35 = vld [vmem:[#allocation8 + $0x190] sm:$0xff] }
 0x5ff   :  { %11702 = vst [vmem:[#allocation99_spill] sm:$0xff] %v9399_v13  ;;  %3388 = vmatpush.msrb.mxu0 %v9414_v35  ;;  %v9417_v13 = vld [vmem:[#allocation8 + $0x198] sm:$0xff] }
 0x600   :  { %11703 = vst [vmem:[#allocation100_spill] sm:$0xff] %v9402_v38  ;;  %3428 = vmatpush.msrb.mxu2 %v9417_v13  ;;  %v9420_v38 = vld [vmem:[#allocation8 + $0x170] sm:$0xff] }
 0x601   :  { %11704 = vst [vmem:[#allocation101_spill] sm:$0xff] %v9405_v10  ;;  %3389 = vmatpush.msrb.mxu0 %v9420_v38  ;;  %v9423_v10 = vld [vmem:[#allocation8 + $0x178] sm:$0xff] }
 0x602   :  { %11705 = vst [vmem:[#allocation102_spill] sm:$0xff] %v9408_v7  ;;  %3429 = vmatpush.msrb.mxu2 %v9423_v10  ;;  %v9426_v7 = vld [vmem:[#allocation8 + $0x150] sm:$0xff] }
 0x603   :  { %11706 = vst [vmem:[#allocation103_spill] sm:$0xff] %v9411_v29  ;;  %3390 = vmatpush.msrb.mxu0 %v9426_v7  ;;  %v9429_v29 = vld [vmem:[#allocation8 + $0x158] sm:$0xff] }
 0x604   :  { %11707 = vst [vmem:[#allocation104_spill] sm:$0xff] %v9414_v35  ;;  %3430 = vmatpush.msrb.mxu2 %v9429_v29  ;;  %v9432_v35 = vld [vmem:[#allocation8 + $0x130] sm:$0xff] }
 0x605   :  { %11708 = vst [vmem:[#allocation107_spill] sm:$0xff] %v9417_v13  ;;  %3391 = vmatpush.msrb.mxu0 %v9432_v35  ;;  %v9435_v13 = vld [vmem:[#allocation8 + $0x138] sm:$0xff] }
 0x606   :  { %11709 = vst [vmem:[#allocation108_spill] sm:$0xff] %v9420_v38  ;;  %3431 = vmatpush.msrb.mxu2 %v9435_v13  ;;  %v9438_v38 = vld [vmem:[#allocation8 + $0x110] sm:$0xff] }
 0x607   :  { %11710 = vst [vmem:[#allocation109_spill] sm:$0xff] %v9423_v10  ;;  %3392 = vmatpush.msrb.mxu0 %v9438_v38  ;;  %v9441_v10 = vld [vmem:[#allocation8 + $0x118] sm:$0xff] }
 0x608   :  { %11711 = vst [vmem:[#allocation110_spill] sm:$0xff] %v9426_v7  ;;  %3432 = vmatpush.msrb.mxu2 %v9441_v10  ;;  %v9444_v7 = vld [vmem:[#allocation8 + $0xf0] sm:$0xff] }
 0x609   :  { %11712 = vst [vmem:[#allocation111_spill] sm:$0xff] %v9429_v29  ;;  %3393 = vmatpush.msrb.mxu0 %v9444_v7  ;;  %v9447_v29 = vld [vmem:[#allocation8 + $0xf8] sm:$0xff] }
 0x60a   :  { %11713 = vst [vmem:[#allocation112_spill] sm:$0xff] %v9432_v35  ;;  %3433 = vmatpush.msrb.mxu2 %v9447_v29  ;;  %v9450_v35 = vld [vmem:[#allocation8 + $0xd0] sm:$0xff] }
 0x60b   :  { %11714 = vst [vmem:[#allocation113_spill] sm:$0xff] %v9435_v13  ;;  %3394 = vmatpush.msrb.mxu0 %v9450_v35  ;;  %v9453_v13 = vld [vmem:[#allocation8 + $0xd8] sm:$0xff] }
 0x60c   :  { %11715 = vst [vmem:[#allocation114_spill] sm:$0xff] %v9438_v38  ;;  %3434 = vmatpush.msrb.mxu2 %v9453_v13  ;;  %v9456_v38 = vld [vmem:[#allocation8 + $0xb0] sm:$0xff] }
 0x60d   :  { %11716 = vst [vmem:[#allocation117_spill] sm:$0xff] %v9441_v10  ;;  %3395 = vmatpush.msrb.mxu0 %v9456_v38  ;;  %v9459_v10 = vld [vmem:[#allocation8 + $0xb8] sm:$0xff] }
 0x60e   :  { %11717 = vst [vmem:[#allocation19_spill] sm:$0xff] %v9444_v7  ;;  %3435 = vmatpush.msrb.mxu2 %v9459_v10  ;;  %v9462_v7 = vld [vmem:[#allocation8 + $0x90] sm:$0xff] }
 0x60f   :  { %11718 = vst [vmem:[#allocation106_spill] sm:$0xff] %v9447_v29  ;;  %3396 = vmatpush.msrb.mxu0 %v9462_v7  ;;  %v9465_v29 = vld [vmem:[#allocation8 + $0x98] sm:$0xff] }
 0x610   :  { %11719 = vst [vmem:[#allocation22_spill] sm:$0xff] %v9450_v35  ;;  %3436 = vmatpush.msrb.mxu2 %v9465_v29  ;;  %v9468_v35 = vld [vmem:[#allocation8 + $0x70] sm:$0xff] }
 0x611   :  { %11720 = vst [vmem:[#allocation20_spill] sm:$0xff] %v9453_v13  ;;  %3397 = vmatpush.msrb.mxu0 %v9468_v35  ;;  %v9471_v13 = vld [vmem:[#allocation8 + $0x78] sm:$0xff] }
 0x612   :  { %11721 = vst [vmem:[#allocation21_spill] sm:$0xff] %v9456_v38  ;;  %3437 = vmatpush.msrb.mxu2 %v9471_v13  ;;  %v2874_v38 = vpop.f32.mrf.mxu0 }
 0x613   :  { %11722 = vst [vmem:[#allocation23_spill] sm:$0xff] %v9459_v10  ;;  %3398 = vmatpush.msrb.mxu0 %v9474_v2  ;;  %v9477_v10 = vld [vmem:[#allocation8 + $0x58] sm:$0xff] }
 0x614   :  { %11723 = vst [vmem:[#allocation26_spill] sm:$0xff] %v9462_v7  ;;  %3438 = vmatpush.msrb.mxu2 %v9477_v10  ;;  %v11729_v7 = vld [vmem:[#allocation74_spill] sm:$0xff] }
 0x615   :  { %11724 = vst [vmem:[#allocation24_spill] sm:$0xff] %v9465_v29  ;;  %v2875_v52 = vadd.f32 %v2874_v38, %v11729_v7  ;;  %v2894_v29 = vpop.f32.mrf.mxu1  ;;  %3399 = vmatpush.msrb.mxu0 %v9481_v37  ;;  %v2914_v38 = vpop.f32.mrf.mxu2  ;;  %v11734_v7 = vld [vmem:[#allocation79_spill] sm:$0xff] }
 0x616   :  { %11725 = vst [vmem:[#allocation28_spill] sm:$0xff] %v9468_v35  ;;  %v9484_v35 = vld [vmem:[#allocation8 + $0x38] sm:$0xff]  ;;  %v2915_v15 = vadd.f32 %v2914_v38, %v11734_v7 }
 0x617   :  { %11726 = vst [vmem:[#allocation25_spill] sm:$0xff] %v9471_v13  ;;  %3439 = vmatpush.msrb.mxu2 %v9484_v35  ;;  %v2895_v13 = vadd.f32 %v2894_v29, %v2875_v52  ;;  %3400 = vmatpush.msrb.mxu0 %v9487_v1  ;;  %v11735_v29 = vld [vmem:[#allocation76_spill] sm:$0xff]  ;;  %v11736_v38 = vld [vmem:[#allocation81_spill] sm:$0xff] }
 0x618   :  { %11727 = vst [vmem:[#allocation30_spill] sm:$0xff] %v9474_v2  ;;  %v9490_v2 = vld [vmem:[#allocation8 + $0x18] sm:$0xff] }
 0x619   :  { %11728 = vst [vmem:[#allocation27_spill] sm:$0xff] %v9477_v10  ;;  %3440 = vmatpush.msrb.mxu2 %v9490_v2  ;;  %v4070_v10 = vmul.f32 -1.442695, %v2895_v13 }
 0x61a   :  { %11730 = vst [vmem:[#allocation32_spill] sm:$0xff] %v9481_v37  ;;  %v2935_v37 = vadd.f32 %v2934_v54, %v2915_v15 }
 0x61b   :  { %11731 = vst [vmem:[#allocation29_spill] sm:$0xff] %v9484_v35  ;;  %4274 = vpow2.f32 %v4070_v10 }
 0x61c   :  { %11732 = vst [vmem:[#allocation34_spill] sm:$0xff] %v9487_v1  ;;  %v4071_v33 = vmul.f32 -1.442695, %v2935_v37  ;;  %v3014_v1 = vpop.f32.mrf.mxu3 }
 0x61d   :  { %11733 = vst [vmem:[#allocation31_spill] sm:$0xff] %v9490_v2  ;;  %v2994_v52 = vpop.f32.mrf.mxu2  ;;  %v2954_v2 = vpop.f32.mrf.mxu0 }
 0x61e   :  { %4276 = vpow2.f32 %v4071_v33  ;;  %v2995_v49 = vadd.f32 %v2994_v52, %v11735_v29  ;;  %v2955_v7 = vadd.f32 %v2954_v2, %v11736_v38  ;;  %v2974_v15 = vpop.f32.mrf.mxu1 }
 0x620   :  { %v3015_v41 = vadd.f32 %v3014_v1, %v2995_v49  ;;  %v2975_v33 = vadd.f32 %v2974_v15, %v2955_v7 }
 0x621   :  { %v4275_v26 = vpop.eup %4274 }
 0x622   :  { %v3020_v35 = vadd.f32 1.0, %v4275_v26  ;;  %v4072_v13 = vmul.f32 -1.442695, %v3015_v41 }
 0x624   :  { %4278 = vrcp.f32 %v3020_v35  ;;  %v4277_v5 = vpop.eup %4276  ;;  %v3032_v29 = vand.u32 2147483648, %v3020_v35  ;;  %vm3026_vm5 = vweird.f32 %v3020_v35  ;;  %v3030_v41 = vand.u32 2147483647, %v3020_v35 }
 0x625   :  { %v3039_v22 = vadd.f32 1.0, %v4277_v5 }
 0x626   :  { %v3033_v7 = vor.u32 1.1754944e-38, %v3032_v29  ;;  %vm3031_vm9 = vcmp.eq.f32.partialorder %v3030_v41, 8.507059e+37 }
 0x627   :  { %4280 = vrcp.f32 %v3039_v22  ;;  %v3051_v1 = vand.u32 2147483648, %v3039_v22  ;;  %vm3045_vm8 = vweird.f32 %v3039_v22 }
 0x628   :  { %4282 = vpow2.f32 %v4072_v13 }
 0x629   :  { %4284 = vtanh.f32 %v2975_v33 }
 0x62a   :  { %v4279_v23 = vpop.eup %4278 }
 0x62b   :  { %v3022_v10 = vmul.f32 %v4279_v23, %v3020_v35  ;;  %vm3027_vm4 = vweird.f32 %v4279_v23  ;;  %v3119_v35 = vpop.f32.mrf.mxu1 }
 0x62c   :  { %vm3028_vm6 = vmor %vm3026_vm5, %vm3027_vm4 }
 0x62d   :  { %v3023_v54 = vsub.f32 1.0, %v3022_v10  ;;  %v4281_v37 = vpop.eup %4280  ;;  %v3049_v10 = vand.u32 2147483647, %v3039_v22 }
 0x62e   :  { %v4283_v53 = vpop.eup %4282  ;;  %v3041_v57 = vmul.f32 %v4281_v37, %v3039_v22  ;;  %vm3046_vm7 = vweird.f32 %v4281_v37 }
 0x62f   :  { %v3024_v26 = vmul.f32 %v4279_v23, %v3023_v54  ;;  %v3059_v49 = vadd.f32 1.0, %v4283_v53  ;;  %v3099_v54 = vpop.f32.mrf.mxu0  ;;  %vm3047_vm10 = vmor %vm3045_vm8, %vm3046_vm7  ;;  %v3052_v53 = vor.u32 1.1754944e-38, %v3051_v1  ;;  %v4285_v38 = vpop.eup %4284  ;;  %vm3050_vm11 = vcmp.eq.f32.partialorder %v3049_v10, 8.507059e+37 }
 0x630   :  { %v3042_v5 = vsub.f32 1.0, %v3041_v57 }
 0x631   :  { %v3025_v52 = vadd.f32 %v4279_v23, %v3024_v26  ;;  %4286 = vrcp.f32 %v3059_v49  ;;  %v3100_v26 = vadd.f32 %v3099_v54, %v11152_v4  ;;  %v3159_v54 = vpop.f32.mrf.mxu3  ;;  %v3071_v1 = vand.u32 2147483648, %v3059_v49 }
 0x632   :  { %v3043_v2 = vmul.f32 %v4281_v37, %v3042_v5  ;;  %vm3065_vm13 = vweird.f32 %v3059_v49 }
 0x633   :  { %v3029_v13 = vsel %vm3028_vm6, %v4279_v23, %v3025_v52  ;;  %v3120_v5 = vadd.f32 %v3119_v35, %v3100_v26  ;;  %v3139_v32 = vpop.f32.mrf.mxu2 }
 0x634   :  { %v3044_v15 = vadd.f32 %v4281_v37, %v3043_v2  ;;  %v3034_v57 = vsel %vm3031_vm9, %v3033_v7, %v3029_v13  ;;  %v3140_v2 = vadd.f32 %v3139_v32, %v10739_v60  ;;  %v3069_v7 = vand.u32 2147483647, %v3059_v49 }
 0x635   :  { %v3076_v52 = vmul.f32 %v4285_v38, %v3034_v57  ;;  %v4073_v13 = vmul.f32 -1.442695, %v3120_v5  ;;  %v3072_v38 = vor.u32 1.1754944e-38, %v3071_v1  ;;  %v11738_v5 = vld [vmem:[#allocation40_spill] sm:$0xff]  ;;  %v11748_v1 = vld [vmem:[#allocation50_spill] sm:$0xff] }
 0x636   :  { %v3048_v33 = vsel %vm3047_vm10, %v4281_v37, %v3044_v15  ;;  %v3160_v10 = vadd.f32 %v3159_v54, %v3140_v2  ;;  %vm3070_vm15 = vcmp.eq.f32.partialorder %v3069_v7, 8.507059e+37  ;;  %v11746_v2 = vld [vmem:[#allocation48_spill] sm:$0xff]  ;;  %v11747_v54 = vld [vmem:[#allocation45_spill] sm:$0xff] }
 0x637   :  { %v4287_v51 = vpop.eup %4286  ;;  %v3053_v39 = vsel %vm3050_vm11, %v3052_v53, %v3048_v33  ;;  %v11737_v33 = vld [vmem:[#allocation35_spill] sm:$0xff] }
 0x638   :  { %v3075_v23 = vmul.f32 %v3053_v39, %v8795_v62  ;;  %v3061_v29 = vmul.f32 %v4287_v51, %v3059_v49  ;;  %vm3066_vm12 = vweird.f32 %v4287_v51  ;;  %v4074_v15 = vmul.f32 -1.442695, %v3160_v10 }
 0x639   :  { %vm3067_vm14 = vmor %vm3065_vm13, %vm3066_vm12 }
 0x63a   :  { %v9498_v22 = vadd.f32 %v3076_v52, %v3075_v23  ;;  %v3062_v41 = vsub.f32 1.0, %v3061_v29  ;;  %v11739_v23 = vld [vmem:[#allocation37_spill] sm:$0xff]  ;;  %v11745_v52 = vld [vmem:[#allocation43_spill] sm:$0xff] }
 0x63c   :  { %4288 = vtanh.f32 %v9498_v22  ;;  %v3063_v37 = vmul.f32 %v4287_v51, %v3062_v41 }
 0x63d   :  { %4290 = vpow2.f32 %v4073_v13  ;;  %v11749_v13 = vld [vmem:[#allocation47_spill] sm:$0xff] }
 0x63e   :  { %v3064_v62 = vadd.f32 %v4287_v51, %v3063_v37  ;;  %4292 = vpow2.f32 %v4074_v15  ;;  %v11750_v15 = vld [vmem:[#allocation52_spill] sm:$0xff] }
 0x640   :  { %v3068_v39 = vsel %vm3067_vm14, %v4287_v51, %v3064_v62 }
 0x641   :  { %v3073_v32 = vsel %vm3070_vm15, %v3072_v38, %v3068_v39  ;;  %v11751_v39 = vld [vmem:[#allocation115_spill] sm:$0xff] }
 0x642   :  { %v4289_v26 = vpop.eup %4288 }
 0x643   :  { %v3079_v53 = vmul.f32 %v4289_v26, %v3073_v32  ;;  %v4291_v57 = vpop.eup %4290  ;;  %v11752_v26 = vld [vmem:[#allocation116_spill] sm:$0xff] }
 0x644   :  { %v4293_v35 = vpop.eup %4292  ;;  %v9506_v49 = vadd.f32 1.0, %v4291_v57  ;;  %v11754_v57 = vld [vmem:[#allocation54_spill] sm:$0xff] }
 0x645   :  { %3341 = vmatmul.f32.vlgmr.msra.gmra.mxu1 %v3079_v53  ;;  %3381 = vmatmul.f32.vlgmr.msra.gmra.mxu3 %v3079_v53  ;;  %v9508_v51 = vadd.f32 1.0, %v4293_v35  ;;  %v3239_v35 = vpop.f32.mrf.mxu3 }
 0x646   :  { %3550 = vmatpush.msra.mxu1 %v8798_v45  ;;  %3590 = vmatpush.msra.mxu3 %v8801_v25  ;;  %4294 = vrcp.f32 %v9506_v49  ;;  %v11740_v45 = vld [vmem:[#allocation42_spill] sm:$0xff]  ;;  %v11741_v25 = vld [vmem:[#allocation39_spill] sm:$0xff]  ;;  %vm3251_vm2 = vweird.f32 %v9506_v49 }
 0x647   :  { %4296 = vrcp.f32 %v9508_v51  ;;  %vm3270_vm3 = vweird.f32 %v9508_v51 }
 0x648   :  { %3551 = vmatpush.msra.mxu1 %v8806_v6  ;;  %3591 = vmatpush.msra.mxu3 %v8809_v30  ;;  %v11742_v6 = vld [vmem:[#allocation44_spill] sm:$0xff]  ;;  %v11743_v30 = vld [vmem:[#allocation41_spill] sm:$0xff] }
 0x64a   :  { %3552 = vmatpush.msra.mxu1 %v8814_v34  ;;  %3592 = vmatpush.msra.mxu3 %v11737_v33  ;;  %v11744_v34 = vld [vmem:[#allocation46_spill] sm:$0xff] }
 0x64c   :  { %3553 = vmatpush.msra.mxu1 %v11738_v5  ;;  %3593 = vmatpush.msra.mxu3 %v11739_v23  ;;  %v9522_v29 = vpop.eup %4294 }
 0x64d   :  { %3421 = vmatmul.f32.vlgmr.msrb.gmra.mxu1 %v3079_v53  ;;  %3461 = vmatmul.f32.vlgmr.msrb.gmra.mxu3 %v3079_v53  ;;  %v9524_v41 = vpop.eup %4296  ;;  %v3247_v37 = vmul.f32 %v9522_v29, %v9506_v49  ;;  %v3179_v7 = vpop.f32.mrf.mxu0  ;;  %v11753_v53 = vld [vmem:[#allocation49_spill] sm:$0xff]  ;;  %vm3252_vm0 = vweird.f32 %v9522_v29 }
 0x64e   :  { %3554 = vmatpush.msra.mxu1 %v11740_v45  ;;  %3594 = vmatpush.msra.mxu3 %v11741_v25  ;;  %v3266_v10 = vmul.f32 %v9524_v41, %v9508_v51  ;;  %v3180_v38 = vadd.f32 %v3179_v7, %v11751_v39  ;;  %v11755_v45 = vld [vmem:[#allocation51_spill] sm:$0xff]  ;;  %v11756_v25 = vld [vmem:[#allocation56_spill] sm:$0xff]  ;;  %vm3271_vm1 = vweird.f32 %v9524_v41  ;;  %vm9560_vm4 = vmor %vm3251_vm2, %vm3252_vm0 }
 0x64f   :  { %v3248_v33 = vsub.f32 1.0, %v3247_v37  ;;  %v11761_v37 = vld [vmem:[#allocation65_spill] sm:$0xff]  ;;  %vm9570_vm5 = vmor %vm3270_vm3, %vm3271_vm1 }
 0x650   :  { %3555 = vmatpush.msra.mxu1 %v11742_v6  ;;  %3595 = vmatpush.msra.mxu3 %v11743_v30  ;;  %v3267_v5 = vsub.f32 1.0, %v3266_v10  ;;  %v3199_v6 = vpop.f32.mrf.mxu1  ;;  %v11762_v10 = vld [vmem:[#allocation62_spill] sm:$0xff] }
 0x651   :  { %v3200_v30 = vadd.f32 %v3199_v6, %v3180_v38  ;;  %v3257_v38 = vand.u32 2147483648, %v9506_v49 }
 0x652   :  { %3556 = vmatpush.msra.mxu1 %v11744_v34  ;;  %3596 = vmatpush.msra.mxu3 %v11745_v52  ;;  %v11757_v34 = vld [vmem:[#allocation53_spill] sm:$0xff]  ;;  %v11758_v52 = vld [vmem:[#allocation55_spill] sm:$0xff] }
 0x653   :  { %v3219_v62 = vpop.f32.mrf.mxu2 }
 0x654   :  { %3557 = vmatpush.msra.mxu1 %v11746_v2  ;;  %3597 = vmatpush.msra.mxu3 %v11747_v54  ;;  %v3220_v32 = vadd.f32 %v3219_v62, %v11752_v26  ;;  %v3268_v2 = vmul.f32 %v9524_v41, %v3267_v5  ;;  %v3249_v54 = vmul.f32 %v9522_v29, %v3248_v33  ;;  %v3276_v62 = vand.u32 2147483648, %v9508_v51  ;;  %v11767_v5 = vld [vmem:[#allocation69_spill] sm:$0xff] }
 0x655   :  { %v3274_v33 = vand.u32 2147483647, %v9508_v51 }
 0x656   :  { %3558 = vmatpush.msra.mxu1 %v11748_v1  ;;  %3598 = vmatpush.msra.mxu3 %v11749_v13  ;;  %v3240_v23 = vadd.f32 %v3239_v35, %v3220_v32  ;;  %v11759_v1 = vld [vmem:[#allocation63_spill] sm:$0xff]  ;;  %v3250_v7 = vadd.f32 %v9522_v29, %v3249_v54  ;;  %v3255_v35 = vand.u32 2147483647, %v9506_v49  ;;  %v3277_v6 = vor.u32 1.1754944e-38, %v3276_v62  ;;  %v11772_v54 = vld [vmem:[#allocation68_spill] sm:$0xff] }
 0x657   :  { %v11760_v13 = vld [vmem:[#allocation59_spill] sm:$0xff]  ;;  %vm3275_vm7 = vcmp.eq.f32.partialorder %v3274_v33, 8.507059e+37 }
 0x658   :  { %3559 = vmatpush.msra.mxu1 %v11750_v15  ;;  %3599 = vmatpush.msra.mxu3 %v8869_v46  ;;  %v4075_v46 = vmul.f32 -1.442695, %v3240_v23  ;;  %v3269_v15 = vadd.f32 %v9524_v41, %v3268_v2  ;;  %v11763_v32 = vld [vmem:[#allocation67_spill] sm:$0xff]  ;;  %vm3256_vm6 = vcmp.eq.f32.partialorder %v3255_v35, 8.507059e+37 }
 0x659   :  { %v11779_v62 = vld [vmem:[#allocation119_spill] sm:$0xff] }
 0x65a   :  { %3560 = vmatpush.msra.mxu1 %v11753_v53  ;;  %3600 = vmatpush.msra.mxu3 %v11754_v57  ;;  %4298 = vpow2.f32 %v4075_v46  ;;  %v11764_v53 = vld [vmem:[#allocation64_spill] sm:$0xff]  ;;  %v3273_v49 = vsel %vm9570_vm5, %v9524_v41, %v3269_v15  ;;  %v11771_v41 = vld [vmem:[#allocation71_spill] sm:$0xff]  ;;  %v11778_v15 = vld [vmem:[#allocation118_spill] sm:$0xff] }
 0x65b   :  { %4300 = vtanh.f32 %v3200_v30  ;;  %v3258_v30 = vor.u32 1.1754944e-38, %v3257_v38  ;;  %v3278_v46 = vsel %vm3275_vm7, %v3277_v6, %v3273_v49  ;;  %v5140_v49 = vld [vmem:[#allocation5 + $0xc0] sm:$0xff] }
 0x65c   :  { %3561 = vmatpush.msra.mxu1 %v11755_v45  ;;  %3601 = vmatpush.msra.mxu3 %v11756_v25  ;;  %v3254_v25 = vsel %vm9560_vm4, %v9522_v29, %v3250_v7  ;;  %v5131_v45 = vld [vmem:[#allocation5 + $0x168] sm:$0xff]  ;;  %v5146_v6 = vld [vmem:[#allocation5 + $0x60] sm:$0xff] }
 0x65d   :  { %v3259_v29 = vsel %vm3256_vm6, %v3258_v30, %v3254_v25  ;;  %v5136_v25 = vld [vmem:[#allocation5 + $0x100] sm:$0xff]  ;;  %v11784_v30 = vld [vmem:[#allocation124_spill] sm:$0xff] }
 0x65e   :  { %3562 = vmatpush.msra.mxu1 %v11757_v34  ;;  %3602 = vmatpush.msra.mxu3 %v11758_v52 }
 0x660   :  { %3563 = vmatpush.msra.mxu1 %v11759_v1  ;;  %3603 = vmatpush.msra.mxu3 %v11760_v13  ;;  %v4299_v23 = vpop.eup %4298  ;;  %v11774_v1 = vld [vmem:[#allocation70_spill] sm:$0xff]  ;;  %v11775_v13 = vld [vmem:[#allocation75_spill] sm:$0xff] }
 0x661   :  { %v3284_v51 = vadd.f32 1.0, %v4299_v23  ;;  %v5129_v23 = vld [vmem:[#allocation5 + $0x188] sm:$0xff] }
 0x662   :  { %3564 = vmatpush.msra.mxu1 %v11761_v37  ;;  %3604 = vmatpush.msra.mxu3 %v11762_v10  ;;  %v11777_v37 = vld [vmem:[#allocation77_spill] sm:$0xff] }
 0x663   :  { %4302 = vrcp.f32 %v3284_v51  ;;  %v3294_v7 = vand.u32 2147483647, %v3284_v51  ;;  %vm3290_vm9 = vweird.f32 %v3284_v51 }
 0x664   :  { %3565 = vmatpush.msra.mxu1 %v11763_v32  ;;  %3605 = vmatpush.msra.mxu3 %v11764_v53 }
 0x665   :  { %vm3295_vm11 = vcmp.eq.f32.partialorder %v3294_v7, 8.507059e+37  ;;  %v11792_v7 = vld [vmem:[#allocation132_spill] sm:$0xff] }
 0x666   :  { %3630 = vmatpush.msrb.mxu1 %v11767_v5  ;;  %3670 = vmatpush.msrb.mxu3 %v8935_v61  ;;  %v4301_v61 = vpop.eup %4300  ;;  %v5122_v5 = vld [vmem:[#allocation5 + $0x1e0] sm:$0xff] }
 0x667   :  { %v3301_v34 = vmul.f32 %v4301_v61, %v3259_v29  ;;  %v11782_v61 = vld [vmem:[#allocation122_spill] sm:$0xff]  ;;  %v5148_v29 = vld [vmem:[#allocation5 + $0x40] sm:$0xff] }
 0x668   :  { %3631 = vmatpush.msrb.mxu1 %v8944_v19  ;;  %3671 = vmatpush.msrb.mxu3 %v8947_v36  ;;  %v3300_v19 = vmul.f32 %v3278_v46, %v8969_v8  ;;  %v11770_v36 = vld [vmem:[#allocation66_spill] sm:$0xff]  ;;  %v11776_v8 = vld [vmem:[#allocation72_spill] sm:$0xff]  ;;  %v11785_v46 = vld [vmem:[#allocation125_spill] sm:$0xff] }
 0x669   :  { %v4303_v52 = vpop.eup %4302 }
 0x66a   :  { %3632 = vmatpush.msrb.mxu1 %v8950_v59  ;;  %3672 = vmatpush.msrb.mxu3 %v8953_v0  ;;  %v9589_v2 = vadd.f32 %v3301_v34, %v3300_v19  ;;  %v11773_v59 = vld [vmem:[#allocation73_spill] sm:$0xff]  ;;  %v3286_v0 = vmul.f32 %v4303_v52, %v3284_v51  ;;  %vm3291_vm8 = vweird.f32 %v4303_v52  ;;  %v11786_v34 = vld [vmem:[#allocation126_spill] sm:$0xff] }
 0x66b   :  { %vm3292_vm10 = vmor %vm3290_vm9, %vm3291_vm8  ;;  %v5150_v19 = vld [vmem:[#allocation5 + $0x20] sm:$0xff] }
 0x66c   :  { %3633 = vmatpush.msrb.mxu1 %v8956_v3  ;;  %3673 = vmatpush.msrb.mxu3 %v8959_v28  ;;  %v3287_v3 = vsub.f32 1.0, %v3286_v0  ;;  %4304 = vtanh.f32 %v9589_v2  ;;  %v3296_v28 = vand.u32 2147483648, %v3284_v51  ;;  %v5144_v51 = vld [vmem:[#allocation5 + $0x80] sm:$0xff]  ;;  %v5153_v0 = vld [vmem:[#allocation5 + $0x8] sm:$0xff] }
 0x66e   :  { %3634 = vmatpush.msrb.mxu1 %v11770_v36  ;;  %3674 = vmatpush.msrb.mxu3 %v11771_v41  ;;  %v3288_v10 = vmul.f32 %v4303_v52, %v3287_v3  ;;  %v3297_v32 = vor.u32 1.1754944e-38, %v3296_v28  ;;  %v5151_v36 = vld [vmem:[#allocation5 + $0x28] sm:$0xff]  ;;  %v9630_v41 = vld [vmem:[#allocation2 + $0x38] sm:$0xff]  ;;  %v11789_v3 = vld [vmem:[#allocation129_spill] sm:$0xff] }
 0x66f   :  { %v11790_v28 = vld [vmem:[#allocation130_spill] sm:$0xff] }
 0x670   :  { %3635 = vmatpush.msrb.mxu1 %v11772_v54  ;;  %3675 = vmatpush.msrb.mxu3 %v11773_v59  ;;  %v3289_v38 = vadd.f32 %v4303_v52, %v3288_v10  ;;  %v11788_v54 = vld [vmem:[#allocation128_spill] sm:$0xff]  ;;  %v5152_v59 = vld [vmem:[#allocation5] sm:$0xff]  ;;  %v11791_v10 = vld [vmem:[#allocation131_spill] sm:$0xff] }
 0x672   :  { %3636 = vmatpush.msrb.mxu1 %v11774_v1  ;;  %3676 = vmatpush.msrb.mxu3 %v11775_v13  ;;  %v3293_v53 = vsel %vm3292_vm10, %v4303_v52, %v3289_v38  ;;  %v4305_v57 = vpop.eup %4304  ;;  %v11787_v52 = vld [vmem:[#allocation127_spill] sm:$0xff]  ;;  %v5155_v13 = vld [vmem:[#allocation5 + $0x1f8] sm:$0xff]  ;;  %v11793_v38 = vld [vmem:[#allocation133_spill] sm:$0xff] }
 0x673   :  { %v3298_v35 = vsel %vm3295_vm11, %v3297_v32, %v3293_v53  ;;  %v5154_v1 = vld [vmem:[#allocation5 + $0x1f0] sm:$0xff]  ;;  %v11794_v32 = vld [vmem:[#allocation134_spill] sm:$0xff] }
 0x674   :  { %3637 = vmatpush.msrb.mxu1 %v11776_v8  ;;  %3677 = vmatpush.msrb.mxu3 %v11777_v37  ;;  %v3304_v33 = vmul.f32 %v4305_v57, %v3298_v35  ;;  %v5156_v8 = vld [vmem:[#allocation5 + $0x1d0] sm:$0xff]  ;;  %v5157_v37 = vld [vmem:[#allocation5 + $0x1d8] sm:$0xff] }
 0x675   :  { %v5160_v53 = vld [vmem:[#allocation5 + $0x190] sm:$0xff]  ;;  %v5161_v57 = vld [vmem:[#allocation5 + $0x198] sm:$0xff] }
 0x676   :  { %3638 = vmatpush.msrb.mxu1 %v11778_v15  ;;  %3678 = vmatpush.msrb.mxu3 %v11779_v62  ;;  %v5158_v15 = vld [vmem:[#allocation5 + $0x1b0] sm:$0xff]  ;;  %v5159_v62 = vld [vmem:[#allocation5 + $0x1b8] sm:$0xff] }
 0x677   :  { %3321 = vmatmul.f32.vlgmr.msra.gmra.mxu0 %v3304_v33  ;;  %3361 = vmatmul.f32.vlgmr.msra.gmra.mxu2 %v3304_v33  ;;  %v11795_v35 = vld [vmem:[#allocation135_spill] sm:$0xff] }
 0x678   :  { %3639 = vmatpush.msrb.mxu1 %v8996_v40  ;;  %3679 = vmatpush.msrb.mxu3 %v8999_v63  ;;  %v5123_v40 = vld [vmem:[#allocation5 + $0x1e8] sm:$0xff]  ;;  %v5124_v63 = vld [vmem:[#allocation5 + $0x1c0] sm:$0xff] }
 0x679   :  { %3530 = vmatpush.msra.mxu0 %v5122_v5  ;;  %3566 = vmatmul.f32.vlgmr.msra.gmra.mxu1 %v3304_v33  ;;  %v5162_v5 = vld [vmem:[#allocation5 + $0x170] sm:$0xff] }
 0x67a   :  { %3640 = vmatpush.msrb.mxu1 %v9002_v55  ;;  %3680 = vmatpush.msrb.mxu3 %v9005_v44  ;;  %v5125_v55 = vld [vmem:[#allocation5 + $0x1c8] sm:$0xff]  ;;  %v5126_v44 = vld [vmem:[#allocation5 + $0x1a0] sm:$0xff] }
 0x67b   :  { %3570 = vmatpush.msra.mxu2 %v5123_v40  ;;  %3606 = vmatmul.f32.vlgmr.msra.gmra.mxu3 %v3304_v33  ;;  %v5163_v40 = vld [vmem:[#allocation5 + $0x178] sm:$0xff] }
 0x67c   :  { %3641 = vmatpush.msrb.mxu1 %v9011_v11  ;;  %3681 = vmatpush.msrb.mxu3 %v9015_v17  ;;  %v5127_v11 = vld [vmem:[#allocation5 + $0x1a8] sm:$0xff]  ;;  %v5128_v17 = vld [vmem:[#allocation5 + $0x180] sm:$0xff] }
 0x67d   :  { %3531 = vmatpush.msra.mxu0 %v5124_v63  ;;  %3571 = vmatpush.msra.mxu2 %v5125_v55  ;;  %v11797_v63 = vld [vmem:[#allocation137_spill] sm:$0xff]  ;;  %v11798_v55 = vld [vmem:[#allocation138_spill] sm:$0xff] }
 0x67e   :  { %3642 = vmatpush.msrb.mxu1 %v9019_v27  ;;  %3682 = vmatpush.msrb.mxu3 %v9023_v9  ;;  %v5130_v27 = vld [vmem:[#allocation5 + $0x160] sm:$0xff] }
 0x67f   :  { %3532 = vmatpush.msra.mxu0 %v5126_v44  ;;  %3572 = vmatpush.msra.mxu2 %v5127_v11  ;;  %v5132_v9 = vld [vmem:[#allocation5 + $0x140] sm:$0xff]  ;;  %v5164_v44 = vld [vmem:[#allocation5 + $0x150] sm:$0xff]  ;;  %v5165_v11 = vld [vmem:[#allocation5 + $0x158] sm:$0xff] }
 0x680   :  { %3643 = vmatpush.msrb.mxu1 %v9027_v42  ;;  %3683 = vmatpush.msrb.mxu3 %v9031_v31  ;;  %v5133_v42 = vld [vmem:[#allocation5 + $0x148] sm:$0xff]  ;;  %v5134_v31 = vld [vmem:[#allocation5 + $0x120] sm:$0xff] }
 0x681   :  { %3533 = vmatpush.msra.mxu0 %v5128_v17  ;;  %3573 = vmatpush.msra.mxu2 %v5129_v23  ;;  %v11799_v17 = vld [vmem:[#allocation139_spill] sm:$0xff]  ;;  %v11800_v23 = vld [vmem:[#allocation140_spill] sm:$0xff] }
 0x682   :  { %3644 = vmatpush.msrb.mxu1 %v9036_v50  ;;  %3401 = vmatmul.f32.vlgmr.msrb.gmra.mxu0 %v3304_v33  ;;  %v5135_v50 = vld [vmem:[#allocation5 + $0x128] sm:$0xff] }
 0x683   :  { %3441 = vmatmul.f32.vlgmr.msrb.gmra.mxu2 %v3304_v33  ;;  %3534 = vmatpush.msra.mxu0 %v5130_v27  ;;  %v5166_v27 = vld [vmem:[#allocation5 + $0x130] sm:$0xff] }
 0x684   :  { %3574 = vmatpush.msra.mxu2 %v5131_v45  ;;  %3684 = vmatpush.msrb.mxu3 %v9039_v16  ;;  %v5137_v16 = vld [vmem:[#allocation5 + $0x108] sm:$0xff]  ;;  %v5167_v45 = vld [vmem:[#allocation5 + $0x138] sm:$0xff] }
 0x685   :  { %3535 = vmatpush.msra.mxu0 %v5132_v9  ;;  %3645 = vmatpush.msrb.mxu1 %v9044_v20  ;;  %v5138_v20 = vld [vmem:[#allocation5 + $0xe0] sm:$0xff] }
 0x686   :  { %3575 = vmatpush.msra.mxu2 %v5133_v42  ;;  %3685 = vmatpush.msrb.mxu3 %v9047_v12  ;;  %v5139_v12 = vld [vmem:[#allocation5 + $0xe8] sm:$0xff]  ;;  %v11801_v9 = vld [vmem:[#allocation141_spill] sm:$0xff] }
 0x687   :  { %3646 = vmatmul.f32.vlgmr.msrb.gmra.mxu1 %v3304_v33  ;;  %3686 = vmatmul.f32.vlgmr.msrb.gmra.mxu3 %v3304_v33  ;;  %v11796_v33 = vld [vmem:[#allocation136_spill] sm:$0xff]  ;;  %v11802_v42 = vld [vmem:[#allocation142_spill] sm:$0xff] }
 0x688   :  { %3536 = vmatpush.msra.mxu0 %v5134_v31  ;;  %3576 = vmatpush.msra.mxu2 %v5135_v50  ;;  %v5168_v31 = vld [vmem:[#allocation5 + $0x110] sm:$0xff]  ;;  %v5169_v50 = vld [vmem:[#allocation5 + $0x118] sm:$0xff] }
 0x689   :  { %3773 = vmatpush.msra.mxu1 %v9052_v43  ;;  %3813 = vmatpush.msra.mxu3 %v9055_v58  ;;  %v5141_v43 = vld [vmem:[#allocation5 + $0xc8] sm:$0xff]  ;;  %v5142_v58 = vld [vmem:[#allocation5 + $0xa0] sm:$0xff] }
 0x68a   :  { %3537 = vmatpush.msra.mxu0 %v5136_v25  ;;  %3577 = vmatpush.msra.mxu2 %v5137_v16  ;;  %v11803_v25 = vld [vmem:[#allocation143_spill] sm:$0xff]  ;;  %v11804_v16 = vld [vmem:[#allocation144_spill] sm:$0xff] }
 0x68b   :  { %3774 = vmatpush.msra.mxu1 %v9060_v48  ;;  %3814 = vmatpush.msra.mxu3 %v9063_v21  ;;  %v5143_v48 = vld [vmem:[#allocation5 + $0xa8] sm:$0xff]  ;;  %v11780_v21 = vld [vmem:[#allocation120_spill] sm:$0xff] }
 0x68c   :  { %3538 = vmatpush.msra.mxu0 %v5138_v20  ;;  %3578 = vmatpush.msra.mxu2 %v5139_v12  ;;  %v5170_v20 = vld [vmem:[#allocation5 + $0xf0] sm:$0xff]  ;;  %v5171_v12 = vld [vmem:[#allocation5 + $0xf8] sm:$0xff] }
 0x68d   :  { %3775 = vmatpush.msra.mxu1 %v9068_v18  ;;  %3815 = vmatpush.msra.mxu3 %v9071_v14  ;;  %v5145_v18 = vld [vmem:[#allocation5 + $0x88] sm:$0xff]  ;;  %v11781_v14 = vld [vmem:[#allocation121_spill] sm:$0xff] }
 0x68e   :  { %3539 = vmatpush.msra.mxu0 %v5140_v49  ;;  %3579 = vmatpush.msra.mxu2 %v5141_v43  ;;  %v11805_v49 = vld [vmem:[#allocation145_spill] sm:$0xff]  ;;  %v11806_v43 = vld [vmem:[#allocation146_spill] sm:$0xff] }
 0x68f   :  { %3776 = vmatpush.msra.mxu1 %v9076_v47  ;;  %3816 = vmatpush.msra.mxu3 %v9079_v56  ;;  %v5147_v47 = vld [vmem:[#allocation5 + $0x68] sm:$0xff]  ;;  %v11783_v56 = vld [vmem:[#allocation123_spill] sm:$0xff] }
 0x690   :  { %3540 = vmatpush.msra.mxu0 %v5142_v58  ;;  %3580 = vmatpush.msra.mxu2 %v5143_v48  ;;  %v5172_v58 = vld [vmem:[#allocation5 + $0xd0] sm:$0xff]  ;;  %v5173_v48 = vld [vmem:[#allocation5 + $0xd8] sm:$0xff] }
 0x691   :  { %3777 = vmatpush.msra.mxu1 %v9084_v24  ;;  %3817 = vmatpush.msra.mxu3 %v11780_v21  ;;  %v5149_v24 = vld [vmem:[#allocation5 + $0x48] sm:$0xff]  ;;  %v11807_v21 = vld [vmem:[#allocation147_spill] sm:$0xff] }
 0x692   :  { %3541 = vmatpush.msra.mxu0 %v5144_v51  ;;  %3581 = vmatpush.msra.mxu2 %v5145_v18  ;;  %v11808_v51 = vld [vmem:[#allocation148_spill] sm:$0xff]  ;;  %v5174_v18 = vld [vmem:[#allocation5 + $0xb0] sm:$0xff] }
 0x693   :  { %3778 = vmatpush.msra.mxu1 %v11781_v14  ;;  %3818 = vmatpush.msra.mxu3 %v11782_v61  ;;  %v5175_v14 = vld [vmem:[#allocation5 + $0xb8] sm:$0xff]  ;;  %v11809_v61 = vld [vmem:[#allocation149_spill] sm:$0xff] }
 0x694   :  { %3542 = vmatpush.msra.mxu0 %v5146_v6  ;;  %3582 = vmatpush.msra.mxu2 %v5147_v47  ;;  %v11810_v6 = vld [vmem:[#allocation150_spill] sm:$0xff]  ;;  %v5176_v47 = vld [vmem:[#allocation5 + $0x90] sm:$0xff] }
 0x695   :  { %3779 = vmatpush.msra.mxu1 %v11783_v56  ;;  %3819 = vmatpush.msra.mxu3 %v11784_v30  ;;  %v5177_v56 = vld [vmem:[#allocation5 + $0x98] sm:$0xff]  ;;  %v11811_v30 = vld [vmem:[#allocation151_spill] sm:$0xff] }
 0x696   :  { %3543 = vmatpush.msra.mxu0 %v5148_v29  ;;  %3583 = vmatpush.msra.mxu2 %v5149_v24  ;;  %v11812_v29 = vld [vmem:[#allocation152_spill] sm:$0xff]  ;;  %v5178_v24 = vld [vmem:[#allocation5 + $0x70] sm:$0xff] }
 0x697   :  { %3780 = vmatpush.msra.mxu1 %v11785_v46  ;;  %3820 = vmatpush.msra.mxu3 %v11786_v34  ;;  %v5179_v46 = vld [vmem:[#allocation5 + $0x78] sm:$0xff]  ;;  %v11813_v34 = vld [vmem:[#allocation153_spill] sm:$0xff] }
 0x698   :  { %3544 = vmatpush.msra.mxu0 %v5150_v19  ;;  %3584 = vmatpush.msra.mxu2 %v5151_v36  ;;  %v11814_v19 = vld [vmem:[#allocation154_spill] sm:$0xff]  ;;  %v5180_v36 = vld [vmem:[#allocation5 + $0x50] sm:$0xff] }
 0x699   :  { %3781 = vmatpush.msra.mxu1 %v11787_v52  ;;  %3821 = vmatpush.msra.mxu3 %v11788_v54  ;;  %v5181_v52 = vld [vmem:[#allocation5 + $0x58] sm:$0xff]  ;;  %v11815_v54 = vld [vmem:[#allocation155_spill] sm:$0xff] }
 0x69a   :  { %3545 = vmatpush.msra.mxu0 %v5152_v59  ;;  %3585 = vmatpush.msra.mxu2 %v5153_v0  ;;  %v11816_v59 = vld [vmem:[#allocation156_spill] sm:$0xff]  ;;  %v5182_v0 = vld [vmem:[#allocation5 + $0x30] sm:$0xff] }
 0x69b   :  { %3546 = vmatmul.f32.vlgmr.msra.gmra.mxu0 %v9630_v41  ;;  %3586 = vmatmul.f32.vlgmr.msra.gmra.mxu2 %v9630_v41 }
 0x69c   :  { %3610 = vmatpush.msrb.mxu0 %v5154_v1  ;;  %3650 = vmatpush.msrb.mxu2 %v5155_v13  ;;  %v5183_v1 = vld [vmem:[#allocation5 + $0x38] sm:$0xff]  ;;  %v11817_v13 = vld [vmem:[#allocation157_spill] sm:$0xff] }
 0x69d   :  { %3782 = vmatpush.msra.mxu1 %v11789_v3  ;;  %3822 = vmatpush.msra.mxu3 %v11790_v28  ;;  %v11818_v3 = vld [vmem:[#allocation158_spill] sm:$0xff]  ;;  %v5184_v28 = vld [vmem:[#allocation5 + $0x10] sm:$0xff] }
 0x69e   :  { %3611 = vmatpush.msrb.mxu0 %v5156_v8  ;;  %3651 = vmatpush.msrb.mxu2 %v5157_v37  ;;  %v5185_v8 = vld [vmem:[#allocation5 + $0x18] sm:$0xff]  ;;  %v11819_v37 = vld [vmem:[#allocation159_spill] sm:$0xff] }
 0x69f   :  { %3783 = vmatpush.msra.mxu1 %v11791_v10  ;;  %3823 = vmatpush.msra.mxu3 %v11792_v7  ;;  %v11820_v10 = vld [vmem:[#allocation160_spill] sm:$0xff]  ;;  %v11821_v7 = vld [vmem:[#allocation161_spill] sm:$0xff] }
 0x6a0   :  { %3612 = vmatpush.msrb.mxu0 %v5158_v15  ;;  %3652 = vmatpush.msrb.mxu2 %v5159_v62  ;;  %v11822_v15 = vld [vmem:[#allocation162_spill] sm:$0xff]  ;;  %v11823_v62 = vld [vmem:[#allocation163_spill] sm:$0xff] }
 0x6a1   :  { %3784 = vmatpush.msra.mxu1 %v11793_v38  ;;  %3824 = vmatpush.msra.mxu3 %v11794_v32  ;;  %v11824_v38 = vld [vmem:[#allocation164_spill] sm:$0xff]  ;;  %v11825_v32 = vld [vmem:[#allocation165_spill] sm:$0xff] }
 0x6a2   :  { %3613 = vmatpush.msrb.mxu0 %v5160_v53  ;;  %3653 = vmatpush.msrb.mxu2 %v5161_v57  ;;  %v11826_v53 = vld [vmem:[#allocation166_spill] sm:$0xff]  ;;  %v11827_v57 = vld [vmem:[#allocation167_spill] sm:$0xff] }
 0x6a3   :  { %3785 = vmatpush.msra.mxu1 %v11795_v35  ;;  %3825 = vmatpush.msra.mxu3 %v11796_v33  ;;  %v11828_v35 = vld [vmem:[#allocation168_spill] sm:$0xff]  ;;  %v11830_v33 = vld [vmem:[#allocation170_spill] sm:$0xff] }
 0x6a4   :  { %3614 = vmatpush.msrb.mxu0 %v5162_v5  ;;  %3654 = vmatpush.msrb.mxu2 %v5163_v40  ;;  %v11831_v5 = vld [vmem:[#allocation171_spill] sm:$0xff]  ;;  %v11832_v40 = vld [vmem:[#allocation172_spill] sm:$0xff] }
 0x6a5   :  { %3786 = vmatpush.msra.mxu1 %v11797_v63  ;;  %3826 = vmatpush.msra.mxu3 %v11798_v55  ;;  %v11833_v63 = vld [vmem:[#allocation173_spill] sm:$0xff]  ;;  %v11834_v55 = vld [vmem:[#allocation174_spill] sm:$0xff] }
 0x6a6   :  { %3615 = vmatpush.msrb.mxu0 %v5164_v44  ;;  %3655 = vmatpush.msrb.mxu2 %v5165_v11  ;;  %v11835_v44 = vld [vmem:[#allocation175_spill] sm:$0xff]  ;;  %v11836_v11 = vld [vmem:[#allocation176_spill] sm:$0xff] }
 0x6a7   :  { %3787 = vmatpush.msra.mxu1 %v11799_v17  ;;  %3827 = vmatpush.msra.mxu3 %v11800_v23  ;;  %v11837_v17 = vld [vmem:[#allocation177_spill] sm:$0xff]  ;;  %v11838_v23 = vld [vmem:[#allocation178_spill] sm:$0xff] }
 0x6a8   :  { %3616 = vmatpush.msrb.mxu0 %v5166_v27  ;;  %3656 = vmatpush.msrb.mxu2 %v5167_v45  ;;  %v11839_v27 = vld [vmem:[#allocation179_spill] sm:$0xff]  ;;  %v11840_v45 = vld [vmem:[#allocation180_spill] sm:$0xff] }
 0x6a9   :  { %3788 = vmatpush.msra.mxu1 %v11801_v9  ;;  %3828 = vmatpush.msra.mxu3 %v11802_v42  ;;  %v11841_v9 = vld [vmem:[#allocation181_spill] sm:$0xff]  ;;  %v11842_v42 = vld [vmem:[#allocation182_spill] sm:$0xff] }
 0x6aa   :  { %3617 = vmatpush.msrb.mxu0 %v5168_v31  ;;  %3657 = vmatpush.msrb.mxu2 %v5169_v50  ;;  %v11843_v31 = vld [vmem:[#allocation183_spill] sm:$0xff]  ;;  %v11844_v50 = vld [vmem:[#allocation105_spill] sm:$0xff] }
 0x6ab   :  { %3853 = vmatpush.msrb.mxu1 %v11803_v25  ;;  %3893 = vmatpush.msrb.mxu3 %v11804_v16  ;;  %v11845_v25 = vld [vmem:[#allocation78_spill] sm:$0xff]  ;;  %v11846_v16 = vld [vmem:[#allocation80_spill] sm:$0xff] }
 0x6ac   :  { %3618 = vmatpush.msrb.mxu0 %v5170_v20  ;;  %3658 = vmatpush.msrb.mxu2 %v5171_v12  ;;  %v11847_v20 = vld [vmem:[#allocation84_spill] sm:$0xff]  ;;  %v11848_v12 = vld [vmem:[#allocation82_spill] sm:$0xff] }
 0x6ad   :  { %3854 = vmatpush.msrb.mxu1 %v11805_v49  ;;  %3894 = vmatpush.msrb.mxu3 %v11806_v43  ;;  %v11849_v49 = vld [vmem:[#allocation86_spill] sm:$0xff]  ;;  %v11850_v43 = vld [vmem:[#allocation83_spill] sm:$0xff] }
 0x6ae   :  { %3619 = vmatpush.msrb.mxu0 %v5172_v58  ;;  %3659 = vmatpush.msrb.mxu2 %v5173_v48  ;;  %v11851_v58 = vld [vmem:[#allocation88_spill] sm:$0xff]  ;;  %v11852_v48 = vld [vmem:[#allocation57_spill] sm:$0xff] }
 0x6af   :  { %3855 = vmatpush.msrb.mxu1 %v11807_v21  ;;  %3895 = vmatpush.msrb.mxu3 %v11808_v51  ;;  %v11853_v21 = vld [vmem:[#allocation58_spill] sm:$0xff]  ;;  %v11854_v51 = vld [vmem:[#allocation85_spill] sm:$0xff] }
 0x6b0   :  { %3620 = vmatpush.msrb.mxu0 %v5174_v18  ;;  %3660 = vmatpush.msrb.mxu2 %v5175_v14  ;;  %v11855_v18 = vld [vmem:[#allocation60_spill] sm:$0xff]  ;;  %v11856_v14 = vld [vmem:[#allocation89_spill] sm:$0xff] }
 0x6b1   :  { %3856 = vmatpush.msrb.mxu1 %v11809_v61  ;;  %3896 = vmatpush.msrb.mxu3 %v11810_v6  ;;  %v11857_v61 = vld [vmem:[#allocation61_spill] sm:$0xff]  ;;  %v11858_v6 = vld [vmem:[#allocation87_spill] sm:$0xff] }
 0x6b2   :  { %3621 = vmatpush.msrb.mxu0 %v5176_v47  ;;  %3661 = vmatpush.msrb.mxu2 %v5177_v56  ;;  %v11859_v47 = vld [vmem:[#allocation90_spill] sm:$0xff]  ;;  %v11860_v56 = vld [vmem:[#allocation92_spill] sm:$0xff] }
 0x6b3   :  { %3857 = vmatpush.msrb.mxu1 %v11811_v30  ;;  %3897 = vmatpush.msrb.mxu3 %v11812_v29  ;;  %v11861_v30 = vld [vmem:[#allocation91_spill] sm:$0xff]  ;;  %v11862_v29 = vld [vmem:[#allocation93_spill] sm:$0xff] }
 0x6b4   :  { %3622 = vmatpush.msrb.mxu0 %v5178_v24  ;;  %3662 = vmatpush.msrb.mxu2 %v5179_v46  ;;  %v11863_v24 = vld [vmem:[#allocation95_spill] sm:$0xff]  ;;  %v11864_v46 = vld [vmem:[#allocation94_spill] sm:$0xff] }
 0x6b5   :  { %3858 = vmatpush.msrb.mxu1 %v11813_v34  ;;  %3898 = vmatpush.msrb.mxu3 %v11814_v19  ;;  %v11865_v34 = vld [vmem:[#allocation96_spill] sm:$0xff]  ;;  %v11866_v19 = vld [vmem:[#allocation97_spill] sm:$0xff] }
 0x6b6   :  { %3623 = vmatpush.msrb.mxu0 %v5180_v36  ;;  %3663 = vmatpush.msrb.mxu2 %v5181_v52  ;;  %v11867_v36 = vld [vmem:[#allocation98_spill] sm:$0xff]  ;;  %v11868_v52 = vld [vmem:[#allocation99_spill] sm:$0xff] }
 0x6b7   :  { %3859 = vmatpush.msrb.mxu1 %v11815_v54  ;;  %3899 = vmatpush.msrb.mxu3 %v11816_v59  ;;  %v11869_v54 = vld [vmem:[#allocation100_spill] sm:$0xff]  ;;  %v11870_v59 = vld [vmem:[#allocation101_spill] sm:$0xff] }
 0x6b8   :  { %3624 = vmatpush.msrb.mxu0 %v5182_v0  ;;  %3664 = vmatpush.msrb.mxu2 %v5183_v1  ;;  %v11871_v0 = vld [vmem:[#allocation102_spill] sm:$0xff]  ;;  %v11872_v1 = vld [vmem:[#allocation103_spill] sm:$0xff] }
 0x6b9   :  { %3860 = vmatpush.msrb.mxu1 %v11817_v13  ;;  %3900 = vmatpush.msrb.mxu3 %v11818_v3  ;;  %v11873_v13 = vld [vmem:[#allocation104_spill] sm:$0xff]  ;;  %v11874_v3 = vld [vmem:[#allocation107_spill] sm:$0xff] }
 0x6ba   :  { %3625 = vmatpush.msrb.mxu0 %v5184_v28  ;;  %3665 = vmatpush.msrb.mxu2 %v5185_v8  ;;  %v11875_v28 = vld [vmem:[#allocation108_spill] sm:$0xff]  ;;  %v11876_v8 = vld [vmem:[#allocation109_spill] sm:$0xff] }
 0x6bb   :  { %3626 = vmatmul.f32.vlgmr.msrb.gmra.mxu0 %v9630_v41  ;;  %3666 = vmatmul.f32.vlgmr.msrb.gmra.mxu2 %v9630_v41  ;;  %v11829_v41 = vld [vmem:[#allocation169_spill] sm:$0xff] }
 0x6bc   :  { %3861 = vmatpush.msrb.mxu1 %v11819_v37  ;;  %3901 = vmatpush.msrb.mxu3 %v11820_v10  ;;  %v11877_v37 = vld [vmem:[#allocation110_spill] sm:$0xff]  ;;  %v11878_v10 = vld [vmem:[#allocation111_spill] sm:$0xff] }
 0x6bd   :  { %3753 = vmatpush.msra.mxu0 %v11821_v7  ;;  %3793 = vmatpush.msra.mxu2 %v11822_v15  ;;  %v11879_v7 = vld [vmem:[#allocation112_spill] sm:$0xff]  ;;  %v11880_v15 = vld [vmem:[#allocation113_spill] sm:$0xff] }
 0x6be   :  { %3862 = vmatpush.msrb.mxu1 %v11823_v62  ;;  %3902 = vmatpush.msrb.mxu3 %v11824_v38  ;;  %v11881_v62 = vld [vmem:[#allocation114_spill] sm:$0xff]  ;;  %v11882_v38 = vld [vmem:[#allocation117_spill] sm:$0xff] }
 0x6bf   :  { %3754 = vmatpush.msra.mxu0 %v11825_v32  ;;  %3794 = vmatpush.msra.mxu2 %v11826_v53  ;;  %v11883_v32 = vld [vmem:[#allocation19_spill] sm:$0xff]  ;;  %v11884_v53 = vld [vmem:[#allocation106_spill] sm:$0xff] }
 0x6c0   :  { %3863 = vmatpush.msrb.mxu1 %v11827_v57  ;;  %3903 = vmatpush.msrb.mxu3 %v11828_v35  ;;  %v11885_v57 = vld [vmem:[#allocation22_spill] sm:$0xff]  ;;  %v11886_v35 = vld [vmem:[#allocation20_spill] sm:$0xff] }
 0x6c1   :  { %3755 = vmatpush.msra.mxu0 %v11829_v41  ;;  %3795 = vmatpush.msra.mxu2 %v11830_v33  ;;  %v11887_v41 = vld [vmem:[#allocation21_spill] sm:$0xff]  ;;  %v11888_v33 = vld [vmem:[#allocation23_spill] sm:$0xff] }
 0x6c2   :  { %3864 = vmatpush.msrb.mxu1 %v11831_v5  ;;  %3904 = vmatpush.msrb.mxu3 %v11832_v40  ;;  %v11889_v5 = vld [vmem:[#allocation26_spill] sm:$0xff]  ;;  %v11890_v40 = vld [vmem:[#allocation24_spill] sm:$0xff] }
 0x6c3   :  { %3756 = vmatpush.msra.mxu0 %v11833_v63  ;;  %3796 = vmatpush.msra.mxu2 %v11834_v55  ;;  %v11891_v63 = vld [vmem:[#allocation28_spill] sm:$0xff]  ;;  %v11892_v55 = vld [vmem:[#allocation25_spill] sm:$0xff] }
 0x6c4   :  { %3865 = vmatpush.msrb.mxu1 %v11835_v44  ;;  %3905 = vmatpush.msrb.mxu3 %v11836_v11  ;;  %v11893_v44 = vld [vmem:[#allocation30_spill] sm:$0xff]  ;;  %v11894_v11 = vld [vmem:[#allocation27_spill] sm:$0xff] }
 0x6c5   :  { %3757 = vmatpush.msra.mxu0 %v11837_v17  ;;  %3797 = vmatpush.msra.mxu2 %v11838_v23  ;;  %v11895_v23 = vld [vmem:[#allocation74_spill] sm:$0xff] }
 0x6c6   :  { %3866 = vmatpush.msrb.mxu1 %v11839_v27  ;;  %3906 = vmatpush.msrb.mxu3 %v11840_v45  ;;  %v11896_v45 = vld [vmem:[#allocation32_spill] sm:$0xff] }
 0x6c7   :  { %3758 = vmatpush.msra.mxu0 %v11841_v9  ;;  %3798 = vmatpush.msra.mxu2 %v11842_v42  ;;  %v11897_v9 = vld [vmem:[#allocation29_spill] sm:$0xff]  ;;  %v3342_v42 = vpop.f32.mrf.mxu1 }
 0x6c8   :  { %3867 = vmatpush.msrb.mxu1 %v11843_v31  ;;  %3907 = vmatpush.msrb.mxu3 %v11844_v50  ;;  %v11898_v50 = vld [vmem:[#allocation34_spill] sm:$0xff] }
 0x6c9   :  { %3759 = vmatpush.msra.mxu0 %v11845_v25  ;;  %3799 = vmatpush.msra.mxu2 %v11846_v16  ;;  %v11899_v25 = vld [vmem:[#allocation31_spill] sm:$0xff] }
 0x6ca   :  { %3868 = vmatpush.msrb.mxu1 %v11847_v20  ;;  %3908 = vmatpush.msrb.mxu3 %v11848_v12  ;;  %v11900_v12 = vld [vmem:[#allocation79_spill] sm:$0xff] }
 0x6cb   :  { %3760 = vmatpush.msra.mxu0 %v11849_v49  ;;  %3800 = vmatpush.msra.mxu2 %v11850_v43  ;;  %v3382_v43 = vpop.f32.mrf.mxu3 }
 0x6cd   :  { %3761 = vmatpush.msra.mxu0 %v11851_v58  ;;  %3801 = vmatpush.msra.mxu2 %v11852_v48 }
 0x6cf   :  { %3762 = vmatpush.msra.mxu0 %v11853_v21  ;;  %3802 = vmatpush.msra.mxu2 %v11854_v51 }
 0x6d1   :  { %3763 = vmatpush.msra.mxu0 %v11855_v18  ;;  %3803 = vmatpush.msra.mxu2 %v11856_v14  ;;  %v11901_v14 = vld [vmem:[#allocation76_spill] sm:$0xff] }
 0x6d3   :  { %3764 = vmatpush.msra.mxu0 %v11857_v61  ;;  %3804 = vmatpush.msra.mxu2 %v11858_v6  ;;  %v3462_v6 = vpop.f32.mrf.mxu3 }
 0x6d5   :  { %3765 = vmatpush.msra.mxu0 %v11859_v47  ;;  %3805 = vmatpush.msra.mxu2 %v11860_v56 }
 0x6d7   :  { %3766 = vmatpush.msra.mxu0 %v11861_v30  ;;  %3806 = vmatpush.msra.mxu2 %v11862_v29 }
 0x6d9   :  { %3767 = vmatpush.msra.mxu0 %v11863_v24  ;;  %3807 = vmatpush.msra.mxu2 %v11864_v46 }
 0x6db   :  { %3768 = vmatpush.msra.mxu0 %v11865_v34  ;;  %3808 = vmatpush.msra.mxu2 %v11866_v19  ;;  %v11902_v19 = vld [vmem:[#allocation81_spill] sm:$0xff] }
 0x6dd   :  { %3833 = vmatpush.msrb.mxu0 %v11867_v36  ;;  %3873 = vmatpush.msrb.mxu2 %v11868_v52 }
 0x6df   :  { %3834 = vmatpush.msrb.mxu0 %v11869_v54  ;;  %3874 = vmatpush.msrb.mxu2 %v11870_v59  ;;  %v3422_v54 = vpop.f32.mrf.mxu1 }
 0x6e1   :  { %3835 = vmatpush.msrb.mxu0 %v11871_v0  ;;  %3875 = vmatpush.msrb.mxu2 %v11872_v1 }
 0x6e3   :  { %3836 = vmatpush.msrb.mxu0 %v11873_v13  ;;  %3876 = vmatpush.msrb.mxu2 %v11874_v3 }
 0x6e5   :  { %3837 = vmatpush.msrb.mxu0 %v11875_v28  ;;  %3877 = vmatpush.msrb.mxu2 %v11876_v8 }
 0x6e7   :  { %3838 = vmatpush.msrb.mxu0 %v11877_v37  ;;  %3878 = vmatpush.msrb.mxu2 %v11878_v10 }
 0x6e9   :  { %3839 = vmatpush.msrb.mxu0 %v11879_v7  ;;  %3879 = vmatpush.msrb.mxu2 %v11880_v15 }
 0x6eb   :  { %3840 = vmatpush.msrb.mxu0 %v11881_v62  ;;  %3880 = vmatpush.msrb.mxu2 %v11882_v38 }
 0x6ed   :  { %3841 = vmatpush.msrb.mxu0 %v11883_v32  ;;  %3881 = vmatpush.msrb.mxu2 %v11884_v53 }
 0x6ef   :  { %3842 = vmatpush.msrb.mxu0 %v11885_v57  ;;  %3882 = vmatpush.msrb.mxu2 %v11886_v35 }
 0x6f1   :  { %3843 = vmatpush.msrb.mxu0 %v11887_v41  ;;  %3883 = vmatpush.msrb.mxu2 %v11888_v33 }
 0x6f3   :  { %3844 = vmatpush.msrb.mxu0 %v11889_v5  ;;  %3884 = vmatpush.msrb.mxu2 %v11890_v40 }
 0x6f4   :  { %v3322_v17 = vpop.f32.mrf.mxu0 }
 0x6f5   :  { %3845 = vmatpush.msrb.mxu0 %v11891_v63  ;;  %3885 = vmatpush.msrb.mxu2 %v11892_v55  ;;  %v3323_v27 = vadd.f32 %v3322_v17, %v11895_v23 }
 0x6f6   :  { %v3567_v63 = vpop.f32.mrf.mxu1 }
 0x6f7   :  { %3846 = vmatpush.msrb.mxu0 %v11893_v44  ;;  %3886 = vmatpush.msrb.mxu2 %v11894_v11  ;;  %v3343_v31 = vadd.f32 %v3342_v42, %v3323_v27 }
 0x6f9   :  { %3847 = vmatpush.msrb.mxu0 %v11896_v45  ;;  %3887 = vmatpush.msrb.mxu2 %v11897_v9  ;;  %v4076_v16 = vmul.f32 -1.442695, %v3343_v31 }
 0x6fa   :  { %v3362_v20 = vpop.f32.mrf.mxu2 }
 0x6fb   :  { %3848 = vmatpush.msrb.mxu0 %v11898_v50  ;;  %3888 = vmatpush.msrb.mxu2 %v11899_v25  ;;  %4306 = vpow2.f32 %v4076_v16  ;;  %v3363_v49 = vadd.f32 %v3362_v20, %v11900_v12 }
 0x6fd   :  { %v3383_v58 = vadd.f32 %v3382_v43, %v3363_v49 }
 0x6fe   :  { %v3607_v31 = vpop.f32.mrf.mxu3 }
 0x6ff   :  { %v4077_v48 = vmul.f32 -1.442695, %v3383_v58  ;;  %v3402_v29 = vpop.f32.mrf.mxu0 }
 0x700   :  { %v3403_v36 = vadd.f32 %v3402_v29, %v11902_v19 }
 0x701   :  { %v4307_v21 = vpop.eup %4306  ;;  %4308 = vpow2.f32 %v4077_v48 }
 0x702   :  { %v3468_v51 = vadd.f32 1.0, %v4307_v21  ;;  %v3423_v59 = vadd.f32 %v3422_v54, %v3403_v36 }
 0x704   :  { %4310 = vrcp.f32 %v3468_v51  ;;  %v3480_v8 = vand.u32 2147483648, %v3468_v51  ;;  %vm3474_vm13 = vweird.f32 %v3468_v51  ;;  %v3478_v7 = vand.u32 2147483647, %v3468_v51 }
 0x706   :  { %v3442_v18 = vpop.f32.mrf.mxu2  ;;  %v3481_v57 = vor.u32 1.1754944e-38, %v3480_v8  ;;  %vm3479_vm1 = vcmp.eq.f32.partialorder %v3478_v7, 8.507059e+37 }
 0x707   :  { %v3443_v61 = vadd.f32 %v3442_v18, %v11901_v14  ;;  %v4309_v47 = vpop.eup %4308 }
 0x708   :  { %v3487_v30 = vadd.f32 1.0, %v4309_v47 }
 0x709   :  { %v3463_v56 = vadd.f32 %v3462_v6, %v3443_v61 }
 0x70a   :  { %v4311_v46 = vpop.eup %4310  ;;  %4312 = vrcp.f32 %v3487_v30  ;;  %v3499_v15 = vand.u32 2147483648, %v3487_v30  ;;  %v3497_v32 = vand.u32 2147483647, %v3487_v30  ;;  %vm3493_vm0 = vweird.f32 %v3487_v30 }
 0x70b   :  { %v4078_v24 = vmul.f32 -1.442695, %v3463_v56  ;;  %v3470_v34 = vmul.f32 %v4311_v46, %v3468_v51  ;;  %vm3475_vm12 = vweird.f32 %v4311_v46 }
 0x70c   :  { %vm3476_vm14 = vmor %vm3474_vm13, %vm3475_vm12  ;;  %v3500_v33 = vor.u32 1.1754944e-38, %v3499_v15  ;;  %vm3498_vm3 = vcmp.eq.f32.partialorder %v3497_v32, 8.507059e+37 }
 0x70d   :  { %4314 = vpow2.f32 %v4078_v24  ;;  %v3471_v52 = vsub.f32 1.0, %v3470_v34 }
 0x70e   :  { %4316 = vtanh.f32 %v3423_v59 }
 0x70f   :  { %v3472_v0 = vmul.f32 %v4311_v46, %v3471_v52 }
 0x710   :  { %v4313_v1 = vpop.eup %4312 }
 0x711   :  { %v3489_v3 = vmul.f32 %v4313_v1, %v3487_v30  ;;  %v3473_v28 = vadd.f32 %v4311_v46, %v3472_v0  ;;  %vm3494_vm15 = vweird.f32 %v4313_v1  ;;  %v3687_v0 = vpop.f32.mrf.mxu3 }
 0x712   :  { %vm3495_vm2 = vmor %vm3493_vm0, %vm3494_vm15 }
 0x713   :  { %v4315_v13 = vpop.eup %4314  ;;  %v3490_v10 = vsub.f32 1.0, %v3489_v3  ;;  %v3477_v38 = vsel %vm3476_vm14, %v4311_v46, %v3473_v28  ;;  %v3647_v28 = vpop.f32.mrf.mxu1 }
 0x714   :  { %v3507_v37 = vadd.f32 1.0, %v4315_v13  ;;  %v3482_v5 = vsel %vm3479_vm1, %v3481_v57, %v3477_v38  ;;  %v4317_v40 = vpop.eup %4316 }
 0x715   :  { %v3491_v62 = vmul.f32 %v4313_v1, %v3490_v10  ;;  %v3524_v45 = vmul.f32 %v4317_v40, %v3482_v5 }
 0x716   :  { %4318 = vrcp.f32 %v3507_v37  ;;  %v3519_v43 = vand.u32 2147483648, %v3507_v37  ;;  %v3517_v48 = vand.u32 2147483647, %v3507_v37  ;;  %vm3513_vm5 = vweird.f32 %v3507_v37 }
 0x717   :  { %v3492_v41 = vadd.f32 %v4313_v1, %v3491_v62 }
 0x718   :  { %v3547_v53 = vpop.f32.mrf.mxu0  ;;  %vm3518_vm7 = vcmp.eq.f32.partialorder %v3517_v48, 8.507059e+37  ;;  %v3990_v48 = vld [vmem:[#allocation11 + $0x70] sm:$0xff] }
 0x719   :  { %v3548_v35 = vadd.f32 %v3547_v53, %v11152_v4  ;;  %v3496_v55 = vsel %vm3495_vm2, %v4313_v1, %v3492_v41 }
 0x71a   :  { %v3501_v11 = vsel %vm3498_vm3, %v3500_v33, %v3496_v55 }
 0x71b   :  { %v3568_v17 = vadd.f32 %v3567_v63, %v3548_v35  ;;  %v3523_v27 = vmul.f32 %v3501_v11, %v9498_v22 }
 0x71c   :  { %v4319_v44 = vpop.eup %4318 }
 0x71d   :  { %v3509_v9 = vmul.f32 %v4319_v44, %v3507_v37  ;;  %v9755_v50 = vadd.f32 %v3524_v45, %v3523_v27  ;;  %v4079_v16 = vmul.f32 -1.442695, %v3568_v17  ;;  %vm3514_vm4 = vweird.f32 %v4319_v44 }
 0x71e   :  { %v3587_v42 = vpop.f32.mrf.mxu2  ;;  %vm3515_vm6 = vmor %vm3513_vm5, %vm3514_vm4 }
 0x71f   :  { %v3588_v4 = vadd.f32 %v3587_v42, %v10739_v60  ;;  %v3510_v25 = vsub.f32 1.0, %v3509_v9  ;;  %4320 = vtanh.f32 %v9755_v50  ;;  %v3520_v60 = vor.u32 1.1754944e-38, %v3519_v43 }
 0x720   :  { %4322 = vpow2.f32 %v4079_v16 }
 0x721   :  { %v3608_v20 = vadd.f32 %v3607_v31, %v3588_v4  ;;  %v3511_v49 = vmul.f32 %v4319_v44, %v3510_v25 }
 0x723   :  { %v4080_v58 = vmul.f32 -1.442695, %v3608_v20  ;;  %v3512_v22 = vadd.f32 %v4319_v44, %v3511_v49 }
 0x725   :  { %4324 = vpow2.f32 %v4080_v58  ;;  %v3516_v21 = vsel %vm3515_vm6, %v4319_v44, %v3512_v22  ;;  %v4321_v51 = vpop.eup %4320  ;;  %v3989_v22 = vld [vmem:[#allocation11 + $0x68] sm:$0xff] }
 0x726   :  { %v3521_v18 = vsel %vm3518_vm7, %v3520_v60, %v3516_v21  ;;  %v4323_v6 = vpop.eup %4322  ;;  %v3988_v21 = vld [vmem:[#allocation11 + $0x60] sm:$0xff]  ;;  %v3987_v60 = vld [vmem:[#allocation11 + $0x58] sm:$0xff] }
 0x727   :  { %v3527_v61 = vmul.f32 %v4321_v51, %v3521_v18  ;;  %v3693_v56 = vadd.f32 1.0, %v4323_v6  ;;  %v3986_v51 = vld [vmem:[#allocation11 + $0x50] sm:$0xff]  ;;  %v3985_v6 = vld [vmem:[#allocation11 + $0x48] sm:$0xff] }
 0x729   :  { %3789 = vmatmul.f32.vlgmr.msra.gmra.mxu1 %v3527_v61  ;;  %3829 = vmatmul.f32.vlgmr.msra.gmra.mxu3 %v3527_v61  ;;  %4326 = vrcp.f32 %v3693_v56  ;;  %vm3699_vm10 = vweird.f32 %v3693_v56 }
 0x72b   :  { %v4325_v47 = vpop.eup %4324 }
 0x72c   :  { %v3712_v30 = vadd.f32 1.0, %v4325_v47 }
 0x72e   :  { %4328 = vrcp.f32 %v3712_v30  ;;  %v3724_v38 = vand.u32 2147483648, %v3712_v30  ;;  %vm3718_vm11 = vweird.f32 %v3712_v30  ;;  %v3722_v32 = vand.u32 2147483647, %v3712_v30 }
 0x72f   :  { %v4327_v29 = vpop.eup %4326 }
 0x730   :  { %v3695_v46 = vmul.f32 %v4327_v29, %v3693_v56  ;;  %vm3700_vm8 = vweird.f32 %v4327_v29  ;;  %v3725_v5 = vor.u32 1.1754944e-38, %v3724_v38  ;;  %vm3723_vm15 = vcmp.eq.f32.partialorder %v3722_v32, 8.507059e+37 }
 0x731   :  { %3869 = vmatmul.f32.vlgmr.msrb.gmra.mxu1 %v3527_v61  ;;  %3909 = vmatmul.f32.vlgmr.msrb.gmra.mxu3 %v3527_v61  ;;  %vm3701_vm12 = vmor %vm3699_vm10, %vm3700_vm8 }
 0x732   :  { %v3696_v1 = vsub.f32 1.0, %v3695_v46 }
 0x734   :  { %v4329_v24 = vpop.eup %4328  ;;  %v3697_v7 = vmul.f32 %v4327_v29, %v3696_v1  ;;  %v3979_v1 = vld [vmem:[#allocation11 + $0x18] sm:$0xff] }
 0x735   :  { %v3714_v34 = vmul.f32 %v4329_v24, %v3712_v30  ;;  %vm3719_vm9 = vweird.f32 %v4329_v24  ;;  %v3984_v30 = vld [vmem:[#allocation11 + $0x40] sm:$0xff] }
 0x736   :  { %v3698_v15 = vadd.f32 %v4327_v29, %v3697_v7  ;;  %vm3720_vm13 = vmor %vm3718_vm11, %vm3719_vm9 }
 0x737   :  { %v3715_v13 = vsub.f32 1.0, %v3714_v34 }
 0x738   :  { %v3627_v36 = vpop.f32.mrf.mxu0  ;;  %v3702_v57 = vsel %vm3701_vm12, %v4327_v29, %v3698_v15  ;;  %v3976_v15 = vld [vmem:[#allocation11] sm:$0xff] }
 0x739   :  { %v3628_v54 = vadd.f32 %v3627_v36, %v11751_v39  ;;  %v3716_v10 = vmul.f32 %v4329_v24, %v3715_v13  ;;  %v3705_v39 = vand.u32 2147483648, %v3693_v56 }
 0x73b   :  { %v3648_v8 = vadd.f32 %v3647_v28, %v3628_v54  ;;  %v3717_v62 = vadd.f32 %v4329_v24, %v3716_v10  ;;  %v3706_v40 = vor.u32 1.1754944e-38, %v3705_v39  ;;  %v3977_v10 = vld [vmem:[#allocation11 + $0x8] sm:$0xff] }
 0x73d   :  { %v3721_v35 = vsel %vm3720_vm13, %v4329_v24, %v3717_v62  ;;  %v3983_v24 = vld [vmem:[#allocation11 + $0x38] sm:$0xff] }
 0x73e   :  { %v3667_v52 = vpop.f32.mrf.mxu2  ;;  %v3726_v55 = vsel %vm3723_vm15, %v3725_v5, %v3721_v35 }
 0x73f   :  { %v3668_v59 = vadd.f32 %v3667_v52, %v11752_v26  ;;  %v3703_v26 = vand.u32 2147483647, %v3693_v56  ;;  %v3748_v11 = vmul.f32 %v3726_v55, %v9589_v2  ;;  %v3991_v2 = vld [vmem:[#allocation11 + $0x78] sm:$0xff]  ;;  %v3982_v52 = vld [vmem:[#allocation11 + $0x30] sm:$0xff] }
 0x741   :  { %v3688_v3 = vadd.f32 %v3687_v0, %v3668_v59  ;;  %vm3704_vm14 = vcmp.eq.f32.partialorder %v3703_v26, 8.507059e+37  ;;  %v3981_v59 = vld [vmem:[#allocation11 + $0x28] sm:$0xff]  ;;  %v3980_v0 = vld [vmem:[#allocation11 + $0x20] sm:$0xff] }
 0x742   :  { %v3707_v63 = vsel %vm3704_vm14, %v3706_v40, %v3702_v57 }
 0x743   :  { %v4081_v37 = vmul.f32 -1.442695, %v3688_v3  ;;  %v3978_v3 = vld [vmem:[#allocation11 + $0x10] sm:$0xff] }
 0x745   :  { %4330 = vpow2.f32 %v4081_v37 }
 0x746   :  { %4332 = vtanh.f32 %v3648_v8 }
 0x74b   :  { %v4331_v53 = vpop.eup %4330 }
 0x74c   :  { %v3732_v41 = vadd.f32 1.0, %v4331_v53  ;;  %v4333_v33 = vpop.eup %4332 }
 0x74d   :  { %v3749_v44 = vmul.f32 %v4333_v33, %v3707_v63 }
 0x74e   :  { %4334 = vrcp.f32 %v3732_v41  ;;  %v3744_v42 = vand.u32 2147483648, %v3732_v41  ;;  %v3742_v31 = vand.u32 2147483647, %v3732_v41  ;;  %vm3738_vm1 = vweird.f32 %v3732_v41 }
 0x74f   :  { %v3750_v27 = vadd.f32 %v3749_v44, %v3748_v11 }
 0x750   :  { %v3745_v16 = vor.u32 1.1754944e-38, %v3744_v42  ;;  %vm3743_vm3 = vcmp.eq.f32.partialorder %v3742_v31, 8.507059e+37 }
 0x751   :  { %4336 = vtanh.f32 %v3750_v27 }
 0x754   :  { %v4335_v17 = vpop.eup %4334 }
 0x755   :  { %v3734_v45 = vmul.f32 %v4335_v17, %v3732_v41  ;;  %vm3739_vm0 = vweird.f32 %v4335_v17 }
 0x756   :  { %vm3740_vm2 = vmor %vm3738_vm1, %vm3739_vm0 }
 0x757   :  { %v3735_v9 = vsub.f32 1.0, %v3734_v45  ;;  %v4337_v49 = vpop.eup %4336 }
 0x759   :  { %v3736_v4 = vmul.f32 %v4335_v17, %v3735_v9 }
 0x75b   :  { %v3737_v25 = vadd.f32 %v4335_v17, %v3736_v4 }
 0x75d   :  { %v3741_v20 = vsel %vm3740_vm2, %v4335_v17, %v3737_v25 }
 0x75e   :  { %v3746_v43 = vsel %vm3743_vm3, %v3745_v16, %v3741_v20 }
 0x75f   :  { %v3752_v58 = vmul.f32 %v4337_v49, %v3746_v43 }
 0x761   :  { %3769 = vmatmul.f32.vlgmr.msra.gmra.mxu0 %v3752_v58  ;;  %3809 = vmatmul.f32.vlgmr.msra.gmra.mxu2 %v3752_v58 }
 0x762   :  { %3996 = vmatpush.msra.mxu0 %v3991_v2 }
 0x764   :  { %3997 = vmatpush.msra.mxu0 %v3990_v48 }
 0x766   :  { %3998 = vmatpush.msra.mxu0 %v3989_v22 }
 0x768   :  { %3999 = vmatpush.msra.mxu0 %v3988_v21 }
 0x769   :  { %3849 = vmatmul.f32.vlgmr.msrb.gmra.mxu0 %v3752_v58  ;;  %3889 = vmatmul.f32.vlgmr.msrb.gmra.mxu2 %v3752_v58 }
 0x76a   :  { %4000 = vmatpush.msra.mxu0 %v3987_v60 }
 0x76c   :  { %4001 = vmatpush.msra.mxu0 %v3986_v51 }
 0x76e   :  { %4002 = vmatpush.msra.mxu0 %v3985_v6 }
 0x770   :  { %4003 = vmatpush.msra.mxu0 %v3984_v30 }
 0x772   :  { %4004 = vmatpush.msra.mxu0 %v3983_v24 }
 0x774   :  { %4005 = vmatpush.msra.mxu0 %v3982_v52 }
 0x776   :  { %4006 = vmatpush.msra.mxu0 %v3981_v59 }
 0x778   :  { %4007 = vmatpush.msra.mxu0 %v3980_v0 }
 0x77a   :  { %4008 = vmatpush.msra.mxu0 %v3979_v1 }
 0x77c   :  { %4009 = vmatpush.msra.mxu0 %v3978_v3 }
 0x77e   :  { %4010 = vmatpush.msra.mxu0 %v3977_v10 }
 0x780   :  { %4011 = vmatpush.msra.mxu0 %v3976_v15 }
 0x7a6   :  { %v3790_v47 = vpop.f32.mrf.mxu1 }
 0x7ac   :  { %v3830_v46 = vpop.f32.mrf.mxu3 }
 0x7ae   :  { %v3870_v41 = vpop.f32.mrf.mxu1 }
 0x7b4   :  { %v3910_v7 = vpop.f32.mrf.mxu3 }
 0x7de   :  { %v3770_v18 = vpop.f32.mrf.mxu0 }
 0x7df   :  { %v3771_v61 = vadd.f32 %v3770_v18, %v11895_v23 }
 0x7e1   :  { %v3791_v56 = vadd.f32 %v3790_v47, %v3771_v61 }
 0x7e3   :  { %v4082_v29 = vmul.f32 -1.442695, %v3791_v56 }
 0x7e4   :  { %v3810_v34 = vpop.f32.mrf.mxu2 }
 0x7e5   :  { %4338 = vpow2.f32 %v4082_v29  ;;  %v3811_v36 = vadd.f32 %v3810_v34, %v11900_v12 }
 0x7e6   :  { %v3850_v26 = vpop.f32.mrf.mxu0 }
 0x7e7   :  { %v3831_v54 = vadd.f32 %v3830_v46, %v3811_v36  ;;  %v3851_v57 = vadd.f32 %v3850_v26, %v11902_v19 }
 0x7e9   :  { %v4083_v23 = vmul.f32 -1.442695, %v3831_v54  ;;  %v3871_v40 = vadd.f32 %v3870_v41, %v3851_v57 }
 0x7eb   :  { %v4339_v13 = vpop.eup %4338  ;;  %4340 = vpow2.f32 %v4083_v23 }
 0x7ec   :  { %v3916_v28 = vadd.f32 1.0, %v4339_v13  ;;  %v3890_v8 = vpop.f32.mrf.mxu2 }
 0x7ed   :  { %v3891_v37 = vadd.f32 %v3890_v8, %v11901_v14 }
 0x7ee   :  { %4342 = vrcp.f32 %v3916_v28  ;;  %v3928_v11 = vand.u32 2147483648, %v3916_v28  ;;  %vm3922_vm5 = vweird.f32 %v3916_v28  ;;  %v3926_v27 = vand.u32 2147483647, %v3916_v28 }
 0x7ef   :  { %v3911_v12 = vadd.f32 %v3910_v7, %v3891_v37 }
 0x7f0   :  { %v3929_v4 = vor.u32 1.1754944e-38, %v3928_v11  ;;  %vm3927_vm9 = vcmp.eq.f32.partialorder %v3926_v27, 8.507059e+37 }
 0x7f1   :  { %v4341_v62 = vpop.eup %4340  ;;  %v4084_v38 = vmul.f32 -1.442695, %v3911_v12 }
 0x7f2   :  { %v3935_v39 = vadd.f32 1.0, %v4341_v62 }
 0x7f3   :  { %4344 = vpow2.f32 %v4084_v38 }
 0x7f4   :  { %v4343_v32 = vpop.eup %4342  ;;  %4346 = vrcp.f32 %v3935_v39  ;;  %v3947_v45 = vand.u32 2147483648, %v3935_v39  ;;  %v3945_v42 = vand.u32 2147483647, %v3935_v39  ;;  %vm3941_vm8 = vweird.f32 %v3935_v39 }
 0x7f5   :  { %v3918_v53 = vmul.f32 %v4343_v32, %v3916_v28  ;;  %vm3923_vm4 = vweird.f32 %v4343_v32 }
 0x7f6   :  { %vm3924_vm6 = vmor %vm3922_vm5, %vm3923_vm4  ;;  %v3948_v16 = vor.u32 1.1754944e-38, %v3947_v45  ;;  %vm3946_vm11 = vcmp.eq.f32.partialorder %v3945_v42, 8.507059e+37 }
 0x7f7   :  { %v3919_v35 = vsub.f32 1.0, %v3918_v53 }
 0x7f9   :  { %v4345_v14 = vpop.eup %4344  ;;  %v3920_v33 = vmul.f32 %v4343_v32, %v3919_v35 }
 0x7fa   :  { %v4347_v5 = vpop.eup %4346  ;;  %v3955_v63 = vadd.f32 1.0, %v4345_v14 }
 0x7fb   :  { %v3937_v55 = vmul.f32 %v4347_v5, %v3935_v39  ;;  %v3921_v44 = vadd.f32 %v4343_v32, %v3920_v33  ;;  %vm3942_vm7 = vweird.f32 %v4347_v5 }
 0x7fc   :  { %4348 = vrcp.f32 %v3955_v63  ;;  %vm3943_vm10 = vmor %vm3941_vm8, %vm3942_vm7  ;;  %v3967_v18 = vand.u32 2147483648, %v3955_v63  ;;  %vm3961_vm13 = vweird.f32 %v3955_v63  ;;  %v3965_v6 = vand.u32 2147483647, %v3955_v63 }
 0x7fd   :  { %v3938_v17 = vsub.f32 1.0, %v3937_v55  ;;  %4350 = vtanh.f32 %v3871_v40  ;;  %v3925_v19 = vsel %vm3924_vm6, %v4343_v32, %v3921_v44 }
 0x7fe   :  { %v3930_v20 = vsel %vm3927_vm9, %v3929_v4, %v3925_v19  ;;  %v3968_v56 = vor.u32 1.1754944e-38, %v3967_v18  ;;  %vm3966_vm15 = vcmp.eq.f32.partialorder %v3965_v6, 8.507059e+37 }
 0x7ff   :  { %v3939_v9 = vmul.f32 %v4347_v5, %v3938_v17 }
 0x801   :  { %v3940_v31 = vadd.f32 %v4347_v5, %v3939_v9 }
 0x802   :  { %v4349_v25 = vpop.eup %4348 }
 0x803   :  { %v3944_v49 = vsel %vm3943_vm10, %v4347_v5, %v3940_v31  ;;  %v3957_v43 = vmul.f32 %v4349_v25, %v3955_v63  ;;  %v4351_v58 = vpop.eup %4350  ;;  %vm3962_vm12 = vweird.f32 %v4349_v25 }
 0x804   :  { %v3949_v2 = vsel %vm3946_vm11, %v3948_v16, %v3944_v49  ;;  %v3972_v22 = vmul.f32 %v4351_v58, %v3930_v20  ;;  %vm3963_vm14 = vmor %vm3961_vm13, %vm3962_vm12 }
 0x805   :  { %v3971_v48 = vmul.f32 %v3949_v2, %v9755_v50  ;;  %v3958_v21 = vsub.f32 1.0, %v3957_v43  ;;  %v4097_v50 = vld [vmem:[%s9778_s6] ss:$0 sm:$0xff] }
 0x807   :  { %v3973_v60 = vadd.f32 %v3972_v22, %v3971_v48  ;;  %v3959_v51 = vmul.f32 %v4349_v25, %v3958_v21 }
 0x809   :  { %4352 = vtanh.f32 %v3973_v60  ;;  %v3960_v61 = vadd.f32 %v4349_v25, %v3959_v51 }
 0x80b   :  { %v3964_v47 = vsel %vm3963_vm14, %v4349_v25, %v3960_v61 }
 0x80c   :  { %v3969_v29 = vsel %vm3966_vm15, %v3968_v56, %v3964_v47 }
 0x80f   :  { %v4353_v30 = vpop.eup %4352 }
 0x810   :  { %v3975_v24 = vmul.f32 %v4353_v30, %v3969_v29 }
 0x812   :  { %4012 = vmatmul.f32.vlgmr.msra.gmra.mxu0 %v3975_v24 }
 0x88f   :  { %v4013_v46 = vpop.f32.mrf.mxu0 }
 0x890   :  { %v4014_v34 = vadd.f32 %v4097_v50, %v4013_v46 }
 0x892   :  { %4016 = vst [vmem:[#allocation13] sm:$0xff] %v4014_v34 }
 0x893   :  { %4027 = dma.vmem_to_hbm [thread:$0]  %s4023_s9, 128, %s4025_s12, [#allocation4]  }
 0x894   :  { %5362 = dma.done.wait [#allocation4], 128  }
 0x895   :  { %5363 = vsyncadd [#allocation4], 4294967168 }
 0x896   :  { %4032 = vsyncpa [#allocation3], 1 }
 0x897   :  { %4033 = vsyncpa [#allocation6], 1 }
 0x898   :  { %4034 = vsyncpa [#allocation9], 1 }
 0x899   :  { %4035 = vsyncpa [#allocation12], 1 }
 0x89a   :  { %4036 = vsyncpa [#allocation4], 1 }

</bundles_post_ra>
